<compile_context>
chip_gen: v6e
topology: v6e:2x2x1
jax: 0.10.0
libtpu: 0.0.40
codegen_flags: <defaults>
</compile_context>

<pallas_src>
import functools

import jax
import jax.numpy as jnp
import numpy as np
from jax.experimental import pallas as pl
from jax.experimental.pallas import tpu as pltpu

# Make XLA-side reference matmuls full f32 so they match Mosaic's f32 matmul.
jax.config.update("jax_default_matmul_precision", "highest")

# ---------------- model hyper-parameters (Seq2SeqAttrs) ----------------
NUM_NODES = 16
RNN_UNITS = 32
NUM_RNN_LAYERS = 2
OUTPUT_DIM = 1
MAX_DIFFUSION_STEP = 2
NUM_MAT = MAX_DIFFUSION_STEP + 1          # supports * K + 1 (single support)
BATCH = 2
HIDDEN_STATE_SIZE = NUM_NODES * RNN_UNITS


# ============================ Pallas kernel ============================

def _decoder_kernel(xh0_ref, h_ref, s_ref,
                    w0_ref, whc0_ref, b0_ref,
                    w1x_ref, w1h_ref, whc1_ref, b1_ref,
                    wp_ref, bp_ref,
                    out_ref, hid_ref, *, num_mat, units):
    """Fused DCRNN decoder forward (2 DCGRU layers + projection), batch folded.

    xh0_ref : (B*N, Din0 + U)  layer-0 input features [x | h0_prev]
    h_ref   : (L, B*N, U)      previous hidden states
    s_ref   : (B*N, B*N)       block-diagonal diffusion support
    w0_ref  : (M, Din0+U, 3U)  layer-0 per-step [W_ru | W_c(x-rows only)]
    whc0/1  : (M, U, U)        candidate h-feature weights per diffusion step
    b0/b1   : (1, 3U)          [b_ru | b_c]
    w1x_ref : (M, U, 3U)       layer-1 input-feature rows of the packed weight
    w1h_ref : (M, U, 3U)       layer-1 hidden-feature rows (candidate cols = 0)
    wp/bp   : (U, P), (1, P)   projection
    """
    f32 = jnp.float32
    s = s_ref[...]

    def diffuse(v):
        # Chebyshev-style diffusion: [v, S v, 2 S (S v) - v, ...]
        feats = [v]
        if num_mat > 1:
            v1 = jnp.dot(s, v, preferred_element_type=f32)
            feats.append(v1)
            vm2, vm1 = v, v1
            for _ in range(2, num_mat):
                v2 = 2.0 * jnp.dot(s, vm1, preferred_element_type=f32) - vm2
                feats.append(v2)
                vm2, vm1 = vm1, v2
        return feats

    def apply_stacked(feats, w_ref):
        acc = jnp.dot(feats[0], w_ref[0], preferred_element_type=f32)
        for k in range(1, num_mat):
            acc = acc + jnp.dot(feats[k], w_ref[k], preferred_element_type=f32)
        return acc

    def finish_cell(pre, h, whc_ref):
        # pre: (B*N, 3U) = [r | u | candidate-x-contribution (+ b_c)]
        ru = jax.nn.sigmoid(pre[:, :2 * units])
        r = ru[:, :units]
        u = ru[:, units:]
        cx = pre[:, 2 * units:]
        rh_feats = diffuse(r * h)
        c = jnp.tanh(cx + apply_stacked(rh_feats, whc_ref))
        return u * h + (1.0 - u) * c

    # ---------------- layer 0 ([x | h0] pre-concatenated in glue) ----------
    h0_prev = h_ref[0]
    xh0_feats = diffuse(xh0_ref[...])
    pre0 = apply_stacked(xh0_feats, w0_ref) + b0_ref[...]
    h0_new = finish_cell(pre0, h0_prev, whc0_ref)
    hid_ref[0] = h0_new

    # ---------------- layer 1 (input = h0_new, state = h1_prev) ------------
    h1_prev = h_ref[1]
    a_feats = diffuse(h0_new)          # diffusion of layer-1 inputs
    b_feats = diffuse(h1_prev)         # diffusion of layer-1 state
    pre1 = (apply_stacked(a_feats, w1x_ref)
            + apply_stacked(b_feats, w1h_ref)
            + b1_ref[...])
    h1_new = finish_cell(pre1, h1_prev, whc1_ref)
    hid_ref[1] = h1_new

    # ---------------- output projection ------------------------------------
    out_ref[...] = (jnp.dot(h1_new, wp_ref[...], preferred_element_type=f32)
                    + bp_ref[...])


def fused_decoder_step(xh0, h, s_bd, p0, p1, w_proj, b_proj):
    """Single-invocation fused decoder. Shapes are full blocks, grid=(1,)."""
    bn = xh0.shape[0]
    u = h.shape[-1]

    def full(shape):
        nd = len(shape)
        return pl.BlockSpec(shape, lambda i, nd=nd: (0,) * nd)

    kernel = functools.partial(_decoder_kernel, num_mat=NUM_MAT, units=u)
    return pl.pallas_call(
        kernel,
        out_shape=(jax.ShapeDtypeStruct((bn, OUTPUT_DIM), jnp.float32),
                   jax.ShapeDtypeStruct((NUM_RNN_LAYERS, bn, u), jnp.float32)),
        grid=(1,),
        in_specs=[
            full(xh0.shape), full(h.shape), full(s_bd.shape),
            full(p0["w_xh"].shape), full(p0["whc"].shape), full(p0["b_big"].shape),
            full(p1["w_x"].shape), full(p1["w_h"].shape),
            full(p1["whc"].shape), full(p1["b_big"].shape),
            full(w_proj.shape), full(b_proj.shape),
        ],
        out_specs=(full((bn, OUTPUT_DIM)),
                   full((NUM_RNN_LAYERS, bn, u))),
        compiler_params=pltpu.CompilerParams(
            dimension_semantics=("arbitrary",)),
    )(xh0, h, s_bd,
      p0["w_xh"], p0["whc"], p0["b_big"],
      p1["w_x"], p1["w_h"], p1["whc"], p1["b_big"],
      w_proj, b_proj)


# ============================ JAX glue ============================

def random_walk_support_T(adj):
    """support = (D^-1 (A + I))^T  -- DCGRUCell random-walk matrix, transposed."""
    n = adj.shape[0]
    a = adj + jnp.eye(n, dtype=adj.dtype)
    d = jnp.sum(a, axis=1)
    d_inv = jnp.where(d > 0.0, 1.0 / d, 0.0)
    return (d_inv[:, None] * a).T


def xavier_normal(key, shape):
    std = (2.0 / (shape[0] + shape[1])) ** 0.5
    return std * jax.random.normal(key, shape, dtype=jnp.float32)


def _build_kernel_weights(w_ru_full, w_c_full, b_ru, b_c, din, units, num_mat):
    """Repack PyTorch gconv weights (rows f*num_mat+k) into per-step blocks.

    Returns:
      w_big : (num_mat, F, 3U) = per-step [W_ru | W_c with h-feature rows zeroed]
      whc   : (num_mat, U, U)    candidate weights for the hidden-feature rows
      b_big : (1, 3U)            [b_ru | b_c]
    Pure row permutation / zero padding: semantics identical to the original.
    """
    input_size = din + units
    out_ru = w_ru_full.shape[1]
    out_c = w_c_full.shape[1]
    w_ru_r = w_ru_full.reshape(input_size, num_mat, out_ru)
    w_c_r = w_c_full.reshape(input_size, num_mat, out_c)
    # Candidate weights: only the input-feature rows are applied to the shared
    # x-diffusion; hidden-feature rows are applied later to diffuse(r*h).
    x_row_mask = (jnp.arange(input_size) < din)[:, None, None]
    wc_x_only = jnp.where(x_row_mask, w_c_r, 0.0)
    w_big = jnp.concatenate([w_ru_r, wc_x_only], axis=-1)      # (F, M, 3U)
    w_big = jnp.transpose(w_big, (1, 0, 2))                    # (M, F, 3U)
    whc = jnp.transpose(w_c_r[din:], (1, 0, 2))                # (M, U, U)
    b_big = jnp.concatenate([b_ru, b_c], axis=-1)              # (1, 3U)
    return w_big, whc, b_big


def init_params(key):
    layer_params = []
    for layer in range(NUM_RNN_LAYERS):
        din = OUTPUT_DIM if layer == 0 else RNN_UNITS
        input_size = din + RNN_UNITS
        key, k1, k2 = jax.random.split(key, 3)
        # PyTorch gconv weights: (input_size * num_matrices, out), rows ordered
        # f * num_matrices + k.  Biases: 1.0 for gates, 0.0 for candidate.
        w_ru_full = xavier_normal(k1, (input_size * NUM_MAT, 2 * RNN_UNITS))
        b_ru = jnp.full((1, 2 * RNN_UNITS), 1.0, dtype=jnp.float32)
        w_c_full = xavier_normal(k2, (input_size * NUM_MAT, RNN_UNITS))
        b_c = jnp.zeros((1, RNN_UNITS), dtype=jnp.float32)

        w_big, whc, b_big = _build_kernel_weights(
            w_ru_full, w_c_full, b_ru, b_c, din, RNN_UNITS, NUM_MAT)
        p = dict(w_ru_full=w_ru_full, w_c_full=w_c_full,
                 b_ru=b_ru, b_c=b_c, whc=whc, b_big=b_big)
        if layer == 0:
            # Layer 0 input [x | h] is pre-concatenated in glue -> keep full rows.
            p["w_xh"] = w_big                                   # (M, din+U, 3U)
        else:
            # Layer >0: kernel diffuses input and state separately (no concat).
            p["w_x"] = w_big[:, :din, :]                        # (M, din, 3U)
            p["w_h"] = w_big[:, din:, :]                        # (M, U,   3U)
        layer_params.append(p)
    key, kp = jax.random.split(key)
    w_proj = xavier_normal(kp, (RNN_UNITS, OUTPUT_DIM))   # stored as (U, P) = W^T
    b_proj = jnp.zeros((1, OUTPUT_DIM), dtype=jnp.float32)
    return layer_params, w_proj, b_proj


def decoder_forward(inputs, adj_mx, hidden_state, layer_params, w_proj, b_proj):
    """DecoderModel.forward.

    inputs:       (B, num_nodes * output_dim)
    adj_mx:       (num_nodes, num_nodes)
    hidden_state: (num_layers, B, num_nodes * rnn_units)
    returns (output (B, num_nodes*output_dim),
             new_hidden (num_layers, B, num_nodes*rnn_units))
    """
    assert len(layer_params) == NUM_RNN_LAYERS == 2
    batch = inputs.shape[0]
    support = random_walk_support_T(adj_mx)
    # Fold batch into the row (sublane) axis with a block-diagonal support.
    s_bd = jnp.kron(jnp.eye(batch, dtype=support.dtype), support)   # (B*N, B*N)

    x = inputs.reshape(batch * NUM_NODES, OUTPUT_DIM)
    h = hidden_state.reshape(NUM_RNN_LAYERS, batch * NUM_NODES, RNN_UNITS)
    # Pre-concatenate layer-0 [x | h0] in glue so the kernel never sees a
    # 1-lane-wide operand (output_dim = 1).
    xh0 = jnp.concatenate([x, h[0]], axis=-1)                       # (B*N, 1+U)

    out, hid = fused_decoder_step(xh0, h, s_bd,
                                  layer_params[0], layer_params[1],
                                  w_proj, b_proj)
    return (out.reshape(batch, NUM_NODES * OUTPUT_DIM),
            hid.reshape(NUM_RNN_LAYERS, batch, HIDDEN_STATE_SIZE))


# ==================== pure-JAX reference (PyTorch-faithful) ====================

def _ref_gconv(x2d, h2d, support, w_full, bias, out_size):
    batch = x2d.shape[0]
    din = x2d.shape[1] // NUM_NODES
    x = x2d.reshape(batch, NUM_NODES, din)
    s = h2d.reshape(batch, NUM_NODES, RNN_UNITS)
    xs = jnp.concatenate([x, s], axis=2)
    feat = xs.shape[2]
    x0 = jnp.transpose(xs, (1, 2, 0)).reshape(NUM_NODES, feat * batch)
    feats = [x0]
    x1 = support @ x0
    feats.append(x1)
    xm2, xm1 = x0, x1
    for _ in range(2, MAX_DIFFUSION_STEP + 1):
        x2 = 2.0 * (support @ xm1) - xm2
        feats.append(x2)
        xm2, xm1 = xm1, x2
    xm = jnp.stack(feats, 0).reshape(NUM_MAT, NUM_NODES, feat, batch)
    xm = jnp.transpose(xm, (3, 1, 2, 0)).reshape(batch * NUM_NODES,
                                                 feat * NUM_MAT)
    out = xm @ w_full + bias.reshape(-1)
    return out.reshape(batch, NUM_NODES * out_size)


def _ref_cell(x2d, h2d, support, p):
    value = jax.nn.sigmoid(
        _ref_gconv(x2d, h2d, support, p["w_ru_full"], p["b_ru"],
                   2 * RNN_UNITS))
    value = value.reshape(-1, NUM_NODES, 2 * RNN_UNITS)
    r = value[..., :RNN_UNITS].reshape(-1, NUM_NODES * RNN_UNITS)
    u = value[..., RNN_UNITS:].reshape(-1, NUM_NODES * RNN_UNITS)
    c = jnp.tanh(_ref_gconv(x2d, r * h2d, support, p["w_c_full"], p["b_c"],
                            RNN_UNITS))
    return u * h2d + (1.0 - u) * c


def _ref_forward(inputs, adj_mx, hidden_state, layer_params, w_proj, b_proj):
    support = random_walk_support_T(adj_mx)
    output = inputs
    hs = []
    for layer, p in enumerate(layer_params):
        nh = _ref_cell(output, hidden_state[layer], support, p)
        hs.append(nh)
        output = nh
    proj = output.reshape(-1, RNN_UNITS) @ w_proj + b_proj.reshape(-1)
    return proj.reshape(-1, NUM_NODES * OUTPUT_DIM), jnp.stack(hs)


# ================================ main ================================

if __name__ == "__main__":
    key = jax.random.PRNGKey(0)
    kp, ka, ki, kh = jax.random.split(key, 4)

    layer_params, w_proj, b_proj = init_params(kp)
    adj_mx = jax.random.uniform(ka, (NUM_NODES, NUM_NODES), dtype=jnp.float32)
    inputs = jax.random.normal(ki, (BATCH, NUM_NODES * OUTPUT_DIM),
                               dtype=jnp.float32)
    hidden_state = jax.random.normal(
        kh, (NUM_RNN_LAYERS, BATCH, HIDDEN_STATE_SIZE), dtype=jnp.float32)

    out, new_hidden = decoder_forward(inputs, adj_mx, hidden_state,
                                      layer_params, w_proj, b_proj)
    jax.block_until_ready((out, new_hidden))

    assert out.shape == (BATCH, NUM_NODES * OUTPUT_DIM)
    assert new_hidden.shape == (NUM_RNN_LAYERS, BATCH, HIDDEN_STATE_SIZE)

    # correctness check against a PyTorch-faithful pure-JAX reference
    ref_out, ref_hidden = _ref_forward(inputs, adj_mx, hidden_state,
                                       layer_params, w_proj, b_proj)
    np.testing.assert_allclose(np.asarray(out), np.asarray(ref_out),
                               rtol=2e-3, atol=2e-3)
    np.testing.assert_allclose(np.asarray(new_hidden), np.asarray(ref_hidden),
                               rtol=2e-3, atol=2e-3)

    print("KERNEL_OK")
</pallas_src>

<mosaic_0001>
module attributes {stable_mosaic.version = 11 : i64} {
  func.func @_decoder_kernel(%arg0: i32, %arg1: memref<32x33xf32, #tpu.memory_space<vmem>>, %arg2: memref<2x32x32xf32, #tpu.memory_space<vmem>>, %arg3: memref<32x32xf32, #tpu.memory_space<vmem>>, %arg4: memref<3x33x96xf32, #tpu.memory_space<vmem>>, %arg5: memref<3x32x32xf32, #tpu.memory_space<vmem>>, %arg6: memref<1x96xf32, #tpu.memory_space<vmem>>, %arg7: memref<3x32x96xf32, #tpu.memory_space<vmem>>, %arg8: memref<3x32x96xf32, #tpu.memory_space<vmem>>, %arg9: memref<3x32x32xf32, #tpu.memory_space<vmem>>, %arg10: memref<1x96xf32, #tpu.memory_space<vmem>>, %arg11: memref<32x1xf32, #tpu.memory_space<vmem>>, %arg12: memref<1x1xf32, #tpu.memory_space<vmem>>, %arg13: memref<32x1xf32, #tpu.memory_space<vmem>>, %arg14: memref<2x32x32xf32, #tpu.memory_space<vmem>>) attributes {dimension_semantics = [#tpu.dimension_semantics<arbitrary>], iteration_bounds = array<i64: 1>, scalar_prefetch = 0 : i64, scratch_operands = 0 : i64, tpu.core_type = #tpu.core_type<tc>, window_params = [{pipeline_mode = #tpu.pipeline_mode<synchronous>, transform_indices = @transform_0, window_bounds = array<i64: 32, 33>}, {pipeline_mode = #tpu.pipeline_mode<synchronous>, transform_indices = @transform_1, window_bounds = array<i64: 2, 32, 32>}, {pipeline_mode = #tpu.pipeline_mode<synchronous>, transform_indices = @transform_2, window_bounds = array<i64: 32, 32>}, {pipeline_mode = #tpu.pipeline_mode<synchronous>, transform_indices = @transform_3, window_bounds = array<i64: 3, 33, 96>}, {pipeline_mode = #tpu.pipeline_mode<synchronous>, transform_indices = @transform_4, window_bounds = array<i64: 3, 32, 32>}, {pipeline_mode = #tpu.pipeline_mode<synchronous>, transform_indices = @transform_5, window_bounds = array<i64: 1, 96>}, {pipeline_mode = #tpu.pipeline_mode<synchronous>, transform_indices = @transform_6, window_bounds = array<i64: 3, 32, 96>}, {pipeline_mode = #tpu.pipeline_mode<synchronous>, transform_indices = @transform_7, window_bounds = array<i64: 3, 32, 96>}, {pipeline_mode = #tpu.pipeline_mode<synchronous>, transform_indices = @transform_8, window_bounds = array<i64: 3, 32, 32>}, {pipeline_mode = #tpu.pipeline_mode<synchronous>, transform_indices = @transform_9, window_bounds = array<i64: 1, 96>}, {pipeline_mode = #tpu.pipeline_mode<synchronous>, transform_indices = @transform_10, window_bounds = array<i64: 32, 1>}, {pipeline_mode = #tpu.pipeline_mode<synchronous>, transform_indices = @transform_11, window_bounds = array<i64: 1, 1>}, {pipeline_mode = #tpu.pipeline_mode<synchronous>, transform_indices = @transform_12, window_bounds = array<i64: 32, 1>}, {pipeline_mode = #tpu.pipeline_mode<synchronous>, transform_indices = @transform_13, window_bounds = array<i64: 2, 32, 32>}]} {
    %c0 = arith.constant 0 : index
    %c0_0 = arith.constant 0 : index
    %0 = vector.load %arg3[%c0, %c0_0] : memref<32x32xf32, #tpu.memory_space<vmem>>, vector<32x32xf32>
    %c0_1 = arith.constant 0 : index
    %c0_2 = arith.constant 0 : index
    %c0_3 = arith.constant 0 : index
    %1 = vector.load %arg2[%c0_1, %c0_2, %c0_3] : memref<2x32x32xf32, #tpu.memory_space<vmem>>, vector<1x32x32xf32>
    %2 = vector.shape_cast %1 : vector<1x32x32xf32> to vector<32x32xf32>
    %c0_4 = arith.constant 0 : index
    %c0_5 = arith.constant 0 : index
    %3 = vector.load %arg1[%c0_4, %c0_5] : memref<32x33xf32, #tpu.memory_space<vmem>>, vector<32x33xf32>
    %cst = arith.constant dense<0.000000e+00> : vector<32x33xf32>
    %4 = tpu.matmul %0, %3, %cst {dimension_numbers = #tpu.dot_dimension_numbers<[1], [0], [0], [1], [0, 0, 1, 1], [], []>, precision = #tpu.contract_precision<fp32>} : vector<32x32xf32>, vector<32x33xf32>, vector<32x33xf32> -> vector<32x33xf32>
    %cst_6 = arith.constant dense<0.000000e+00> : vector<32x33xf32>
    %5 = tpu.matmul %0, %4, %cst_6 {dimension_numbers = #tpu.dot_dimension_numbers<[1], [0], [0], [1], [0, 0, 1, 1], [], []>, precision = #tpu.contract_precision<fp32>} : vector<32x32xf32>, vector<32x33xf32>, vector<32x33xf32> -> vector<32x33xf32>
    %cst_7 = arith.constant 2.000000e+00 : f32
    %6 = vector.broadcast %cst_7 : f32 to vector<32x33xf32>
    %7 = arith.mulf %6, %5 : vector<32x33xf32>
    %8 = arith.subf %7, %3 : vector<32x33xf32>
    %c0_8 = arith.constant 0 : index
    %c0_9 = arith.constant 0 : index
    %c0_10 = arith.constant 0 : index
    %9 = vector.load %arg4[%c0_8, %c0_9, %c0_10] : memref<3x33x96xf32, #tpu.memory_space<vmem>>, vector<1x33x96xf32>
    %10 = vector.shape_cast %9 : vector<1x33x96xf32> to vector<33x96xf32>
    %cst_11 = arith.constant dense<0.000000e+00> : vector<32x96xf32>
    %11 = tpu.matmul %3, %10, %cst_11 {dimension_numbers = #tpu.dot_dimension_numbers<[1], [0], [0], [1], [0, 0, 1, 1], [], []>, precision = #tpu.contract_precision<fp32>} : vector<32x33xf32>, vector<33x96xf32>, vector<32x96xf32> -> vector<32x96xf32>
    %c1 = arith.constant 1 : index
    %c0_12 = arith.constant 0 : index
    %c0_13 = arith.constant 0 : index
    %12 = vector.load %arg4[%c1, %c0_12, %c0_13] : memref<3x33x96xf32, #tpu.memory_space<vmem>>, vector<1x33x96xf32>
    %13 = vector.shape_cast %12 : vector<1x33x96xf32> to vector<33x96xf32>
    %cst_14 = arith.constant dense<0.000000e+00> : vector<32x96xf32>
    %14 = tpu.matmul %4, %13, %cst_14 {dimension_numbers = #tpu.dot_dimension_numbers<[1], [0], [0], [1], [0, 0, 1, 1], [], []>, precision = #tpu.contract_precision<fp32>} : vector<32x33xf32>, vector<33x96xf32>, vector<32x96xf32> -> vector<32x96xf32>
    %15 = arith.addf %11, %14 : vector<32x96xf32>
    %c2 = arith.constant 2 : index
    %c0_15 = arith.constant 0 : index
    %c0_16 = arith.constant 0 : index
    %16 = vector.load %arg4[%c2, %c0_15, %c0_16] : memref<3x33x96xf32, #tpu.memory_space<vmem>>, vector<1x33x96xf32>
    %17 = vector.shape_cast %16 : vector<1x33x96xf32> to vector<33x96xf32>
    %cst_17 = arith.constant dense<0.000000e+00> : vector<32x96xf32>
    %18 = tpu.matmul %8, %17, %cst_17 {dimension_numbers = #tpu.dot_dimension_numbers<[1], [0], [0], [1], [0, 0, 1, 1], [], []>, precision = #tpu.contract_precision<fp32>} : vector<32x33xf32>, vector<33x96xf32>, vector<32x96xf32> -> vector<32x96xf32>
    %19 = arith.addf %15, %18 : vector<32x96xf32>
    %c0_18 = arith.constant 0 : index
    %c0_19 = arith.constant 0 : index
    %20 = vector.load %arg6[%c0_18, %c0_19] : memref<1x96xf32, #tpu.memory_space<vmem>>, vector<1x96xf32>
    %21 = vector.broadcast %20 : vector<1x96xf32> to vector<32x96xf32>
    %22 = arith.addf %19, %21 : vector<32x96xf32>
    %23 = vector.extract_strided_slice %22 {offsets = [0, 0], sizes = [32, 64], strides = [1, 1]} : vector<32x96xf32> to vector<32x64xf32>
    %24 = arith.negf %23 : vector<32x64xf32>
    %25 = math.exp %24 : vector<32x64xf32>
    %cst_20 = arith.constant 1.000000e+00 : f32
    %26 = vector.broadcast %cst_20 : f32 to vector<32x64xf32>
    %27 = arith.addf %26, %25 : vector<32x64xf32>
    %28 = arith.divf %26, %27 : vector<32x64xf32>
    %29 = vector.extract_strided_slice %28 {offsets = [0, 0], sizes = [32, 32], strides = [1, 1]} : vector<32x64xf32> to vector<32x32xf32>
    %30 = vector.extract_strided_slice %28 {offsets = [0, 32], sizes = [32, 32], strides = [1, 1]} : vector<32x64xf32> to vector<32x32xf32>
    %31 = vector.extract_strided_slice %22 {offsets = [0, 64], sizes = [32, 32], strides = [1, 1]} : vector<32x96xf32> to vector<32x32xf32>
    %32 = arith.mulf %29, %2 : vector<32x32xf32>
    %cst_21 = arith.constant dense<0.000000e+00> : vector<32x32xf32>
    %33 = tpu.matmul %0, %32, %cst_21 {dimension_numbers = #tpu.dot_dimension_numbers<[1], [0], [0], [1], [0, 0, 1, 1], [], []>, precision = #tpu.contract_precision<fp32>} : vector<32x32xf32>, vector<32x32xf32>, vector<32x32xf32> -> vector<32x32xf32>
    %cst_22 = arith.constant dense<0.000000e+00> : vector<32x32xf32>
    %34 = tpu.matmul %0, %33, %cst_22 {dimension_numbers = #tpu.dot_dimension_numbers<[1], [0], [0], [1], [0, 0, 1, 1], [], []>, precision = #tpu.contract_precision<fp32>} : vector<32x32xf32>, vector<32x32xf32>, vector<32x32xf32> -> vector<32x32xf32>
    %cst_23 = arith.constant 2.000000e+00 : f32
    %35 = vector.broadcast %cst_23 : f32 to vector<32x32xf32>
    %36 = arith.mulf %35, %34 : vector<32x32xf32>
    %37 = arith.subf %36, %32 : vector<32x32xf32>
    %c0_24 = arith.constant 0 : index
    %c0_25 = arith.constant 0 : index
    %c0_26 = arith.constant 0 : index
    %38 = vector.load %arg5[%c0_24, %c0_25, %c0_26] : memref<3x32x32xf32, #tpu.memory_space<vmem>>, vector<1x32x32xf32>
    %39 = vector.shape_cast %38 : vector<1x32x32xf32> to vector<32x32xf32>
    %cst_27 = arith.constant dense<0.000000e+00> : vector<32x32xf32>
    %40 = tpu.matmul %32, %39, %cst_27 {dimension_numbers = #tpu.dot_dimension_numbers<[1], [0], [0], [1], [0, 0, 1, 1], [], []>, precision = #tpu.contract_precision<fp32>} : vector<32x32xf32>, vector<32x32xf32>, vector<32x32xf32> -> vector<32x32xf32>
    %c1_28 = arith.constant 1 : index
    %c0_29 = arith.constant 0 : index
    %c0_30 = arith.constant 0 : index
    %41 = vector.load %arg5[%c1_28, %c0_29, %c0_30] : memref<3x32x32xf32, #tpu.memory_space<vmem>>, vector<1x32x32xf32>
    %42 = vector.shape_cast %41 : vector<1x32x32xf32> to vector<32x32xf32>
    %cst_31 = arith.constant dense<0.000000e+00> : vector<32x32xf32>
    %43 = tpu.matmul %33, %42, %cst_31 {dimension_numbers = #tpu.dot_dimension_numbers<[1], [0], [0], [1], [0, 0, 1, 1], [], []>, precision = #tpu.contract_precision<fp32>} : vector<32x32xf32>, vector<32x32xf32>, vector<32x32xf32> -> vector<32x32xf32>
    %44 = arith.addf %40, %43 : vector<32x32xf32>
    %c2_32 = arith.constant 2 : index
    %c0_33 = arith.constant 0 : index
    %c0_34 = arith.constant 0 : index
    %45 = vector.load %arg5[%c2_32, %c0_33, %c0_34] : memref<3x32x32xf32, #tpu.memory_space<vmem>>, vector<1x32x32xf32>
    %46 = vector.shape_cast %45 : vector<1x32x32xf32> to vector<32x32xf32>
    %cst_35 = arith.constant dense<0.000000e+00> : vector<32x32xf32>
    %47 = tpu.matmul %37, %46, %cst_35 {dimension_numbers = #tpu.dot_dimension_numbers<[1], [0], [0], [1], [0, 0, 1, 1], [], []>, precision = #tpu.contract_precision<fp32>} : vector<32x32xf32>, vector<32x32xf32>, vector<32x32xf32> -> vector<32x32xf32>
    %48 = arith.addf %44, %47 : vector<32x32xf32>
    %49 = arith.addf %31, %48 : vector<32x32xf32>
    %50 = math.tanh %49 : vector<32x32xf32>
    %51 = arith.mulf %30, %2 : vector<32x32xf32>
    %cst_36 = arith.constant 1.000000e+00 : f32
    %52 = vector.broadcast %cst_36 : f32 to vector<32x32xf32>
    %53 = arith.subf %52, %30 : vector<32x32xf32>
    %54 = arith.mulf %53, %50 : vector<32x32xf32>
    %55 = arith.addf %51, %54 : vector<32x32xf32>
    %c0_37 = arith.constant 0 : index
    %c0_38 = arith.constant 0 : index
    %c0_39 = arith.constant 0 : index
    %56 = vector.load %arg14[%c0_37, %c0_38, %c0_39] : memref<2x32x32xf32, #tpu.memory_space<vmem>>, vector<1x32x32xf32>
    %57 = vector.shape_cast %56 : vector<1x32x32xf32> to vector<32x32xf32>
    %58 = vector.shape_cast %55 : vector<32x32xf32> to vector<1x32x32xf32>
    tpu.vector_store %arg14[%c0_37, %c0_38, %c0_39], %58 {strides = array<i32>} : memref<2x32x32xf32, #tpu.memory_space<vmem>>, vector<1x32x32xf32>,
    %c1_40 = arith.constant 1 : index
    %c0_41 = arith.constant 0 : index
    %c0_42 = arith.constant 0 : index
    %59 = vector.load %arg2[%c1_40, %c0_41, %c0_42] : memref<2x32x32xf32, #tpu.memory_space<vmem>>, vector<1x32x32xf32>
    %60 = vector.shape_cast %59 : vector<1x32x32xf32> to vector<32x32xf32>
    %cst_43 = arith.constant dense<0.000000e+00> : vector<32x32xf32>
    %61 = tpu.matmul %0, %55, %cst_43 {dimension_numbers = #tpu.dot_dimension_numbers<[1], [0], [0], [1], [0, 0, 1, 1], [], []>, precision = #tpu.contract_precision<fp32>} : vector<32x32xf32>, vector<32x32xf32>, vector<32x32xf32> -> vector<32x32xf32>
    %cst_44 = arith.constant dense<0.000000e+00> : vector<32x32xf32>
    %62 = tpu.matmul %0, %61, %cst_44 {dimension_numbers = #tpu.dot_dimension_numbers<[1], [0], [0], [1], [0, 0, 1, 1], [], []>, precision = #tpu.contract_precision<fp32>} : vector<32x32xf32>, vector<32x32xf32>, vector<32x32xf32> -> vector<32x32xf32>
    %cst_45 = arith.constant 2.000000e+00 : f32
    %63 = vector.broadcast %cst_45 : f32 to vector<32x32xf32>
    %64 = arith.mulf %63, %62 : vector<32x32xf32>
    %65 = arith.subf %64, %55 : vector<32x32xf32>
    %cst_46 = arith.constant dense<0.000000e+00> : vector<32x32xf32>
    %66 = tpu.matmul %0, %60, %cst_46 {dimension_numbers = #tpu.dot_dimension_numbers<[1], [0], [0], [1], [0, 0, 1, 1], [], []>, precision = #tpu.contract_precision<fp32>} : vector<32x32xf32>, vector<32x32xf32>, vector<32x32xf32> -> vector<32x32xf32>
    %cst_47 = arith.constant dense<0.000000e+00> : vector<32x32xf32>
    %67 = tpu.matmul %0, %66, %cst_47 {dimension_numbers = #tpu.dot_dimension_numbers<[1], [0], [0], [1], [0, 0, 1, 1], [], []>, precision = #tpu.contract_precision<fp32>} : vector<32x32xf32>, vector<32x32xf32>, vector<32x32xf32> -> vector<32x32xf32>
    %cst_48 = arith.constant 2.000000e+00 : f32
    %68 = vector.broadcast %cst_48 : f32 to vector<32x32xf32>
    %69 = arith.mulf %68, %67 : vector<32x32xf32>
    %70 = arith.subf %69, %60 : vector<32x32xf32>
    %c0_49 = arith.constant 0 : index
    %c0_50 = arith.constant 0 : index
    %c0_51 = arith.constant 0 : index
    %71 = vector.load %arg7[%c0_49, %c0_50, %c0_51] : memref<3x32x96xf32, #tpu.memory_space<vmem>>, vector<1x32x96xf32>
    %72 = vector.shape_cast %71 : vector<1x32x96xf32> to vector<32x96xf32>
    %cst_52 = arith.constant dense<0.000000e+00> : vector<32x96xf32>
    %73 = tpu.matmul %55, %72, %cst_52 {dimension_numbers = #tpu.dot_dimension_numbers<[1], [0], [0], [1], [0, 0, 1, 1], [], []>, precision = #tpu.contract_precision<fp32>} : vector<32x32xf32>, vector<32x96xf32>, vector<32x96xf32> -> vector<32x96xf32>
    %c1_53 = arith.constant 1 : index
    %c0_54 = arith.constant 0 : index
    %c0_55 = arith.constant 0 : index
    %74 = vector.load %arg7[%c1_53, %c0_54, %c0_55] : memref<3x32x96xf32, #tpu.memory_space<vmem>>, vector<1x32x96xf32>
    %75 = vector.shape_cast %74 : vector<1x32x96xf32> to vector<32x96xf32>
    %cst_56 = arith.constant dense<0.000000e+00> : vector<32x96xf32>
    %76 = tpu.matmul %61, %75, %cst_56 {dimension_numbers = #tpu.dot_dimension_numbers<[1], [0], [0], [1], [0, 0, 1, 1], [], []>, precision = #tpu.contract_precision<fp32>} : vector<32x32xf32>, vector<32x96xf32>, vector<32x96xf32> -> vector<32x96xf32>
    %77 = arith.addf %73, %76 : vector<32x96xf32>
    %c2_57 = arith.constant 2 : index
    %c0_58 = arith.constant 0 : index
    %c0_59 = arith.constant 0 : index
    %78 = vector.load %arg7[%c2_57, %c0_58, %c0_59] : memref<3x32x96xf32, #tpu.memory_space<vmem>>, vector<1x32x96xf32>
    %79 = vector.shape_cast %78 : vector<1x32x96xf32> to vector<32x96xf32>
    %cst_60 = arith.constant dense<0.000000e+00> : vector<32x96xf32>
    %80 = tpu.matmul %65, %79, %cst_60 {dimension_numbers = #tpu.dot_dimension_numbers<[1], [0], [0], [1], [0, 0, 1, 1], [], []>, precision = #tpu.contract_precision<fp32>} : vector<32x32xf32>, vector<32x96xf32>, vector<32x96xf32> -> vector<32x96xf32>
    %81 = arith.addf %77, %80 : vector<32x96xf32>
    %c0_61 = arith.constant 0 : index
    %c0_62 = arith.constant 0 : index
    %c0_63 = arith.constant 0 : index
    %82 = vector.load %arg8[%c0_61, %c0_62, %c0_63] : memref<3x32x96xf32, #tpu.memory_space<vmem>>, vector<1x32x96xf32>
    %83 = vector.shape_cast %82 : vector<1x32x96xf32> to vector<32x96xf32>
    %cst_64 = arith.constant dense<0.000000e+00> : vector<32x96xf32>
    %84 = tpu.matmul %60, %83, %cst_64 {dimension_numbers = #tpu.dot_dimension_numbers<[1], [0], [0], [1], [0, 0, 1, 1], [], []>, precision = #tpu.contract_precision<fp32>} : vector<32x32xf32>, vector<32x96xf32>, vector<32x96xf32> -> vector<32x96xf32>
    %c1_65 = arith.constant 1 : index
    %c0_66 = arith.constant 0 : index
    %c0_67 = arith.constant 0 : index
    %85 = vector.load %arg8[%c1_65, %c0_66, %c0_67] : memref<3x32x96xf32, #tpu.memory_space<vmem>>, vector<1x32x96xf32>
    %86 = vector.shape_cast %85 : vector<1x32x96xf32> to vector<32x96xf32>
    %cst_68 = arith.constant dense<0.000000e+00> : vector<32x96xf32>
    %87 = tpu.matmul %66, %86, %cst_68 {dimension_numbers = #tpu.dot_dimension_numbers<[1], [0], [0], [1], [0, 0, 1, 1], [], []>, precision = #tpu.contract_precision<fp32>} : vector<32x32xf32>, vector<32x96xf32>, vector<32x96xf32> -> vector<32x96xf32>
    %88 = arith.addf %84, %87 : vector<32x96xf32>
    %c2_69 = arith.constant 2 : index
    %c0_70 = arith.constant 0 : index
    %c0_71 = arith.constant 0 : index
    %89 = vector.load %arg8[%c2_69, %c0_70, %c0_71] : memref<3x32x96xf32, #tpu.memory_space<vmem>>, vector<1x32x96xf32>
    %90 = vector.shape_cast %89 : vector<1x32x96xf32> to vector<32x96xf32>
    %cst_72 = arith.constant dense<0.000000e+00> : vector<32x96xf32>
    %91 = tpu.matmul %70, %90, %cst_72 {dimension_numbers = #tpu.dot_dimension_numbers<[1], [0], [0], [1], [0, 0, 1, 1], [], []>, precision = #tpu.contract_precision<fp32>} : vector<32x32xf32>, vector<32x96xf32>, vector<32x96xf32> -> vector<32x96xf32>
    %92 = arith.addf %88, %91 : vector<32x96xf32>
    %93 = arith.addf %81, %92 : vector<32x96xf32>
    %c0_73 = arith.constant 0 : index
    %c0_74 = arith.constant 0 : index
    %94 = vector.load %arg10[%c0_73, %c0_74] : memref<1x96xf32, #tpu.memory_space<vmem>>, vector<1x96xf32>
    %95 = vector.broadcast %94 : vector<1x96xf32> to vector<32x96xf32>
    %96 = arith.addf %93, %95 : vector<32x96xf32>
    %97 = vector.extract_strided_slice %96 {offsets = [0, 0], sizes = [32, 64], strides = [1, 1]} : vector<32x96xf32> to vector<32x64xf32>
    %98 = arith.negf %97 : vector<32x64xf32>
    %99 = math.exp %98 : vector<32x64xf32>
    %cst_75 = arith.constant 1.000000e+00 : f32
    %100 = vector.broadcast %cst_75 : f32 to vector<32x64xf32>
    %101 = arith.addf %100, %99 : vector<32x64xf32>
    %102 = arith.divf %100, %101 : vector<32x64xf32>
    %103 = vector.extract_strided_slice %102 {offsets = [0, 0], sizes = [32, 32], strides = [1, 1]} : vector<32x64xf32> to vector<32x32xf32>
    %104 = vector.extract_strided_slice %102 {offsets = [0, 32], sizes = [32, 32], strides = [1, 1]} : vector<32x64xf32> to vector<32x32xf32>
    %105 = vector.extract_strided_slice %96 {offsets = [0, 64], sizes = [32, 32], strides = [1, 1]} : vector<32x96xf32> to vector<32x32xf32>
    %106 = arith.mulf %103, %60 : vector<32x32xf32>
    %cst_76 = arith.constant dense<0.000000e+00> : vector<32x32xf32>
    %107 = tpu.matmul %0, %106, %cst_76 {dimension_numbers = #tpu.dot_dimension_numbers<[1], [0], [0], [1], [0, 0, 1, 1], [], []>, precision = #tpu.contract_precision<fp32>} : vector<32x32xf32>, vector<32x32xf32>, vector<32x32xf32> -> vector<32x32xf32>
    %cst_77 = arith.constant dense<0.000000e+00> : vector<32x32xf32>
    %108 = tpu.matmul %0, %107, %cst_77 {dimension_numbers = #tpu.dot_dimension_numbers<[1], [0], [0], [1], [0, 0, 1, 1], [], []>, precision = #tpu.contract_precision<fp32>} : vector<32x32xf32>, vector<32x32xf32>, vector<32x32xf32> -> vector<32x32xf32>
    %cst_78 = arith.constant 2.000000e+00 : f32
    %109 = vector.broadcast %cst_78 : f32 to vector<32x32xf32>
    %110 = arith.mulf %109, %108 : vector<32x32xf32>
    %111 = arith.subf %110, %106 : vector<32x32xf32>
    %c0_79 = arith.constant 0 : index
    %c0_80 = arith.constant 0 : index
    %c0_81 = arith.constant 0 : index
    %112 = vector.load %arg9[%c0_79, %c0_80, %c0_81] : memref<3x32x32xf32, #tpu.memory_space<vmem>>, vector<1x32x32xf32>
    %113 = vector.shape_cast %112 : vector<1x32x32xf32> to vector<32x32xf32>
    %cst_82 = arith.constant dense<0.000000e+00> : vector<32x32xf32>
    %114 = tpu.matmul %106, %113, %cst_82 {dimension_numbers = #tpu.dot_dimension_numbers<[1], [0], [0], [1], [0, 0, 1, 1], [], []>, precision = #tpu.contract_precision<fp32>} : vector<32x32xf32>, vector<32x32xf32>, vector<32x32xf32> -> vector<32x32xf32>
    %c1_83 = arith.constant 1 : index
    %c0_84 = arith.constant 0 : index
    %c0_85 = arith.constant 0 : index
    %115 = vector.load %arg9[%c1_83, %c0_84, %c0_85] : memref<3x32x32xf32, #tpu.memory_space<vmem>>, vector<1x32x32xf32>
    %116 = vector.shape_cast %115 : vector<1x32x32xf32> to vector<32x32xf32>
    %cst_86 = arith.constant dense<0.000000e+00> : vector<32x32xf32>
    %117 = tpu.matmul %107, %116, %cst_86 {dimension_numbers = #tpu.dot_dimension_numbers<[1], [0], [0], [1], [0, 0, 1, 1], [], []>, precision = #tpu.contract_precision<fp32>} : vector<32x32xf32>, vector<32x32xf32>, vector<32x32xf32> -> vector<32x32xf32>
    %118 = arith.addf %114, %117 : vector<32x32xf32>
    %c2_87 = arith.constant 2 : index
    %c0_88 = arith.constant 0 : index
    %c0_89 = arith.constant 0 : index
    %119 = vector.load %arg9[%c2_87, %c0_88, %c0_89] : memref<3x32x32xf32, #tpu.memory_space<vmem>>, vector<1x32x32xf32>
    %120 = vector.shape_cast %119 : vector<1x32x32xf32> to vector<32x32xf32>
    %cst_90 = arith.constant dense<0.000000e+00> : vector<32x32xf32>
    %121 = tpu.matmul %111, %120, %cst_90 {dimension_numbers = #tpu.dot_dimension_numbers<[1], [0], [0], [1], [0, 0, 1, 1], [], []>, precision = #tpu.contract_precision<fp32>} : vector<32x32xf32>, vector<32x32xf32>, vector<32x32xf32> -> vector<32x32xf32>
    %122 = arith.addf %118, %121 : vector<32x32xf32>
    %123 = arith.addf %105, %122 : vector<32x32xf32>
    %124 = math.tanh %123 : vector<32x32xf32>
    %125 = arith.mulf %104, %60 : vector<32x32xf32>
    %cst_91 = arith.constant 1.000000e+00 : f32
    %126 = vector.broadcast %cst_91 : f32 to vector<32x32xf32>
    %127 = arith.subf %126, %104 : vector<32x32xf32>
    %128 = arith.mulf %127, %124 : vector<32x32xf32>
    %129 = arith.addf %125, %128 : vector<32x32xf32>
    %c1_92 = arith.constant 1 : index
    %c0_93 = arith.constant 0 : index
    %c0_94 = arith.constant 0 : index
    %130 = vector.load %arg14[%c1_92, %c0_93, %c0_94] : memref<2x32x32xf32, #tpu.memory_space<vmem>>, vector<1x32x32xf32>
    %131 = vector.shape_cast %130 : vector<1x32x32xf32> to vector<32x32xf32>
    %132 = vector.shape_cast %129 : vector<32x32xf32> to vector<1x32x32xf32>
    tpu.vector_store %arg14[%c1_92, %c0_93, %c0_94], %132 {strides = array<i32>} : memref<2x32x32xf32, #tpu.memory_space<vmem>>, vector<1x32x32xf32>,
    %c0_95 = arith.constant 0 : index
    %c0_96 = arith.constant 0 : index
    %133 = vector.load %arg11[%c0_95, %c0_96] : memref<32x1xf32, #tpu.memory_space<vmem>>, vector<32x1xf32>
    %cst_97 = arith.constant dense<0.000000e+00> : vector<32x1xf32>
    %134 = tpu.matmul %129, %133, %cst_97 {dimension_numbers = #tpu.dot_dimension_numbers<[1], [0], [0], [1], [0, 0, 1, 1], [], []>, precision = #tpu.contract_precision<fp32>} : vector<32x32xf32>, vector<32x1xf32>, vector<32x1xf32> -> vector<32x1xf32>
    %c0_98 = arith.constant 0 : index
    %c0_99 = arith.constant 0 : index
    %135 = vector.load %arg12[%c0_98, %c0_99] : memref<1x1xf32, #tpu.memory_space<vmem>>, vector<1x1xf32>
    %136 = vector.broadcast %135 : vector<1x1xf32> to vector<32x1xf32>
    %137 = arith.addf %134, %136 : vector<32x1xf32>
    %c0_100 = arith.constant 0 : index
    %c0_101 = arith.constant 0 : index
    %138 = vector.load %arg13[%c0_100, %c0_101] : memref<32x1xf32, #tpu.memory_space<vmem>>, vector<32x1xf32>
    tpu.vector_store %arg13[%c0_100, %c0_101], %137 {strides = array<i32>} : memref<32x1xf32, #tpu.memory_space<vmem>>, vector<32x1xf32>,
    return
  }
  func.func @transform_0(%arg0: i32) -> (i32, i32) {
    %c0_i32 = arith.constant 0 : i32
    %c0_i32_0 = arith.constant 0 : i32
    %c0_i32_1 = arith.constant 0 : i32
    return %c0_i32, %c0_i32_0 : i32, i32
  }
  func.func @transform_1(%arg0: i32) -> (i32, i32, i32) {
    %c0_i32 = arith.constant 0 : i32
    %c0_i32_0 = arith.constant 0 : i32
    %c0_i32_1 = arith.constant 0 : i32
    %c0_i32_2 = arith.constant 0 : i32
    return %c0_i32, %c0_i32_0, %c0_i32_1 : i32, i32, i32
  }
  func.func @transform_2(%arg0: i32) -> (i32, i32) {
    %c0_i32 = arith.constant 0 : i32
    %c0_i32_0 = arith.constant 0 : i32
    %c0_i32_1 = arith.constant 0 : i32
    return %c0_i32, %c0_i32_0 : i32, i32
  }
  func.func @transform_3(%arg0: i32) -> (i32, i32, i32) {
    %c0_i32 = arith.constant 0 : i32
    %c0_i32_0 = arith.constant 0 : i32
    %c0_i32_1 = arith.constant 0 : i32
    %c0_i32_2 = arith.constant 0 : i32
    return %c0_i32, %c0_i32_0, %c0_i32_1 : i32, i32, i32
  }
  func.func @transform_4(%arg0: i32) -> (i32, i32, i32) {
    %c0_i32 = arith.constant 0 : i32
    %c0_i32_0 = arith.constant 0 : i32
    %c0_i32_1 = arith.constant 0 : i32
    %c0_i32_2 = arith.constant 0 : i32
    return %c0_i32, %c0_i32_0, %c0_i32_1 : i32, i32, i32
  }
  func.func @transform_5(%arg0: i32) -> (i32, i32) {
    %c0_i32 = arith.constant 0 : i32
    %c0_i32_0 = arith.constant 0 : i32
    %c0_i32_1 = arith.constant 0 : i32
    return %c0_i32, %c0_i32_0 : i32, i32
  }
  func.func @transform_6(%arg0: i32) -> (i32, i32, i32) {
    %c0_i32 = arith.constant 0 : i32
    %c0_i32_0 = arith.constant 0 : i32
    %c0_i32_1 = arith.constant 0 : i32
    %c0_i32_2 = arith.constant 0 : i32
    return %c0_i32, %c0_i32_0, %c0_i32_1 : i32, i32, i32
  }
  func.func @transform_7(%arg0: i32) -> (i32, i32, i32) {
    %c0_i32 = arith.constant 0 : i32
    %c0_i32_0 = arith.constant 0 : i32
    %c0_i32_1 = arith.constant 0 : i32
    %c0_i32_2 = arith.constant 0 : i32
    return %c0_i32, %c0_i32_0, %c0_i32_1 : i32, i32, i32
  }
  func.func @transform_8(%arg0: i32) -> (i32, i32, i32) {
    %c0_i32 = arith.constant 0 : i32
    %c0_i32_0 = arith.constant 0 : i32
    %c0_i32_1 = arith.constant 0 : i32
    %c0_i32_2 = arith.constant 0 : i32
    return %c0_i32, %c0_i32_0, %c0_i32_1 : i32, i32, i32
  }
  func.func @transform_9(%arg0: i32) -> (i32, i32) {
    %c0_i32 = arith.constant 0 : i32
    %c0_i32_0 = arith.constant 0 : i32
    %c0_i32_1 = arith.constant 0 : i32
    return %c0_i32, %c0_i32_0 : i32, i32
  }
  func.func @transform_10(%arg0: i32) -> (i32, i32) {
    %c0_i32 = arith.constant 0 : i32
    %c0_i32_0 = arith.constant 0 : i32
    %c0_i32_1 = arith.constant 0 : i32
    return %c0_i32, %c0_i32_0 : i32, i32
  }
  func.func @transform_11(%arg0: i32) -> (i32, i32) {
    %c0_i32 = arith.constant 0 : i32
    %c0_i32_0 = arith.constant 0 : i32
    %c0_i32_1 = arith.constant 0 : i32
    return %c0_i32, %c0_i32_0 : i32, i32
  }
  func.func @transform_12(%arg0: i32) -> (i32, i32) {
    %c0_i32 = arith.constant 0 : i32
    %c0_i32_0 = arith.constant 0 : i32
    %c0_i32_1 = arith.constant 0 : i32
    return %c0_i32, %c0_i32_0 : i32, i32
  }
  func.func @transform_13(%arg0: i32) -> (i32, i32, i32) {
    %c0_i32 = arith.constant 0 : i32
    %c0_i32_0 = arith.constant 0 : i32
    %c0_i32_1 = arith.constant 0 : i32
    %c0_i32_2 = arith.constant 0 : i32
    return %c0_i32, %c0_i32_0, %c0_i32_1 : i32, i32, i32
  }
}

</mosaic_0001>

<bundles_post_ra>
// kernel: tpu_custom_call.1
= control target key start
LH: loop header
LB: loop body
LE: loop exit
PB: predicated region body
PF: predicated region fallthrough
CT: control target
= control target key end

     0   :  { %s24147_s0 = inlined_call_operand.vmem [shape: f32[32,33], index: 0, kind: input, shape index: {}]   ;;  %s24148_s1 = inlined_call_operand.hbm [shape: f32[2,32,32], index: 1, kind: input, shape index: {}]   ;;  %s24149_s2 = inlined_call_operand.hbm [shape: f32[32,32], index: 2, kind: input, shape index: {}]   ;;  %s24150_s3 = inlined_call_operand.hbm [shape: f32[3,33,96], index: 3, kind: input, shape index: {}]   ;;  %s24151_s4 = inlined_call_operand.hbm [shape: f32[3,32,32], index: 4, kind: input, shape index: {}]   ;;  %s24152_s5 = inlined_call_operand.vmem [shape: f32[1,96], index: 5, kind: input, shape index: {}]   ;;  %s24153_s6 = inlined_call_operand.hbm [shape: f32[3,32,96], index: 6, kind: input, shape index: {}]   ;;  %s24154_s7 = inlined_call_operand.hbm [shape: f32[3,32,96], index: 7, kind: input, shape index: {}]   ;;  %s24155_s8 = inlined_call_operand.hbm [shape: f32[3,32,32], index: 8, kind: input, shape index: {}]   ;;  %s24156_s9 = inlined_call_operand.vmem [shape: f32[1,96], index: 9, kind: input, shape index: {}]   ;;  %s24157_s10 = inlined_call_operand.vmem [shape: f32[32,1], index: 10, kind: input, shape index: {}]   ;;  %s24158_s11 = inlined_call_operand.<no memory space> [shape: f32[1,1], index: 11, kind: input, shape index: {}]   ;;  %s24159_s12 = inlined_call_operand.vmem [shape: f32[32,1], index: 12, kind: output, shape index: {0}]   ;;  %s24160_s13 = inlined_call_operand.hbm [shape: f32[2,32,32], index: 13, kind: output, shape index: {1}]  }
   0x1   :  { %v19_v0 = vstv %s24158_s11 }
   0x2   :  { %20 = vst [vmem:[#allocation2] sm:$0x1] %v19_v0 }
   0x3   :  { %21 = vsyncpa [#allocation4], 0 }
   0x4   :  { %22 = vsyncpa [#allocation7], 0 }
   0x5   :  { %23 = vsyncpa [#allocation10], 0 }
   0x6   :  { %24 = vsyncpa [#allocation13], 0 }
   0x7   :  { %25 = vsyncpa [#allocation5], 0  ;;  %s20553_s27 = smov [#allocation6]   ;;  %s20554_s29 = smov [#allocation9]  }
   0x8   :  { %s45_s28 = sshll.u32 %s20553_s27, 4  ;;  %s69_s30 = sshll.u32 %s20554_s29, 4  ;;  %s46_s28 = int_to_ptr.vmem [resolvable:$true] %s45_s28  ;;  %s70_s30 = int_to_ptr.vmem [resolvable:$true] %s69_s30 }
   0x9   :  { %s20391_s14 = scalar_lea.vmem %s46_s28, 512  ;;  %p20396_p1 = scmp.lt.s32.totalorder %s46_s28, %s46_s28 }
   0xa   :  { %p20392_p0 = scmp.ne.s32.totalorder %s46_s28, %s20391_s14  ;;  %p20397_p2 = scmp.lt.s32.totalorder %s20391_s14, %s20391_s14 }
   0xc   :  { %p20398_p3 = por %p20397_p2, %p20396_p1 }
   0xe   :  { %p20399_p4 = pnand %p20398_p3, %p20392_p0 }
  0x10   :  { %20402 = shalt.err (!%p20399_p4)
}
  0x11   :  { %s20555_s11 = smov 128   ;;  %s20556_s15 = smov 8  }
  0x12   :  { %51 = dma.hbm_to_vmem [thread:$0]  %s24149_s2, 512, %s46_s28, [#allocation7], %s20555_s11, %s20555_s11, %s20556_s15  }
  0x13   :  { %s20411_s18 = scalar_lea.vmem %s70_s30, 1536  ;;  %p20416_p6 = scmp.lt.s32.totalorder %s70_s30, %s70_s30 }
  0x14   :  { %p20412_p5 = scmp.ne.s32.totalorder %s70_s30, %s20411_s18  ;;  %p20417_p7 = scmp.lt.s32.totalorder %s20411_s18, %s20411_s18 }
  0x16   :  { %p20418_p8 = por %p20417_p7, %p20416_p6 }
  0x18   :  { %p20419_p9 = pnand %p20418_p8, %p20412_p5 }
  0x1a   :  { %20422 = shalt.err (!%p20419_p9)
}
  0x1b   :  { %75 = dma.hbm_to_vmem [thread:$0]  %s24151_s4, 1536, %s70_s30, [#allocation10], %s20555_s11, %s20555_s11, %s20556_s15  }
  0x1c   :  { %s20557_s21 = smov [#allocation12]   ;;  %s20558_s23 = smov [#allocation3]  }
  0x1d   :  { %s95_s22 = sshll.u32 %s20557_s21, 4  ;;  %s33_s24 = sshll.u32 %s20558_s23, 4  ;;  %s96_s22 = int_to_ptr.vmem [resolvable:$true] %s95_s22  ;;  %s34_s24 = int_to_ptr.vmem [resolvable:$true] %s33_s24 }
  0x1e   :  { %s20431_s2 = scalar_lea.vmem %s96_s22, 1536  ;;  %p20436_p11 = scmp.lt.s32.totalorder %s96_s22, %s96_s22 }
  0x1f   :  { %p20432_p10 = scmp.ne.s32.totalorder %s96_s22, %s20431_s2  ;;  %p20437_p12 = scmp.lt.s32.totalorder %s20431_s2, %s20431_s2 }
  0x21   :  { %p20438_p13 = por %p20437_p12, %p20436_p11 }
  0x23   :  { %p20439_p0 = pnand %p20438_p13, %p20432_p10 }
  0x25   :  { %20442 = shalt.err (!%p20439_p0)
}
  0x26   :  { %101 = dma.hbm_to_vmem [thread:$0]  %s24154_s7, 1536, %s96_s22, [#allocation13], %s20555_s11, %s20555_s11, %s20556_s15  }
  0x27   :  { %s20451_s4 = scalar_lea.vmem %s34_s24, 1024  ;;  %p20456_p2 = scmp.lt.s32.totalorder %s34_s24, %s34_s24 }
  0x28   :  { %p20452_p1 = scmp.ne.s32.totalorder %s34_s24, %s20451_s4  ;;  %p20457_p3 = scmp.lt.s32.totalorder %s20451_s4, %s20451_s4 }
  0x2a   :  { %p20458_p4 = por %p20457_p3, %p20456_p2 }
  0x2c   :  { %p20459_p5 = pnand %p20458_p4, %p20452_p1 }
  0x2e   :  { %20462 = shalt.err (!%p20459_p5)
}
  0x2f   :  { %39 = dma.hbm_to_vmem [thread:$0]  %s24148_s1, 1024, %s34_s24, [#allocation4], %s20555_s11, %s20555_s11, %s20556_s15  }
  0x30   :  { %s20559_s29 = smov [#allocation8]   ;;  %s20560_s14 = smov [#allocation11]  }
  0x31   :  { %s57_s30 = sshll.u32 %s20559_s29, 4  ;;  %s83_s16 = sshll.u32 %s20560_s14, 4  ;;  %s58_s30 = int_to_ptr.vmem [resolvable:$true] %s57_s30  ;;  %s84_s16 = int_to_ptr.vmem [resolvable:$true] %s83_s16 }
  0x32   :  { %s20471_s7 = scalar_lea.vmem %s58_s30, 1920  ;;  %p20476_p7 = scmp.lt.s32.totalorder %s58_s30, %s58_s30 }
  0x33   :  { %p20472_p6 = scmp.ne.s32.totalorder %s58_s30, %s20471_s7  ;;  %p20477_p8 = scmp.lt.s32.totalorder %s20471_s7, %s20471_s7 }
  0x35   :  { %p20478_p9 = por %p20477_p8, %p20476_p7 }
  0x37   :  { %p20479_p10 = pnand %p20478_p9, %p20472_p6 }
  0x39   :  { %20482 = shalt.err (!%p20479_p10)
}
  0x3a   :  { %63 = dma.hbm_to_vmem [thread:$0]  %s24150_s3, 1920, %s58_s30, [#allocation7], %s20555_s11, %s20555_s11, %s20556_s15  }
  0x3b   :  { %s20491_s1 = scalar_lea.vmem %s84_s16, 1536  ;;  %p20496_p12 = scmp.lt.s32.totalorder %s84_s16, %s84_s16 }
  0x3c   :  { %p20492_p11 = scmp.ne.s32.totalorder %s84_s16, %s20491_s1  ;;  %p20497_p13 = scmp.lt.s32.totalorder %s20491_s1, %s20491_s1 }
  0x3e   :  { %p20498_p0 = por %p20497_p13, %p20496_p12 }
  0x40   :  { %p20499_p1 = pnand %p20498_p0, %p20492_p11 }
  0x42   :  { %20502 = shalt.err (!%p20499_p1)
}
  0x43   :  { %89 = dma.hbm_to_vmem [thread:$0]  %s24153_s6, 1536, %s84_s16, [#allocation10], %s20555_s11, %s20555_s11, %s20556_s15  }
  0x44   :  { %s20561_s21 = smov [#allocation14]  }
  0x45   :  { %s107_s22 = sshll.u32 %s20561_s21, 4  ;;  %s108_s22 = int_to_ptr.vmem [resolvable:$true] %s107_s22 }
  0x46   :  { %s20511_s23 = scalar_lea.vmem %s108_s22, 1536  ;;  %p20516_p3 = scmp.lt.s32.totalorder %s108_s22, %s108_s22 }
  0x47   :  { %p20512_p2 = scmp.ne.s32.totalorder %s108_s22, %s20511_s23  ;;  %p20517_p4 = scmp.lt.s32.totalorder %s20511_s23, %s20511_s23 }
  0x49   :  { %p20518_p5 = por %p20517_p4, %p20516_p3 }
  0x4b   :  { %p20519_p6 = pnand %p20518_p5, %p20512_p2 }
  0x4d   :  { %20522 = shalt.err (!%p20519_p6)
}
  0x4e   :  { %113 = dma.hbm_to_vmem [thread:$0]  %s24155_s8, 1536, %s108_s22, [#allocation13], %s20555_s11, %s20555_s11, %s20556_s15  }
  0x4f   :  { %20543 = dma.done.wait [#allocation4], 1024  }
  0x50   :  { %20544 = vsyncadd [#allocation4], 4294966272 }
  0x51   :  { %20545 = dma.done.wait [#allocation7], 2432  }
  0x52   :  { %20546 = vsyncadd [#allocation7], 4294964864 }
  0x53   :  { %20547 = dma.done.wait [#allocation10], 3072  }
  0x54   :  { %20548 = vsyncadd [#allocation10], 4294964224 }
  0x55   :  { %20549 = dma.done.wait [#allocation13], 3072  }
  0x56   :  { %20550 = vsyncadd [#allocation13], 4294964224  ;;  %vm153_vm0 = vcmask 261120   ;;  %v20684_v1 = vld [vmem:[%s24147_s0 + $0x18] sm:$0xff]  ;;  %v20689_v2 = vld [vmem:[%s24147_s0 + $0x10] sm:$0xff]  ;;  %vm1413_vm1 = vcmask 269312  }
  0x57   :  { %v20694_v3 = vld [vmem:[%s24147_s0 + $0x8] sm:$0xff]  ;;  %v20697_v4 = vand.u32 4294901760, %v20684_v1  ;;  %v20700_v5 = vand.u32 4294901760, %v20689_v2  ;;  %v20708_v7 = vld [vmem:[%s24147_s0] sm:$0xff]  ;;  %v143_v13 = vld [vmem:[#allocation6 + $0x10] sm:$0xff]  ;;  %vm1426_vm2 = vcmask 1040384  }
  0x58   :  { %v20703_v6 = vand.u32 4294901760, %v20694_v3  ;;  %v141_v8 = vld [vmem:[#allocation6] sm:$0xff]  ;;  %v142_v9 = vld [vmem:[#allocation6 + $0x8] sm:$0xff]  ;;  %v20711_v10 = vand.u32 4294901760, %v20708_v7  ;;  %v144_v14 = vld [vmem:[#allocation6 + $0x18] sm:$0xff]  ;;  %v161_v20 = vsel %vm153_vm0, %v143_v13, 0 }
  0x59   :  { %v155_v11 = vsel %vm153_vm0, %v141_v8, 0  ;;  %v158_v12 = vsel %vm153_vm0, %v142_v9, 0  ;;  %18082 = vmatprep.subr.mxu0 %v20697_v4  ;;  %v301_v15 = vsub.f32 %v20684_v1, %v20697_v4  ;;  %v308_v18 = vsub.f32 %v20689_v2, %v20700_v5  ;;  %s20563_s20 = smov 32   ;;  %s20564_s21 = smov 96  }
  0x5a   :  { %v20718_v16 = vand.u32 4294901760, %v155_v11  ;;  %v20720_v17 = vand.u32 4294901760, %v158_v12  ;;  %18083 = vmatpush3.msra.mxu0 %v20697_v4  ;;  %v315_v19 = vsub.f32 %v20694_v3, %v20703_v6  ;;  %v164_v21 = vsel %vm153_vm0, %v144_v14, 0 }
  0x5b   :  { %v322_v22 = vsub.f32 %v20708_v7, %v20711_v10  ;;  %18084 = vmatprep.subr.mxu0 %v20700_v5  ;;  %v20732_v23 = vand.u32 4294901760, %v301_v15  ;;  %v20740_v26 = vand.u32 4294901760, %v308_v18  ;;  %v20746_v28 = vand.u32 4294901760, %v161_v20 }
  0x5c   :  { %24256 = vst [vmem:[#allocation21_spill] sm:$0xff] %v20718_v16  ;;  %24257 = vst [vmem:[#allocation22_spill] sm:$0xff] %v20720_v17  ;;  %v20735_v24 = vsub.f32 %v155_v11, %v20718_v16  ;;  %v20738_v25 = vsub.f32 %v158_v12, %v20720_v17  ;;  %18104 = vmatprep.mubr.f32.mxu1 %v20718_v16  ;;  %18085 = vmatpush3.msra.mxu0 %v20700_v5  ;;  %v20744_v27 = vand.u32 4294901760, %v315_v19 }
  0x5d   :  { %24260 = vst [vmem:[#allocation25_spill] sm:$0xff] %v20746_v28  ;;  %v20748_v29 = vand.u32 4294901760, %v164_v21  ;;  %v20750_v30 = vand.u32 4294901760, %v322_v22  ;;  %18086 = vmatprep.subr.mxu0 %v20703_v6  ;;  %v303_v31 = vsub.f32 %v301_v15, %v20732_v23  ;;  %v310_v34 = vsub.f32 %v308_v18, %v20740_v26 }
  0x5e   :  { %24258 = vst [vmem:[#allocation23_spill] sm:$0xff] %v20735_v24  ;;  %24259 = vst [vmem:[#allocation24_spill] sm:$0xff] %v20738_v25  ;;  %v20755_v32 = vand.u32 4294901760, %v20735_v24  ;;  %v20758_v33 = vand.u32 4294901760, %v20738_v25  ;;  %18087 = vmatpush3.msra.mxu0 %v20703_v6  ;;  %v317_v35 = vsub.f32 %v315_v19, %v20744_v27  ;;  %v20764_v36 = vsub.f32 %v161_v20, %v20746_v28 }
  0x5f   :  { %24261 = vst [vmem:[#allocation26_spill] sm:$0xff] %v20748_v29  ;;  %v20767_v37 = vsub.f32 %v164_v21, %v20748_v29  ;;  %18088 = vmatprep.subr.mxu0 %v20711_v10  ;;  %v304_v38 = vand.u32 4294901760, %v303_v31  ;;  %v311_v41 = vand.u32 4294901760, %v310_v34  ;;  %v324_v44 = vsub.f32 %v322_v22, %v20750_v30 }
  0x60   :  { %24262 = vst [vmem:[#allocation27_spill] sm:$0xff] %v20755_v32  ;;  %24263 = vst [vmem:[#allocation28_spill] sm:$0xff] %v20758_v33  ;;  %v238_v39 = vsub.f32 %v20735_v24, %v20755_v32  ;;  %v248_v40 = vsub.f32 %v20738_v25, %v20758_v33  ;;  %18089 = vmatpush3.msra.mxu0 %v20711_v10  ;;  %v20776_v42 = vand.u32 4294901760, %v20764_v36  ;;  %v318_v47 = vand.u32 4294901760, %v317_v35 }
  0x61   :  { %24264 = vst [vmem:[#allocation29_spill] sm:$0xff] %v20764_v36  ;;  %24265 = vst [vmem:[#allocation30_spill] sm:$0xff] %v20767_v37  ;;  %v20779_v43 = vand.u32 4294901760, %v20767_v37  ;;  %18096 = vmatprep.subr.mxu1 %v304_v38  ;;  %18110 = vmatprep.subr.mxu0 %v301_v15  ;;  %v325_v52 = vand.u32 4294901760, %v324_v44 }
  0x62   :  { %24266 = vst [vmem:[#allocation31_spill] sm:$0xff] %v20776_v42  ;;  %v20782_v45 = vand.u32 4294901760, %v238_v39  ;;  %v20784_v46 = vand.u32 4294901760, %v248_v40  ;;  %18097 = vmatpush3.msra.mxu1 %v304_v38  ;;  %v258_v48 = vsub.f32 %v20764_v36, %v20776_v42 }
  0x63   :  { %24267 = vst [vmem:[#allocation32_spill] sm:$0xff] %v20779_v43  ;;  %v268_v49 = vsub.f32 %v20767_v37, %v20779_v43  ;;  %18098 = vmatprep.subr.mxu1 %v311_v41 }
  0x64   :  { %24268 = vst [vmem:[#allocation33_spill] sm:$0xff] %v20782_v45  ;;  %24269 = vst [vmem:[#allocation34_spill] sm:$0xff] %v20784_v46  ;;  %18090 = vmatprep.mubr.f32.mxu0 %v20782_v45  ;;  %18099 = vmatpush3.msra.mxu1 %v311_v41  ;;  %v20792_v50 = vand.u32 4294901760, %v258_v48 }
  0x65   :  { %18091 = vmatmul.mubr.f32.vlgmr.msra.gmra.mxu0 %v20784_v46  ;;  %v20794_v51 = vand.u32 4294901760, %v268_v49  ;;  %18100 = vmatprep.subr.mxu1 %v318_v47 }
  0x66   :  { %24270 = vst [vmem:[#allocation35_spill] sm:$0xff] %v20792_v50  ;;  %18111 = vmatpush3.msra.mxu0 %v301_v15  ;;  %18093 = vmatprep.mubr.f32.mxu0 %v20792_v50 }
  0x67   :  { %24271 = vst [vmem:[#allocation36_spill] sm:$0xff] %v20794_v51  ;;  %18112 = vmatprep.subr.mxu0 %v308_v18  ;;  %18101 = vmatpush3.msra.mxu1 %v318_v47 }
  0x68   :  { %18113 = vmatpush3.msra.mxu0 %v308_v18  ;;  %18102 = vmatprep.subr.mxu1 %v325_v52 }
  0x69   :  { %18094 = vmatmul.mubr.f32.gmra.mxu0 %v20794_v51  ;;  %18114 = vmatprep.subr.mxu0 %v315_v19 }
  0x6a   :  { %18103 = vmatpush3.msra.mxu1 %v325_v52  ;;  %18115 = vmatpush3.msra.mxu0 %v315_v19 }
  0x6b   :  { %18105 = vmatmul.mubr.f32.vlgmr.msra.gmra.mxu1 %v20720_v17  ;;  %18116 = vmatprep.subr.mxu0 %v322_v22 }
  0x6c   :  { %18124 = vmatprep.subr.mxu1 %v20697_v4  ;;  %18117 = vmatpush3.msra.mxu0 %v322_v22 }
  0x6d   :  { %18118 = vmatprep.mubr.f32.mxu0 %v20735_v24  ;;  %18125 = vmatpush3.msra.mxu1 %v20697_v4 }
  0x6e   :  { %18119 = vmatmul.mubr.f32.vlgmr.msra.gmra.mxu0 %v20738_v25  ;;  %18126 = vmatprep.subr.mxu1 %v20700_v5 }
  0x6f   :  { %18138 = vmatprep.subr.mxu0 %v20732_v23  ;;  %18107 = vmatprep.mubr.f32.mxu1 %v20746_v28 }
  0x70   :  { %18127 = vmatpush3.msra.mxu1 %v20700_v5  ;;  %18139 = vmatpush3.msra.mxu0 %v20732_v23 }
  0x71   :  { %18108 = vmatmul.mubr.f32.gmra.mxu1 %v20748_v29  ;;  %18128 = vmatprep.subr.mxu1 %v20703_v6 }
  0x72   :  { %18140 = vmatprep.subr.mxu0 %v20740_v26  ;;  %18121 = vmatprep.mubr.f32.mxu0 %v20764_v36 }
  0x73   :  { %18129 = vmatpush3.msra.mxu1 %v20703_v6  ;;  %18141 = vmatpush3.msra.mxu0 %v20740_v26 }
  0x74   :  { %18130 = vmatprep.subr.mxu1 %v20711_v10  ;;  %18122 = vmatmul.mubr.f32.gmra.mxu0 %v20767_v37 }
  0x75   :  { %18142 = vmatprep.subr.mxu0 %v20744_v27  ;;  %18131 = vmatpush3.msra.mxu1 %v20711_v10 }
  0x76   :  { %18132 = vmatprep.mubr.f32.mxu1 %v20755_v32  ;;  %18143 = vmatpush3.msra.mxu0 %v20744_v27 }
  0x77   :  { %18133 = vmatmul.mubr.f32.vlgmr.msra.gmra.mxu1 %v20758_v33  ;;  %18144 = vmatprep.subr.mxu0 %v20750_v30 }
  0x78   :  { %18152 = vmatprep.subr.mxu1 %v20697_v4  ;;  %18145 = vmatpush3.msra.mxu0 %v20750_v30 }
  0x79   :  { %18146 = vmatprep.mubr.f32.mxu0 %v20718_v16  ;;  %18153 = vmatpush3.msra.mxu1 %v20697_v4 }
  0x7a   :  { %18147 = vmatmul.mubr.f32.vlgmr.msra.gmra.mxu0 %v20720_v17  ;;  %18154 = vmatprep.subr.mxu1 %v20700_v5 }
  0x7b   :  { %18135 = vmatprep.mubr.f32.mxu1 %v20776_v42  ;;  %18155 = vmatpush3.msra.mxu1 %v20700_v5 }
  0x7c   :  { %18149 = vmatprep.mubr.f32.mxu0 %v20746_v28  ;;  %18136 = vmatmul.mubr.f32.gmra.mxu1 %v20779_v43 }
  0x7d   :  { %18156 = vmatprep.subr.mxu1 %v20703_v6  ;;  %18160 = vmatprep.mubr.f32.mxu1 %v20718_v16 }
  0x7e   :  { %18157 = vmatpush3.msra.mxu1 %v20703_v6  ;;  %18150 = vmatmul.mubr.f32.gmra.mxu0 %v20748_v29 }
  0x7f   :  { %18158 = vmatprep.subr.mxu1 %v20711_v10  ;;  %18174 = vmatprep.mubr.f32.mxu0 %v20782_v45 }
  0x80   :  { %18159 = vmatpush3.msra.mxu1 %v20711_v10 }
  0x81   :  { %18161 = vmatmul.mubr.f32.vlgmr.msra.gmra.mxu1 %v20720_v17 }
  0x82   :  { %18163 = vmatprep.mubr.f32.mxu1 %v20746_v28 }
  0x85   :  { %18164 = vmatmul.mubr.f32.gmra.mxu1 %v20748_v29 }
  0x86   :  { %18188 = vmatprep.mubr.f32.mxu1 %v20718_v16 }
 0x125   :  { %v18092_v53 = vpop.f32.mrf.mxu0 }
 0x127   :  { %v241_v54 = vpop.f32.mrf.mxu0 }
 0x129   :  { %v18095_v55 = vpop.f32.mrf.mxu0 }
 0x12b   :  { %v261_v56 = vpop.f32.mrf.mxu0  ;;  %v18106_v57 = vpop.f32.mrf.mxu1 }
 0x12c   :  { %v369_v0 = vadd.f32 %v18106_v57, %v18092_v53 }
 0x12d   :  { %v362_v58 = vpop.f32.mrf.mxu1 }
 0x12e   :  { %v18120_v59 = vpop.f32.mrf.mxu0  ;;  %v363_v6 = vadd.f32 %v362_v58, %v241_v54 }
 0x12f   :  { %v468_v9 = vadd.f32 %v18120_v59, %v369_v0 }
 0x130   :  { %v460_v61 = vpop.f32.mrf.mxu0 }
 0x131   :  { %v18109_v60 = vpop.f32.mrf.mxu1  ;;  %v461_v12 = vadd.f32 %v460_v61, %v363_v6 }
 0x132   :  { %v381_v10 = vadd.f32 %v18109_v60, %v18095_v55 }
 0x133   :  { %v374_v62 = vpop.f32.mrf.mxu1 }
 0x134   :  { %v18123_v63 = vpop.f32.mrf.mxu0  ;;  %v375_v13 = vadd.f32 %v374_v62, %v261_v56 }
 0x135   :  { %v482_v19 = vadd.f32 %v18123_v63, %v381_v10 }
 0x136   :  { %v474_v4 = vpop.f32.mrf.mxu0 }
 0x137   :  { %v18134_v5 = vpop.f32.mrf.mxu1  ;;  %v475_v23 = vadd.f32 %v474_v4, %v375_v13  ;;  %v1412_v13 = vld [vmem:[#allocation8 + $0x48] sm:$0x1] }
 0x138   :  { %v567_v14 = vadd.f32 %v18134_v5, %v468_v9 }
 0x139   :  { %v558_v8 = vpop.f32.mrf.mxu1 }
 0x13a   :  { %v18148_v11 = vpop.f32.mrf.mxu0  ;;  %v559_v20 = vadd.f32 %v558_v8, %v461_v12 }
 0x13b   :  { %v672_v26 = vadd.f32 %v18148_v11, %v567_v14 }
 0x13c   :  { %v665_v15 = vpop.f32.mrf.mxu0  ;;  %v18137_v18 = vpop.f32.mrf.mxu1 }
 0x13d   :  { %v583_v27 = vadd.f32 %v18137_v18, %v482_v19  ;;  %v666_v31 = vadd.f32 %v665_v15, %v559_v20  ;;  %v1428_v15 = vsel %vm1426_vm2, %v1412_v13, 0  ;;  %v1411_v19 = vld [vmem:[#allocation8 + $0x40] sm:$0xff] }
 0x13e   :  { %v574_v21 = vpop.f32.mrf.mxu1  ;;  %v18151_v22 = vpop.f32.mrf.mxu0 }
 0x13f   :  { %v575_v34 = vadd.f32 %v574_v21, %v475_v23  ;;  %v684_v40 = vadd.f32 %v18151_v22, %v583_v27  ;;  %v20899_v21 = vand.u32 4294901760, %v1428_v15  ;;  %v1410_v27 = vld [vmem:[#allocation8 + $0x38] sm:$0xff] }
 0x140   :  { %v677_v38 = vpop.f32.mrf.mxu0 }
 0x141   :  { %v18162_v30 = vpop.f32.mrf.mxu1  ;;  %v678_v48 = vadd.f32 %v677_v38, %v575_v34  ;;  %v1409_v38 = vld [vmem:[#allocation8 + $0x30] sm:$0xff] }
 0x142   :  { %v20843_v35 = vadd.f32 %v18162_v30, %v672_v26  ;;  %v20910_v26 = vand.u32 4294901760, %v1411_v19 }
 0x143   :  { %v758_v39 = vpop.f32.mrf.mxu1 }
 0x144   :  { %v759_v41 = vadd.f32 %v758_v39, %v666_v31  ;;  %v20846_v44 = vand.u32 4294901760, %v20843_v35  ;;  %v1418_v20 = vsel %vm1413_vm1, %v20843_v35, 0  ;;  %v20919_v31 = vsub.f32 %v1428_v15, %v20899_v21 }
 0x145   :  { %v18165_v47 = vpop.f32.mrf.mxu1  ;;  %v20912_v30 = vand.u32 4294901760, %v1418_v20 }
 0x146   :  { %v20848_v49 = vadd.f32 %v18165_v47, %v684_v40  ;;  %v20850_v52 = vand.u32 4294901760, %v759_v41  ;;  %v929_v56 = vsub.f32 %v20843_v35, %v20846_v44  ;;  %v1415_v14 = vsel %vm1413_vm1, %v759_v41, 0 }
 0x147   :  { %v770_v53 = vpop.f32.mrf.mxu1  ;;  %v20891_v18 = vand.u32 4294901760, %v1415_v14  ;;  %v20925_v35 = vand.u32 4294901760, %v1410_v27  ;;  %v20931_v40 = vsub.f32 %v1411_v19, %v20910_v26 }
 0x148   :  { %v20853_v54 = vand.u32 4294901760, %v20848_v49  ;;  %v20855_v55 = vadd.f32 %v770_v53, %v678_v48  ;;  %v936_v59 = vsub.f32 %v759_v41, %v20850_v52  ;;  %v20871_v62 = vand.u32 4294901760, %v929_v56  ;;  %v1408_v53 = vld [vmem:[#allocation8 + $0x28] sm:$0xff] }
 0x149   :  { %v20904_v22 = vsub.f32 %v1415_v14, %v20891_v18  ;;  %v20934_v41 = vsub.f32 %v1418_v20, %v20912_v30  ;;  %v1424_v47 = vsel %vm1413_vm1, %v20848_v49, 0  ;;  %v20942_v48 = vand.u32 4294901760, %v1409_v38 }
 0x14a   :  { %v915_v57 = vsub.f32 %v20848_v49, %v20853_v54  ;;  %v20862_v58 = vand.u32 4294901760, %v20855_v55  ;;  %18166 = vmatprep.subr.mxu0 %v20853_v54  ;;  %v20875_v4 = vand.u32 4294901760, %v936_v59  ;;  %v931_v8 = vsub.f32 %v929_v56, %v20871_v62 }
 0x14b   :  { %18167 = vmatpush3.msra.mxu0 %v20853_v54  ;;  %v1421_v23 = vsel %vm1413_vm1, %v20855_v55, 0  ;;  %v1502_v39 = vand.u32 4294901760, %v20904_v22  ;;  %v20953_v49 = vsub.f32 %v1410_v27, %v20925_v35 }
 0x14c   :  { %v922_v60 = vsub.f32 %v20855_v55, %v20862_v58  ;;  %18168 = vmatprep.subr.mxu0 %v20862_v58  ;;  %v916_v61 = vand.u32 4294901760, %v915_v57  ;;  %v938_v10 = vsub.f32 %v936_v59, %v20875_v4  ;;  %v932_v11 = vand.u32 4294901760, %v931_v8 }
 0x14d   :  { %18169 = vmatpush3.msra.mxu0 %v20862_v58  ;;  %v20921_v34 = vand.u32 4294901760, %v1421_v23  ;;  %v20945_v55 = vand.u32 4294901760, %v20919_v31 }
 0x14e   :  { %18170 = vmatprep.subr.mxu0 %v20846_v44  ;;  %v917_v63 = vsub.f32 %v915_v57, %v916_v61  ;;  %v923_v0 = vand.u32 4294901760, %v922_v60  ;;  %v939_v12 = vand.u32 4294901760, %v938_v10 }
 0x14f   :  { %18171 = vmatpush3.msra.mxu0 %v20846_v44 }
 0x150   :  { %18172 = vmatprep.subr.mxu0 %v20850_v52  ;;  %v918_v5 = vand.u32 4294901760, %v917_v63  ;;  %v924_v6 = vsub.f32 %v922_v60, %v923_v0  ;;  %v1585_v63 = vsub.f32 %v1409_v38, %v20942_v48 }
 0x151   :  { %18173 = vmatpush3.msra.mxu0 %v20850_v52 }
 0x152   :  { %18175 = vmatmul.mubr.f32.vlgmr.msra.gmra.mxu0 %v20784_v46  ;;  %18180 = vmatprep.subr.mxu1 %v918_v5  ;;  %v925_v9 = vand.u32 4294901760, %v924_v6 }
 0x153   :  { %18194 = vmatprep.subr.mxu0 %v915_v57  ;;  %18181 = vmatpush3.msra.mxu1 %v918_v5 }
 0x154   :  { %18195 = vmatpush3.msra.mxu0 %v915_v57  ;;  %18182 = vmatprep.subr.mxu1 %v925_v9  ;;  %v20955_v57 = vand.u32 4294901760, %v1424_v47 }
 0x155   :  { %18196 = vmatprep.subr.mxu0 %v922_v60  ;;  %18177 = vmatprep.mubr.f32.mxu0 %v20792_v50 }
 0x156   :  { %18183 = vmatpush3.msra.mxu1 %v925_v9  ;;  %18197 = vmatpush3.msra.mxu0 %v922_v60  ;;  %v20963_v60 = vand.u32 4294901760, %v20931_v40  ;;  %v20982_v5 = vsub.f32 %v1424_v47, %v20955_v57 }
 0x157   :  { %18178 = vmatmul.mubr.f32.gmra.mxu0 %v20794_v51  ;;  %18184 = vmatprep.subr.mxu1 %v932_v11 }
 0x158   :  { %18198 = vmatprep.subr.mxu0 %v929_v56  ;;  %18185 = vmatpush3.msra.mxu1 %v932_v11  ;;  %v1573_v6 = vsub.f32 %v20931_v40, %v20963_v60  ;;  %v20995_v11 = vand.u32 4294901760, %v1585_v63  ;;  %v1532_v14 = vand.u32 4294901760, %v20982_v5 }
 0x159   :  { %18199 = vmatpush3.msra.mxu0 %v929_v56  ;;  %18186 = vmatprep.subr.mxu1 %v939_v12  ;;  %v20948_v56 = vsub.f32 %v1421_v23, %v20921_v34 }
 0x15a   :  { %18200 = vmatprep.subr.mxu0 %v936_v59  ;;  %18187 = vmatpush3.msra.mxu1 %v939_v12  ;;  %v1574_v13 = vand.u32 4294901760, %v1573_v6  ;;  %v1587_v19 = vsub.f32 %v1585_v63, %v20995_v11  ;;  %v1533_v27 = vsub.f32 %v20982_v5, %v1532_v14 }
 0x15b   :  { %18201 = vmatpush3.msra.mxu0 %v936_v59  ;;  %18202 = vmatprep.mubr.f32.mxu0 %v20735_v24  ;;  %v1503_v59 = vsub.f32 %v20904_v22, %v1502_v39 }
 0x15c   :  { %18189 = vmatmul.mubr.f32.vlgmr.msra.gmra.mxu1 %v20720_v17  ;;  %18203 = vmatmul.mubr.f32.vlgmr.msra.gmra.mxu0 %v20738_v25  ;;  %v1588_v47 = vand.u32 4294901760, %v1587_v19 }
 0x15d   :  { %18208 = vmatprep.subr.mxu1 %v20853_v54  ;;  %18222 = vmatprep.subr.mxu0 %v916_v61 }
 0x15e   :  { %18209 = vmatpush3.msra.mxu1 %v20853_v54  ;;  %18223 = vmatpush3.msra.mxu0 %v916_v61  ;;  %v20968_v61 = vand.u32 4294901760, %v1408_v53 }
 0x15f   :  { %18210 = vmatprep.subr.mxu1 %v20862_v58  ;;  %18224 = vmatprep.subr.mxu0 %v923_v0 }
 0x160   :  { %18191 = vmatprep.mubr.f32.mxu1 %v20746_v28  ;;  %18205 = vmatprep.mubr.f32.mxu0 %v20764_v36  ;;  %v1592_v9 = vsub.f32 %v1408_v53, %v20968_v61  ;;  %v1534_v53 = vand.u32 4294901760, %v1533_v27 }
 0x161   :  { %18211 = vmatpush3.msra.mxu1 %v20862_v58  ;;  %18225 = vmatpush3.msra.mxu0 %v923_v0  ;;  %v1522_v0 = vand.u32 4294901760, %v20948_v56 }
 0x162   :  { %18192 = vmatmul.mubr.f32.gmra.mxu1 %v20748_v29  ;;  %18206 = vmatmul.mubr.f32.gmra.mxu0 %v20767_v37 }
 0x163   :  { %18212 = vmatprep.subr.mxu1 %v20846_v44  ;;  %18226 = vmatprep.subr.mxu0 %v20871_v62  ;;  %v1523_v12 = vsub.f32 %v20948_v56, %v1522_v0 }
 0x164   :  { %18213 = vmatpush3.msra.mxu1 %v20846_v44  ;;  %18227 = vmatpush3.msra.mxu0 %v20871_v62  ;;  %v1566_v62 = vsub.f32 %v20919_v31, %v20945_v55 }
 0x165   :  { %18214 = vmatprep.subr.mxu1 %v20850_v52  ;;  %18228 = vmatprep.subr.mxu0 %v20875_v4  ;;  %v1524_v20 = vand.u32 4294901760, %v1523_v12 }
 0x166   :  { %18215 = vmatpush3.msra.mxu1 %v20850_v52  ;;  %18216 = vmatprep.mubr.f32.mxu1 %v20755_v32  ;;  %v1567_v10 = vand.u32 4294901760, %v1566_v62 }
 0x167   :  { %18229 = vmatpush3.msra.mxu0 %v20875_v4  ;;  %18230 = vmatprep.mubr.f32.mxu0 %v20718_v16  ;;  %v20979_v4 = vand.u32 4294901760, %v20953_v49 }
 0x168   :  { %18217 = vmatmul.mubr.f32.vlgmr.msra.gmra.mxu1 %v20758_v33  ;;  %18231 = vmatmul.mubr.f32.vlgmr.msra.gmra.mxu0 %v20720_v17 }
 0x169   :  { %18236 = vmatprep.subr.mxu1 %v20853_v54  ;;  %18250 = vmatprep.subr.mxu0 %v20899_v21 }
 0x16a   :  { %18237 = vmatpush3.msra.mxu1 %v20853_v54  ;;  %18251 = vmatpush3.msra.mxu0 %v20899_v21  ;;  %v1512_v54 = vand.u32 4294901760, %v20934_v41 }
 0x16b   :  { %18238 = vmatprep.subr.mxu1 %v20862_v58  ;;  %18252 = vmatprep.subr.mxu0 %v20910_v26 }
 0x16c   :  { %18219 = vmatprep.mubr.f32.mxu1 %v20776_v42  ;;  %18233 = vmatprep.mubr.f32.mxu0 %v20746_v28  ;;  %v1513_v8 = vsub.f32 %v20934_v41, %v1512_v54 }
 0x16d   :  { %18239 = vmatpush3.msra.mxu1 %v20862_v58  ;;  %18253 = vmatpush3.msra.mxu0 %v20910_v26  ;;  %v1504_v58 = vand.u32 4294901760, %v1503_v59 }
 0x16e   :  { %18220 = vmatmul.mubr.f32.gmra.mxu1 %v20779_v43  ;;  %18234 = vmatmul.mubr.f32.gmra.mxu0 %v20748_v29  ;;  %v1514_v15 = vand.u32 4294901760, %v1513_v8 }
 0x16f   :  { %18240 = vmatprep.subr.mxu1 %v20846_v44  ;;  %18254 = vmatprep.subr.mxu0 %v20925_v35 }
 0x170   :  { %18241 = vmatpush3.msra.mxu1 %v20846_v44  ;;  %18255 = vmatpush3.msra.mxu0 %v20925_v35  ;;  %v1580_v44 = vsub.f32 %v20953_v49, %v20979_v4 }
 0x171   :  { %18260 = vmatprep.mubr.f32.mxu0 %v1504_v58  ;;  %18242 = vmatprep.subr.mxu1 %v20850_v52  ;;  %v2064_v58 = vsel %vm1413_vm1, %v20689_v2, 0 }
 0x172   :  { %18256 = vmatprep.subr.mxu0 %v20942_v48  ;;  %18243 = vmatpush3.msra.mxu1 %v20850_v52  ;;  %v21009_v52 = vand.u32 4294901760, %v1592_v9  ;;  %v1581_v23 = vand.u32 4294901760, %v1580_v44 }
 0x173   :  { %18244 = vmatprep.mubr.f32.mxu1 %v20718_v16  ;;  %18257 = vmatpush3.msra.mxu0 %v20942_v48 }
 0x174   :  { %18245 = vmatmul.mubr.f32.vlgmr.msra.gmra.mxu1 %v20720_v17  ;;  %18258 = vmatprep.subr.mxu0 %v20968_v61  ;;  %v1594_v38 = vsub.f32 %v1592_v9, %v21009_v52 }
 0x175   :  { %18266 = vmatprep.subr.mxu1 %v1567_v10  ;;  %18259 = vmatpush3.msra.mxu0 %v20968_v61 }
 0x176   :  { %18267 = vmatpush3.msra.mxu1 %v1567_v10  ;;  %18261 = vmatmul.mubr.f32.vlgmr.msra.gmra.mxu0 %v1514_v15  ;;  %v1595_v59 = vand.u32 4294901760, %v1594_v38 }
 0x177   :  { %18268 = vmatprep.subr.mxu1 %v1574_v13  ;;  %18282 = vmatprep.subr.mxu0 %v20919_v31 }
 0x178   :  { %18247 = vmatprep.mubr.f32.mxu1 %v20746_v28  ;;  %18263 = vmatprep.mubr.f32.mxu0 %v1524_v20 }
 0x179   :  { %18269 = vmatpush3.msra.mxu1 %v1574_v13  ;;  %18283 = vmatpush3.msra.mxu0 %v20919_v31  ;;  %v1406_v31 = vld [vmem:[#allocation8 + $0x20] sm:$0x1] }
 0x17a   :  { %18248 = vmatmul.mubr.f32.gmra.mxu1 %v20748_v29  ;;  %18270 = vmatprep.subr.mxu1 %v1581_v23 }
 0x17b   :  { %18284 = vmatprep.subr.mxu0 %v20931_v40  ;;  %18271 = vmatpush3.msra.mxu1 %v1581_v23 }
 0x17c   :  { %18276 = vmatprep.mubr.f32.mxu1 %v20891_v18  ;;  %18285 = vmatpush3.msra.mxu0 %v20931_v40  ;;  %v2070_v40 = vsel %vm1426_vm2, %v1406_v31, 0 }
 0x17d   :  { %18264 = vmatmul.mubr.f32.gmra.mxu0 %v1534_v53  ;;  %18272 = vmatprep.subr.mxu1 %v1588_v47  ;;  %v21047_v62 = vand.u32 4294901760, %v2070_v40 }
 0x17e   :  { %18286 = vmatprep.subr.mxu0 %v20953_v49  ;;  %18273 = vmatpush3.msra.mxu1 %v1588_v47 }
 0x17f   :  { %18287 = vmatpush3.msra.mxu0 %v20953_v49  ;;  %18292 = vmatprep.mubr.f32.mxu0 %v20904_v22  ;;  %v2058_v49 = vsel %vm1413_vm1, %v20708_v7, 0 }
 0x180   :  { %18274 = vmatprep.subr.mxu1 %v1595_v59  ;;  %18288 = vmatprep.subr.mxu0 %v1585_v63  ;;  %v21055_v7 = vand.u32 4294901760, %v2058_v49 }
 0x181   :  { %18275 = vmatpush3.msra.mxu1 %v1595_v59  ;;  %18289 = vmatpush3.msra.mxu0 %v1585_v63  ;;  %v2061_v63 = vsel %vm1413_vm1, %v20694_v3, 0  ;;  %v21066_v3 = vsub.f32 %v2070_v40, %v21047_v62 }
 0x182   :  { %18277 = vmatmul.mubr.f32.vlgmr.msra.gmra.mxu1 %v20912_v30  ;;  %18290 = vmatprep.subr.mxu0 %v1592_v9  ;;  %v21078_v8 = vsub.f32 %v2058_v49, %v21055_v7 }
 0x183   :  { %18298 = vmatprep.subr.mxu1 %v20899_v21  ;;  %18279 = vmatprep.mubr.f32.mxu1 %v20921_v34 }
 0x184   :  { %18291 = vmatpush3.msra.mxu0 %v1592_v9  ;;  %18299 = vmatpush3.msra.mxu1 %v20899_v21  ;;  %v2067_v9 = vsel %vm1413_vm1, %v20684_v1, 0  ;;  %v1402_v1 = vld [vmem:[#allocation8] sm:$0xff] }
 0x185   :  { %18293 = vmatmul.mubr.f32.vlgmr.msra.gmra.mxu0 %v20934_v41  ;;  %18300 = vmatprep.subr.mxu1 %v20910_v26  ;;  %v21112_v12 = vand.u32 4294901760, %v1402_v1 }
 0x186   :  { %18314 = vmatprep.subr.mxu0 %v20945_v55  ;;  %18295 = vmatprep.mubr.f32.mxu0 %v20948_v56  ;;  %v21102_v56 = vand.u32 4294901760, %v2067_v9 }
 0x187   :  { %18301 = vmatpush3.msra.mxu1 %v20910_v26  ;;  %18315 = vmatpush3.msra.mxu0 %v20945_v55  ;;  %v1405_v55 = vld [vmem:[#allocation8 + $0x18] sm:$0xff]  ;;  %v2234_v23 = vsub.f32 %v1402_v1, %v21112_v12  ;;  %v2700_v1 = vld [vmem:[#allocation8 + $0x50] sm:$0xff] }
 0x188   :  { %18280 = vmatmul.mubr.f32.gmra.mxu1 %v20955_v57  ;;  %18302 = vmatprep.subr.mxu1 %v20925_v35  ;;  %v21059_v22 = vand.u32 4294901760, %v1405_v55  ;;  %v21132_v19 = vsub.f32 %v2067_v9, %v21102_v56 }
 0x189   :  { %18316 = vmatprep.subr.mxu0 %v20963_v60  ;;  %18303 = vmatpush3.msra.mxu1 %v20925_v35  ;;  %v21168_v49 = vand.u32 4294901760, %v2234_v23 }
 0x18a   :  { %18308 = vmatprep.mubr.f32.mxu1 %v1502_v39  ;;  %18317 = vmatpush3.msra.mxu0 %v20963_v60  ;;  %v1404_v39 = vld [vmem:[#allocation8 + $0x10] sm:$0xff]  ;;  %v21061_v60 = vand.u32 4294901760, %v2061_v63  ;;  %v21089_v41 = vsub.f32 %v1405_v55, %v21059_v22  ;;  %v2174_v47 = vand.u32 4294901760, %v21132_v19 }
 0x18b   :  { %18296 = vmatmul.mubr.f32.gmra.mxu0 %v20982_v5  ;;  %18304 = vmatprep.subr.mxu1 %v20942_v48  ;;  %v21075_v6 = vand.u32 4294901760, %v1404_v39 }
 0x18c   :  { %18318 = vmatprep.subr.mxu0 %v20979_v4  ;;  %18305 = vmatpush3.msra.mxu1 %v20942_v48  ;;  %v21086_v2 = vsub.f32 %v2061_v63, %v21061_v60  ;;  %v21116_v13 = vand.u32 4294901760, %v21089_v41 }
 0x18d   :  { %18319 = vmatpush3.msra.mxu0 %v20979_v4  ;;  %18324 = vmatprep.mubr.f32.mxu0 %v20891_v18  ;;  %v1403_v4 = vld [vmem:[#allocation8 + $0x8] sm:$0xff] }
 0x18e   :  { %18306 = vmatprep.subr.mxu1 %v20968_v61  ;;  %18320 = vmatprep.subr.mxu0 %v20995_v11  ;;  %v21095_v10 = vand.u32 4294901760, %v1403_v4  ;;  %v2154_v44 = vand.u32 4294901760, %v21086_v2 }
 0x18f   :  { %18307 = vmatpush3.msra.mxu1 %v20968_v61  ;;  %18321 = vmatpush3.msra.mxu0 %v20995_v11  ;;  %v21098_v11 = vand.u32 4294901760, %v21066_v3 }
 0x190   :  { %18309 = vmatmul.mubr.f32.vlgmr.msra.gmra.mxu1 %v1512_v54  ;;  %18322 = vmatprep.subr.mxu0 %v21009_v52  ;;  %v21091_v54 = vand.u32 4294901760, %v2064_v58 }
 0x191   :  { %18330 = vmatprep.subr.mxu1 %v20899_v21  ;;  %18311 = vmatprep.mubr.f32.mxu1 %v1522_v0  ;;  %v2144_v0 = vand.u32 4294901760, %v21078_v8 }
 0x192   :  { %18323 = vmatpush3.msra.mxu0 %v21009_v52  ;;  %18331 = vmatpush3.msra.mxu1 %v20899_v21  ;;  %v21108_v21 = vsub.f32 %v1404_v39, %v21075_v6  ;;  %v21119_v15 = vsub.f32 %v2064_v58, %v21091_v54  ;;  %v21127_v52 = vsub.f32 %v1403_v4, %v21095_v10 }
 0x193   :  { %18325 = vmatmul.mubr.f32.vlgmr.msra.gmra.mxu0 %v20912_v30  ;;  %18332 = vmatprep.subr.mxu1 %v20910_v26  ;;  %v2145_v5 = vsub.f32 %v21078_v8, %v2144_v0  ;;  %v2236_v39 = vsub.f32 %v2234_v23, %v21168_v49 }
 0x194   :  { %18346 = vmatprep.subr.mxu0 %v21047_v62  ;;  %18327 = vmatprep.mubr.f32.mxu0 %v20921_v34  ;;  %v2164_v20 = vand.u32 4294901760, %v21119_v15  ;;  %v21154_v38 = vand.u32 4294901760, %v21127_v52 }
 0x195   :  { %18333 = vmatpush3.msra.mxu1 %v20910_v26  ;;  %18347 = vmatpush3.msra.mxu0 %v21047_v62  ;;  %v2208_v26 = vsub.f32 %v21066_v3, %v21098_v11  ;;  %v2146_v53 = vand.u32 4294901760, %v2145_v5  ;;  %v2237_v4 = vand.u32 4294901760, %v2236_v39 }
 0x196   :  { %18312 = vmatmul.mubr.f32.gmra.mxu1 %v1532_v14  ;;  %18334 = vmatprep.subr.mxu1 %v20925_v35  ;;  %v21140_v14 = vand.u32 4294901760, %v21108_v21  ;;  %v2165_v40 = vsub.f32 %v21119_v15, %v2164_v20 }
 0x197   :  { %18348 = vmatprep.subr.mxu0 %v21059_v22  ;;  %18335 = vmatpush3.msra.mxu1 %v20925_v35  ;;  %v2155_v35 = vsub.f32 %v21086_v2, %v2154_v44  ;;  %v2209_v27 = vand.u32 4294901760, %v2208_v26 }
 0x198   :  { %18340 = vmatprep.mubr.f32.mxu1 %v20891_v18  ;;  %18349 = vmatpush3.msra.mxu0 %v21059_v22  ;;  %v2215_v18 = vsub.f32 %v21089_v41, %v21116_v13  ;;  %v2222_v59 = vsub.f32 %v21108_v21, %v21140_v14  ;;  %v2166_v63 = vand.u32 4294901760, %v2165_v40 }
 0x199   :  { %18328 = vmatmul.mubr.f32.gmra.mxu0 %v20955_v57  ;;  %18336 = vmatprep.subr.mxu1 %v20942_v48 }
 0x19a   :  { %18350 = vmatprep.subr.mxu0 %v21075_v6  ;;  %18337 = vmatpush3.msra.mxu1 %v20942_v48  ;;  %v2156_v48 = vand.u32 4294901760, %v2155_v35  ;;  %v2216_v31 = vand.u32 4294901760, %v2215_v18  ;;  %v2223_v55 = vand.u32 4294901760, %v2222_v59 }
 0x19b   :  { %18351 = vmatpush3.msra.mxu0 %v21075_v6  ;;  %18338 = vmatprep.subr.mxu1 %v20968_v61 }
 0x19c   :  { %18352 = vmatprep.subr.mxu0 %v21095_v10  ;;  %18339 = vmatpush3.msra.mxu1 %v20968_v61  ;;  %v2229_v61 = vsub.f32 %v21127_v52, %v21154_v38 }
 0x19d   :  { %18353 = vmatpush3.msra.mxu0 %v21095_v10  ;;  %18341 = vmatmul.mubr.f32.vlgmr.msra.gmra.mxu1 %v20912_v30  ;;  %v2175_v30 = vsub.f32 %v21132_v19, %v2174_v47 }
 0x19e   :  { %18354 = vmatprep.subr.mxu0 %v21112_v12  ;;  %18362 = vmatprep.subr.mxu1 %v2209_v27  ;;  %v2230_v58 = vand.u32 4294901760, %v2229_v61 }
 0x19f   :  { %18343 = vmatprep.mubr.f32.mxu1 %v20921_v34  ;;  %18355 = vmatpush3.msra.mxu0 %v21112_v12  ;;  %v2176_v34 = vand.u32 4294901760, %v2175_v30 }
 0x1a0   :  { %18356 = vmatprep.mubr.f32.mxu0 %v2146_v53  ;;  %18363 = vmatpush3.msra.mxu1 %v2209_v27 }
 0x1a1   :  { %18357 = vmatmul.mubr.f32.vlgmr.msra.gmra.mxu0 %v2156_v48  ;;  %18364 = vmatprep.subr.mxu1 %v2216_v31 }
 0x1a2   :  { %18378 = vmatprep.subr.mxu0 %v21066_v3  ;;  %18365 = vmatpush3.msra.mxu1 %v2216_v31 }
 0x1a3   :  { %18379 = vmatpush3.msra.mxu0 %v21066_v3  ;;  %18344 = vmatmul.mubr.f32.gmra.mxu1 %v20955_v57  ;;  %v2704_v57 = vld [vmem:[#allocation8 + $0x70] sm:$0x1] }
 0x1a4   :  { %18366 = vmatprep.subr.mxu1 %v2223_v55  ;;  %18380 = vmatprep.subr.mxu0 %v21089_v41 }
 0x1a5   :  { %18359 = vmatprep.mubr.f32.mxu0 %v2166_v63  ;;  %18367 = vmatpush3.msra.mxu1 %v2223_v55 }
 0x1a6   :  { %18381 = vmatpush3.msra.mxu0 %v21089_v41  ;;  %18368 = vmatprep.subr.mxu1 %v2230_v58 }
 0x1a7   :  { %18360 = vmatmul.mubr.f32.gmra.mxu0 %v2176_v34  ;;  %18382 = vmatprep.subr.mxu0 %v21108_v21 }
 0x1a8   :  { %18369 = vmatpush3.msra.mxu1 %v2230_v58  ;;  %18383 = vmatpush3.msra.mxu0 %v21108_v21 }
 0x1a9   :  { %18370 = vmatprep.subr.mxu1 %v2237_v4  ;;  %18384 = vmatprep.subr.mxu0 %v21127_v52 }
 0x1aa   :  { %18371 = vmatpush3.msra.mxu1 %v2237_v4  ;;  %18372 = vmatprep.mubr.f32.mxu1 %v21055_v7 }
 0x1ab   :  { %18385 = vmatpush3.msra.mxu0 %v21127_v52  ;;  %18373 = vmatmul.mubr.f32.vlgmr.msra.gmra.mxu1 %v21061_v60 }
 0x1ac   :  { %18386 = vmatprep.subr.mxu0 %v2234_v23  ;;  %18394 = vmatprep.subr.mxu1 %v21047_v62 }
 0x1ad   :  { %18387 = vmatpush3.msra.mxu0 %v2234_v23  ;;  %18388 = vmatprep.mubr.f32.mxu0 %v21078_v8 }
 0x1ae   :  { %18395 = vmatpush3.msra.mxu1 %v21047_v62  ;;  %18389 = vmatmul.mubr.f32.vlgmr.msra.gmra.mxu0 %v21086_v2 }
 0x1af   :  { %18396 = vmatprep.subr.mxu1 %v21059_v22  ;;  %18410 = vmatprep.subr.mxu0 %v21098_v11 }
 0x1b0   :  { %18375 = vmatprep.mubr.f32.mxu1 %v21091_v54  ;;  %18397 = vmatpush3.msra.mxu1 %v21059_v22 }
 0x1b1   :  { %18411 = vmatpush3.msra.mxu0 %v21098_v11  ;;  %18376 = vmatmul.mubr.f32.gmra.mxu1 %v21102_v56 }
 0x1b2   :  { %18398 = vmatprep.subr.mxu1 %v21075_v6  ;;  %18412 = vmatprep.subr.mxu0 %v21116_v13 }
 0x1b3   :  { %18391 = vmatprep.mubr.f32.mxu0 %v21119_v15  ;;  %18399 = vmatpush3.msra.mxu1 %v21075_v6 }
 0x1b4   :  { %18413 = vmatpush3.msra.mxu0 %v21116_v13  ;;  %18400 = vmatprep.subr.mxu1 %v21095_v10 }
 0x1b5   :  { %18392 = vmatmul.mubr.f32.gmra.mxu0 %v21132_v19  ;;  %18414 = vmatprep.subr.mxu0 %v21140_v14 }
 0x1b6   :  { %18401 = vmatpush3.msra.mxu1 %v21095_v10  ;;  %18415 = vmatpush3.msra.mxu0 %v21140_v14 }
 0x1b7   :  { %18402 = vmatprep.subr.mxu1 %v21112_v12  ;;  %18416 = vmatprep.subr.mxu0 %v21154_v38 }
 0x1b8   :  { %18403 = vmatpush3.msra.mxu1 %v21112_v12  ;;  %18404 = vmatprep.mubr.f32.mxu1 %v2144_v0 }
 0x1b9   :  { %18417 = vmatpush3.msra.mxu0 %v21154_v38  ;;  %18405 = vmatmul.mubr.f32.vlgmr.msra.gmra.mxu1 %v2154_v44 }
 0x1ba   :  { %18418 = vmatprep.subr.mxu0 %v21168_v49  ;;  %18426 = vmatprep.subr.mxu1 %v21047_v62 }
 0x1bb   :  { %18419 = vmatpush3.msra.mxu0 %v21168_v49  ;;  %18420 = vmatprep.mubr.f32.mxu0 %v21055_v7 }
 0x1bc   :  { %18427 = vmatpush3.msra.mxu1 %v21047_v62  ;;  %18421 = vmatmul.mubr.f32.vlgmr.msra.gmra.mxu0 %v21061_v60  ;;  %v2718_v62 = vsel %vm1426_vm2, %v2704_v57, 0 }
 0x1bd   :  { %18428 = vmatprep.subr.mxu1 %v21059_v22  ;;  %18407 = vmatprep.mubr.f32.mxu1 %v2164_v20  ;;  %v21237_v3 = vand.u32 4294901760, %v2718_v62 }
 0x1be   :  { %18429 = vmatpush3.msra.mxu1 %v21059_v22  ;;  %18423 = vmatprep.mubr.f32.mxu0 %v21091_v54  ;;  %v2703_v22 = vld [vmem:[#allocation8 + $0x68] sm:$0xff] }
 0x1bf   :  { %18408 = vmatmul.mubr.f32.gmra.mxu1 %v2174_v47  ;;  %18430 = vmatprep.subr.mxu1 %v21075_v6  ;;  %v21242_v8 = vsub.f32 %v2718_v62, %v21237_v3  ;;  %v21244_v9 = vand.u32 4294901760, %v2703_v22 }
 0x1c0   :  { %18431 = vmatpush3.msra.mxu1 %v21075_v6  ;;  %18424 = vmatmul.mubr.f32.gmra.mxu0 %v21102_v56  ;;  %v2702_v6 = vld [vmem:[#allocation8 + $0x60] sm:$0xff] }
 0x1c1   :  { %18432 = vmatprep.subr.mxu1 %v21095_v10  ;;  %18436 = vmatprep.mubr.f32.mxu1 %v21055_v7  ;;  %v21251_v7 = vand.u32 4294901760, %v21242_v8  ;;  %v21254_v2 = vsub.f32 %v2703_v22, %v21244_v9  ;;  %v21256_v41 = vand.u32 4294901760, %v2702_v6 }
 0x1c2   :  { %18433 = vmatpush3.msra.mxu1 %v21095_v10  ;;  %18442 = vmatprep.subr.mxu0 %v21237_v3  ;;  %v2701_v10 = vld [vmem:[#allocation8 + $0x58] sm:$0xff] }
 0x1c3   :  { %18434 = vmatprep.subr.mxu1 %v21112_v12  ;;  %18443 = vmatpush3.msra.mxu0 %v21237_v3  ;;  %v2856_v11 = vsub.f32 %v21242_v8, %v21251_v7  ;;  %v21267_v0 = vsub.f32 %v2702_v6, %v21256_v41  ;;  %v21269_v21 = vand.u32 4294901760, %v2701_v10 }
 0x1c4   :  { %18435 = vmatpush3.msra.mxu1 %v21112_v12  ;;  %18444 = vmatprep.subr.mxu0 %v21244_v9  ;;  %v21272_v12 = vand.u32 4294901760, %v2700_v1 }
 0x1c5   :  { %18437 = vmatmul.mubr.f32.vlgmr.msra.gmra.mxu1 %v21061_v60  ;;  %18445 = vmatpush3.msra.mxu0 %v21244_v9  ;;  %v21264_v60 = vand.u32 4294901760, %v21254_v2  ;;  %v21279_v13 = vand.u32 4294901760, %v21267_v0  ;;  %v21282_v15 = vsub.f32 %v2701_v10, %v21269_v21 }
 0x1c6   :  { %18439 = vmatprep.mubr.f32.mxu1 %v21091_v54  ;;  %18446 = vmatprep.subr.mxu0 %v21256_v41  ;;  %v2857_v54 = vand.u32 4294901760, %v2856_v11  ;;  %v21286_v26 = vsub.f32 %v2700_v1, %v21272_v12 }
 0x1c7   :  { %18447 = vmatpush3.msra.mxu0 %v21256_v41  ;;  %v2863_v44 = vsub.f32 %v21254_v2, %v21264_v60  ;;  %v21292_v19 = vand.u32 4294901760, %v21282_v15 }
 0x1c8   :  { %18448 = vmatprep.subr.mxu0 %v21269_v21  ;;  %18458 = vmatprep.subr.mxu1 %v2857_v54  ;;  %v21296_v5 = vand.u32 4294901760, %v21286_v26 }
 0x1c9   :  { %18440 = vmatmul.mubr.f32.gmra.mxu1 %v21102_v56  ;;  %18449 = vmatpush3.msra.mxu0 %v21269_v21  ;;  %v2864_v52 = vand.u32 4294901760, %v2863_v44  ;;  %v2870_v56 = vsub.f32 %v21267_v0, %v21279_v13  ;;  %v2877_v35 = vsub.f32 %v21282_v15, %v21292_v19 }
 0x1ca   :  { %18450 = vmatprep.subr.mxu0 %v21272_v12  ;;  %18459 = vmatpush3.msra.mxu1 %v2857_v54  ;;  %v2884_v18 = vsub.f32 %v21286_v26, %v21296_v5 }
 0x1cb   :  { %18451 = vmatpush3.msra.mxu0 %v21272_v12  ;;  %18460 = vmatprep.subr.mxu1 %v2864_v52  ;;  %v2871_v14 = vand.u32 4294901760, %v2870_v56  ;;  %v2878_v20 = vand.u32 4294901760, %v2877_v35 }
 0x1cc   :  { %18474 = vmatprep.subr.mxu0 %v21242_v8  ;;  %18461 = vmatpush3.msra.mxu1 %v2864_v52  ;;  %v2885_v23 = vand.u32 4294901760, %v2884_v18 }
 0x1cd   :  { %18462 = vmatprep.subr.mxu1 %v2871_v14 }
 0x1ce   :  { %18463 = vmatpush3.msra.mxu1 %v2871_v14 }
 0x1cf   :  { %18464 = vmatprep.subr.mxu1 %v2878_v20 }
 0x1d0   :  { %18465 = vmatpush3.msra.mxu1 %v2878_v20 }
 0x1d1   :  { %18466 = vmatprep.subr.mxu1 %v2885_v23 }
 0x1d2   :  { %18467 = vmatpush3.msra.mxu1 %v2885_v23 }
 0x1d3   :  { %18490 = vmatprep.subr.mxu1 %v21237_v3 }
 0x212   :  { %v18176_v27 = vpop.f32.mrf.mxu0 }
 0x214   :  { %v855_v38 = vpop.f32.mrf.mxu0 }
 0x217   :  { %v18179_v47 = vpop.f32.mrf.mxu0 }
 0x219   :  { %v875_v53 = vpop.f32.mrf.mxu0 }
 0x21c   :  { %v18190_v59 = vpop.f32.mrf.mxu1  ;;  %v18204_v48 = vpop.f32.mrf.mxu0 }
 0x21d   :  { %v983_v39 = vadd.f32 %v18190_v59, %v18176_v27 }
 0x21e   :  { %v976_v31 = vpop.f32.mrf.mxu1  ;;  %v1074_v40 = vpop.f32.mrf.mxu0 }
 0x21f   :  { %v977_v34 = vadd.f32 %v976_v31, %v855_v38  ;;  %v1082_v57 = vadd.f32 %v18204_v48, %v983_v39 }
 0x221   :  { %v1075_v6 = vadd.f32 %v1074_v40, %v977_v34  ;;  %v20363_v40 = vld [vmem:[%s24147_s0 + $0x8] sm:$0xff] }
 0x222   :  { %v18193_v49 = vpop.f32.mrf.mxu1  ;;  %v18207_v30 = vpop.f32.mrf.mxu0 }
 0x223   :  { %v995_v22 = vadd.f32 %v18193_v49, %v18179_v47 }
 0x224   :  { %v988_v61 = vpop.f32.mrf.mxu1  ;;  %v1088_v55 = vpop.f32.mrf.mxu0 }
 0x225   :  { %v989_v54 = vadd.f32 %v988_v61, %v875_v53  ;;  %v1096_v52 = vadd.f32 %v18207_v30, %v995_v22 }
 0x227   :  { %v1089_v18 = vadd.f32 %v1088_v55, %v989_v54  ;;  %v20364_v55 = vld [vmem:[%s24147_s0] sm:$0xff] }
 0x228   :  { %v18218_v63 = vpop.f32.mrf.mxu1  ;;  %v18232_v4 = vpop.f32.mrf.mxu0 }
 0x229   :  { %v1181_v10 = vadd.f32 %v18218_v63, %v1082_v57 }
 0x22a   :  { %v1172_v58 = vpop.f32.mrf.mxu1  ;;  %v1279_v1 = vpop.f32.mrf.mxu0 }
 0x22b   :  { %v1173_v44 = vadd.f32 %v1172_v58, %v1075_v6  ;;  %v1286_v56 = vadd.f32 %v18232_v4, %v1181_v10 }
 0x22d   :  { %v1280_v23 = vadd.f32 %v1279_v1, %v1173_v44 }
 0x22e   :  { %v18221_v62 = vpop.f32.mrf.mxu1  ;;  %v18235_v14 = vpop.f32.mrf.mxu0 }
 0x22f   :  { %v1197_v20 = vadd.f32 %v18221_v62, %v1096_v52 }
 0x230   :  { %v1188_v11 = vpop.f32.mrf.mxu1  ;;  %v1291_v39 = vpop.f32.mrf.mxu0 }
 0x231   :  { %v1189_v38 = vadd.f32 %v1188_v11, %v1089_v18  ;;  %v1298_v47 = vadd.f32 %v18235_v14, %v1197_v20  ;;  %v20365_v11 = vld [vmem:[%s24147_s0 + $0x18] sm:$0xff] }
 0x233   :  { %v1292_v30 = vadd.f32 %v1291_v39, %v1189_v38 }
 0x234   :  { %v18246_v35 = vpop.f32.mrf.mxu1 }
 0x235   :  { %v1379_v27 = vadd.f32 %v18246_v35, %v1286_v56  ;;  %v20366_v35 = vld [vmem:[%s24147_s0 + $0x10] sm:$0xff] }
 0x236   :  { %v1372_v59 = vpop.f32.mrf.mxu1 }
 0x237   :  { %v1395_v31 = vmul.f32 2.0, %v1379_v27  ;;  %v1373_v48 = vadd.f32 %v1372_v59, %v1280_v23 }
 0x239   :  { %v1399_v53 = vsub.f32 %v1395_v31, %v20363_v40  ;;  %v1394_v49 = vmul.f32 2.0, %v1373_v48 }
 0x23a   :  { %v18249_v61 = vpop.f32.mrf.mxu1 }
 0x23b   :  { %v2709_v63 = vsel %vm1413_vm1, %v1399_v53, 0  ;;  %v1398_v58 = vsub.f32 %v1394_v49, %v20364_v55  ;;  %v1391_v34 = vadd.f32 %v18249_v61, %v1298_v47 }
 0x23c   :  { %v21312_v4 = vand.u32 4294901760, %v2709_v63  ;;  %v1384_v57 = vpop.f32.mrf.mxu1 }
 0x23d   :  { %v2706_v62 = vsel %vm1413_vm1, %v1398_v58, 0  ;;  %v1397_v22 = vmul.f32 2.0, %v1391_v34  ;;  %v1385_v6 = vadd.f32 %v1384_v57, %v1292_v30 }
 0x23e   :  { %v21316_v10 = vsub.f32 %v2709_v63, %v21312_v4  ;;  %v21318_v1 = vand.u32 4294901760, %v2706_v62 }
 0x23f   :  { %v1401_v54 = vsub.f32 %v1397_v22, %v20365_v11  ;;  %v1396_v44 = vmul.f32 2.0, %v1385_v6 }
 0x240   :  { %v2802_v52 = vand.u32 4294901760, %v21316_v10  ;;  %v2791_v56 = vsub.f32 %v2706_v62, %v21318_v1  ;;  %18468 = vmatprep.mubr.f32.mxu1 %v21318_v1 }
 0x241   :  { %v2715_v14 = vsel %vm1413_vm1, %v1401_v54, 0  ;;  %v1400_v18 = vsub.f32 %v1396_v44, %v20366_v35  ;;  %18469 = vmatmul.mubr.f32.vlgmr.msra.gmra.mxu1 %v21312_v4 }
 0x242   :  { %v21331_v20 = vand.u32 4294901760, %v2715_v14  ;;  %18491 = vmatpush3.msra.mxu1 %v21237_v3  ;;  %v2792_v23 = vand.u32 4294901760, %v2791_v56  ;;  %v2803_v59 = vsub.f32 %v21316_v10, %v2802_v52 }
 0x243   :  { %v2712_v27 = vsel %vm1413_vm1, %v1400_v18, 0  ;;  %18492 = vmatprep.subr.mxu1 %v21244_v9 }
 0x244   :  { %v2821_v38 = vsub.f32 %v2715_v14, %v21331_v20  ;;  %v21338_v31 = vand.u32 4294901760, %v2712_v27  ;;  %18493 = vmatpush3.msra.mxu1 %v21244_v9  ;;  %v2793_v48 = vsub.f32 %v2791_v56, %v2792_v23  ;;  %v2804_v53 = vand.u32 4294901760, %v2803_v59 }
 0x245   :  { %18494 = vmatprep.subr.mxu1 %v21256_v41 }
 0x246   :  { %v2811_v39 = vsub.f32 %v2712_v27, %v21338_v31  ;;  %18471 = vmatprep.mubr.f32.mxu1 %v21338_v31  ;;  %18495 = vmatpush3.msra.mxu1 %v21256_v41  ;;  %v2794_v47 = vand.u32 4294901760, %v2793_v48  ;;  %v2822_v40 = vand.u32 4294901760, %v2821_v38 }
 0x247   :  { %18472 = vmatmul.mubr.f32.gmra.mxu1 %v21331_v20  ;;  %18496 = vmatprep.subr.mxu1 %v21269_v21 }
 0x248   :  { %18500 = vmatprep.mubr.f32.mxu1 %v2792_v23  ;;  %18497 = vmatpush3.msra.mxu1 %v21269_v21  ;;  %v2812_v49 = vand.u32 4294901760, %v2811_v39  ;;  %v2823_v30 = vsub.f32 %v2821_v38, %v2822_v40 }
 0x249   :  { %18452 = vmatprep.mubr.f32.mxu0 %v2794_v47  ;;  %18498 = vmatprep.subr.mxu1 %v21272_v12 }
 0x24a   :  { %18453 = vmatmul.mubr.f32.vlgmr.msra.gmra.mxu0 %v2804_v53  ;;  %18499 = vmatpush3.msra.mxu1 %v21272_v12  ;;  %v2813_v61 = vsub.f32 %v2811_v39, %v2812_v49  ;;  %v2824_v55 = vand.u32 4294901760, %v2823_v30 }
 0x24b   :  { %18475 = vmatpush3.msra.mxu0 %v21242_v8  ;;  %18501 = vmatmul.mubr.f32.vlgmr.msra.gmra.mxu1 %v2802_v52 }
 0x24c   :  { %18476 = vmatprep.subr.mxu0 %v21254_v2  ;;  %18522 = vmatprep.subr.mxu1 %v21237_v3  ;;  %v2814_v63 = vand.u32 4294901760, %v2813_v61 }
 0x24d   :  { %18477 = vmatpush3.msra.mxu0 %v21254_v2  ;;  %18503 = vmatprep.mubr.f32.mxu1 %v2812_v49 }
 0x24e   :  { %18523 = vmatpush3.msra.mxu1 %v21237_v3  ;;  %18455 = vmatprep.mubr.f32.mxu0 %v2814_v63  ;;  %v18278_v3 = vpop.f32.mrf.mxu1 }
 0x24f   :  { %18478 = vmatprep.subr.mxu0 %v21267_v0  ;;  %18524 = vmatprep.subr.mxu1 %v21244_v9 }
 0x250   :  { %18456 = vmatmul.mubr.f32.gmra.mxu0 %v2824_v55  ;;  %18525 = vmatpush3.msra.mxu1 %v21244_v9  ;;  %v1632_v8 = vpop.f32.mrf.mxu1 }
 0x251   :  { %18479 = vmatpush3.msra.mxu0 %v21267_v0  ;;  %18484 = vmatprep.mubr.f32.mxu0 %v2791_v56 }
 0x252   :  { %18480 = vmatprep.subr.mxu0 %v21282_v15  ;;  %18504 = vmatmul.mubr.f32.gmra.mxu1 %v2822_v40  ;;  %v18281_v9 = vpop.f32.mrf.mxu1 }
 0x253   :  { %18526 = vmatprep.subr.mxu1 %v21256_v41  ;;  %18481 = vmatpush3.msra.mxu0 %v21282_v15 }
 0x254   :  { %18527 = vmatpush3.msra.mxu1 %v21256_v41  ;;  %18532 = vmatprep.mubr.f32.mxu1 %v21318_v1  ;;  %v1644_v2 = vpop.f32.mrf.mxu1 }
 0x255   :  { %18482 = vmatprep.subr.mxu0 %v21286_v26  ;;  %18528 = vmatprep.subr.mxu1 %v21269_v21 }
 0x256   :  { %18483 = vmatpush3.msra.mxu0 %v21286_v26  ;;  %18529 = vmatpush3.msra.mxu1 %v21269_v21 }
 0x257   :  { %18485 = vmatmul.mubr.f32.vlgmr.msra.gmra.mxu0 %v21316_v10  ;;  %18506 = vmatprep.subr.mxu0 %v21251_v7 }
 0x258   :  { %18530 = vmatprep.subr.mxu1 %v21272_v12  ;;  %18487 = vmatprep.mubr.f32.mxu0 %v2811_v39 }
 0x259   :  { %18507 = vmatpush3.msra.mxu0 %v21251_v7  ;;  %18531 = vmatpush3.msra.mxu1 %v21272_v12  ;;  %v18262_v7 = vpop.f32.mrf.mxu0 }
 0x25a   :  { %18508 = vmatprep.subr.mxu0 %v21264_v60  ;;  %18533 = vmatmul.mubr.f32.vlgmr.msra.gmra.mxu1 %v21312_v4  ;;  %v1639_v43 = vadd.f32 %v18278_v3, %v18262_v7 }
 0x25b   :  { %18509 = vmatpush3.msra.mxu0 %v21264_v60  ;;  %18535 = vmatprep.mubr.f32.mxu1 %v21338_v31  ;;  %v1506_v41 = vpop.f32.mrf.mxu0  ;;  %v18310_v60 = vpop.f32.mrf.mxu1 }
 0x25c   :  { %18488 = vmatmul.mubr.f32.gmra.mxu0 %v2821_v38  ;;  %18510 = vmatprep.subr.mxu0 %v21279_v13  ;;  %v1633_v42 = vadd.f32 %v1632_v8, %v1506_v41 }
 0x25d   :  { %18511 = vmatpush3.msra.mxu0 %v21279_v13  ;;  %18516 = vmatprep.mubr.f32.mxu0 %v21318_v1  ;;  %v18265_v0 = vpop.f32.mrf.mxu0  ;;  %v1831_v21 = vpop.f32.mrf.mxu1 }
 0x25e   :  { %18512 = vmatprep.subr.mxu0 %v21292_v19  ;;  %18536 = vmatmul.mubr.f32.gmra.mxu1 %v21331_v20  ;;  %v1651_v32 = vadd.f32 %v18281_v9, %v18265_v0 }
 0x25f   :  { %18513 = vmatpush3.msra.mxu0 %v21292_v19  ;;  %18560 = vmatprep.mubr.f32.mxu1 %v20718_v16  ;;  %v1526_v12 = vpop.f32.mrf.mxu0  ;;  %v18313_v13 = vpop.f32.mrf.mxu1 }
 0x260   :  { %18514 = vmatprep.subr.mxu0 %v21296_v5  ;;  %v1645_v28 = vadd.f32 %v1644_v2, %v1526_v12 }
 0x261   :  { %18515 = vmatpush3.msra.mxu0 %v21296_v5  ;;  %v18294_v15 = vpop.f32.mrf.mxu0  ;;  %v1847_v26 = vpop.f32.mrf.mxu1 }
 0x262   :  { %18517 = vmatmul.mubr.f32.vlgmr.msra.gmra.mxu0 %v21312_v4  ;;  %v1740_v36 = vadd.f32 %v18294_v15, %v1639_v43 }
 0x263   :  { %18519 = vmatprep.mubr.f32.mxu0 %v21338_v31  ;;  %v1732_v19 = vpop.f32.mrf.mxu0  ;;  %v18342_v5 = vpop.f32.mrf.mxu1 }
 0x264   :  { %v1733_v29 = vadd.f32 %v1732_v19, %v1633_v42  ;;  %v1840_v17 = vadd.f32 %v18310_v60, %v1740_v36 }
 0x265   :  { %v18297_v58 = vpop.f32.mrf.mxu0  ;;  %v2035_v34 = vpop.f32.mrf.mxu1 }
 0x266   :  { %18520 = vmatmul.mubr.f32.gmra.mxu0 %v21331_v20  ;;  %v1754_v51 = vadd.f32 %v18297_v58, %v1651_v32  ;;  %v1832_v50 = vadd.f32 %v1831_v21, %v1733_v29 }
 0x267   :  { %18546 = vmatprep.mubr.f32.mxu0 %v20782_v45  ;;  %v1746_v4 = vpop.f32.mrf.mxu0  ;;  %v18345_v57 = vpop.f32.mrf.mxu1 }
 0x268   :  { %v1747_v46 = vadd.f32 %v1746_v4, %v1645_v28 }
 0x269   :  { %v18326_v62 = vpop.f32.mrf.mxu0  ;;  %v2047_v22 = vpop.f32.mrf.mxu1 }
 0x26a   :  { %v1848_v8 = vadd.f32 %v1847_v26, %v1747_v46 }
 0x26b   :  { %v1941_v6 = vpop.f32.mrf.mxu0  ;;  %v18374_v10 = vpop.f32.mrf.mxu1 }
 0x26c   :  { %v1942_v3 = vadd.f32 %v1941_v6, %v1832_v50 }
 0x26d   :  { %v18329_v1 = vpop.f32.mrf.mxu0  ;;  %v2274_v11 = vpop.f32.mrf.mxu1 }
 0x26e   :  { %v2036_v9 = vadd.f32 %v2035_v34, %v1942_v3 }
 0x26f   :  { %v1953_v54 = vpop.f32.mrf.mxu0 }
 0x270   :  { %v1954_v43 = vadd.f32 %v1953_v54, %v1848_v8 }
 0x271   :  { %v18377_v44 = vpop.f32.mrf.mxu1  ;;  %v18358_v52 = vpop.f32.mrf.mxu0 }
 0x272   :  { %v2048_v36 = vadd.f32 %v2047_v22, %v1954_v43 }
 0x273   :  { %v21390_v56 = vpop.f32.mrf.mxu1  ;;  %v2148_v14 = vpop.f32.mrf.mxu0 }
 0x274   :  { %v2149_v15 = vadd.f32 %v2148_v14, %v2036_v9 }
 0x275   :  { %v18361_v18 = vpop.f32.mrf.mxu0 }
 0x276   :  { %v2275_v60 = vadd.f32 %v2274_v11, %v2149_v15 }
 0x277   :  { %v2168_v23 = vpop.f32.mrf.mxu0 }
 0x279   :  { %v21392_v35 = vpop.f32.mrf.mxu1  ;;  %v18390_v59 = vpop.f32.mrf.mxu0 }
 0x27b   :  { %v21394_v20 = vpop.f32.mrf.mxu1  ;;  %v2374_v31 = vpop.f32.mrf.mxu0 }
 0x27c   :  { %v2375_v58 = vadd.f32 %v2374_v31, %v2275_v60 }
 0x27d   :  { %v18393_v39 = vpop.f32.mrf.mxu0 }
 0x27e   :  { %v2474_v6 = vadd.f32 %v21394_v20, %v2375_v58 }
 0x27f   :  { %v21396_v27 = vpop.f32.mrf.mxu1  ;;  %v21404_v40 = vpop.f32.mrf.mxu0 }
 0x281   :  { %v21398_v38 = vpop.f32.mrf.mxu1  ;;  %v21408_v49 = vpop.f32.mrf.mxu0 }
 0x283   :  { %v21412_v30 = vpop.f32.mrf.mxu0 }
 0x285   :  { %v21400_v48 = vpop.f32.mrf.mxu1  ;;  %v21414_v55 = vpop.f32.mrf.mxu0 }
 0x286   :  { %24275 = vst [vmem:[#allocation40_spill] sm:$0xff] %v21414_v55  ;;  %v1948_v55 = vadd.f32 %v18326_v62, %v1840_v17  ;;  %v2169_v17 = vadd.f32 %v2168_v23, %v2048_v36 }
 0x287   :  { %v21402_v47 = vpop.f32.mrf.mxu1  ;;  %v21416_v16 = vpop.f32.mrf.mxu0 }
 0x288   :  { %24272 = vst [vmem:[#allocation37_spill] sm:$0xff] %v21402_v47  ;;  %24276 = vst [vmem:[#allocation41_spill] sm:$0xff] %v21416_v16  ;;  %v2042_v7 = vadd.f32 %v18342_v5, %v1948_v55 }
 0x289   :  { %v21406_v53 = vpop.f32.mrf.mxu1 }
 0x28a   :  { %24273 = vst [vmem:[#allocation38_spill] sm:$0xff] %v21406_v53  ;;  %v2159_v2 = vadd.f32 %v18358_v52, %v2042_v7 }
 0x28b   :  { %v21410_v61 = vpop.f32.mrf.mxu1 }
 0x28c   :  { %24274 = vst [vmem:[#allocation39_spill] sm:$0xff] %v21410_v61  ;;  %v1856_v61 = vadd.f32 %v18313_v13, %v1754_v51  ;;  %v2281_v29 = vadd.f32 %v18374_v10, %v2159_v2 }
 0x28e   :  { %v1960_v16 = vadd.f32 %v18329_v1, %v1856_v61  ;;  %v2382_v26 = vadd.f32 %v18390_v59, %v2281_v29 }
 0x28f   :  { %v24279_v3 = vld [vmem:[#allocation41_spill] sm:$0xff] }
 0x290   :  { %v2054_v42 = vadd.f32 %v18345_v57, %v1960_v16  ;;  %v2287_v16 = vadd.f32 %v21390_v56, %v2169_v17  ;;  %v2482_v4 = vadd.f32 %v21392_v35, %v2382_v26 }
 0x292   :  { %v2179_v51 = vadd.f32 %v18361_v18, %v2054_v42  ;;  %v2389_v54 = vadd.f32 %v21404_v40, %v2287_v16  ;;  %v2590_v52 = vadd.f32 %v21408_v49, %v2482_v4  ;;  %v16805_v49 = vld [vmem:[%s24152_s5] ss:$0 sm:$0xff]  ;;  %s20562_s5 = smov 64  }
 0x293   :  { %v24282_v2 = vld [vmem:[#allocation39_spill] sm:$0xff] }
 0x294   :  { %v2293_v50 = vadd.f32 %v18377_v44, %v2179_v51  ;;  %v2490_v18 = vadd.f32 %v21398_v38, %v2389_v54  ;;  %v147_v54 = vld [vmem:[#allocation3 + $0x10] sm:$0xff] }
 0x296   :  { %v2396_v22 = vadd.f32 %v18393_v39, %v2293_v50  ;;  %v24277_v39 = vld [vmem:[#allocation40_spill] sm:$0xff]  ;;  %v2596_v8 = vadd.f32 %v24279_v3, %v2490_v18 }
 0x297   :  { %v24292_v3 = vld [vmem:[#allocation36_spill] sm:$0xff] }
 0x301   :  { %v18470_v63 = vpop.f32.mrf.mxu1 }
 0x303   :  { %v2922_v45 = vpop.f32.mrf.mxu1 }
 0x307   :  { %v18473_v33 = vpop.f32.mrf.mxu1 }
 0x309   :  { %v2934_v25 = vpop.f32.mrf.mxu1 }
 0x30a   :  { %v18454_v37 = vpop.f32.mrf.mxu0 }
 0x30b   :  { %v18502_v53 = vpop.f32.mrf.mxu1  ;;  %v2929_v21 = vadd.f32 %v18470_v63, %v18454_v37 }
 0x30c   :  { %v2796_v24 = vpop.f32.mrf.mxu0 }
 0x30d   :  { %v3121_v0 = vpop.f32.mrf.mxu1  ;;  %v2923_v19 = vadd.f32 %v2922_v45, %v2796_v24  ;;  %v2498_v24 = vadd.f32 %v21396_v27, %v2396_v22  ;;  %v24278_v27 = vld [vmem:[#allocation37_spill] sm:$0xff]  ;;  %v145_v22 = vld [vmem:[#allocation3] sm:$0xff] }
 0x310   :  { %v18457_v47 = vpop.f32.mrf.mxu0 }
 0x311   :  { %v2941_v57 = vadd.f32 %v18473_v33, %v18457_v47  ;;  %v2584_v33 = vadd.f32 %v21412_v30, %v2474_v6  ;;  %v2602_v47 = vadd.f32 %v24277_v39, %v2498_v24 }
 0x312   :  { %v2816_v41 = vpop.f32.mrf.mxu0  ;;  %v18505_v32 = vpop.f32.mrf.mxu1 }
 0x313   :  { %v2935_v37 = vadd.f32 %v2934_v25, %v2816_v41  ;;  %v2684_v25 = vadd.f32 %v21400_v48, %v2590_v52  ;;  %v2678_v40 = vadd.f32 %v24278_v27, %v2584_v33  ;;  %v24280_v48 = vld [vmem:[#allocation38_spill] sm:$0xff] }
 0x314   :  { %v3137_v46 = vpop.f32.mrf.mxu1  ;;  %v2696_v7 = vadd.f32 %v24280_v48, %v2602_v47  ;;  %v24294_v48 = vld [vmem:[#allocation23_spill] sm:$0xff] }
 0x317   :  { %v18486_v12 = vpop.f32.mrf.mxu0 }
 0x318   :  { %v3030_v5 = vadd.f32 %v18486_v12, %v2929_v21  ;;  %v2690_v12 = vadd.f32 %v24282_v2, %v2596_v8  ;;  %v24293_v8 = vld [vmem:[#allocation22_spill] sm:$0xff]  ;;  %v24300_v2 = vld [vmem:[#allocation27_spill] sm:$0xff] }
 0x319   :  { %v3022_v28 = vpop.f32.mrf.mxu0 }
 0x31a   :  { %v18534_v34 = vpop.f32.mrf.mxu1  ;;  %v3023_v62 = vadd.f32 %v3022_v28, %v2923_v19  ;;  %v3130_v11 = vadd.f32 %v18502_v53, %v3030_v5 }
 0x31c   :  { %v18489_v13 = vpop.f32.mrf.mxu0  ;;  %v3325_v45 = vpop.f32.mrf.mxu1  ;;  %v3122_v35 = vadd.f32 %v3121_v0, %v3023_v62 }
 0x31d   :  { %v3044_v1 = vadd.f32 %v18489_v13, %v2941_v57  ;;  %v146_v57 = vld [vmem:[#allocation3 + $0x8] sm:$0xff] }
 0x31e   :  { %v3036_v10 = vpop.f32.mrf.mxu0  ;;  %v18537_v53 = vpop.f32.mrf.mxu1 }
 0x31f   :  { %v3037_v56 = vadd.f32 %v3036_v10, %v2935_v37  ;;  %v3146_v31 = vadd.f32 %v18505_v32, %v3044_v1  ;;  %v148_v37 = vld [vmem:[#allocation3 + $0x18] sm:$0xff] }
 0x320   :  { %v3337_v15 = vpop.f32.mrf.mxu1 }
 0x321   :  { %v3138_v38 = vadd.f32 %v3137_v46, %v3037_v56 }
 0x322   :  { %v18518_v44 = vpop.f32.mrf.mxu0 }
 0x323   :  { %v3238_v14 = vadd.f32 %v18518_v44, %v3130_v11 }
 0x324   :  { %v3231_v20 = vpop.f32.mrf.mxu0 }
 0x325   :  { %v3332_v23 = vadd.f32 %v18534_v34, %v3238_v14  ;;  %v3232_v59 = vadd.f32 %v3231_v20, %v3122_v35 }
 0x326   :  { %v18521_v61 = vpop.f32.mrf.mxu0 }
 0x327   :  { %v3348_v63 = vadd.f32 %v3332_v23, %v2684_v25  ;;  %v3326_v30 = vadd.f32 %v3325_v45, %v3232_v59  ;;  %v3250_v55 = vadd.f32 %v18521_v61, %v3146_v31  ;;  %v24290_v61 = vld [vmem:[#allocation34_spill] sm:$0xff] }
 0x328   :  { %v3243_v41 = vpop.f32.mrf.mxu0 }
 0x329   :  { %v21434_v9 = vadd.f32 %v16805_v49, %v3348_v63  ;;  %v3347_v0 = vadd.f32 %v3326_v30, %v2678_v40  ;;  %v3344_v43 = vadd.f32 %v18537_v53, %v3250_v55  ;;  %v3244_v42 = vadd.f32 %v3243_v41, %v3138_v38  ;;  %v24291_v55 = vld [vmem:[#allocation35_spill] sm:$0xff]  ;;  %v24296_v41 = vld [vmem:[#allocation25_spill] sm:$0xff] }
 0x32b   :  { %24281 = vst [vmem:[#allocation40_spill] sm:$0xff] %v21434_v9  ;;  %v16807_v36 = vmul.f32 -1.442695, %v21434_v9  ;;  %v21438_v32 = vadd.f32 %v16805_v49, %v3347_v0  ;;  %v3350_v29 = vadd.f32 %v3344_v43, %v2696_v7  ;;  %v3338_v28 = vadd.f32 %v3337_v15, %v3244_v42  ;;  %v24295_v7 = vld [vmem:[#allocation24_spill] sm:$0xff]  ;;  %v24297_v0 = vld [vmem:[#allocation26_spill] sm:$0xff]  ;;  %v24298_v43 = vld [vmem:[#allocation29_spill] sm:$0xff] }
 0x32c   :  { %v24299_v42 = vld [vmem:[#allocation30_spill] sm:$0xff]  ;;  %v24302_v15 = vld [vmem:[#allocation21_spill] sm:$0xff] }
 0x32d   :  { %24283 = vst [vmem:[#allocation37_spill] sm:$0xff] %v21438_v32  ;;  %20315 = vpow2.f32 %v16807_v36  ;;  %v16806_v51 = vmul.f32 -1.442695, %v21438_v32  ;;  %v21441_v60 = vadd.f32 %v16805_v49, %v3350_v29  ;;  %v3349_v21 = vadd.f32 %v3338_v28, %v2690_v12  ;;  %v24301_v12 = vld [vmem:[#allocation28_spill] sm:$0xff]  ;;  %v24303_v36 = vld [vmem:[#allocation31_spill] sm:$0xff]  ;;  %v24305_v28 = vld [vmem:[#allocation33_spill] sm:$0xff] }
 0x32e   :  { %v24304_v29 = vld [vmem:[#allocation32_spill] sm:$0xff] }
 0x32f   :  { %24284 = vst [vmem:[#allocation41_spill] sm:$0xff] %v21441_v60  ;;  %20317 = vpow2.f32 %v16806_v51  ;;  %v16809_v17 = vmul.f32 -1.442695, %v21441_v60  ;;  %v21444_v50 = vadd.f32 %v16805_v49, %v3349_v21 }
 0x331   :  { %24285 = vst [vmem:[#allocation38_spill] sm:$0xff] %v21444_v50  ;;  %20319 = vpow2.f32 %v16809_v17  ;;  %v16808_v46 = vmul.f32 -1.442695, %v21444_v50 }
 0x333   :  { %20321 = vpow2.f32 %v16808_v46 }
 0x33a   :  { %v20316_v13 = vpop.eup %20315 }
 0x33b   :  { %v3375_v26 = vadd.f32 1.0, %v20316_v13 }
 0x33c   :  { %v20318_v19 = vpop.eup %20317 }
 0x33d   :  { %20323 = vrcp.f32 %v3375_v26  ;;  %v3374_v5 = vadd.f32 1.0, %v20318_v19 }
 0x33e   :  { %v20320_v58 = vpop.eup %20319 }
 0x33f   :  { %20325 = vrcp.f32 %v3374_v5  ;;  %v3377_v16 = vadd.f32 1.0, %v20320_v58 }
 0x340   :  { %v20322_v34 = vpop.eup %20321 }
 0x341   :  { %20327 = vrcp.f32 %v3377_v16  ;;  %v3376_v4 = vadd.f32 1.0, %v20322_v34 }
 0x343   :  { %20329 = vrcp.f32 %v3376_v4 }
 0x34a   :  { %v21447_v62 = vpop.eup %20323 }
 0x34b   :  { %24286 = vst [vmem:[#allocation39_spill] sm:$0xff] %v21447_v62  ;;  %v21450_v6 = vmul.f32 %v21447_v62, %v146_v57 }
 0x34c   :  { %v21452_v10 = vpop.eup %20325 }
 0x34d   :  { %24287 = vst [vmem:[#allocation42_spill] sm:$0xff] %v21452_v10  ;;  %v21455_v1 = vmul.f32 %v21452_v10, %v145_v22  ;;  %v21460_v24 = vand.u32 4294901760, %v21450_v6 }
 0x34e   :  { %v21457_v11 = vpop.eup %20327 }
 0x34f   :  { %24288 = vst [vmem:[#allocation43_spill] sm:$0xff] %v21457_v11  ;;  %v21463_v45 = vmul.f32 %v21457_v11, %v148_v37  ;;  %v21468_v52 = vand.u32 4294901760, %v21455_v1  ;;  %v3539_v35 = vsub.f32 %v21450_v6, %v21460_v24 }
 0x350   :  { %v21465_v44 = vpop.eup %20329 }
 0x351   :  { %24289 = vst [vmem:[#allocation44_spill] sm:$0xff] %v21465_v44  ;;  %v21471_v56 = vand.u32 4294901760, %v21463_v45  ;;  %v21474_v14 = vmul.f32 %v21465_v44, %v147_v54  ;;  %v3546_v20 = vsub.f32 %v21455_v1, %v21468_v52  ;;  %v3540_v59 = vand.u32 4294901760, %v3539_v35 }
 0x353   :  { %18538 = vmatprep.subr.mxu0 %v21471_v56  ;;  %v21480_v33 = vand.u32 4294901760, %v21474_v14  ;;  %v3525_v18 = vsub.f32 %v21463_v45, %v21471_v56  ;;  %v3547_v47 = vand.u32 4294901760, %v3546_v20  ;;  %v3541_v53 = vsub.f32 %v3539_v35, %v3540_v59 }
 0x354   :  { %18539 = vmatpush3.msra.mxu0 %v21471_v56 }
 0x355   :  { %18540 = vmatprep.subr.mxu0 %v21480_v33  ;;  %v3526_v25 = vand.u32 4294901760, %v3525_v18  ;;  %v3532_v23 = vsub.f32 %v21474_v14, %v21480_v33  ;;  %v3548_v63 = vsub.f32 %v3546_v20, %v3547_v47  ;;  %v3542_v30 = vand.u32 4294901760, %v3541_v53 }
 0x356   :  { %18541 = vmatpush3.msra.mxu0 %v21480_v33 }
 0x357   :  { %18542 = vmatprep.subr.mxu0 %v21460_v24  ;;  %v3527_v31 = vsub.f32 %v3525_v18, %v3526_v25  ;;  %v3533_v39 = vand.u32 4294901760, %v3532_v23  ;;  %v3549_v38 = vand.u32 4294901760, %v3548_v63 }
 0x358   :  { %18543 = vmatpush3.msra.mxu0 %v21460_v24 }
 0x359   :  { %18544 = vmatprep.subr.mxu0 %v21468_v52  ;;  %v3528_v27 = vand.u32 4294901760, %v3527_v31  ;;  %v3534_v40 = vsub.f32 %v3532_v23, %v3533_v39 }
 0x35a   :  { %18545 = vmatpush3.msra.mxu0 %v21468_v52 }
 0x35b   :  { %18552 = vmatprep.subr.mxu1 %v3528_v27  ;;  %18566 = vmatprep.subr.mxu0 %v3525_v18  ;;  %v3535_v49 = vand.u32 4294901760, %v3534_v40 }
 0x35c   :  { %18547 = vmatmul.mubr.f32.vlgmr.msra.gmra.mxu0 %v24290_v61  ;;  %18553 = vmatpush3.msra.mxu1 %v3528_v27 }
 0x35d   :  { %18567 = vmatpush3.msra.mxu0 %v3525_v18  ;;  %18554 = vmatprep.subr.mxu1 %v3535_v49 }
 0x35e   :  { %18568 = vmatprep.subr.mxu0 %v3532_v23  ;;  %18555 = vmatpush3.msra.mxu1 %v3535_v49 }
 0x35f   :  { %18569 = vmatpush3.msra.mxu0 %v3532_v23  ;;  %18549 = vmatprep.mubr.f32.mxu0 %v24291_v55 }
 0x360   :  { %18556 = vmatprep.subr.mxu1 %v3542_v30  ;;  %18570 = vmatprep.subr.mxu0 %v3539_v35 }
 0x361   :  { %18550 = vmatmul.mubr.f32.gmra.mxu0 %v24292_v3  ;;  %18557 = vmatpush3.msra.mxu1 %v3542_v30 }
 0x362   :  { %18571 = vmatpush3.msra.mxu0 %v3539_v35  ;;  %18558 = vmatprep.subr.mxu1 %v3549_v38 }
 0x363   :  { %18572 = vmatprep.subr.mxu0 %v3546_v20  ;;  %18559 = vmatpush3.msra.mxu1 %v3549_v38 }
 0x364   :  { %18573 = vmatpush3.msra.mxu0 %v3546_v20  ;;  %18561 = vmatmul.mubr.f32.vlgmr.msra.gmra.mxu1 %v24293_v8 }
 0x365   :  { %18574 = vmatprep.mubr.f32.mxu0 %v24294_v48  ;;  %18580 = vmatprep.subr.mxu1 %v21471_v56 }
 0x366   :  { %18594 = vmatprep.subr.mxu0 %v3526_v25  ;;  %18575 = vmatmul.mubr.f32.vlgmr.msra.gmra.mxu0 %v24295_v7 }
 0x367   :  { %18581 = vmatpush3.msra.mxu1 %v21471_v56  ;;  %18595 = vmatpush3.msra.mxu0 %v3526_v25 }
 0x368   :  { %18582 = vmatprep.subr.mxu1 %v21480_v33  ;;  %18596 = vmatprep.subr.mxu0 %v3533_v39 }
 0x369   :  { %18563 = vmatprep.mubr.f32.mxu1 %v24296_v41  ;;  %18583 = vmatpush3.msra.mxu1 %v21480_v33 }
 0x36a   :  { %18597 = vmatpush3.msra.mxu0 %v3533_v39  ;;  %18564 = vmatmul.mubr.f32.gmra.mxu1 %v24297_v0 }
 0x36b   :  { %18584 = vmatprep.subr.mxu1 %v21460_v24  ;;  %18598 = vmatprep.subr.mxu0 %v3540_v59 }
 0x36c   :  { %18577 = vmatprep.mubr.f32.mxu0 %v24298_v43  ;;  %18585 = vmatpush3.msra.mxu1 %v21460_v24 }
 0x36d   :  { %18599 = vmatpush3.msra.mxu0 %v3540_v59  ;;  %18586 = vmatprep.subr.mxu1 %v21468_v52 }
 0x36e   :  { %18578 = vmatmul.mubr.f32.gmra.mxu0 %v24299_v42  ;;  %18600 = vmatprep.subr.mxu0 %v3547_v47 }
 0x36f   :  { %18587 = vmatpush3.msra.mxu1 %v21468_v52  ;;  %18588 = vmatprep.mubr.f32.mxu1 %v24300_v2 }
 0x370   :  { %18601 = vmatpush3.msra.mxu0 %v3547_v47  ;;  %18589 = vmatmul.mubr.f32.vlgmr.msra.gmra.mxu1 %v24301_v12 }
 0x371   :  { %18608 = vmatprep.subr.mxu1 %v21471_v56  ;;  %18602 = vmatprep.mubr.f32.mxu0 %v24302_v15 }
 0x372   :  { %18609 = vmatpush3.msra.mxu1 %v21471_v56  ;;  %18603 = vmatmul.mubr.f32.vlgmr.msra.gmra.mxu0 %v24293_v8 }
 0x373   :  { %18610 = vmatprep.subr.mxu1 %v21480_v33  ;;  %18591 = vmatprep.mubr.f32.mxu1 %v24303_v36 }
 0x374   :  { %18611 = vmatpush3.msra.mxu1 %v21480_v33  ;;  %18605 = vmatprep.mubr.f32.mxu0 %v24296_v41 }
 0x375   :  { %18592 = vmatmul.mubr.f32.gmra.mxu1 %v24304_v29  ;;  %18612 = vmatprep.subr.mxu1 %v21460_v24 }
 0x376   :  { %18613 = vmatpush3.msra.mxu1 %v21460_v24  ;;  %18606 = vmatmul.mubr.f32.gmra.mxu0 %v24297_v0 }
 0x377   :  { %18614 = vmatprep.subr.mxu1 %v21468_v52  ;;  %18616 = vmatprep.mubr.f32.mxu1 %v24302_v15 }
 0x378   :  { %18615 = vmatpush3.msra.mxu1 %v21468_v52  ;;  %18630 = vmatprep.mubr.f32.mxu0 %v24305_v28 }
 0x379   :  { %18617 = vmatmul.mubr.f32.vlgmr.msra.gmra.mxu1 %v24293_v8 }
 0x37a   :  { %18619 = vmatprep.mubr.f32.mxu1 %v24296_v41 }
 0x37d   :  { %18620 = vmatmul.mubr.f32.gmra.mxu1 %v24297_v0 }
 0x37e   :  { %18644 = vmatprep.mubr.f32.mxu1 %v24302_v15 }
 0x41c   :  { %v18548_v51 = vpop.f32.mrf.mxu0 }
 0x41e   :  { %v3465_v21 = vpop.f32.mrf.mxu0 }
 0x421   :  { %v18551_v17 = vpop.f32.mrf.mxu0 }
 0x423   :  { %v3485_v46 = vpop.f32.mrf.mxu0 }
 0x424   :  { %v18562_v13 = vpop.f32.mrf.mxu1 }
 0x425   :  { %v3593_v34 = vadd.f32 %v18562_v13, %v18548_v51 }
 0x426   :  { %v3586_v26 = vpop.f32.mrf.mxu1  ;;  %v18576_v19 = vpop.f32.mrf.mxu0 }
 0x427   :  { %v3587_v57 = vadd.f32 %v3586_v26, %v3465_v21  ;;  %v3692_v54 = vadd.f32 %v18576_v19, %v3593_v34 }
 0x428   :  { %v3684_v58 = vpop.f32.mrf.mxu0 }
 0x429   :  { %v3685_v35 = vadd.f32 %v3684_v58, %v3587_v57 }
 0x42a   :  { %v18565_v5 = vpop.f32.mrf.mxu1 }
 0x42b   :  { %v3605_v24 = vadd.f32 %v18565_v5, %v18551_v17 }
 0x42c   :  { %v3598_v16 = vpop.f32.mrf.mxu1 }
 0x42d   :  { %v3599_v33 = vadd.f32 %v3598_v16, %v3485_v46 }
 0x42e   :  { %v18579_v4 = vpop.f32.mrf.mxu0 }
 0x42f   :  { %v3706_v23 = vadd.f32 %v18579_v4, %v3605_v24 }
 0x430   :  { %v3698_v22 = vpop.f32.mrf.mxu0  ;;  %v18590_v37 = vpop.f32.mrf.mxu1 }
 0x431   :  { %v3791_v18 = vadd.f32 %v18590_v37, %v3692_v54  ;;  %v3699_v47 = vadd.f32 %v3698_v22, %v3599_v33 }
 0x432   :  { %v3782_v52 = vpop.f32.mrf.mxu1  ;;  %v18604_v56 = vpop.f32.mrf.mxu0 }
 0x433   :  { %v3783_v59 = vadd.f32 %v3782_v52, %v3685_v35  ;;  %v3896_v27 = vadd.f32 %v18604_v56, %v3791_v18 }
 0x434   :  { %v3889_v20 = vpop.f32.mrf.mxu0 }
 0x435   :  { %v18593_v25 = vpop.f32.mrf.mxu1  ;;  %v3890_v49 = vadd.f32 %v3889_v20, %v3783_v59 }
 0x436   :  { %v18607_v39 = vpop.f32.mrf.mxu0  ;;  %v3807_v40 = vadd.f32 %v18593_v25, %v3706_v23 }
 0x437   :  { %v3798_v31 = vpop.f32.mrf.mxu1 }
 0x438   :  { %v3799_v63 = vadd.f32 %v3798_v31, %v3699_v47  ;;  %v3901_v38 = vpop.f32.mrf.mxu0  ;;  %v3908_v21 = vadd.f32 %v18607_v39, %v3807_v40 }
 0x439   :  { %v18618_v53 = vpop.f32.mrf.mxu1 }
 0x43a   :  { %v21535_v30 = vadd.f32 %v18618_v53, %v3896_v27  ;;  %v3902_v26 = vadd.f32 %v3901_v38, %v3799_v63  ;;  %v4634_v27 = vld [vmem:[#allocation9 + $0x38] sm:$0xff] }
 0x43b   :  { %v3982_v51 = vpop.f32.mrf.mxu1  ;;  %v21584_v38 = vand.u32 4294901760, %v4634_v27 }
 0x43c   :  { %v3983_v17 = vadd.f32 %v3982_v51, %v3890_v49  ;;  %v21538_v46 = vand.u32 4294901760, %v21535_v30  ;;  %v4639_v40 = vsel %vm153_vm0, %v21535_v30, 0  ;;  %v4633_v49 = vld [vmem:[#allocation9 + $0x30] sm:$0xff] }
 0x43d   :  { %v18621_v13 = vpop.f32.mrf.mxu1  ;;  %v21586_v51 = vand.u32 4294901760, %v4639_v40 }
 0x43e   :  { %v21540_v19 = vadd.f32 %v18621_v13, %v3908_v21  ;;  %v21542_v5 = vand.u32 4294901760, %v3983_v17  ;;  %v4153_v4 = vsub.f32 %v21535_v30, %v21538_v46  ;;  %v4636_v47 = vsel %vm153_vm0, %v3983_v17, 0  ;;  %v4632_v13 = vld [vmem:[#allocation9 + $0x28] sm:$0xff] }
 0x43f   :  { %v3994_v58 = vpop.f32.mrf.mxu1  ;;  %v21577_v53 = vand.u32 4294901760, %v4636_v47  ;;  %v21594_v21 = vand.u32 4294901760, %v4633_v49 }
 0x440   :  { %v21545_v16 = vand.u32 4294901760, %v21540_v19  ;;  %v3995_v34 = vadd.f32 %v3994_v58, %v3902_v26  ;;  %v4160_v37 = vsub.f32 %v3983_v17, %v21542_v5  ;;  %v4154_v52 = vand.u32 4294901760, %v4153_v4 }
 0x441   :  { %v21591_v30 = vsub.f32 %v4636_v47, %v21577_v53  ;;  %v4645_v26 = vsel %vm153_vm0, %v21540_v19, 0  ;;  %v21604_v58 = vsub.f32 %v4634_v27, %v21584_v38 }
 0x442   :  { %v4139_v57 = vsub.f32 %v21540_v19, %v21545_v16  ;;  %v21551_v22 = vand.u32 4294901760, %v3995_v34  ;;  %18622 = vmatprep.subr.mxu0 %v21545_v16  ;;  %v21561_v33 = vand.u32 4294901760, %v4160_v37  ;;  %v4155_v25 = vsub.f32 %v4153_v4, %v4154_v52 }
 0x443   :  { %18623 = vmatpush3.msra.mxu0 %v21545_v16  ;;  %v4642_v63 = vsel %vm153_vm0, %v3995_v34, 0  ;;  %v4718_v19 = vand.u32 4294901760, %v21591_v30 }
 0x444   :  { %v4146_v54 = vsub.f32 %v3995_v34, %v21551_v22  ;;  %18624 = vmatprep.subr.mxu0 %v21551_v22  ;;  %v4140_v24 = vand.u32 4294901760, %v4139_v57  ;;  %v4162_v59 = vsub.f32 %v4160_v37, %v21561_v33  ;;  %v4156_v31 = vand.u32 4294901760, %v4155_v25 }
 0x445   :  { %18625 = vmatpush3.msra.mxu0 %v21551_v22  ;;  %v21596_v17 = vand.u32 4294901760, %v4642_v63  ;;  %v21607_v34 = vsub.f32 %v4639_v40, %v21586_v51 }
 0x446   :  { %18626 = vmatprep.subr.mxu0 %v21538_v46  ;;  %v4141_v56 = vsub.f32 %v4139_v57, %v4140_v24  ;;  %v4147_v35 = vand.u32 4294901760, %v4146_v54  ;;  %v4163_v39 = vand.u32 4294901760, %v4162_v59 }
 0x447   :  { %18627 = vmatpush3.msra.mxu0 %v21538_v46 }
 0x448   :  { %18628 = vmatprep.subr.mxu0 %v21542_v5  ;;  %v4142_v18 = vand.u32 4294901760, %v4141_v56  ;;  %v4148_v20 = vsub.f32 %v4146_v54, %v4147_v35  ;;  %v4728_v56 = vand.u32 4294901760, %v21607_v34 }
 0x449   :  { %18629 = vmatpush3.msra.mxu0 %v21542_v5 }
 0x44a   :  { %18631 = vmatmul.mubr.f32.vlgmr.msra.gmra.mxu0 %v24290_v61  ;;  %18636 = vmatprep.subr.mxu1 %v4142_v18  ;;  %v4149_v23 = vand.u32 4294901760, %v4148_v20  ;;  %v4729_v59 = vsub.f32 %v21607_v34, %v4728_v56 }
 0x44b   :  { %18650 = vmatprep.subr.mxu0 %v4139_v57  ;;  %18637 = vmatpush3.msra.mxu1 %v4142_v18 }
 0x44c   :  { %18651 = vmatpush3.msra.mxu0 %v4139_v57  ;;  %18638 = vmatprep.subr.mxu1 %v4149_v23  ;;  %v4631_v57 = vld [vmem:[#allocation9 + $0x20] sm:$0xff] }
 0x44d   :  { %18652 = vmatprep.subr.mxu0 %v4146_v54  ;;  %18633 = vmatprep.mubr.f32.mxu0 %v24291_v55 }
 0x44e   :  { %18639 = vmatpush3.msra.mxu1 %v4149_v23  ;;  %18653 = vmatpush3.msra.mxu0 %v4146_v54  ;;  %v21619_v54 = vand.u32 4294901760, %v4645_v26 }
 0x44f   :  { %18634 = vmatmul.mubr.f32.gmra.mxu0 %v24292_v3  ;;  %18640 = vmatprep.subr.mxu1 %v4156_v31 }
 0x450   :  { %18654 = vmatprep.subr.mxu0 %v4153_v4  ;;  %18641 = vmatpush3.msra.mxu1 %v4156_v31  ;;  %v21646_v25 = vsub.f32 %v4645_v26, %v21619_v54 }
 0x451   :  { %18655 = vmatpush3.msra.mxu0 %v4153_v4  ;;  %18642 = vmatprep.subr.mxu1 %v4163_v39  ;;  %v21613_v4 = vand.u32 4294901760, %v4632_v13 }
 0x452   :  { %18656 = vmatprep.subr.mxu0 %v4160_v37  ;;  %18643 = vmatpush3.msra.mxu1 %v4163_v39  ;;  %v4748_v40 = vand.u32 4294901760, %v21646_v25 }
 0x453   :  { %18657 = vmatpush3.msra.mxu0 %v4160_v37  ;;  %18658 = vmatprep.mubr.f32.mxu0 %v24294_v48  ;;  %v21617_v37 = vsub.f32 %v4633_v49, %v21594_v21  ;;  %v4796_v20 = vsub.f32 %v4632_v13, %v21613_v4 }
 0x454   :  { %18645 = vmatmul.mubr.f32.vlgmr.msra.gmra.mxu1 %v24293_v8  ;;  %18659 = vmatmul.mubr.f32.vlgmr.msra.gmra.mxu0 %v24295_v7 }
 0x455   :  { %18664 = vmatprep.subr.mxu1 %v21545_v16  ;;  %18678 = vmatprep.subr.mxu0 %v4140_v24  ;;  %v21642_v18 = vand.u32 4294901760, %v21617_v37  ;;  %v21665_v47 = vand.u32 4294901760, %v4796_v20 }
 0x456   :  { %18665 = vmatpush3.msra.mxu1 %v21545_v16  ;;  %18679 = vmatpush3.msra.mxu0 %v4140_v24  ;;  %v21622_v24 = vsub.f32 %v4642_v63, %v21596_v17  ;;  %v4730_v63 = vand.u32 4294901760, %v4729_v59 }
 0x457   :  { %18666 = vmatprep.subr.mxu1 %v21551_v22  ;;  %18680 = vmatprep.subr.mxu0 %v4147_v35  ;;  %v4791_v39 = vsub.f32 %v21617_v37, %v21642_v18  ;;  %v4798_v26 = vsub.f32 %v4796_v20, %v21665_v47 }
 0x458   :  { %18647 = vmatprep.mubr.f32.mxu1 %v24296_v41  ;;  %18661 = vmatprep.mubr.f32.mxu0 %v24298_v43 }
 0x459   :  { %18667 = vmatpush3.msra.mxu1 %v21551_v22  ;;  %18681 = vmatpush3.msra.mxu0 %v4147_v35  ;;  %v21634_v35 = vand.u32 4294901760, %v4631_v57 }
 0x45a   :  { %18648 = vmatmul.mubr.f32.gmra.mxu1 %v24297_v0  ;;  %18662 = vmatmul.mubr.f32.gmra.mxu0 %v24299_v42 }
 0x45b   :  { %18668 = vmatprep.subr.mxu1 %v21538_v46  ;;  %18682 = vmatprep.subr.mxu0 %v4154_v52  ;;  %v4803_v31 = vsub.f32 %v4631_v57, %v21634_v35 }
 0x45c   :  { %18669 = vmatpush3.msra.mxu1 %v21538_v46  ;;  %18683 = vmatpush3.msra.mxu0 %v4154_v52  ;;  %v21629_v52 = vand.u32 4294901760, %v21604_v58 }
 0x45d   :  { %18670 = vmatprep.subr.mxu1 %v21542_v5  ;;  %18684 = vmatprep.subr.mxu0 %v21561_v33  ;;  %v21676_v13 = vand.u32 4294901760, %v4803_v31 }
 0x45e   :  { %18671 = vmatpush3.msra.mxu1 %v21542_v5  ;;  %18672 = vmatprep.mubr.f32.mxu1 %v24300_v2  ;;  %v4784_v23 = vsub.f32 %v21604_v58, %v21629_v52 }
 0x45f   :  { %18685 = vmatpush3.msra.mxu0 %v21561_v33  ;;  %18686 = vmatprep.mubr.f32.mxu0 %v24302_v15  ;;  %v4719_v33 = vsub.f32 %v21591_v30, %v4718_v19 }
 0x460   :  { %18673 = vmatmul.mubr.f32.vlgmr.msra.gmra.mxu1 %v24301_v12  ;;  %18687 = vmatmul.mubr.f32.vlgmr.msra.gmra.mxu0 %v24293_v8  ;;  %v4785_v49 = vand.u32 4294901760, %v4784_v23  ;;  %v4799_v23 = vand.u32 4294901760, %v4798_v26 }
 0x461   :  { %18692 = vmatprep.subr.mxu1 %v21545_v16  ;;  %18706 = vmatprep.subr.mxu0 %v21584_v38 }
 0x462   :  { %18693 = vmatpush3.msra.mxu1 %v21545_v16  ;;  %18707 = vmatpush3.msra.mxu0 %v21584_v38  ;;  %v4738_v16 = vand.u32 4294901760, %v21622_v24 }
 0x463   :  { %18694 = vmatprep.subr.mxu1 %v21551_v22  ;;  %18708 = vmatprep.subr.mxu0 %v21594_v21 }
 0x464   :  { %18675 = vmatprep.mubr.f32.mxu1 %v24303_v36  ;;  %18689 = vmatprep.mubr.f32.mxu0 %v24296_v41  ;;  %v4739_v27 = vsub.f32 %v21622_v24, %v4738_v16 }
 0x465   :  { %18695 = vmatpush3.msra.mxu1 %v21551_v22  ;;  %18709 = vmatpush3.msra.mxu0 %v21594_v21  ;;  %v4720_v22 = vand.u32 4294901760, %v4719_v33  ;;  %v4749_v33 = vsub.f32 %v21646_v25, %v4748_v40 }
 0x466   :  { %18676 = vmatmul.mubr.f32.gmra.mxu1 %v24304_v29  ;;  %18690 = vmatmul.mubr.f32.gmra.mxu0 %v24297_v0  ;;  %v4740_v57 = vand.u32 4294901760, %v4739_v27  ;;  %v4628_v27 = vld [vmem:[#allocation9 + $0x10] sm:$0xff] }
 0x467   :  { %18696 = vmatprep.subr.mxu1 %v21538_v46  ;;  %18710 = vmatprep.subr.mxu0 %v21613_v4  ;;  %v4750_v59 = vand.u32 4294901760, %v4749_v33  ;;  %v5271_v33 = vsel %vm153_vm0, %v21463_v45, 0 }
 0x468   :  { %18697 = vmatpush3.msra.mxu1 %v21538_v46  ;;  %18711 = vmatpush3.msra.mxu0 %v21613_v4  ;;  %v4792_v46 = vand.u32 4294901760, %v4791_v39 }
 0x469   :  { %18714 = vmatprep.mubr.f32.mxu0 %v4720_v22  ;;  %18698 = vmatprep.subr.mxu1 %v21542_v5 }
 0x46a   :  { %18712 = vmatprep.subr.mxu0 %v21634_v35  ;;  %18699 = vmatpush3.msra.mxu1 %v21542_v5  ;;  %v4805_v5 = vsub.f32 %v4803_v31, %v21676_v13 }
 0x46b   :  { %18700 = vmatprep.mubr.f32.mxu1 %v24302_v15  ;;  %18713 = vmatpush3.msra.mxu0 %v21634_v35 }
 0x46c   :  { %18701 = vmatmul.mubr.f32.vlgmr.msra.gmra.mxu1 %v24293_v8  ;;  %18715 = vmatmul.mubr.f32.vlgmr.msra.gmra.mxu0 %v4730_v63  ;;  %v4806_v22 = vand.u32 4294901760, %v4805_v5  ;;  %v4626_v5 = vld [vmem:[#allocation9] sm:$0xff] }
 0x46d   :  { %18720 = vmatprep.subr.mxu1 %v4785_v49  ;;  %18734 = vmatprep.subr.mxu0 %v21604_v58 }
 0x46e   :  { %18717 = vmatprep.mubr.f32.mxu0 %v4740_v57  ;;  %18721 = vmatpush3.msra.mxu1 %v4785_v49  ;;  %v5268_v49 = vsel %vm153_vm0, %v21474_v14, 0 }
 0x46f   :  { %18735 = vmatpush3.msra.mxu0 %v21604_v58  ;;  %18722 = vmatprep.subr.mxu1 %v4792_v46  ;;  %v5262_v58 = vsel %vm153_vm0, %v21455_v1, 0  ;;  %v21730_v26 = vand.u32 4294901760, %v5268_v49 }
 0x470   :  { %18736 = vmatprep.subr.mxu0 %v21617_v37  ;;  %18703 = vmatprep.mubr.f32.mxu1 %v24296_v41 }
 0x471   :  { %18723 = vmatpush3.msra.mxu1 %v4792_v46  ;;  %18737 = vmatpush3.msra.mxu0 %v21617_v37  ;;  %v4629_v37 = vld [vmem:[#allocation9 + $0x18] sm:$0xff]  ;;  %v4627_v46 = vld [vmem:[#allocation9 + $0x8] sm:$0xff] }
 0x472   :  { %18704 = vmatmul.mubr.f32.gmra.mxu1 %v24297_v0  ;;  %18718 = vmatmul.mubr.f32.gmra.mxu0 %v4750_v59  ;;  %v21712_v39 = vand.u32 4294901760, %v4629_v37 }
 0x473   :  { %18724 = vmatprep.subr.mxu1 %v4799_v23  ;;  %18738 = vmatprep.subr.mxu0 %v4796_v20 }
 0x474   :  { %18725 = vmatpush3.msra.mxu1 %v4799_v23  ;;  %18728 = vmatprep.mubr.f32.mxu1 %v21577_v53  ;;  %v21735_v57 = vsub.f32 %v4629_v37, %v21712_v39  ;;  %v21753_v23 = vsub.f32 %v5268_v49, %v21730_v26 }
 0x475   :  { %18739 = vmatpush3.msra.mxu0 %v4796_v20  ;;  %18742 = vmatprep.mubr.f32.mxu0 %v21591_v30  ;;  %v21704_v20 = vand.u32 4294901760, %v5262_v58 }
 0x476   :  { %18726 = vmatprep.subr.mxu1 %v4806_v22  ;;  %18740 = vmatprep.subr.mxu0 %v4803_v31 }
 0x477   :  { %18727 = vmatpush3.msra.mxu1 %v4806_v22  ;;  %18741 = vmatpush3.msra.mxu0 %v4803_v31  ;;  %v5265_v31 = vsel %vm153_vm0, %v21450_v6, 0  ;;  %v21723_v63 = vsub.f32 %v5262_v58, %v21704_v20  ;;  %v21756_v22 = vand.u32 4294901760, %v5271_v33 }
 0x478   :  { %18729 = vmatmul.mubr.f32.vlgmr.msra.gmra.mxu1 %v21586_v51  ;;  %18743 = vmatmul.mubr.f32.vlgmr.msra.gmra.mxu0 %v21607_v34  ;;  %v21766_v34 = vand.u32 4294901760, %v4626_v5 }
 0x479   :  { %18748 = vmatprep.subr.mxu1 %v21584_v38  ;;  %18762 = vmatprep.subr.mxu0 %v21629_v52 }
 0x47a   :  { %18731 = vmatprep.mubr.f32.mxu1 %v21596_v17  ;;  %18745 = vmatprep.mubr.f32.mxu0 %v21622_v24  ;;  %v24193_v24 = vand.u32 4294901760, %v21753_v23  ;;  %v5429_v49 = vsub.f32 %v4626_v5, %v21766_v34 }
 0x47b   :  { %18749 = vmatpush3.msra.mxu1 %v21584_v38  ;;  %18763 = vmatpush3.msra.mxu0 %v21629_v52  ;;  %v21718_v52 = vand.u32 4294901760, %v5265_v31 }
 0x47c   :  { %18750 = vmatprep.subr.mxu1 %v21594_v21  ;;  %18764 = vmatprep.subr.mxu0 %v21642_v18 }
 0x47d   :  { %18751 = vmatpush3.msra.mxu1 %v21594_v21  ;;  %18765 = vmatpush3.msra.mxu0 %v21642_v18  ;;  %v21728_v18 = vand.u32 4294901760, %v4628_v27  ;;  %v21742_v30 = vsub.f32 %v5265_v31, %v21718_v52  ;;  %v21781_v31 = vsub.f32 %v5271_v33, %v21756_v22 }
 0x47e   :  { %18732 = vmatmul.mubr.f32.gmra.mxu1 %v21619_v54  ;;  %18746 = vmatmul.mubr.f32.gmra.mxu0 %v21646_v25  ;;  %v5365_v25 = vsub.f32 %v21753_v23, %v24193_v24 }
 0x47f   :  { %18752 = vmatprep.subr.mxu1 %v21613_v4  ;;  %18766 = vmatprep.subr.mxu0 %v21665_v47  ;;  %v5415_v59 = vsub.f32 %v4628_v27, %v21728_v18  ;;  %v5374_v33 = vand.u32 4294901760, %v21781_v31 }
 0x480   :  { %18753 = vmatpush3.msra.mxu1 %v21613_v4  ;;  %18756 = vmatprep.mubr.f32.mxu1 %v4718_v19  ;;  %v21746_v19 = vand.u32 4294901760, %v4627_v46  ;;  %v5366_v24 = vand.u32 4294901760, %v5365_v25 }
 0x481   :  { %18767 = vmatpush3.msra.mxu0 %v21665_v47  ;;  %18770 = vmatprep.mubr.f32.mxu0 %v21577_v53  ;;  %v5344_v47 = vand.u32 4294901760, %v21723_v63 }
 0x482   :  { %18754 = vmatprep.subr.mxu1 %v21634_v35  ;;  %18768 = vmatprep.subr.mxu0 %v21676_v13  ;;  %v5422_v37 = vsub.f32 %v4627_v46, %v21746_v19 }
 0x483   :  { %18755 = vmatpush3.msra.mxu1 %v21634_v35  ;;  %18769 = vmatpush3.msra.mxu0 %v21676_v13  ;;  %v21761_v13 = vand.u32 4294901760, %v21735_v57  ;;  %v5345_v58 = vsub.f32 %v21723_v63, %v5344_v47 }
 0x484   :  { %18757 = vmatmul.mubr.f32.vlgmr.msra.gmra.mxu1 %v4728_v56  ;;  %18771 = vmatmul.mubr.f32.vlgmr.msra.gmra.mxu0 %v21586_v51  ;;  %v24194_v56 = vand.u32 4294901760, %v21742_v30  ;;  %v21796_v46 = vand.u32 4294901760, %v5422_v37 }
 0x485   :  { %18776 = vmatprep.subr.mxu1 %v21584_v38  ;;  %18790 = vmatprep.subr.mxu0 %v21712_v39 }
 0x486   :  { %18759 = vmatprep.mubr.f32.mxu1 %v4738_v16  ;;  %18773 = vmatprep.mubr.f32.mxu0 %v21596_v17  ;;  %v21778_v16 = vand.u32 4294901760, %v5415_v59  ;;  %v5355_v27 = vsub.f32 %v21742_v30, %v24194_v56 }
 0x487   :  { %18777 = vmatpush3.msra.mxu1 %v21584_v38  ;;  %18791 = vmatpush3.msra.mxu0 %v21712_v39  ;;  %v5410_v38 = vsub.f32 %v21735_v57, %v21761_v13 }
 0x488   :  { %18778 = vmatprep.subr.mxu1 %v21594_v21  ;;  %18792 = vmatprep.subr.mxu0 %v21728_v18 }
 0x489   :  { %18779 = vmatpush3.msra.mxu1 %v21594_v21  ;;  %18793 = vmatpush3.msra.mxu0 %v21728_v18  ;;  %v5346_v21 = vand.u32 4294901760, %v5345_v58  ;;  %v5411_v5 = vand.u32 4294901760, %v5410_v38  ;;  %v5356_v58 = vand.u32 4294901760, %v5355_v27  ;;  %v5375_v38 = vsub.f32 %v21781_v31, %v5374_v33 }
 0x48a   :  { %18760 = vmatmul.mubr.f32.gmra.mxu1 %v4748_v40  ;;  %18774 = vmatmul.mubr.f32.gmra.mxu0 %v21619_v54  ;;  %v5417_v40 = vsub.f32 %v5415_v59, %v21778_v16 }
 0x48b   :  { %18780 = vmatprep.subr.mxu1 %v21613_v4  ;;  %18794 = vmatprep.subr.mxu0 %v21746_v19 }
 0x48c   :  { %18781 = vmatpush3.msra.mxu1 %v21613_v4  ;;  %18784 = vmatprep.mubr.f32.mxu1 %v21577_v53  ;;  %v5430_v4 = vand.u32 4294901760, %v5429_v49  ;;  %v5424_v53 = vsub.f32 %v5422_v37, %v21796_v46  ;;  %v5418_v56 = vand.u32 4294901760, %v5417_v40 }
 0x48d   :  { %18795 = vmatpush3.msra.mxu0 %v21746_v19  ;;  %18798 = vmatprep.mubr.f32.mxu0 %v5346_v21 }
 0x48e   :  { %18782 = vmatprep.subr.mxu1 %v21634_v35  ;;  %18796 = vmatprep.subr.mxu0 %v21766_v34  ;;  %v5425_v27 = vand.u32 4294901760, %v5424_v53 }
 0x48f   :  { %18783 = vmatpush3.msra.mxu1 %v21634_v35  ;;  %18797 = vmatpush3.msra.mxu0 %v21766_v34  ;;  %v5431_v35 = vsub.f32 %v5429_v49, %v5430_v4 }
 0x490   :  { %18785 = vmatmul.mubr.f32.vlgmr.msra.gmra.mxu1 %v21586_v51  ;;  %18799 = vmatmul.mubr.f32.vlgmr.msra.gmra.mxu0 %v5356_v58  ;;  %v5376_v51 = vand.u32 4294901760, %v5375_v38 }
 0x491   :  { %18804 = vmatprep.subr.mxu1 %v5411_v5  ;;  %18818 = vmatprep.subr.mxu0 %v21735_v57  ;;  %v5432_v21 = vand.u32 4294901760, %v5431_v35 }
 0x492   :  { %18787 = vmatprep.mubr.f32.mxu1 %v21596_v17  ;;  %18801 = vmatprep.mubr.f32.mxu0 %v5366_v24  ;;  %v24306_v17 = vand.u32 4294901760, %v21742_v30 }
 0x493   :  { %18805 = vmatpush3.msra.mxu1 %v5411_v5  ;;  %18819 = vmatpush3.msra.mxu0 %v21735_v57 }
 0x494   :  { %18806 = vmatprep.subr.mxu1 %v5418_v56  ;;  %18820 = vmatprep.subr.mxu0 %v5415_v59 }
 0x495   :  { %18807 = vmatpush3.msra.mxu1 %v5418_v56  ;;  %18821 = vmatpush3.msra.mxu0 %v5415_v59 }
 0x496   :  { %18788 = vmatmul.mubr.f32.gmra.mxu1 %v21619_v54  ;;  %18802 = vmatmul.mubr.f32.gmra.mxu0 %v5376_v51  ;;  %v24307_v54 = vand.u32 4294901760, %v21753_v23 }
 0x497   :  { %18808 = vmatprep.subr.mxu1 %v5425_v27  ;;  %18822 = vmatprep.subr.mxu0 %v5422_v37 }
 0x498   :  { %18809 = vmatpush3.msra.mxu1 %v5425_v27  ;;  %18812 = vmatprep.mubr.f32.mxu1 %v21704_v20 }
 0x499   :  { %18823 = vmatpush3.msra.mxu0 %v5422_v37  ;;  %18826 = vmatprep.mubr.f32.mxu0 %v21723_v63 }
 0x49a   :  { %18810 = vmatprep.subr.mxu1 %v5432_v21  ;;  %18824 = vmatprep.subr.mxu0 %v5429_v49 }
 0x49b   :  { %18811 = vmatpush3.msra.mxu1 %v5432_v21  ;;  %18825 = vmatpush3.msra.mxu0 %v5429_v49 }
 0x49c   :  { %18813 = vmatmul.mubr.f32.vlgmr.msra.gmra.mxu1 %v21718_v52  ;;  %18827 = vmatmul.mubr.f32.vlgmr.msra.gmra.mxu0 %v21742_v30 }
 0x49d   :  { %18832 = vmatprep.subr.mxu1 %v21712_v39  ;;  %18846 = vmatprep.subr.mxu0 %v21761_v13 }
 0x49e   :  { %18815 = vmatprep.mubr.f32.mxu1 %v21730_v26  ;;  %18829 = vmatprep.mubr.f32.mxu0 %v21753_v23 }
 0x49f   :  { %18833 = vmatpush3.msra.mxu1 %v21712_v39  ;;  %18847 = vmatpush3.msra.mxu0 %v21761_v13 }
 0x4a0   :  { %18834 = vmatprep.subr.mxu1 %v21728_v18  ;;  %18848 = vmatprep.subr.mxu0 %v21778_v16 }
 0x4a1   :  { %18835 = vmatpush3.msra.mxu1 %v21728_v18  ;;  %18849 = vmatpush3.msra.mxu0 %v21778_v16 }
 0x4a2   :  { %18816 = vmatmul.mubr.f32.gmra.mxu1 %v21756_v22  ;;  %18830 = vmatmul.mubr.f32.gmra.mxu0 %v21781_v31 }
 0x4a3   :  { %18836 = vmatprep.subr.mxu1 %v21746_v19  ;;  %18850 = vmatprep.subr.mxu0 %v21796_v46 }
 0x4a4   :  { %18837 = vmatpush3.msra.mxu1 %v21746_v19  ;;  %18840 = vmatprep.mubr.f32.mxu1 %v5344_v47 }
 0x4a5   :  { %18851 = vmatpush3.msra.mxu0 %v21796_v46  ;;  %18854 = vmatprep.mubr.f32.mxu0 %v21704_v20 }
 0x4a6   :  { %18838 = vmatprep.subr.mxu1 %v21766_v34  ;;  %18852 = vmatprep.subr.mxu0 %v5430_v4 }
 0x4a7   :  { %18839 = vmatpush3.msra.mxu1 %v21766_v34  ;;  %18853 = vmatpush3.msra.mxu0 %v5430_v4 }
 0x4a8   :  { %18841 = vmatmul.mubr.f32.vlgmr.msra.gmra.mxu1 %v24306_v17  ;;  %18855 = vmatmul.mubr.f32.vlgmr.msra.gmra.mxu0 %v21718_v52 }
 0x4a9   :  { %18860 = vmatprep.subr.mxu1 %v21712_v39  ;;  %18843 = vmatprep.mubr.f32.mxu1 %v24307_v54 }
 0x4aa   :  { %18857 = vmatprep.mubr.f32.mxu0 %v21730_v26  ;;  %18861 = vmatpush3.msra.mxu1 %v21712_v39  ;;  %v5891_v39 = vld [vmem:[#allocation9 + $0x58] sm:$0xff] }
 0x4ab   :  { %18862 = vmatprep.subr.mxu1 %v21728_v18  ;;  %v21865_v63 = vand.u32 4294901760, %v5891_v39 }
 0x4ac   :  { %18863 = vmatpush3.msra.mxu1 %v21728_v18  ;;  %18858 = vmatmul.mubr.f32.gmra.mxu0 %v21756_v22  ;;  %v5890_v18 = vld [vmem:[#allocation9 + $0x50] sm:$0xff] }
 0x4ad   :  { %18844 = vmatmul.mubr.f32.gmra.mxu1 %v5374_v33  ;;  %18864 = vmatprep.subr.mxu1 %v21746_v19  ;;  %v21868_v57 = vsub.f32 %v5891_v39, %v21865_v63  ;;  %v21870_v30 = vand.u32 4294901760, %v5890_v18 }
 0x4ae   :  { %18865 = vmatpush3.msra.mxu1 %v21746_v19  ;;  %18868 = vmatprep.mubr.f32.mxu1 %v21704_v20  ;;  %v5889_v20 = vld [vmem:[#allocation9 + $0x48] sm:$0xff]  ;;  %v5888_v19 = vld [vmem:[#allocation9 + $0x40] sm:$0xff] }
 0x4af   :  { %18866 = vmatprep.subr.mxu1 %v21766_v34  ;;  %18874 = vmatprep.subr.mxu0 %v21865_v63  ;;  %v21873_v47 = vand.u32 4294901760, %v5889_v20  ;;  %v21882_v23 = vsub.f32 %v5890_v18, %v21870_v30 }
 0x4b0   :  { %18867 = vmatpush3.msra.mxu1 %v21766_v34  ;;  %18875 = vmatpush3.msra.mxu0 %v21865_v63 }
 0x4b1   :  { %18869 = vmatmul.mubr.f32.vlgmr.msra.gmra.mxu1 %v21718_v52  ;;  %v21875_v52 = vand.u32 4294901760, %v5888_v19  ;;  %18876 = vmatprep.subr.mxu0 %v21870_v30  ;;  %v21886_v59 = vsub.f32 %v5889_v20, %v21873_v47  ;;  %v21895_v34 = vand.u32 4294901760, %v21882_v23 }
 0x4b2   :  { %18871 = vmatprep.mubr.f32.mxu1 %v21730_v26  ;;  %v21879_v26 = vand.u32 4294901760, %v21868_v57  ;;  %18877 = vmatpush3.msra.mxu0 %v21870_v30 }
 0x4b3   :  { %18878 = vmatprep.subr.mxu0 %v21873_v47  ;;  %v21899_v56 = vand.u32 4294901760, %v21886_v59  ;;  %v6048_v16 = vsub.f32 %v21882_v23, %v21895_v34 }
 0x4b4   :  { %v6041_v13 = vsub.f32 %v21868_v57, %v21879_v26  ;;  %18879 = vmatpush3.msra.mxu0 %v21873_v47 }
 0x4b5   :  { %18872 = vmatmul.mubr.f32.gmra.mxu1 %v21756_v22  ;;  %v21889_v22 = vsub.f32 %v5888_v19, %v21875_v52  ;;  %18880 = vmatprep.subr.mxu0 %v21875_v52  ;;  %v6055_v31 = vsub.f32 %v21886_v59, %v21899_v56  ;;  %v6049_v46 = vand.u32 4294901760, %v6048_v16 }
 0x4b6   :  { %v6042_v24 = vand.u32 4294901760, %v6041_v13  ;;  %18881 = vmatpush3.msra.mxu0 %v21875_v52 }
 0x4b7   :  { %v21902_v37 = vand.u32 4294901760, %v21889_v22  ;;  %18902 = vmatprep.subr.mxu0 %v21868_v57  ;;  %v6056_v25 = vand.u32 4294901760, %v6055_v31 }
 0x4b8   :  { %18888 = vmatprep.subr.mxu1 %v6042_v24 }
 0x4b9   :  { %v6062_v49 = vsub.f32 %v21889_v22, %v21902_v37  ;;  %18889 = vmatpush3.msra.mxu1 %v6042_v24 }
 0x4ba   :  { %18890 = vmatprep.subr.mxu1 %v6049_v46 }
 0x4bb   :  { %v6063_v40 = vand.u32 4294901760, %v6062_v49  ;;  %18891 = vmatpush3.msra.mxu1 %v6049_v46 }
 0x4bc   :  { %18892 = vmatprep.subr.mxu1 %v6056_v25 }
 0x4bd   :  { %18893 = vmatpush3.msra.mxu1 %v6056_v25 }
 0x4be   :  { %18894 = vmatprep.subr.mxu1 %v6063_v40 }
 0x4bf   :  { %18895 = vmatpush3.msra.mxu1 %v6063_v40 }
 0x4c0   :  { %18916 = vmatprep.subr.mxu1 %v21865_v63 }
 0x50a   :  { %v18632_v33 = vpop.f32.mrf.mxu0 }
 0x50c   :  { %v4079_v5 = vpop.f32.mrf.mxu0 }
 0x50f   :  { %v18635_v58 = vpop.f32.mrf.mxu0 }
 0x511   :  { %v4099_v4 = vpop.f32.mrf.mxu0 }
 0x514   :  { %v18646_v53 = vpop.f32.mrf.mxu1  ;;  %v18660_v38 = vpop.f32.mrf.mxu0 }
 0x515   :  { %v4207_v39 = vadd.f32 %v18646_v53, %v18632_v33 }
 0x516   :  { %v4200_v35 = vpop.f32.mrf.mxu1  ;;  %v4298_v27 = vpop.f32.mrf.mxu0 }
 0x517   :  { %v4201_v19 = vadd.f32 %v4200_v35, %v4079_v5  ;;  %v4306_v13 = vadd.f32 %v18660_v38, %v4207_v39 }
 0x519   :  { %v4299_v31 = vadd.f32 %v4298_v27, %v4201_v19 }
 0x51a   :  { %v18649_v51 = vpop.f32.mrf.mxu1  ;;  %v18663_v17 = vpop.f32.mrf.mxu0 }
 0x51b   :  { %v4219_v49 = vadd.f32 %v18649_v51, %v18635_v58 }
 0x51c   :  { %v4212_v21 = vpop.f32.mrf.mxu1  ;;  %v4312_v18 = vpop.f32.mrf.mxu0 }
 0x51d   :  { %v4213_v40 = vadd.f32 %v4212_v21, %v4099_v4  ;;  %v4320_v12 = vadd.f32 %v18663_v17, %v4219_v49 }
 0x51f   :  { %v4313_v43 = vadd.f32 %v4312_v18, %v4213_v40 }
 0x520   :  { %v18674_v54 = vpop.f32.mrf.mxu1  ;;  %v18688_v24 = vpop.f32.mrf.mxu0 }
 0x521   :  { %v4405_v46 = vadd.f32 %v18674_v54, %v4306_v13 }
 0x522   :  { %v4396_v20 = vpop.f32.mrf.mxu1  ;;  %v4503_v36 = vpop.f32.mrf.mxu0 }
 0x523   :  { %v4397_v29 = vadd.f32 %v4396_v20, %v4299_v31  ;;  %v4510_v2 = vadd.f32 %v18688_v24, %v4405_v46 }
 0x525   :  { %v4504_v0 = vadd.f32 %v4503_v36, %v4397_v29 }
 0x526   :  { %v18677_v16 = vpop.f32.mrf.mxu1  ;;  %v18691_v53 = vpop.f32.mrf.mxu0 }
 0x527   :  { %v4421_v41 = vadd.f32 %v18677_v16, %v4320_v12 }
 0x528   :  { %v4412_v25 = vpop.f32.mrf.mxu1  ;;  %v4515_v51 = vpop.f32.mrf.mxu0 }
 0x529   :  { %v4413_v5 = vadd.f32 %v4412_v25, %v4313_v43  ;;  %v4522_v39 = vadd.f32 %v18691_v53, %v4421_v41 }
 0x52b   :  { %v4516_v21 = vadd.f32 %v4515_v51, %v4413_v5 }
 0x52c   :  { %v18702_v42 = vpop.f32.mrf.mxu1 }
 0x52d   :  { %v4603_v33 = vadd.f32 %v18702_v42, %v4510_v2 }
 0x52e   :  { %v4596_v7 = vpop.f32.mrf.mxu1 }
 0x52f   :  { %v4619_v38 = vmul.f32 2.0, %v4603_v33  ;;  %v4597_v35 = vadd.f32 %v4596_v7, %v4504_v0 }
 0x531   :  { %v4623_v58 = vsub.f32 %v4619_v38, %v21450_v6  ;;  %v4618_v27 = vmul.f32 2.0, %v4597_v35 }
 0x532   :  { %v18705_v4 = vpop.f32.mrf.mxu1 }
 0x533   :  { %v5896_v17 = vsel %vm153_vm0, %v4623_v58, 0  ;;  %v4622_v54 = vsub.f32 %v4618_v27, %v21455_v1  ;;  %v4615_v18 = vadd.f32 %v18705_v4, %v4522_v39 }
 0x534   :  { %v21918_v36 = vand.u32 4294901760, %v5896_v17  ;;  %v4608_v42 = vpop.f32.mrf.mxu1 }
 0x535   :  { %v5893_v2 = vsel %vm153_vm0, %v4622_v54, 0  ;;  %v4621_v43 = vmul.f32 2.0, %v4615_v18  ;;  %v4609_v12 = vadd.f32 %v4608_v42, %v4516_v21 }
 0x536   :  { %v5984_v7 = vsub.f32 %v5896_v17, %v21918_v36  ;;  %v21922_v41 = vand.u32 4294901760, %v5893_v2 }
 0x537   :  { %v4625_v6 = vsub.f32 %v4621_v43, %v21463_v45  ;;  %v4620_v0 = vmul.f32 2.0, %v4609_v12 }
 0x538   :  { %v5985_v29 = vand.u32 4294901760, %v5984_v7  ;;  %v5974_v20 = vsub.f32 %v5893_v2, %v21922_v41  ;;  %18896 = vmatprep.mubr.f32.mxu1 %v21922_v41 }
 0x539   :  { %v5902_v1 = vsel %vm153_vm0, %v4625_v6, 0  ;;  %v4624_v19 = vsub.f32 %v4620_v0, %v21474_v14  ;;  %18897 = vmatmul.mubr.f32.vlgmr.msra.gmra.mxu1 %v21918_v36 }
 0x53a   :  { %v21930_v13 = vand.u32 4294901760, %v5902_v1  ;;  %18917 = vmatpush3.msra.mxu1 %v21865_v63  ;;  %v5975_v24 = vand.u32 4294901760, %v5974_v20  ;;  %v5986_v16 = vsub.f32 %v5984_v7, %v5985_v29 }
 0x53b   :  { %v5899_v45 = vsel %vm153_vm0, %v4624_v19, 0  ;;  %18918 = vmatprep.subr.mxu1 %v21870_v30 }
 0x53c   :  { %v6004_v31 = vsub.f32 %v5902_v1, %v21930_v13  ;;  %v5993_v49 = vand.u32 4294901760, %v5899_v45  ;;  %18919 = vmatpush3.msra.mxu1 %v21870_v30  ;;  %v5976_v46 = vsub.f32 %v5974_v20, %v5975_v24  ;;  %v5987_v33 = vand.u32 4294901760, %v5986_v16 }
 0x53d   :  { %18920 = vmatprep.subr.mxu1 %v21873_v47 }
 0x53e   :  { %v5994_v14 = vsub.f32 %v5899_v45, %v5993_v49  ;;  %18899 = vmatprep.mubr.f32.mxu1 %v5993_v49  ;;  %18921 = vmatpush3.msra.mxu1 %v21873_v47  ;;  %v5977_v25 = vand.u32 4294901760, %v5976_v46  ;;  %v6005_v40 = vand.u32 4294901760, %v6004_v31 }
 0x53f   :  { %18900 = vmatmul.mubr.f32.gmra.mxu1 %v21930_v13  ;;  %18922 = vmatprep.subr.mxu1 %v21875_v52 }
 0x540   :  { %18924 = vmatprep.mubr.f32.mxu1 %v5975_v24  ;;  %18882 = vmatprep.mubr.f32.mxu0 %v5977_v25  ;;  %v5995_v53 = vand.u32 4294901760, %v5994_v14  ;;  %v6006_v5 = vsub.f32 %v6004_v31, %v6005_v40 }
 0x541   :  { %18923 = vmatpush3.msra.mxu1 %v21875_v52  ;;  %18883 = vmatmul.mubr.f32.vlgmr.msra.gmra.mxu0 %v5987_v33 }
 0x542   :  { %18944 = vmatprep.subr.mxu1 %v21865_v63  ;;  %18903 = vmatpush3.msra.mxu0 %v21868_v57  ;;  %v5996_v38 = vsub.f32 %v5994_v14, %v5995_v53  ;;  %v6007_v39 = vand.u32 4294901760, %v6006_v5 }
 0x543   :  { %18925 = vmatmul.mubr.f32.vlgmr.msra.gmra.mxu1 %v5985_v29  ;;  %18904 = vmatprep.subr.mxu0 %v21882_v23 }
 0x544   :  { %18927 = vmatprep.mubr.f32.mxu1 %v5995_v53  ;;  %18945 = vmatpush3.msra.mxu1 %v21865_v63  ;;  %v5997_v35 = vand.u32 4294901760, %v5996_v38  ;;  %v18730_v63 = vpop.f32.mrf.mxu1 }
 0x545   :  { %18946 = vmatprep.subr.mxu1 %v21870_v30  ;;  %18905 = vmatpush3.msra.mxu0 %v21882_v23 }
 0x546   :  { %18885 = vmatprep.mubr.f32.mxu0 %v5997_v35  ;;  %18947 = vmatpush3.msra.mxu1 %v21870_v30  ;;  %v4843_v57 = vpop.f32.mrf.mxu1  ;;  %v18716_v30 = vpop.f32.mrf.mxu0 }
 0x547   :  { %18886 = vmatmul.mubr.f32.gmra.mxu0 %v6007_v39  ;;  %18906 = vmatprep.subr.mxu0 %v21886_v59  ;;  %v4850_v35 = vadd.f32 %v18730_v63, %v18716_v30 }
 0x548   :  { %18928 = vmatmul.mubr.f32.gmra.mxu1 %v6005_v40  ;;  %18948 = vmatprep.subr.mxu1 %v21873_v47 }
 0x549   :  { %18907 = vmatpush3.msra.mxu0 %v21886_v59  ;;  %18910 = vmatprep.mubr.f32.mxu0 %v5974_v20 }
 0x54a   :  { %18949 = vmatpush3.msra.mxu1 %v21873_v47  ;;  %18952 = vmatprep.mubr.f32.mxu1 %v21922_v41  ;;  %v18733_v47 = vpop.f32.mrf.mxu1 }
 0x54b   :  { %18908 = vmatprep.subr.mxu0 %v21889_v22  ;;  %18950 = vmatprep.subr.mxu1 %v21875_v52 }
 0x54c   :  { %18909 = vmatpush3.msra.mxu0 %v21889_v22  ;;  %18951 = vmatpush3.msra.mxu1 %v21875_v52  ;;  %v4722_v52 = vpop.f32.mrf.mxu0 }
 0x54d   :  { %18911 = vmatmul.mubr.f32.vlgmr.msra.gmra.mxu0 %v5984_v7  ;;  %18930 = vmatprep.subr.mxu0 %v21879_v26 }
 0x54e   :  { %18953 = vmatmul.mubr.f32.vlgmr.msra.gmra.mxu1 %v21918_v36  ;;  %18913 = vmatprep.mubr.f32.mxu0 %v5994_v14  ;;  %v18719_v23 = vpop.f32.mrf.mxu0 }
 0x54f   :  { %18931 = vmatpush3.msra.mxu0 %v21879_v26  ;;  %18955 = vmatprep.mubr.f32.mxu1 %v5993_v49  ;;  %v4855_v26 = vpop.f32.mrf.mxu1  ;;  %v4862_v48 = vadd.f32 %v18733_v47, %v18719_v23 }
 0x550   :  { %18932 = vmatprep.subr.mxu0 %v21895_v34  ;;  %v4742_v22 = vpop.f32.mrf.mxu0 }
 0x551   :  { %18933 = vmatpush3.msra.mxu0 %v21895_v34  ;;  %v18758_v59 = vpop.f32.mrf.mxu1  ;;  %v4856_v32 = vadd.f32 %v4855_v26, %v4742_v22 }
 0x552   :  { %18914 = vmatmul.mubr.f32.gmra.mxu0 %v6004_v31  ;;  %18934 = vmatprep.subr.mxu0 %v21899_v56 }
 0x553   :  { %18956 = vmatmul.mubr.f32.gmra.mxu1 %v21930_v13  ;;  %18935 = vmatpush3.msra.mxu0 %v21899_v56  ;;  %v5039_v34 = vpop.f32.mrf.mxu1  ;;  %v18744_v56 = vpop.f32.mrf.mxu0 }
 0x554   :  { %18938 = vmatprep.mubr.f32.mxu0 %v21922_v41  ;;  %18936 = vmatprep.subr.mxu0 %v21902_v37  ;;  %v4949_v8 = vadd.f32 %v18744_v56, %v4850_v35 }
 0x555   :  { %18937 = vmatpush3.msra.mxu0 %v21902_v37  ;;  %18980 = vmatprep.mubr.f32.mxu1 %v24302_v15  ;;  %v18761_v37 = vpop.f32.mrf.mxu1  ;;  %v4941_v58 = vpop.f32.mrf.mxu0  ;;  %v4844_v15 = vadd.f32 %v4843_v57, %v4722_v52 }
 0x556   :  { %18939 = vmatmul.mubr.f32.vlgmr.msra.gmra.mxu0 %v21918_v36  ;;  %v5048_v61 = vadd.f32 %v18758_v59, %v4949_v8 }
 0x557   :  { %18941 = vmatprep.mubr.f32.mxu0 %v5993_v49  ;;  %v5055_v27 = vpop.f32.mrf.mxu1  ;;  %v18747_v51 = vpop.f32.mrf.mxu0  ;;  %v4942_v62 = vadd.f32 %v4941_v58, %v4844_v15 }
 0x558   :  { %v4963_v11 = vadd.f32 %v18747_v51, %v4862_v48 }
 0x559   :  { %v18786_v4 = vpop.f32.mrf.mxu1  ;;  %v4955_v21 = vpop.f32.mrf.mxu0  ;;  %v5040_v9 = vadd.f32 %v5039_v34, %v4942_v62 }
 0x55a   :  { %18942 = vmatmul.mubr.f32.gmra.mxu0 %v21930_v13  ;;  %v4956_v30 = vadd.f32 %v4955_v21, %v4856_v32 }
 0x55b   :  { %18966 = vmatprep.mubr.f32.mxu0 %v24305_v28  ;;  %v5239_v17 = vpop.f32.mrf.mxu1  ;;  %v18772_v54 = vpop.f32.mrf.mxu0 }
 0x55c   :  { %v5153_v63 = vadd.f32 %v18772_v54, %v5048_v61  ;;  %v5056_v23 = vadd.f32 %v5055_v27, %v4956_v30 }
 0x55d   :  { %v18789_v18 = vpop.f32.mrf.mxu1  ;;  %v5146_v36 = vpop.f32.mrf.mxu0 }
 0x55e   :  { %v5147_v47 = vadd.f32 %v5146_v36, %v5040_v9 }
 0x55f   :  { %v5251_v42 = vpop.f32.mrf.mxu1  ;;  %v18775_v2 = vpop.f32.mrf.mxu0 }
 0x560   :  { %v5240_v35 = vadd.f32 %v5239_v17, %v5147_v47 }
 0x561   :  { %v18814_v43 = vpop.f32.mrf.mxu1  ;;  %v5158_v12 = vpop.f32.mrf.mxu0 }
 0x562   :  { %v5159_v15 = vadd.f32 %v5158_v12, %v5056_v23 }
 0x563   :  { %v5469_v7 = vpop.f32.mrf.mxu1  ;;  %v18800_v41 = vpop.f32.mrf.mxu0 }
 0x564   :  { %v5252_v62 = vadd.f32 %v5251_v42, %v5159_v15 }
 0x565   :  { %v18817_v6 = vpop.f32.mrf.mxu1  ;;  %v5348_v0 = vpop.f32.mrf.mxu0 }
 0x566   :  { %v5349_v22 = vadd.f32 %v5348_v0, %v5240_v35 }
 0x567   :  { %v21973_v29 = vpop.f32.mrf.mxu1  ;;  %v18803_v20 = vpop.f32.mrf.mxu0 }
 0x568   :  { %v5470_v34 = vadd.f32 %v5469_v7, %v5349_v22  ;;  %v20368_v22 = vld [vmem:[#allocation3 + $0x10] sm:$0xff] }
 0x569   :  { %v21975_v1 = vpop.f32.mrf.mxu1  ;;  %v5368_v19 = vpop.f32.mrf.mxu0 }
 0x56a   :  { %v5369_v27 = vadd.f32 %v5368_v19, %v5252_v62  ;;  %v20370_v62 = vld [vmem:[#allocation3] sm:$0xff] }
 0x56b   :  { %v21977_v13 = vpop.f32.mrf.mxu1  ;;  %v18828_v24 = vpop.f32.mrf.mxu0 }
 0x56d   :  { %v21979_v16 = vpop.f32.mrf.mxu1  ;;  %v5567_v45 = vpop.f32.mrf.mxu0 }
 0x56f   :  { %v21981_v31 = vpop.f32.mrf.mxu1  ;;  %v18831_v49 = vpop.f32.mrf.mxu0 }
 0x571   :  { %v21983_v46 = vpop.f32.mrf.mxu1  ;;  %v21985_v14 = vpop.f32.mrf.mxu0 }
 0x573   :  { %v21987_v25 = vpop.f32.mrf.mxu1  ;;  %v21989_v40 = vpop.f32.mrf.mxu0 }
 0x574   :  { %24308 = vst [vmem:[#allocation45_spill] sm:$0xff] %v21987_v25  ;;  %v5246_v25 = vadd.f32 %v18786_v4, %v5153_v63 }
 0x575   :  { %v21991_v33 = vpop.f32.mrf.mxu1  ;;  %v21993_v53 = vpop.f32.mrf.mxu0 }
 0x576   :  { %24309 = vst [vmem:[#allocation46_spill] sm:$0xff] %v21991_v33 }
 0x577   :  { %v21995_v5 = vpop.f32.mrf.mxu1  ;;  %v21997_v39 = vpop.f32.mrf.mxu0 }
 0x578   :  { %24310 = vst [vmem:[#allocation47_spill] sm:$0xff] %v21995_v5  ;;  %v5064_v5 = vadd.f32 %v18761_v37, %v4963_v11 }
 0x579   :  { %v21999_v3 = vpop.f32.mrf.mxu0 }
 0x57a   :  { %24311 = vst [vmem:[#allocation48_spill] sm:$0xff] %v21999_v3  ;;  %v5165_v52 = vadd.f32 %v18775_v2, %v5064_v5  ;;  %v5359_v3 = vadd.f32 %v18800_v41, %v5246_v25 }
 0x57c   :  { %v5258_v8 = vadd.f32 %v18789_v18, %v5165_v52  ;;  %v5476_v48 = vadd.f32 %v18814_v43, %v5359_v3  ;;  %v5568_v3 = vadd.f32 %v5567_v45, %v5470_v34  ;;  %v5482_v43 = vadd.f32 %v21973_v29, %v5369_v27  ;;  %v24318_v27 = vld [vmem:[#allocation38_spill] sm:$0xff] }
 0x57d   :  { %v24313_v47 = vld [vmem:[#allocation46_spill] sm:$0xff] }
 0x57e   :  { %v5379_v58 = vadd.f32 %v18803_v20, %v5258_v8  ;;  %v5575_v51 = vadd.f32 %v18828_v24, %v5476_v48  ;;  %v5666_v7 = vadd.f32 %v21977_v13, %v5568_v3  ;;  %v5582_v19 = vadd.f32 %v21985_v14, %v5482_v43  ;;  %v24312_v14 = vld [vmem:[#allocation45_spill] sm:$0xff] }
 0x580   :  { %v5488_v37 = vadd.f32 %v18817_v6, %v5379_v58  ;;  %v5674_v54 = vadd.f32 %v21975_v1, %v5575_v51  ;;  %v20369_v58 = vld [vmem:[#allocation3 + $0x8] sm:$0xff] }
 0x582   :  { %v5589_v2 = vadd.f32 %v18831_v49, %v5488_v37  ;;  %v5779_v0 = vadd.f32 %v21989_v40, %v5674_v54  ;;  %v24317_v37 = vld [vmem:[#allocation41_spill] sm:$0xff] }
 0x584   :  { %v5872_v29 = vadd.f32 %v21983_v46, %v5779_v0 }
 0x5f9   :  { %v18898_v38 = vpop.f32.mrf.mxu1 }
 0x5fb   :  { %v6100_v28 = vpop.f32.mrf.mxu1 }
 0x5ff   :  { %v18901_v55 = vpop.f32.mrf.mxu1 }
 0x601   :  { %v6112_v10 = vpop.f32.mrf.mxu1  ;;  %v18884_v44 = vpop.f32.mrf.mxu0 }
 0x602   :  { %v6107_v61 = vadd.f32 %v18898_v38, %v18884_v44 }
 0x603   :  { %v18926_v50 = vpop.f32.mrf.mxu1  ;;  %v5979_v60 = vpop.f32.mrf.mxu0 }
 0x604   :  { %v6101_v9 = vadd.f32 %v6100_v28, %v5979_v60  ;;  %v5690_v60 = vadd.f32 %v21979_v16, %v5589_v2  ;;  %v5682_v16 = vadd.f32 %v21981_v31, %v5582_v19  ;;  %v24322_v19 = vld [vmem:[#allocation44_spill] sm:$0xff] }
 0x605   :  { %v6296_v33 = vpop.f32.mrf.mxu1 }
 0x606   :  { %v5791_v13 = vadd.f32 %v21997_v39, %v5690_v60  ;;  %v24314_v39 = vld [vmem:[#allocation48_spill] sm:$0xff] }
 0x607   :  { %v18887_v57 = vpop.f32.mrf.mxu0 }
 0x608   :  { %v18929_v59 = vpop.f32.mrf.mxu1  ;;  %v6119_v18 = vadd.f32 %v18901_v55, %v18887_v57  ;;  %v5884_v46 = vadd.f32 %v24313_v47, %v5791_v13 }
 0x609   :  { %v5999_v56 = vpop.f32.mrf.mxu0 }
 0x60a   :  { %v6312_v11 = vpop.f32.mrf.mxu1  ;;  %v6113_v12 = vadd.f32 %v6112_v10, %v5999_v56  ;;  %v5785_v56 = vadd.f32 %v24314_v39, %v5682_v16 }
 0x60d   :  { %v18912_v26 = vpop.f32.mrf.mxu0 }
 0x60e   :  { %v6206_v4 = vadd.f32 %v18912_v26, %v6107_v61  ;;  %v18954_v21 = vpop.f32.mrf.mxu1  ;;  %v20367_v26 = vld [vmem:[#allocation3 + $0x18] sm:$0xff]  ;;  %v24316_v61 = vld [vmem:[#allocation40_spill] sm:$0xff] }
 0x60f   :  { %v6198_v32 = vpop.f32.mrf.mxu0 }
 0x610   :  { %v6199_v36 = vadd.f32 %v6198_v32, %v6101_v9  ;;  %v6305_v41 = vadd.f32 %v18926_v50, %v6206_v4  ;;  %v6496_v28 = vpop.f32.mrf.mxu1  ;;  %v5773_v50 = vadd.f32 %v21993_v53, %v5666_v7 }
 0x612   :  { %v18915_v17 = vpop.f32.mrf.mxu0  ;;  %v6297_v55 = vadd.f32 %v6296_v33, %v6199_v36  ;;  %v5866_v57 = vadd.f32 %v24312_v14, %v5773_v50 }
 0x613   :  { %v6220_v44 = vadd.f32 %v18915_v17, %v6119_v18  ;;  %v18957_v25 = vpop.f32.mrf.mxu1  ;;  %v24319_v17 = vld [vmem:[#allocation37_spill] sm:$0xff] }
 0x614   :  { %v6212_v42 = vpop.f32.mrf.mxu0 }
 0x615   :  { %v6213_v20 = vadd.f32 %v6212_v42, %v6113_v12  ;;  %v6321_v49 = vadd.f32 %v18929_v59, %v6220_v44  ;;  %v6508_v53 = vpop.f32.mrf.mxu1  ;;  %v24315_v59 = vld [vmem:[#allocation47_spill] sm:$0xff] }
 0x616   :  { %v18940_v6 = vpop.f32.mrf.mxu0  ;;  %v5878_v15 = vadd.f32 %v24315_v59, %v5785_v56  ;;  %v24320_v44 = vld [vmem:[#allocation43_spill] sm:$0xff] }
 0x617   :  { %v6410_v1 = vadd.f32 %v18940_v6, %v6305_v41  ;;  %v6313_v63 = vadd.f32 %v6312_v11, %v6213_v20  ;;  %v6569_v41 = vsub.f32 1.0, %v24320_v44  ;;  %v24321_v6 = vld [vmem:[#allocation39_spill] sm:$0xff] }
 0x618   :  { %v6403_v24 = vpop.f32.mrf.mxu0  ;;  %v6567_v0 = vsub.f32 1.0, %v24321_v6 }
 0x619   :  { %v6503_v45 = vadd.f32 %v18954_v21, %v6410_v1  ;;  %v6404_v10 = vadd.f32 %v6403_v24, %v6297_v55  ;;  %v6568_v24 = vsub.f32 1.0, %v24322_v19 }
 0x61a   :  { %v18943_v5 = vpop.f32.mrf.mxu0 }
 0x61b   :  { %v6497_v40 = vadd.f32 %v6496_v28, %v6404_v10  ;;  %v6422_v38 = vadd.f32 %v18943_v5, %v6321_v49  ;;  %v6519_v33 = vadd.f32 %v6503_v45, %v5872_v29 }
 0x61c   :  { %v6415_v30 = vpop.f32.mrf.mxu0 }
 0x61d   :  { %v6515_v52 = vadd.f32 %v18957_v25, %v6422_v38  ;;  %v6416_v23 = vadd.f32 %v6415_v30, %v6313_v63  ;;  %6528 = vrot.lane.b32.xlu1 %v6519_v33, %s20562_s5  ;;  %v6518_v8 = vadd.f32 %v6497_v40, %v5866_v57  ;;  %v24323_v25 = vld [vmem:[#allocation42_spill] sm:$0xff] }
 0x61e   :  { %v6566_v5 = vsub.f32 1.0, %v24323_v25 }
 0x61f   :  { %v6509_v31 = vadd.f32 %v6508_v53, %v6416_v23  ;;  %v6521_v35 = vadd.f32 %v6515_v52, %v5884_v46 }
 0x621   :  { %6532 = vrot.lane.b32.xlu0 %v6521_v35, %s20562_s5  ;;  %6526 = vrot.lane.b32.xlu1 %v6518_v8, %s20562_s5  ;;  %v6520_v48 = vadd.f32 %v6509_v31, %v5878_v15 }
 0x625   :  { %6530 = vrot.lane.b32.xlu0 %v6520_v48, %s20562_s5 }
 0x629   :  { %6556 = vrot.lane.b32.xlu0 %v20367_v26, %s20563_s20 }
 0x62d   :  { %6554 = vrot.lane.b32.xlu0 %v20368_v22, %s20563_s20 }
 0x631   :  { %6552 = vrot.lane.b32.xlu0 %v20369_v58, %s20563_s20 }
 0x635   :  { %6550 = vrot.lane.b32.xlu0 %v20370_v62, %s20563_s20 }
 0x68f   :  { %v6529_v11 = vpop.permute.xlu1 %6528 }
 0x690   :  { %v6539_v32 = vadd.f32 %v6529_v11, %v24316_v61  ;;  %v24324_v61 = vld [vmem:[#allocation34_spill] sm:$0xff] }
 0x692   :  { %20331 = vtanh.f32 %v6539_v32 }
 0x693   :  { %v6533_v34 = vpop.permute.xlu0 %6532  ;;  %v6527_v9 = vpop.permute.xlu1 %6526 }
 0x694   :  { %v6541_v51 = vadd.f32 %v6533_v34, %v24317_v37  ;;  %v6538_v54 = vadd.f32 %v6527_v9, %v24319_v17  ;;  %v24325_v37 = vld [vmem:[#allocation35_spill] sm:$0xff]  ;;  %v24326_v9 = vld [vmem:[#allocation36_spill] sm:$0xff]  ;;  %v24330_v17 = vld [vmem:[#allocation25_spill] sm:$0xff] }
 0x696   :  { %20333 = vtanh.f32 %v6541_v51 }
 0x697   :  { %v6531_v4 = vpop.permute.xlu0 %6530 }
 0x698   :  { %v6540_v21 = vadd.f32 %v6531_v4, %v24318_v27  ;;  %v24327_v4 = vld [vmem:[#allocation22_spill] sm:$0xff]  ;;  %v24328_v27 = vld [vmem:[#allocation23_spill] sm:$0xff] }
 0x69a   :  { %20335 = vtanh.f32 %v6540_v21  ;;  %v24329_v21 = vld [vmem:[#allocation24_spill] sm:$0xff] }
 0x69b   :  { %20337 = vtanh.f32 %v6538_v54  ;;  %v6557_v43 = vpop.permute.xlu0 %6556  ;;  %v24331_v54 = vld [vmem:[#allocation26_spill] sm:$0xff] }
 0x69c   :  { %v6565_v28 = vmul.f32 %v24320_v44, %v6557_v43  ;;  %v24336_v43 = vld [vmem:[#allocation21_spill] sm:$0xff] }
 0x69d   :  { %v24339_v44 = vld [vmem:[#allocation33_spill] sm:$0xff] }
 0x69f   :  { %v20332_v18 = vpop.eup %20331  ;;  %v6555_v42 = vpop.permute.xlu0 %6554 }
 0x6a0   :  { %6576 = vrot.lane.b32.xlu1 %v20332_v18, %s20564_s21  ;;  %v6564_v45 = vmul.f32 %v24322_v19, %v6555_v42  ;;  %v24332_v18 = vld [vmem:[#allocation29_spill] sm:$0xff]  ;;  %v24337_v42 = vld [vmem:[#allocation31_spill] sm:$0xff] }
 0x6a3   :  { %v20334_v36 = vpop.eup %20333  ;;  %v6553_v7 = vpop.permute.xlu0 %6552 }
 0x6a4   :  { %6580 = vrot.lane.b32.xlu1 %v20334_v36, %s20564_s21  ;;  %v6563_v10 = vmul.f32 %v24321_v6, %v6553_v7  ;;  %v24333_v36 = vld [vmem:[#allocation30_spill] sm:$0xff] }
 0x6a7   :  { %v20336_v3 = vpop.eup %20335  ;;  %v6551_v50 = vpop.permute.xlu0 %6550 }
 0x6a8   :  { %6578 = vrot.lane.b32.xlu1 %v20336_v3, %s20564_s21  ;;  %v20338_v2 = vpop.eup %20337  ;;  %v6562_v38 = vmul.f32 %v24323_v25, %v6551_v50  ;;  %v24334_v3 = vld [vmem:[#allocation27_spill] sm:$0xff] }
 0x6ac   :  { %6574 = vrot.lane.b32.xlu1 %v20338_v2, %s20564_s21  ;;  %v24335_v2 = vld [vmem:[#allocation28_spill] sm:$0xff] }
 0x712   :  { %v6577_v12 = vpop.permute.xlu1 %6576 }
 0x713   :  { %v6587_v1 = vmul.f32 %v6577_v12, %v6567_v0  ;;  %v24338_v12 = vld [vmem:[#allocation32_spill] sm:$0xff] }
 0x715   :  { %v6591_v13 = vadd.f32 %v6587_v1, %v6563_v10 }
 0x716   :  { %v6581_v60 = vpop.permute.xlu1 %6580 }
 0x717   :  { %v6589_v20 = vmul.f32 %v6581_v60, %v6569_v41 }
 0x719   :  { %v6593_v55 = vadd.f32 %v6589_v20, %v6565_v28 }
 0x71a   :  { %v6579_v29 = vpop.permute.xlu1 %6578 }
 0x71b   :  { %v6588_v49 = vmul.f32 %v6579_v29, %v6568_v24  ;;  %6604 = vrot.lane.b32.xlu0 %v6593_v55, %s20564_s21 }
 0x71d   :  { %v6592_v16 = vadd.f32 %v6588_v49, %v6564_v45 }
 0x71e   :  { %v6575_v40 = vpop.permute.xlu1 %6574 }
 0x71f   :  { %v6586_v63 = vmul.f32 %v6575_v40, %v6566_v5  ;;  %6602 = vrot.lane.b32.xlu1 %v6592_v16, %s20564_s21  ;;  %6600 = vrot.lane.b32.xlu0 %v6591_v13, %s20564_s21 }
 0x721   :  { %v6590_v33 = vadd.f32 %v6586_v63, %v6562_v38 }
 0x723   :  { %6598 = vrot.lane.b32.xlu1 %v6590_v33, %s20564_s21 }
 0x78d   :  { %v22043_v30 = vpop.permute.xlu0 %6604 }
 0x78e   :  { %6613 = vst.msk [vmem:[#allocation15 + $0x18] sm:$0xff] %vm153_vm0, %v22043_v30  ;;  %v22048_v14 = vand.u32 4294901760, %v22043_v30 }
 0x790   :  { %v6754_v57 = vsub.f32 %v22043_v30, %v22048_v14  ;;  %18958 = vmatprep.subr.mxu0 %v22048_v14 }
 0x791   :  { %v22053_v47 = vpop.permute.xlu1 %6602  ;;  %18959 = vmatpush3.msra.mxu0 %v22048_v14  ;;  %v22056_v46 = vpop.permute.xlu0 %6600 }
 0x792   :  { %6612 = vst.msk [vmem:[#allocation15 + $0x10] sm:$0xff] %vm153_vm0, %v22053_v47  ;;  %v22061_v52 = vand.u32 4294901760, %v22053_v47  ;;  %6611 = vst.msk [vmem:[#allocation15 + $0x8] sm:$0xff] %vm153_vm0, %v22056_v46  ;;  %v22066_v23 = vand.u32 4294901760, %v22056_v46  ;;  %v6755_v53 = vand.u32 4294901760, %v6754_v57 }
 0x794   :  { %v6761_v39 = vsub.f32 %v22053_v47, %v22061_v52  ;;  %v6768_v56 = vsub.f32 %v22056_v46, %v22066_v23  ;;  %18960 = vmatprep.subr.mxu0 %v22061_v52  ;;  %v6756_v35 = vsub.f32 %v6754_v57, %v6755_v53 }
 0x795   :  { %v22073_v31 = vpop.permute.xlu1 %6598  ;;  %18961 = vmatpush3.msra.mxu0 %v22061_v52 }
 0x796   :  { %6610 = vst.msk [vmem:[#allocation15] sm:$0xff] %vm153_vm0, %v22073_v31  ;;  %v22079_v8 = vand.u32 4294901760, %v22073_v31  ;;  %18962 = vmatprep.subr.mxu0 %v22066_v23  ;;  %v6762_v59 = vand.u32 4294901760, %v6761_v39  ;;  %v6769_v15 = vand.u32 4294901760, %v6768_v56  ;;  %v6757_v48 = vand.u32 4294901760, %v6756_v35 }
 0x797   :  { %18963 = vmatpush3.msra.mxu0 %v22066_v23 }
 0x798   :  { %v6775_v26 = vsub.f32 %v22073_v31, %v22079_v8  ;;  %18964 = vmatprep.subr.mxu0 %v22079_v8  ;;  %v6763_v22 = vsub.f32 %v6761_v39, %v6762_v59  ;;  %18972 = vmatprep.subr.mxu1 %v6757_v48  ;;  %v6770_v58 = vsub.f32 %v6768_v56, %v6769_v15 }
 0x799   :  { %18965 = vmatpush3.msra.mxu0 %v22079_v8  ;;  %18973 = vmatpush3.msra.mxu1 %v6757_v48 }
 0x79a   :  { %18986 = vmatprep.subr.mxu0 %v6754_v57  ;;  %v6764_v62 = vand.u32 4294901760, %v6763_v22  ;;  %v6776_v11 = vand.u32 4294901760, %v6775_v26  ;;  %18967 = vmatmul.mubr.f32.vlgmr.msra.gmra.mxu0 %v24324_v61  ;;  %v6771_v34 = vand.u32 4294901760, %v6770_v58 }
 0x79b   :  { %18987 = vmatpush3.msra.mxu0 %v6754_v57  ;;  %18969 = vmatprep.mubr.f32.mxu0 %v24325_v37 }
 0x79c   :  { %18974 = vmatprep.subr.mxu1 %v6764_v62  ;;  %v6777_v32 = vsub.f32 %v6775_v26, %v6776_v11  ;;  %18988 = vmatprep.subr.mxu0 %v6761_v39 }
 0x79d   :  { %18975 = vmatpush3.msra.mxu1 %v6764_v62  ;;  %18989 = vmatpush3.msra.mxu0 %v6761_v39 }
 0x79e   :  { %v6778_v51 = vand.u32 4294901760, %v6777_v32  ;;  %18976 = vmatprep.subr.mxu1 %v6771_v34  ;;  %18990 = vmatprep.subr.mxu0 %v6768_v56 }
 0x79f   :  { %18970 = vmatmul.mubr.f32.gmra.mxu0 %v24326_v9  ;;  %18977 = vmatpush3.msra.mxu1 %v6771_v34 }
 0x7a0   :  { %18991 = vmatpush3.msra.mxu0 %v6768_v56  ;;  %18978 = vmatprep.subr.mxu1 %v6778_v51 }
 0x7a1   :  { %18992 = vmatprep.subr.mxu0 %v6775_v26  ;;  %18979 = vmatpush3.msra.mxu1 %v6778_v51 }
 0x7a2   :  { %18993 = vmatpush3.msra.mxu0 %v6775_v26  ;;  %18981 = vmatmul.mubr.f32.vlgmr.msra.gmra.mxu1 %v24327_v4 }
 0x7a3   :  { %18994 = vmatprep.mubr.f32.mxu0 %v24328_v27  ;;  %19000 = vmatprep.subr.mxu1 %v22048_v14 }
 0x7a4   :  { %19014 = vmatprep.subr.mxu0 %v6755_v53  ;;  %18995 = vmatmul.mubr.f32.vlgmr.msra.gmra.mxu0 %v24329_v21 }
 0x7a5   :  { %19001 = vmatpush3.msra.mxu1 %v22048_v14  ;;  %19015 = vmatpush3.msra.mxu0 %v6755_v53 }
 0x7a6   :  { %19002 = vmatprep.subr.mxu1 %v22061_v52  ;;  %19016 = vmatprep.subr.mxu0 %v6762_v59 }
 0x7a7   :  { %18983 = vmatprep.mubr.f32.mxu1 %v24330_v17  ;;  %19003 = vmatpush3.msra.mxu1 %v22061_v52 }
 0x7a8   :  { %19017 = vmatpush3.msra.mxu0 %v6762_v59  ;;  %18984 = vmatmul.mubr.f32.gmra.mxu1 %v24331_v54 }
 0x7a9   :  { %19004 = vmatprep.subr.mxu1 %v22066_v23  ;;  %19018 = vmatprep.subr.mxu0 %v6769_v15 }
 0x7aa   :  { %18997 = vmatprep.mubr.f32.mxu0 %v24332_v18  ;;  %19005 = vmatpush3.msra.mxu1 %v22066_v23 }
 0x7ab   :  { %19019 = vmatpush3.msra.mxu0 %v6769_v15  ;;  %19006 = vmatprep.subr.mxu1 %v22079_v8 }
 0x7ac   :  { %18998 = vmatmul.mubr.f32.gmra.mxu0 %v24333_v36  ;;  %19020 = vmatprep.subr.mxu0 %v6776_v11 }
 0x7ad   :  { %19007 = vmatpush3.msra.mxu1 %v22079_v8  ;;  %19008 = vmatprep.mubr.f32.mxu1 %v24334_v3 }
 0x7ae   :  { %19021 = vmatpush3.msra.mxu0 %v6776_v11  ;;  %19009 = vmatmul.mubr.f32.vlgmr.msra.gmra.mxu1 %v24335_v2 }
 0x7af   :  { %19028 = vmatprep.subr.mxu1 %v22048_v14  ;;  %19022 = vmatprep.mubr.f32.mxu0 %v24336_v43 }
 0x7b0   :  { %19029 = vmatpush3.msra.mxu1 %v22048_v14  ;;  %19023 = vmatmul.mubr.f32.vlgmr.msra.gmra.mxu0 %v24327_v4 }
 0x7b1   :  { %19030 = vmatprep.subr.mxu1 %v22061_v52  ;;  %19011 = vmatprep.mubr.f32.mxu1 %v24337_v42 }
 0x7b2   :  { %19031 = vmatpush3.msra.mxu1 %v22061_v52  ;;  %19025 = vmatprep.mubr.f32.mxu0 %v24330_v17 }
 0x7b3   :  { %19012 = vmatmul.mubr.f32.gmra.mxu1 %v24338_v12  ;;  %19032 = vmatprep.subr.mxu1 %v22066_v23 }
 0x7b4   :  { %19033 = vmatpush3.msra.mxu1 %v22066_v23  ;;  %19026 = vmatmul.mubr.f32.gmra.mxu0 %v24331_v54 }
 0x7b5   :  { %19034 = vmatprep.subr.mxu1 %v22079_v8  ;;  %19036 = vmatprep.mubr.f32.mxu1 %v24336_v43 }
 0x7b6   :  { %19035 = vmatpush3.msra.mxu1 %v22079_v8  ;;  %19050 = vmatprep.mubr.f32.mxu0 %v24339_v44 }
 0x7b7   :  { %19037 = vmatmul.mubr.f32.vlgmr.msra.gmra.mxu1 %v24327_v4 }
 0x7b8   :  { %19039 = vmatprep.mubr.f32.mxu1 %v24330_v17 }
 0x7bb   :  { %19040 = vmatmul.mubr.f32.gmra.mxu1 %v24331_v54 }
 0x7bc   :  { %19064 = vmatprep.mubr.f32.mxu1 %v24336_v43 }
 0x85a   :  { %v18968_v41 = vpop.f32.mrf.mxu0 }
 0x85c   :  { %v6694_v7 = vpop.f32.mrf.mxu0 }
 0x85f   :  { %v18971_v60 = vpop.f32.mrf.mxu0 }
 0x861   :  { %v6714_v28 = vpop.f32.mrf.mxu0 }
 0x862   :  { %v18982_v6 = vpop.f32.mrf.mxu1 }
 0x863   :  { %v6822_v24 = vadd.f32 %v18982_v6, %v18968_v41 }
 0x864   :  { %v6815_v0 = vpop.f32.mrf.mxu1  ;;  %v18996_v20 = vpop.f32.mrf.mxu0 }
 0x865   :  { %v6816_v45 = vadd.f32 %v6815_v0, %v6694_v7  ;;  %v6921_v50 = vadd.f32 %v18996_v20, %v6822_v24 }
 0x866   :  { %v6913_v55 = vpop.f32.mrf.mxu0 }
 0x867   :  { %v6914_v5 = vadd.f32 %v6913_v55, %v6816_v45 }
 0x868   :  { %v18985_v1 = vpop.f32.mrf.mxu1 }
 0x869   :  { %v6834_v13 = vadd.f32 %v18985_v1, %v18971_v60 }
 0x86a   :  { %v6827_v19 = vpop.f32.mrf.mxu1 }
 0x86b   :  { %v6828_v40 = vadd.f32 %v6827_v19, %v6714_v28 }
 0x86c   :  { %v18999_v29 = vpop.f32.mrf.mxu0 }
 0x86d   :  { %v6935_v14 = vadd.f32 %v18999_v29, %v6834_v13 }
 0x86e   :  { %v6927_v10 = vpop.f32.mrf.mxu0  ;;  %v19010_v49 = vpop.f32.mrf.mxu1 }
 0x86f   :  { %v7020_v38 = vadd.f32 %v19010_v49, %v6921_v50  ;;  %v6928_v53 = vadd.f32 %v6927_v10, %v6828_v40  ;;  %v6618_v40 = vld [vmem:[#allocation3 + $0x38] sm:$0xff] }
 0x870   :  { %v7011_v16 = vpop.f32.mrf.mxu1  ;;  %v19024_v25 = vpop.f32.mrf.mxu0 }
 0x871   :  { %v7012_v57 = vadd.f32 %v7011_v16, %v6914_v5  ;;  %v7125_v39 = vadd.f32 %v19024_v25, %v7020_v38  ;;  %v22172_v38 = vand.u32 4294901760, %v6618_v40 }
 0x872   :  { %v7118_v63 = vpop.f32.mrf.mxu0 }
 0x873   :  { %v19013_v33 = vpop.f32.mrf.mxu1  ;;  %v7119_v8 = vadd.f32 %v7118_v63, %v7012_v57  ;;  %v6617_v63 = vld [vmem:[#allocation3 + $0x30] sm:$0xff]  ;;  %v7990_v57 = vsub.f32 %v6618_v40, %v22172_v38 }
 0x874   :  { %v19027_v23 = vpop.f32.mrf.mxu0  ;;  %v7036_v56 = vadd.f32 %v19013_v33, %v6935_v14  ;;  %v22178_v33 = vand.u32 4294901760, %v6617_v63  ;;  %v6616_v14 = vld [vmem:[#allocation3 + $0x28] sm:$0xff] }
 0x875   :  { %v7027_v52 = vpop.f32.mrf.mxu1 }
 0x876   :  { %v7028_v59 = vadd.f32 %v7027_v52, %v6928_v53  ;;  %v7130_v48 = vpop.f32.mrf.mxu0  ;;  %v7137_v22 = vadd.f32 %v19027_v23, %v7036_v56  ;;  %v6615_v52 = vld [vmem:[#allocation3 + $0x20] sm:$0xff]  ;;  %v22185_v23 = vand.u32 4294901760, %v6616_v14  ;;  %v7997_v53 = vsub.f32 %v6617_v63, %v22178_v33 }
 0x877   :  { %v19038_v35 = vpop.f32.mrf.mxu1  ;;  %v22193_v56 = vand.u32 4294901760, %v7990_v57 }
 0x878   :  { %v22127_v15 = vadd.f32 %v19038_v35, %v7125_v39  ;;  %v7131_v32 = vadd.f32 %v7130_v48, %v7028_v59  ;;  %v22191_v39 = vand.u32 4294901760, %v6615_v52  ;;  %v8004_v35 = vsub.f32 %v6616_v14, %v22185_v23 }
 0x879   :  { %v7211_v26 = vpop.f32.mrf.mxu1  ;;  %v7992_v59 = vsub.f32 %v7990_v57, %v22193_v56 }
 0x87a   :  { %v22129_v58 = vadd.f32 %v7211_v26, %v7119_v8  ;;  %v22132_v62 = vand.u32 4294901760, %v22127_v15  ;;  %v22202_v8 = vand.u32 4294901760, %v7997_v53  ;;  %v8011_v48 = vsub.f32 %v6615_v52, %v22191_v39 }
 0x87b   :  { %v19041_v11 = vpop.f32.mrf.mxu1  ;;  %v22212_v26 = vand.u32 4294901760, %v8004_v35 }
 0x87c   :  { %v22134_v34 = vadd.f32 %v19041_v11, %v7137_v22  ;;  %v22137_v51 = vand.u32 4294901760, %v22129_v58  ;;  %v7382_v28 = vsub.f32 %v22127_v15, %v22132_v62  ;;  %v7999_v22 = vsub.f32 %v7997_v53, %v22202_v8 }
 0x87d   :  { %v7223_v41 = vpop.f32.mrf.mxu1  ;;  %v7993_v11 = vand.u32 4294901760, %v7992_v59 }
 0x87e   :  { %v22140_v7 = vand.u32 4294901760, %v22134_v34  ;;  %v22142_v60 = vadd.f32 %v7223_v41, %v7131_v32  ;;  %v7389_v20 = vsub.f32 %v22129_v58, %v22137_v51  ;;  %v7383_v19 = vand.u32 4294901760, %v7382_v28 }
 0x87f   :  { %v8012_v32 = vand.u32 4294901760, %v8011_v48  ;;  %v8006_v41 = vsub.f32 %v8004_v35, %v22212_v26 }
 0x880   :  { %v7368_v6 = vsub.f32 %v22134_v34, %v22140_v7  ;;  %v22149_v0 = vand.u32 4294901760, %v22142_v60  ;;  %19042 = vmatprep.subr.mxu0 %v22140_v7  ;;  %v7390_v45 = vand.u32 4294901760, %v7389_v20  ;;  %v7384_v50 = vsub.f32 %v7382_v28, %v7383_v19 }
 0x881   :  { %19043 = vmatpush3.msra.mxu0 %v22140_v7 }
 0x882   :  { %v7375_v1 = vsub.f32 %v22142_v60, %v22149_v0  ;;  %19044 = vmatprep.subr.mxu0 %v22149_v0  ;;  %v7369_v55 = vand.u32 4294901760, %v7368_v6  ;;  %v7391_v16 = vsub.f32 %v7389_v20, %v7390_v45  ;;  %v7385_v25 = vand.u32 4294901760, %v7384_v50 }
 0x883   :  { %19045 = vmatpush3.msra.mxu0 %v22149_v0 }
 0x884   :  { %19046 = vmatprep.subr.mxu0 %v22132_v62  ;;  %v7370_v24 = vsub.f32 %v7368_v6, %v7369_v55  ;;  %v7376_v29 = vand.u32 4294901760, %v7375_v1  ;;  %v7392_v5 = vand.u32 4294901760, %v7391_v16 }
 0x885   :  { %19047 = vmatpush3.msra.mxu0 %v22132_v62 }
 0x886   :  { %19048 = vmatprep.subr.mxu0 %v22137_v51  ;;  %v7371_v10 = vand.u32 4294901760, %v7370_v24  ;;  %v7377_v49 = vsub.f32 %v7375_v1, %v7376_v29 }
 0x887   :  { %19049 = vmatpush3.msra.mxu0 %v22137_v51 }
 0x888   :  { %19056 = vmatprep.subr.mxu1 %v7371_v10  ;;  %19070 = vmatprep.subr.mxu0 %v7368_v6  ;;  %v7378_v13 = vand.u32 4294901760, %v7377_v49 }
 0x889   :  { %19051 = vmatmul.mubr.f32.vlgmr.msra.gmra.mxu0 %v24324_v61  ;;  %19057 = vmatpush3.msra.mxu1 %v7371_v10 }
 0x88a   :  { %19071 = vmatpush3.msra.mxu0 %v7368_v6  ;;  %19058 = vmatprep.subr.mxu1 %v7378_v13 }
 0x88b   :  { %19072 = vmatprep.subr.mxu0 %v7375_v1  ;;  %19059 = vmatpush3.msra.mxu1 %v7378_v13 }
 0x88c   :  { %19073 = vmatpush3.msra.mxu0 %v7375_v1  ;;  %19053 = vmatprep.mubr.f32.mxu0 %v24325_v37 }
 0x88d   :  { %19060 = vmatprep.subr.mxu1 %v7385_v25  ;;  %19074 = vmatprep.subr.mxu0 %v7382_v28 }
 0x88e   :  { %19054 = vmatmul.mubr.f32.gmra.mxu0 %v24326_v9  ;;  %19061 = vmatpush3.msra.mxu1 %v7385_v25 }
 0x88f   :  { %19075 = vmatpush3.msra.mxu0 %v7382_v28  ;;  %19062 = vmatprep.subr.mxu1 %v7392_v5 }
 0x890   :  { %19076 = vmatprep.subr.mxu0 %v7389_v20  ;;  %19063 = vmatpush3.msra.mxu1 %v7392_v5 }
 0x891   :  { %19077 = vmatpush3.msra.mxu0 %v7389_v20  ;;  %19065 = vmatmul.mubr.f32.vlgmr.msra.gmra.mxu1 %v24327_v4 }
 0x892   :  { %19078 = vmatprep.mubr.f32.mxu0 %v24328_v27  ;;  %19084 = vmatprep.subr.mxu1 %v22140_v7 }
 0x893   :  { %19098 = vmatprep.subr.mxu0 %v7369_v55  ;;  %19079 = vmatmul.mubr.f32.vlgmr.msra.gmra.mxu0 %v24329_v21 }
 0x894   :  { %19085 = vmatpush3.msra.mxu1 %v22140_v7  ;;  %19099 = vmatpush3.msra.mxu0 %v7369_v55 }
 0x895   :  { %19086 = vmatprep.subr.mxu1 %v22149_v0  ;;  %19100 = vmatprep.subr.mxu0 %v7376_v29 }
 0x896   :  { %19067 = vmatprep.mubr.f32.mxu1 %v24330_v17  ;;  %19087 = vmatpush3.msra.mxu1 %v22149_v0 }
 0x897   :  { %19101 = vmatpush3.msra.mxu0 %v7376_v29  ;;  %19068 = vmatmul.mubr.f32.gmra.mxu1 %v24331_v54 }
 0x898   :  { %19088 = vmatprep.subr.mxu1 %v22132_v62  ;;  %19102 = vmatprep.subr.mxu0 %v7383_v19 }
 0x899   :  { %19081 = vmatprep.mubr.f32.mxu0 %v24332_v18  ;;  %19089 = vmatpush3.msra.mxu1 %v22132_v62 }
 0x89a   :  { %19103 = vmatpush3.msra.mxu0 %v7383_v19  ;;  %19090 = vmatprep.subr.mxu1 %v22137_v51 }
 0x89b   :  { %19082 = vmatmul.mubr.f32.gmra.mxu0 %v24333_v36  ;;  %19104 = vmatprep.subr.mxu0 %v7390_v45 }
 0x89c   :  { %19091 = vmatpush3.msra.mxu1 %v22137_v51  ;;  %19092 = vmatprep.mubr.f32.mxu1 %v24334_v3 }
 0x89d   :  { %19105 = vmatpush3.msra.mxu0 %v7390_v45  ;;  %19093 = vmatmul.mubr.f32.vlgmr.msra.gmra.mxu1 %v24335_v2 }
 0x89e   :  { %19112 = vmatprep.subr.mxu1 %v22140_v7  ;;  %19106 = vmatprep.mubr.f32.mxu0 %v24336_v43 }
 0x89f   :  { %19113 = vmatpush3.msra.mxu1 %v22140_v7  ;;  %19107 = vmatmul.mubr.f32.vlgmr.msra.gmra.mxu0 %v24327_v4  ;;  %v8013_v7 = vsub.f32 %v8011_v48, %v8012_v32 }
 0x8a0   :  { %19114 = vmatprep.subr.mxu1 %v22149_v0  ;;  %19126 = vmatprep.subr.mxu0 %v22172_v38 }
 0x8a1   :  { %19095 = vmatprep.mubr.f32.mxu1 %v24337_v42  ;;  %19115 = vmatpush3.msra.mxu1 %v22149_v0  ;;  %v8014_v28 = vand.u32 4294901760, %v8013_v7 }
 0x8a2   :  { %19127 = vmatpush3.msra.mxu0 %v22172_v38  ;;  %19096 = vmatmul.mubr.f32.gmra.mxu1 %v24338_v12 }
 0x8a3   :  { %19116 = vmatprep.subr.mxu1 %v22132_v62  ;;  %19128 = vmatprep.subr.mxu0 %v22178_v33 }
 0x8a4   :  { %19109 = vmatprep.mubr.f32.mxu0 %v24330_v17  ;;  %19117 = vmatpush3.msra.mxu1 %v22132_v62  ;;  %v8000_v62 = vand.u32 4294901760, %v7999_v22 }
 0x8a5   :  { %19129 = vmatpush3.msra.mxu0 %v22178_v33  ;;  %19118 = vmatprep.subr.mxu1 %v22137_v51 }
 0x8a6   :  { %19110 = vmatmul.mubr.f32.gmra.mxu0 %v24331_v54  ;;  %19130 = vmatprep.subr.mxu0 %v22185_v23 }
 0x8a7   :  { %19119 = vmatpush3.msra.mxu1 %v22137_v51  ;;  %19120 = vmatprep.mubr.f32.mxu1 %v24336_v43  ;;  %v8007_v51 = vand.u32 4294901760, %v8006_v41 }
 0x8a8   :  { %19131 = vmatpush3.msra.mxu0 %v22185_v23  ;;  %19121 = vmatmul.mubr.f32.vlgmr.msra.gmra.mxu1 %v24327_v4 }
 0x8a9   :  { %19132 = vmatprep.subr.mxu0 %v22191_v39  ;;  %19140 = vmatprep.subr.mxu1 %v7993_v11 }
 0x8aa   :  { %19133 = vmatpush3.msra.mxu0 %v22191_v39  ;;  %19134 = vmatprep.mubr.f32.mxu0 %v24339_v44 }
 0x8ab   :  { %19141 = vmatpush3.msra.mxu1 %v7993_v11  ;;  %19135 = vmatmul.mubr.f32.vlgmr.msra.gmra.mxu0 %v24324_v61 }
 0x8ac   :  { %19142 = vmatprep.subr.mxu1 %v8000_v62  ;;  %19154 = vmatprep.subr.mxu0 %v7990_v57 }
 0x8ad   :  { %19123 = vmatprep.mubr.f32.mxu1 %v24330_v17  ;;  %19143 = vmatpush3.msra.mxu1 %v8000_v62 }
 0x8ae   :  { %19155 = vmatpush3.msra.mxu0 %v7990_v57  ;;  %19124 = vmatmul.mubr.f32.gmra.mxu1 %v24331_v54 }
 0x8af   :  { %19144 = vmatprep.subr.mxu1 %v8007_v51  ;;  %19156 = vmatprep.subr.mxu0 %v7997_v53 }
 0x8b0   :  { %19137 = vmatprep.mubr.f32.mxu0 %v24325_v37  ;;  %19145 = vmatpush3.msra.mxu1 %v8007_v51 }
 0x8b1   :  { %19157 = vmatpush3.msra.mxu0 %v7997_v53  ;;  %19146 = vmatprep.subr.mxu1 %v8014_v28 }
 0x8b2   :  { %19138 = vmatmul.mubr.f32.gmra.mxu0 %v24326_v9  ;;  %19158 = vmatprep.subr.mxu0 %v8004_v35 }
 0x8b3   :  { %19147 = vmatpush3.msra.mxu1 %v8014_v28  ;;  %19148 = vmatprep.mubr.f32.mxu1 %v24336_v43 }
 0x8b4   :  { %19159 = vmatpush3.msra.mxu0 %v8004_v35  ;;  %19149 = vmatmul.mubr.f32.vlgmr.msra.gmra.mxu1 %v24327_v4 }
 0x8b5   :  { %19160 = vmatprep.subr.mxu0 %v8011_v48  ;;  %19168 = vmatprep.subr.mxu1 %v22172_v38 }
 0x8b6   :  { %19161 = vmatpush3.msra.mxu0 %v8011_v48  ;;  %19162 = vmatprep.mubr.f32.mxu0 %v24328_v27 }
 0x8b7   :  { %19169 = vmatpush3.msra.mxu1 %v22172_v38  ;;  %19163 = vmatmul.mubr.f32.vlgmr.msra.gmra.mxu0 %v24329_v21 }
 0x8b8   :  { %19170 = vmatprep.subr.mxu1 %v22178_v33  ;;  %19182 = vmatprep.subr.mxu0 %v22193_v56 }
 0x8b9   :  { %19151 = vmatprep.mubr.f32.mxu1 %v24330_v17  ;;  %19171 = vmatpush3.msra.mxu1 %v22178_v33 }
 0x8ba   :  { %19183 = vmatpush3.msra.mxu0 %v22193_v56  ;;  %19152 = vmatmul.mubr.f32.gmra.mxu1 %v24331_v54 }
 0x8bb   :  { %19172 = vmatprep.subr.mxu1 %v22185_v23  ;;  %19184 = vmatprep.subr.mxu0 %v22202_v8 }
 0x8bc   :  { %19165 = vmatprep.mubr.f32.mxu0 %v24332_v18  ;;  %19173 = vmatpush3.msra.mxu1 %v22185_v23 }
 0x8bd   :  { %19185 = vmatpush3.msra.mxu0 %v22202_v8  ;;  %19174 = vmatprep.subr.mxu1 %v22191_v39 }
 0x8be   :  { %19166 = vmatmul.mubr.f32.gmra.mxu0 %v24333_v36  ;;  %19186 = vmatprep.subr.mxu0 %v22212_v26 }
 0x8bf   :  { %19175 = vmatpush3.msra.mxu1 %v22191_v39  ;;  %19176 = vmatprep.mubr.f32.mxu1 %v24334_v3 }
 0x8c0   :  { %19187 = vmatpush3.msra.mxu0 %v22212_v26  ;;  %19177 = vmatmul.mubr.f32.vlgmr.msra.gmra.mxu1 %v24335_v2 }
 0x8c1   :  { %19188 = vmatprep.subr.mxu0 %v8012_v32  ;;  %19196 = vmatprep.subr.mxu1 %v22172_v38 }
 0x8c2   :  { %19189 = vmatpush3.msra.mxu0 %v8012_v32  ;;  %19190 = vmatprep.mubr.f32.mxu0 %v24336_v43 }
 0x8c3   :  { %19197 = vmatpush3.msra.mxu1 %v22172_v38  ;;  %19191 = vmatmul.mubr.f32.vlgmr.msra.gmra.mxu0 %v24327_v4 }
 0x8c4   :  { %19198 = vmatprep.subr.mxu1 %v22178_v33  ;;  %19179 = vmatprep.mubr.f32.mxu1 %v24337_v42 }
 0x8c5   :  { %19199 = vmatpush3.msra.mxu1 %v22178_v33  ;;  %19193 = vmatprep.mubr.f32.mxu0 %v24330_v17 }
 0x8c6   :  { %19180 = vmatmul.mubr.f32.gmra.mxu1 %v24338_v12  ;;  %19200 = vmatprep.subr.mxu1 %v22185_v23 }
 0x8c7   :  { %19201 = vmatpush3.msra.mxu1 %v22185_v23  ;;  %19194 = vmatmul.mubr.f32.gmra.mxu0 %v24331_v54 }
 0x8c8   :  { %19202 = vmatprep.subr.mxu1 %v22191_v39  ;;  %19204 = vmatprep.mubr.f32.mxu1 %v24336_v43 }
 0x8c9   :  { %19203 = vmatpush3.msra.mxu1 %v22191_v39  ;;  %19218 = vmatprep.mubr.f32.mxu0 %v24339_v44 }
 0x8ca   :  { %19205 = vmatmul.mubr.f32.vlgmr.msra.gmra.mxu1 %v24327_v4 }
 0x8cb   :  { %19207 = vmatprep.mubr.f32.mxu1 %v24330_v17 }
 0x8ce   :  { %19208 = vmatmul.mubr.f32.gmra.mxu1 %v24331_v54 }
 0x8cf   :  { %19232 = vmatprep.mubr.f32.mxu1 %v24336_v43 }
 0x949   :  { %v19052_v6 = vpop.f32.mrf.mxu0 }
 0x94b   :  { %v22278_v0 = vpop.f32.mrf.mxu0 }
 0x94e   :  { %v19055_v20 = vpop.f32.mrf.mxu0 }
 0x950   :  { %v22280_v1 = vpop.f32.mrf.mxu0 }
 0x951   :  { %v19066_v55 = vpop.f32.mrf.mxu1 }
 0x952   :  { %v7436_v19 = vadd.f32 %v19066_v55, %v19052_v6 }
 0x953   :  { %v22282_v24 = vpop.f32.mrf.mxu1  ;;  %v19080_v29 = vpop.f32.mrf.mxu0 }
 0x954   :  { %v7535_v45 = vadd.f32 %v19080_v29, %v7436_v19 }
 0x955   :  { %v22284_v49 = vpop.f32.mrf.mxu0 }
 0x957   :  { %v19069_v10 = vpop.f32.mrf.mxu1 }
 0x958   :  { %v7448_v50 = vadd.f32 %v19069_v10, %v19055_v20 }
 0x959   :  { %v22286_v13 = vpop.f32.mrf.mxu1 }
 0x95b   :  { %v19083_v16 = vpop.f32.mrf.mxu0 }
 0x95c   :  { %v7549_v25 = vadd.f32 %v19083_v16, %v7448_v50 }
 0x95d   :  { %v22288_v5 = vpop.f32.mrf.mxu0  ;;  %v19094_v40 = vpop.f32.mrf.mxu1 }
 0x95e   :  { %v7634_v38 = vadd.f32 %v19094_v40, %v7535_v45 }
 0x95f   :  { %v22290_v63 = vpop.f32.mrf.mxu1  ;;  %v19108_v33 = vpop.f32.mrf.mxu0 }
 0x960   :  { %v7739_v14 = vadd.f32 %v19108_v33, %v7634_v38 }
 0x961   :  { %v22292_v52 = vpop.f32.mrf.mxu0 }
 0x962   :  { %v19097_v57 = vpop.f32.mrf.mxu1 }
 0x963   :  { %v7650_v23 = vadd.f32 %v19097_v57, %v7549_v25 }
 0x964   :  { %v22294_v53 = vpop.f32.mrf.mxu1 }
 0x966   :  { %v19111_v39 = vpop.f32.mrf.mxu0 }
 0x967   :  { %v7751_v56 = vadd.f32 %v19111_v39, %v7650_v23 }
 0x968   :  { %v22296_v35 = vpop.f32.mrf.mxu0  ;;  %v19122_v8 = vpop.f32.mrf.mxu1 }
 0x969   :  { %24340 = vst [vmem:[#allocation45_spill] sm:$0xff] %v22296_v35  ;;  %v22298_v59 = vadd.f32 %v19122_v8, %v7739_v14 }
 0x96a   :  { %v22300_v48 = vpop.f32.mrf.mxu1 }
 0x96b   :  { %24341 = vst [vmem:[#allocation46_spill] sm:$0xff] %v22298_v59  ;;  %24342 = vst [vmem:[#allocation48_spill] sm:$0xff] %v22300_v48  ;;  %v19136_v26 = vpop.f32.mrf.mxu0 }
 0x96d   :  { %v7930_v11 = vpop.f32.mrf.mxu0 }
 0x96e   :  { %v19125_v22 = vpop.f32.mrf.mxu1 }
 0x96f   :  { %v22302_v32 = vadd.f32 %v19125_v22, %v7751_v56 }
 0x970   :  { %v22304_v41 = vpop.f32.mrf.mxu1 }
 0x971   :  { %24343 = vst [vmem:[#allocation47_spill] sm:$0xff] %v22302_v32  ;;  %24344 = vst [vmem:[#allocation40_spill] sm:$0xff] %v22304_v41 }
 0x972   :  { %v19139_v62 = vpop.f32.mrf.mxu0 }
 0x974   :  { %v7950_v7 = vpop.f32.mrf.mxu0  ;;  %v19150_v51 = vpop.f32.mrf.mxu1 }
 0x975   :  { %v8058_v45 = vadd.f32 %v19150_v51, %v19136_v26 }
 0x976   :  { %v8051_v28 = vpop.f32.mrf.mxu1 }
 0x977   :  { %v19164_v6 = vpop.f32.mrf.mxu0  ;;  %v8052_v16 = vadd.f32 %v8051_v28, %v7930_v11 }
 0x978   :  { %v8157_v40 = vadd.f32 %v19164_v6, %v8058_v45 }
 0x979   :  { %v8149_v55 = vpop.f32.mrf.mxu0 }
 0x97a   :  { %v19153_v20 = vpop.f32.mrf.mxu1  ;;  %v8150_v14 = vadd.f32 %v8149_v55, %v8052_v16 }
 0x97b   :  { %v8070_v38 = vadd.f32 %v19153_v20, %v19139_v62 }
 0x97c   :  { %v8063_v19 = vpop.f32.mrf.mxu1 }
 0x97d   :  { %v8064_v57 = vadd.f32 %v8063_v19, %v7950_v7 }
 0x97e   :  { %v19167_v29 = vpop.f32.mrf.mxu0 }
 0x97f   :  { %v8171_v8 = vadd.f32 %v19167_v29, %v8070_v38 }
 0x980   :  { %v8163_v10 = vpop.f32.mrf.mxu0  ;;  %v19178_v50 = vpop.f32.mrf.mxu1 }
 0x981   :  { %v8256_v23 = vadd.f32 %v19178_v50, %v8157_v40  ;;  %v8164_v59 = vadd.f32 %v8163_v10, %v8064_v57 }
 0x982   :  { %v8247_v25 = vpop.f32.mrf.mxu1 }
 0x983   :  { %v19192_v33 = vpop.f32.mrf.mxu0  ;;  %v8248_v22 = vadd.f32 %v8247_v25, %v8150_v14 }
 0x984   :  { %v8361_v41 = vadd.f32 %v19192_v33, %v8256_v23 }
 0x985   :  { %v8354_v39 = vpop.f32.mrf.mxu0 }
 0x986   :  { %v19181_v56 = vpop.f32.mrf.mxu1  ;;  %v8355_v51 = vadd.f32 %v8354_v39, %v8248_v22 }
 0x987   :  { %v19195_v32 = vpop.f32.mrf.mxu0  ;;  %v8272_v35 = vadd.f32 %v19181_v56, %v8171_v8 }
 0x988   :  { %v8263_v44 = vpop.f32.mrf.mxu1 }
 0x989   :  { %v8264_v48 = vadd.f32 %v8263_v44, %v8164_v59  ;;  %v8366_v28 = vpop.f32.mrf.mxu0  ;;  %v8373_v6 = vadd.f32 %v19195_v32, %v8272_v35 }
 0x98a   :  { %v19206_v26 = vpop.f32.mrf.mxu1 }
 0x98b   :  { %v22306_v11 = vadd.f32 %v19206_v26, %v8361_v41  ;;  %v8367_v19 = vadd.f32 %v8366_v28, %v8264_v48  ;;  %v9101_v26 = vsel %vm153_vm0, %v22129_v58, 0  ;;  %v9104_v28 = vsel %vm153_vm0, %v22127_v15, 0  ;;  %v9098_v58 = vld [vmem:[#allocation11 + $0x30] sm:$0xff] }
 0x98c   :  { %v8447_v62 = vpop.f32.mrf.mxu1 }
 0x98d   :  { %v22308_v20 = vadd.f32 %v8447_v62, %v8355_v51  ;;  %v22311_v7 = vand.u32 4294901760, %v22306_v11  ;;  %v9099_v51 = vld [vmem:[#allocation11 + $0x38] sm:$0xff]  ;;  %v22357_v62 = vand.u32 4294901760, %v9101_v26 }
 0x98e   :  { %v19209_v55 = vpop.f32.mrf.mxu1 }
 0x98f   :  { %v22313_v29 = vadd.f32 %v19209_v55, %v8373_v6  ;;  %v22316_v45 = vand.u32 4294901760, %v22308_v20  ;;  %v8618_v35 = vsub.f32 %v22306_v11, %v22311_v7  ;;  %v9107_v6 = vsel %vm153_vm0, %v22142_v60, 0 }
 0x990   :  { %v8459_v10 = vpop.f32.mrf.mxu1  ;;  %v22365_v55 = vand.u32 4294901760, %v9099_v51  ;;  %v22372_v15 = vsub.f32 %v9101_v26, %v22357_v62  ;;  %v22377_v60 = vand.u32 4294901760, %v9107_v6 }
 0x991   :  { %v22319_v44 = vand.u32 4294901760, %v22313_v29  ;;  %v22321_v59 = vadd.f32 %v8459_v10, %v8367_v19  ;;  %v8625_v48 = vsub.f32 %v22308_v20, %v22316_v45  ;;  %v8619_v25 = vand.u32 4294901760, %v8618_v35 }
 0x992   :  { %v22367_v19 = vand.u32 4294901760, %v9104_v28  ;;  %v22375_v10 = vand.u32 4294901760, %v9098_v58 }
 0x993   :  { %v8604_v32 = vsub.f32 %v22313_v29, %v22319_v44  ;;  %v22328_v41 = vand.u32 4294901760, %v22321_v59  ;;  %19210 = vmatprep.subr.mxu0 %v22319_v44  ;;  %v22340_v33 = vand.u32 4294901760, %v8625_v48  ;;  %v8620_v23 = vsub.f32 %v8618_v35, %v8619_v25 }
 0x994   :  { %19211 = vmatpush3.msra.mxu0 %v22319_v44 }
 0x995   :  { %v8611_v50 = vsub.f32 %v22321_v59, %v22328_v41  ;;  %19212 = vmatprep.subr.mxu0 %v22328_v41  ;;  %v8605_v16 = vand.u32 4294901760, %v8604_v32  ;;  %v8627_v56 = vsub.f32 %v8625_v48, %v22340_v33  ;;  %v8621_v8 = vand.u32 4294901760, %v8620_v23 }
 0x996   :  { %19213 = vmatpush3.msra.mxu0 %v22328_v41 }
 0x997   :  { %19214 = vmatprep.subr.mxu0 %v22311_v7  ;;  %v8606_v40 = vsub.f32 %v8604_v32, %v8605_v16  ;;  %v8612_v38 = vand.u32 4294901760, %v8611_v50  ;;  %v8628_v22 = vand.u32 4294901760, %v8627_v56 }
 0x998   :  { %19215 = vmatpush3.msra.mxu0 %v22311_v7 }
 0x999   :  { %19216 = vmatprep.subr.mxu0 %v22316_v45  ;;  %v8607_v14 = vand.u32 4294901760, %v8606_v40  ;;  %v8613_v57 = vsub.f32 %v8611_v50, %v8612_v38  ;;  %v22398_v40 = vsub.f32 %v9098_v58, %v22375_v10 }
 0x99a   :  { %19217 = vmatpush3.msra.mxu0 %v22316_v45 }
 0x99b   :  { %19219 = vmatmul.mubr.f32.vlgmr.msra.gmra.mxu0 %v24324_v61  ;;  %19224 = vmatprep.subr.mxu1 %v8607_v14  ;;  %v8614_v39 = vand.u32 4294901760, %v8613_v57  ;;  %v22423_v56 = vand.u32 4294901760, %v22398_v40 }
 0x99c   :  { %19238 = vmatprep.subr.mxu0 %v8604_v32  ;;  %19225 = vmatpush3.msra.mxu1 %v8607_v14  ;;  %v22403_v14 = vsub.f32 %v9107_v6, %v22377_v60 }
 0x99d   :  { %19239 = vmatpush3.msra.mxu0 %v8604_v32  ;;  %19226 = vmatprep.subr.mxu1 %v8614_v39  ;;  %v9110_v32 = vsel %vm153_vm0, %v22134_v34, 0  ;;  %v9183_v34 = vand.u32 4294901760, %v22372_v15  ;;  %v9256_v58 = vsub.f32 %v22398_v40, %v22423_v56 }
 0x99e   :  { %19240 = vmatprep.subr.mxu0 %v8611_v50  ;;  %19221 = vmatprep.mubr.f32.mxu0 %v24325_v37 }
 0x99f   :  { %19227 = vmatpush3.msra.mxu1 %v8614_v39  ;;  %19241 = vmatpush3.msra.mxu0 %v8611_v50  ;;  %v22388_v50 = vsub.f32 %v9104_v28, %v22367_v19  ;;  %v9184_v39 = vsub.f32 %v22372_v15, %v9183_v34 }
 0x9a0   :  { %19222 = vmatmul.mubr.f32.gmra.mxu0 %v24326_v9  ;;  %19228 = vmatprep.subr.mxu1 %v8621_v8 }
 0x9a1   :  { %19242 = vmatprep.subr.mxu0 %v8618_v35  ;;  %19229 = vmatpush3.msra.mxu1 %v8621_v8  ;;  %v24224_v57 = vand.u32 4294901760, %v22388_v50 }
 0x9a2   :  { %19243 = vmatpush3.msra.mxu0 %v8618_v35  ;;  %19230 = vmatprep.subr.mxu1 %v8628_v22  ;;  %v9097_v35 = vld [vmem:[#allocation11 + $0x28] sm:$0xff] }
 0x9a3   :  { %19244 = vmatprep.subr.mxu0 %v8625_v48  ;;  %19231 = vmatpush3.msra.mxu1 %v8628_v22 }
 0x9a4   :  { %19245 = vmatpush3.msra.mxu0 %v8625_v48  ;;  %19246 = vmatprep.mubr.f32.mxu0 %v24328_v27  ;;  %v22385_v48 = vsub.f32 %v9099_v51, %v22365_v55  ;;  %v9194_v51 = vsub.f32 %v22388_v50, %v24224_v57 }
 0x9a5   :  { %19233 = vmatmul.mubr.f32.vlgmr.msra.gmra.mxu1 %v24327_v4  ;;  %19247 = vmatmul.mubr.f32.vlgmr.msra.gmra.mxu0 %v24329_v21 }
 0x9a6   :  { %19252 = vmatprep.subr.mxu1 %v22319_v44  ;;  %19266 = vmatprep.subr.mxu0 %v8605_v16 }
 0x9a7   :  { %19253 = vmatpush3.msra.mxu1 %v22319_v44  ;;  %19267 = vmatpush3.msra.mxu0 %v8605_v16  ;;  %v22394_v16 = vand.u32 4294901760, %v9097_v35 }
 0x9a8   :  { %19254 = vmatprep.subr.mxu1 %v22328_v41  ;;  %19268 = vmatprep.subr.mxu0 %v8612_v38 }
 0x9a9   :  { %19235 = vmatprep.mubr.f32.mxu1 %v24330_v17  ;;  %19249 = vmatprep.mubr.f32.mxu0 %v24332_v18  ;;  %v9261_v8 = vsub.f32 %v9097_v35, %v22394_v16 }
 0x9aa   :  { %19255 = vmatpush3.msra.mxu1 %v22328_v41  ;;  %19269 = vmatpush3.msra.mxu0 %v8612_v38  ;;  %v22400_v38 = vand.u32 4294901760, %v9110_v32 }
 0x9ab   :  { %19236 = vmatmul.mubr.f32.gmra.mxu1 %v24331_v54  ;;  %19250 = vmatmul.mubr.f32.gmra.mxu0 %v24333_v36  ;;  %v22446_v6 = vand.u32 4294901760, %v9261_v8 }
 0x9ac   :  { %19256 = vmatprep.subr.mxu1 %v22311_v7  ;;  %19270 = vmatprep.subr.mxu0 %v8619_v25  ;;  %v22427_v22 = vsub.f32 %v9110_v32, %v22400_v38 }
 0x9ad   :  { %19257 = vmatpush3.msra.mxu1 %v22311_v7  ;;  %19271 = vmatpush3.msra.mxu0 %v8619_v25  ;;  %v9096_v25 = vld [vmem:[#allocation11 + $0x20] sm:$0xff] }
 0x9ae   :  { %19258 = vmatprep.subr.mxu1 %v22316_v45  ;;  %19272 = vmatprep.subr.mxu0 %v22340_v33  ;;  %v22415_v23 = vand.u32 4294901760, %v9096_v25  ;;  %v24226_v32 = vand.u32 4294901760, %v22427_v22 }
 0x9af   :  { %19259 = vmatpush3.msra.mxu1 %v22316_v45  ;;  %19260 = vmatprep.mubr.f32.mxu1 %v24334_v3 }
 0x9b0   :  { %19273 = vmatpush3.msra.mxu0 %v22340_v33  ;;  %19274 = vmatprep.mubr.f32.mxu0 %v24336_v43  ;;  %v22410_v33 = vand.u32 4294901760, %v22385_v48  ;;  %v9268_v28 = vsub.f32 %v9096_v25, %v22415_v23 }
 0x9b1   :  { %19261 = vmatmul.mubr.f32.vlgmr.msra.gmra.mxu1 %v24335_v2  ;;  %19275 = vmatmul.mubr.f32.vlgmr.msra.gmra.mxu0 %v24327_v4 }
 0x9b2   :  { %19280 = vmatprep.subr.mxu1 %v22319_v44  ;;  %19294 = vmatprep.subr.mxu0 %v22365_v55  ;;  %v9249_v26 = vsub.f32 %v22385_v48, %v22410_v33  ;;  %v22457_v57 = vand.u32 4294901760, %v9268_v28 }
 0x9b3   :  { %19281 = vmatpush3.msra.mxu1 %v22319_v44  ;;  %19295 = vmatpush3.msra.mxu0 %v22365_v55  ;;  %v24225_v44 = vand.u32 4294901760, %v22403_v14 }
 0x9b4   :  { %19282 = vmatprep.subr.mxu1 %v22328_v41  ;;  %19296 = vmatprep.subr.mxu0 %v22375_v10  ;;  %v9250_v25 = vand.u32 4294901760, %v9249_v26  ;;  %v9214_v26 = vsub.f32 %v22427_v22, %v24226_v32 }
 0x9b5   :  { %19263 = vmatprep.mubr.f32.mxu1 %v24337_v42  ;;  %19277 = vmatprep.mubr.f32.mxu0 %v24330_v17  ;;  %v9204_v35 = vsub.f32 %v22403_v14, %v24225_v44  ;;  %v9263_v44 = vsub.f32 %v9261_v8, %v22446_v6 }
 0x9b6   :  { %19283 = vmatpush3.msra.mxu1 %v22328_v41  ;;  %19297 = vmatpush3.msra.mxu0 %v22375_v10  ;;  %v9185_v41 = vand.u32 4294901760, %v9184_v39  ;;  %v9195_v39 = vand.u32 4294901760, %v9194_v51 }
 0x9b7   :  { %19264 = vmatmul.mubr.f32.gmra.mxu1 %v24338_v12  ;;  %19278 = vmatmul.mubr.f32.gmra.mxu0 %v24331_v54  ;;  %v9264_v51 = vand.u32 4294901760, %v9263_v44 }
 0x9b8   :  { %19284 = vmatprep.subr.mxu1 %v22311_v7  ;;  %19298 = vmatprep.subr.mxu0 %v22394_v16 }
 0x9b9   :  { %19285 = vmatpush3.msra.mxu1 %v22311_v7  ;;  %19299 = vmatpush3.msra.mxu0 %v22394_v16  ;;  %v9257_v7 = vand.u32 4294901760, %v9256_v58  ;;  %v9215_v58 = vand.u32 4294901760, %v9214_v26  ;;  %v9092_v26 = vld [vmem:[#allocation11 + $0x8] sm:$0xff] }
 0x9ba   :  { %19302 = vmatprep.mubr.f32.mxu0 %v9185_v41  ;;  %19286 = vmatprep.subr.mxu1 %v22316_v45  ;;  %v9205_v41 = vand.u32 4294901760, %v9204_v35 }
 0x9bb   :  { %19300 = vmatprep.subr.mxu0 %v22415_v23  ;;  %19287 = vmatpush3.msra.mxu1 %v22316_v45  ;;  %v9270_v45 = vsub.f32 %v9268_v28, %v22457_v57 }
 0x9bc   :  { %19288 = vmatprep.mubr.f32.mxu1 %v24336_v43  ;;  %19301 = vmatpush3.msra.mxu0 %v22415_v23 }
 0x9bd   :  { %19289 = vmatmul.mubr.f32.vlgmr.msra.gmra.mxu1 %v24327_v4  ;;  %19303 = vmatmul.mubr.f32.vlgmr.msra.gmra.mxu0 %v9195_v39  ;;  %v9271_v35 = vand.u32 4294901760, %v9270_v45  ;;  %v9093_v39 = vld [vmem:[#allocation11 + $0x10] sm:$0xff]  ;;  %v9732_v45 = vsel %vm153_vm0, %v22043_v30, 0 }
 0x9be   :  { %19308 = vmatprep.subr.mxu1 %v9250_v25  ;;  %19322 = vmatprep.subr.mxu0 %v22385_v48 }
 0x9bf   :  { %19305 = vmatprep.mubr.f32.mxu0 %v9205_v41  ;;  %19309 = vmatpush3.msra.mxu1 %v9250_v25 }
 0x9c0   :  { %19323 = vmatpush3.msra.mxu0 %v22385_v48  ;;  %19310 = vmatprep.subr.mxu1 %v9257_v7  ;;  %v9726_v48 = vsel %vm153_vm0, %v22073_v31, 0 }
 0x9c1   :  { %19324 = vmatprep.subr.mxu0 %v22398_v40  ;;  %19291 = vmatprep.mubr.f32.mxu1 %v24330_v17  ;;  %v22485_v44 = vand.u32 4294901760, %v9726_v48 }
 0x9c2   :  { %19311 = vmatpush3.msra.mxu1 %v9257_v7  ;;  %19325 = vmatpush3.msra.mxu0 %v22398_v40  ;;  %v9094_v40 = vld [vmem:[#allocation11 + $0x18] sm:$0xff] }
 0x9c3   :  { %19292 = vmatmul.mubr.f32.gmra.mxu1 %v24331_v54  ;;  %19306 = vmatmul.mubr.f32.gmra.mxu0 %v9215_v58  ;;  %v22495_v25 = vand.u32 4294901760, %v9094_v40 }
 0x9c4   :  { %19312 = vmatprep.subr.mxu1 %v9264_v51  ;;  %19326 = vmatprep.subr.mxu0 %v9261_v8 }
 0x9c5   :  { %19313 = vmatpush3.msra.mxu1 %v9264_v51  ;;  %19316 = vmatprep.mubr.f32.mxu1 %v22357_v62  ;;  %v22518_v51 = vsub.f32 %v9094_v40, %v22495_v25  ;;  %v24345_v40 = vand.u32 4294901760, %v22388_v50 }
 0x9c6   :  { %19327 = vmatpush3.msra.mxu0 %v9261_v8  ;;  %19330 = vmatprep.mubr.f32.mxu0 %v22372_v15  ;;  %v9728_v8 = vsel %vm153_vm0, %v22056_v46, 0  ;;  %v22527_v15 = vand.u32 4294901760, %v9092_v26 }
 0x9c7   :  { %19314 = vmatprep.subr.mxu1 %v9271_v35  ;;  %19328 = vmatprep.subr.mxu0 %v9268_v28  ;;  %v22497_v7 = vand.u32 4294901760, %v9728_v8  ;;  %v22546_v32 = vand.u32 4294901760, %v22518_v51 }
 0x9c8   :  { %19315 = vmatpush3.msra.mxu1 %v9271_v35  ;;  %19329 = vmatpush3.msra.mxu0 %v9268_v28  ;;  %v9730_v28 = vsel %vm153_vm0, %v22053_v47, 0  ;;  %v22530_v35 = vand.u32 4294901760, %v9732_v45 }
 0x9c9   :  { %19317 = vmatmul.mubr.f32.vlgmr.msra.gmra.mxu1 %v22367_v19  ;;  %19331 = vmatmul.mubr.f32.vlgmr.msra.gmra.mxu0 %v22388_v50  ;;  %v22506_v41 = vand.u32 4294901760, %v9730_v28  ;;  %v22521_v58 = vsub.f32 %v9728_v8, %v22497_v7 }
 0x9ca   :  { %19336 = vmatprep.subr.mxu1 %v22365_v55  ;;  %19350 = vmatprep.subr.mxu0 %v22410_v33 }
 0x9cb   :  { %19319 = vmatprep.mubr.f32.mxu1 %v22377_v60  ;;  %19333 = vmatprep.mubr.f32.mxu0 %v22403_v14  ;;  %v22538_v8 = vsub.f32 %v9730_v28, %v22506_v41 }
 0x9cc   :  { %19337 = vmatpush3.msra.mxu1 %v22365_v55  ;;  %19351 = vmatpush3.msra.mxu0 %v22410_v33  ;;  %v22504_v33 = vsub.f32 %v9726_v48, %v22485_v44  ;;  %v7430_v48 = vadd.f32 %v22282_v24, %v22278_v0  ;;  %v9815_v0 = vand.u32 4294901760, %v22521_v58  ;;  %v24346_v24 = vand.u32 4294901760, %v22403_v14 }
 0x9cd   :  { %19338 = vmatprep.subr.mxu1 %v22375_v10  ;;  %19352 = vmatprep.subr.mxu0 %v22423_v56 }
 0x9ce   :  { %19339 = vmatpush3.msra.mxu1 %v22375_v10  ;;  %19353 = vmatpush3.msra.mxu0 %v22423_v56  ;;  %v22511_v56 = vand.u32 4294901760, %v9093_v39  ;;  %v7528_v14 = vadd.f32 %v22284_v49, %v7430_v48  ;;  %v9816_v49 = vsub.f32 %v22521_v58, %v9815_v0  ;;  %v24347_v48 = vand.u32 4294901760, %v22427_v22 }
 0x9cf   :  { %19320 = vmatmul.mubr.f32.gmra.mxu1 %v22400_v38  ;;  %19334 = vmatmul.mubr.f32.gmra.mxu0 %v22427_v22 }
 0x9d0   :  { %19340 = vmatprep.subr.mxu1 %v22394_v16  ;;  %19354 = vmatprep.subr.mxu0 %v22446_v6 }
 0x9d1   :  { %19341 = vmatpush3.msra.mxu1 %v22394_v16  ;;  %19344 = vmatprep.mubr.f32.mxu1 %v9183_v34  ;;  %v24227_v34 = vand.u32 4294901760, %v22504_v33 }
 0x9d2   :  { %19355 = vmatpush3.msra.mxu0 %v22446_v6  ;;  %19358 = vmatprep.mubr.f32.mxu0 %v22357_v62  ;;  %v9091_v6 = vld [vmem:[#allocation11] sm:$0xff] }
 0x9d3   :  { %19342 = vmatprep.subr.mxu1 %v22415_v23  ;;  %19356 = vmatprep.subr.mxu0 %v22457_v57  ;;  %v22552_v50 = vand.u32 4294901760, %v9091_v6  ;;  %v9806_v28 = vsub.f32 %v22504_v33, %v24227_v34  ;;  %v7442_v34 = vadd.f32 %v22286_v13, %v22280_v1 }
 0x9d4   :  { %19343 = vmatpush3.msra.mxu1 %v22415_v23  ;;  %19357 = vmatpush3.msra.mxu0 %v22457_v57  ;;  %v22541_v57 = vsub.f32 %v9093_v39, %v22511_v56  ;;  %v22560_v39 = vsub.f32 %v9092_v26, %v22527_v15  ;;  %v9871_v26 = vsub.f32 %v22518_v51, %v22546_v32 }
 0x9d5   :  { %19345 = vmatmul.mubr.f32.vlgmr.msra.gmra.mxu1 %v24345_v40  ;;  %19359 = vmatmul.mubr.f32.vlgmr.msra.gmra.mxu0 %v22367_v19  ;;  %v22563_v40 = vsub.f32 %v9732_v45, %v22530_v35  ;;  %v7626_v45 = vadd.f32 %v22290_v63, %v7528_v14  ;;  %v9890_v1 = vsub.f32 %v9091_v6, %v22552_v50  ;;  %v9807_v13 = vand.u32 4294901760, %v9806_v28 }
 0x9d6   :  { %19364 = vmatprep.subr.mxu1 %v22365_v55  ;;  %19378 = vmatprep.subr.mxu0 %v22495_v25  ;;  %v7542_v14 = vadd.f32 %v22288_v5, %v7442_v34  ;;  %v9872_v28 = vand.u32 4294901760, %v9871_v26  ;;  %v24348_v34 = vld [vmem:[#allocation48_spill] sm:$0xff] }
 0x9d7   :  { %19347 = vmatprep.mubr.f32.mxu1 %v24346_v24  ;;  %19361 = vmatprep.mubr.f32.mxu0 %v22377_v60  ;;  %v22570_v24 = vand.u32 4294901760, %v22541_v57  ;;  %v9835_v6 = vand.u32 4294901760, %v22563_v40 }
 0x9d8   :  { %19365 = vmatpush3.msra.mxu1 %v22365_v55  ;;  %19379 = vmatpush3.msra.mxu0 %v22495_v25  ;;  %v24228_v55 = vand.u32 4294901760, %v22538_v8 }
 0x9d9   :  { %19366 = vmatprep.subr.mxu1 %v22375_v10  ;;  %19380 = vmatprep.subr.mxu0 %v22511_v56  ;;  %v9878_v22 = vsub.f32 %v22541_v57, %v22570_v24 }
 0x9da   :  { %19367 = vmatpush3.msra.mxu1 %v22375_v10  ;;  %19381 = vmatpush3.msra.mxu0 %v22511_v56  ;;  %v22589_v10 = vand.u32 4294901760, %v22560_v39  ;;  %v9826_v63 = vsub.f32 %v22538_v8, %v24228_v55  ;;  %v7642_v55 = vadd.f32 %v22294_v53, %v7542_v14  ;;  %v24350_v14 = vld [vmem:[#allocation40_spill] sm:$0xff] }
 0x9db   :  { %19348 = vmatmul.mubr.f32.gmra.mxu1 %v24347_v48  ;;  %19362 = vmatmul.mubr.f32.gmra.mxu0 %v22400_v38  ;;  %v9817_v48 = vand.u32 4294901760, %v9816_v49  ;;  %v9879_v49 = vand.u32 4294901760, %v9878_v22 }
 0x9dc   :  { %19368 = vmatprep.subr.mxu1 %v22394_v16  ;;  %19382 = vmatprep.subr.mxu0 %v22527_v15  ;;  %v9885_v5 = vsub.f32 %v22560_v39, %v22589_v10 }
 0x9dd   :  { %19369 = vmatpush3.msra.mxu1 %v22394_v16  ;;  %19372 = vmatprep.mubr.f32.mxu1 %v22357_v62  ;;  %v7733_v16 = vadd.f32 %v22292_v52, %v7626_v45  ;;  %v22604_v62 = vand.u32 4294901760, %v9890_v1  ;;  %v9827_v52 = vand.u32 4294901760, %v9826_v63  ;;  %v9836_v45 = vsub.f32 %v22563_v40, %v9835_v6 }
 0x9de   :  { %19383 = vmatpush3.msra.mxu0 %v22527_v15  ;;  %19386 = vmatprep.mubr.f32.mxu0 %v9807_v13 }
 0x9df   :  { %19370 = vmatprep.subr.mxu1 %v22415_v23  ;;  %19384 = vmatprep.subr.mxu0 %v22552_v50  ;;  %v7826_v26 = vadd.f32 %v24348_v34, %v7733_v16  ;;  %v9892_v53 = vsub.f32 %v9890_v1, %v22604_v62  ;;  %v9837_v22 = vand.u32 4294901760, %v9836_v45  ;;  %v24351_v16 = vld [vmem:[#allocation46_spill] sm:$0xff] }
 0x9e0   :  { %19371 = vmatpush3.msra.mxu1 %v22415_v23  ;;  %19385 = vmatpush3.msra.mxu0 %v22552_v50  ;;  %v24349_v23 = vld [vmem:[#allocation45_spill] sm:$0xff] }
 0x9e1   :  { %19373 = vmatmul.mubr.f32.vlgmr.msra.gmra.mxu1 %v22367_v19  ;;  %19387 = vmatmul.mubr.f32.vlgmr.msra.gmra.mxu0 %v9817_v48  ;;  %v7745_v13 = vadd.f32 %v24349_v23, %v7642_v55  ;;  %v9886_v19 = vand.u32 4294901760, %v9885_v5  ;;  %v7847_v63 = vmul.f32 2.0, %v7826_v26  ;;  %v7848_v55 = vmul.f32 2.0, %v24351_v16  ;;  %v10350_v23 = vld [vmem:[#allocation11 + $0x48] sm:$0xff] }
 0x9e2   :  { %19392 = vmatprep.subr.mxu1 %v9872_v28  ;;  %19406 = vmatprep.subr.mxu0 %v22518_v51 }
 0x9e3   :  { %19375 = vmatprep.mubr.f32.mxu1 %v22377_v60  ;;  %19389 = vmatprep.mubr.f32.mxu0 %v9827_v52  ;;  %v7838_v48 = vadd.f32 %v24350_v14, %v7745_v13  ;;  %v9893_v60 = vand.u32 4294901760, %v9892_v53 }
 0x9e4   :  { %19393 = vmatpush3.msra.mxu1 %v9872_v28  ;;  %19407 = vmatpush3.msra.mxu0 %v22518_v51  ;;  %v7851_v51 = vsub.f32 %v7847_v63, %v22073_v31  ;;  %v24352_v31 = vld [vmem:[#allocation47_spill] sm:$0xff] }
 0x9e5   :  { %19394 = vmatprep.subr.mxu1 %v9879_v49  ;;  %19408 = vmatprep.subr.mxu0 %v22541_v57  ;;  %v7849_v28 = vmul.f32 2.0, %v7838_v48  ;;  %v7850_v5 = vmul.f32 2.0, %v24352_v31 }
 0x9e6   :  { %19395 = vmatpush3.msra.mxu1 %v9879_v49  ;;  %19409 = vmatpush3.msra.mxu0 %v22541_v57  ;;  %v10354_v57 = vsel %vm153_vm0, %v7851_v51, 0  ;;  %v10351_v49 = vld [vmem:[#allocation11 + $0x50] sm:$0xff] }
 0x9e7   :  { %19376 = vmatmul.mubr.f32.gmra.mxu1 %v22400_v38  ;;  %19390 = vmatmul.mubr.f32.gmra.mxu0 %v9837_v22  ;;  %v7852_v38 = vsub.f32 %v7848_v55, %v22056_v46  ;;  %v7853_v34 = vsub.f32 %v7849_v28, %v22053_v47  ;;  %v10352_v46 = vld [vmem:[#allocation11 + $0x58] sm:$0xff]  ;;  %v7854_v47 = vsub.f32 %v7850_v5, %v22043_v30  ;;  %v22668_v53 = vand.u32 4294901760, %v10351_v49  ;;  %v10349_v22 = vld [vmem:[#allocation11 + $0x40] sm:$0xff] }
 0x9e8   :  { %19396 = vmatprep.subr.mxu1 %v9886_v19  ;;  %19410 = vmatprep.subr.mxu0 %v22560_v39  ;;  %v22652_v52 = vand.u32 4294901760, %v10352_v46  ;;  %v24354_v55 = vand.u32 4294901760, %v22538_v8 }
 0x9e9   :  { %19397 = vmatpush3.msra.mxu1 %v9886_v19  ;;  %19400 = vmatprep.mubr.f32.mxu1 %v22485_v44  ;;  %v10360_v26 = vsel %vm153_vm0, %v7853_v34, 0  ;;  %v10363_v13 = vsel %vm153_vm0, %v7854_v47, 0 }
 0x9ea   :  { %19411 = vmatpush3.msra.mxu0 %v22560_v39  ;;  %19414 = vmatprep.mubr.f32.mxu0 %v22504_v33  ;;  %v10357_v39 = vsel %vm153_vm0, %v7852_v38, 0  ;;  %v22663_v30 = vand.u32 4294901760, %v10360_v26  ;;  %v22674_v19 = vsub.f32 %v10352_v46, %v22652_v52  ;;  %v22686_v14 = vand.u32 4294901760, %v10363_v13 }
 0x9eb   :  { %19398 = vmatprep.subr.mxu1 %v9893_v60  ;;  %19412 = vmatprep.subr.mxu0 %v9890_v1  ;;  %v22654_v45 = vand.u32 4294901760, %v10357_v39 }
 0x9ec   :  { %19399 = vmatpush3.msra.mxu1 %v9893_v60  ;;  %19413 = vmatpush3.msra.mxu0 %v9890_v1  ;;  %v22642_v1 = vand.u32 4294901760, %v10354_v57  ;;  %v22689_v48 = vsub.f32 %v10360_v26, %v22663_v30  ;;  %v10507_v60 = vsub.f32 %v10351_v49, %v22668_v53  ;;  %v22713_v28 = vsub.f32 %v10363_v13, %v22686_v14 }
 0x9ed   :  { %19401 = vmatmul.mubr.f32.vlgmr.msra.gmra.mxu1 %v22497_v7  ;;  %19415 = vmatmul.mubr.f32.vlgmr.msra.gmra.mxu0 %v22521_v58  ;;  %v22677_v63 = vsub.f32 %v10357_v39, %v22654_v45  ;;  %v22704_v58 = vand.u32 4294901760, %v10349_v22  ;;  %v10996_v13 = vsel %vm153_vm0, %v22306_v11, 0  ;;  %v10990_v11 = vld [vmem:[#allocation12 + $0x30] sm:$0xff] }
 0x9ee   :  { %19420 = vmatprep.subr.mxu1 %v22495_v25  ;;  %19434 = vmatprep.subr.mxu0 %v22546_v32  ;;  %v22718_v38 = vand.u32 4294901760, %v10507_v60  ;;  %v10466_v34 = vand.u32 4294901760, %v22713_v28 }
 0x9ef   :  { %19403 = vmatprep.mubr.f32.mxu1 %v22506_v41  ;;  %19417 = vmatprep.mubr.f32.mxu0 %v22538_v8  ;;  %v10446_v16 = vand.u32 4294901760, %v22677_v63  ;;  %v10456_v8 = vand.u32 4294901760, %v22689_v48  ;;  %v10521_v31 = vsub.f32 %v10349_v22, %v22704_v58 }
 0x9f0   :  { %19421 = vmatpush3.msra.mxu1 %v22495_v25  ;;  %19435 = vmatpush3.msra.mxu0 %v22546_v32  ;;  %v22659_v32 = vsub.f32 %v10354_v57, %v22642_v1  ;;  %v10467_v49 = vsub.f32 %v22713_v28, %v10466_v34 }
 0x9f1   :  { %19422 = vmatprep.subr.mxu1 %v22511_v56  ;;  %19436 = vmatprep.subr.mxu0 %v22570_v24  ;;  %v10447_v57 = vsub.f32 %v22677_v63, %v10446_v16 }
 0x9f2   :  { %19423 = vmatpush3.msra.mxu1 %v22511_v56  ;;  %19437 = vmatpush3.msra.mxu0 %v22570_v24  ;;  %v24353_v24 = vand.u32 4294901760, %v22504_v33  ;;  %v22683_v33 = vand.u32 4294901760, %v10350_v23 }
 0x9f3   :  { %19404 = vmatmul.mubr.f32.gmra.mxu1 %v22530_v35  ;;  %19418 = vmatmul.mubr.f32.gmra.mxu0 %v22563_v40  ;;  %v10457_v40 = vsub.f32 %v22689_v48, %v10456_v8  ;;  %v10448_v39 = vand.u32 4294901760, %v10447_v57 }
 0x9f4   :  { %19424 = vmatprep.subr.mxu1 %v22527_v15  ;;  %19438 = vmatprep.subr.mxu0 %v22589_v10  ;;  %v10514_v51 = vsub.f32 %v10350_v23, %v22683_v33 }
 0x9f5   :  { %19425 = vmatpush3.msra.mxu1 %v22527_v15  ;;  %19428 = vmatprep.mubr.f32.mxu1 %v24353_v24  ;;  %v10458_v47 = vand.u32 4294901760, %v10457_v40 }
 0x9f6   :  { %19439 = vmatpush3.msra.mxu0 %v22589_v10  ;;  %19442 = vmatprep.mubr.f32.mxu0 %v22485_v44  ;;  %v10436_v10 = vand.u32 4294901760, %v22659_v32  ;;  %v22733_v5 = vand.u32 4294901760, %v10514_v51 }
 0x9f7   :  { %19426 = vmatprep.subr.mxu1 %v22552_v50  ;;  %19440 = vmatprep.subr.mxu0 %v22604_v62 }
 0x9f8   :  { %19427 = vmatpush3.msra.mxu1 %v22552_v50  ;;  %19441 = vmatpush3.msra.mxu0 %v22604_v62  ;;  %v22698_v62 = vand.u32 4294901760, %v22674_v19 }
 0x9f9   :  { %19429 = vmatmul.mubr.f32.vlgmr.msra.gmra.mxu1 %v9815_v0  ;;  %19443 = vmatmul.mubr.f32.vlgmr.msra.gmra.mxu0 %v22497_v7  ;;  %v10437_v0 = vsub.f32 %v22659_v32, %v10436_v10 }
 0x9fa   :  { %19448 = vmatprep.subr.mxu1 %v22495_v25  ;;  %19462 = vmatprep.subr.mxu0 %v22652_v52 }
 0x9fb   :  { %19431 = vmatprep.mubr.f32.mxu1 %v24354_v55  ;;  %19445 = vmatprep.mubr.f32.mxu0 %v22506_v41  ;;  %v22797_v55 = vand.u32 4294901760, %v10990_v11 }
 0x9fc   :  { %19449 = vmatpush3.msra.mxu1 %v22495_v25  ;;  %19463 = vmatpush3.msra.mxu0 %v22652_v52  ;;  %v10502_v25 = vsub.f32 %v22674_v19, %v22698_v62 }
 0x9fd   :  { %19450 = vmatprep.subr.mxu1 %v22511_v56  ;;  %19464 = vmatprep.subr.mxu0 %v22668_v53 }
 0x9fe   :  { %19451 = vmatpush3.msra.mxu1 %v22511_v56  ;;  %19465 = vmatpush3.msra.mxu0 %v22668_v53  ;;  %v10438_v56 = vand.u32 4294901760, %v10437_v0  ;;  %v10503_v46 = vand.u32 4294901760, %v10502_v25  ;;  %v10989_v0 = vld [vmem:[#allocation12 + $0x28] sm:$0xff] }
 0x9ff   :  { %19432 = vmatmul.mubr.f32.gmra.mxu1 %v9835_v6  ;;  %19446 = vmatmul.mubr.f32.gmra.mxu0 %v22530_v35  ;;  %v10509_v6 = vsub.f32 %v10507_v60, %v22718_v38 }
 0xa00   :  { %19452 = vmatprep.subr.mxu1 %v22527_v15  ;;  %19466 = vmatprep.subr.mxu0 %v22683_v33 }
 0xa01   :  { %19453 = vmatpush3.msra.mxu1 %v22527_v15  ;;  %19456 = vmatprep.mubr.f32.mxu1 %v22485_v44  ;;  %v22745_v15 = vand.u32 4294901760, %v10521_v31  ;;  %v10516_v44 = vsub.f32 %v10514_v51, %v22733_v5  ;;  %v10510_v26 = vand.u32 4294901760, %v10509_v6 }
 0xa02   :  { %19467 = vmatpush3.msra.mxu0 %v22683_v33  ;;  %19470 = vmatprep.mubr.f32.mxu0 %v10438_v56  ;;  %v11146_v56 = vsub.f32 %v10990_v11, %v22797_v55  ;;  %v22905_v11 = vld [vmem:[#allocation3 + $0x28] sm:$0xff] }
 0xa03   :  { %19454 = vmatprep.subr.mxu1 %v22552_v50  ;;  %19468 = vmatprep.subr.mxu0 %v22704_v58  ;;  %v10517_v24 = vand.u32 4294901760, %v10516_v44 }
 0xa04   :  { %19455 = vmatpush3.msra.mxu1 %v22552_v50  ;;  %19469 = vmatpush3.msra.mxu0 %v22704_v58  ;;  %v10523_v50 = vsub.f32 %v10521_v31, %v22745_v15 }
 0xa05   :  { %19457 = vmatmul.mubr.f32.vlgmr.msra.gmra.mxu1 %v22497_v7  ;;  %19471 = vmatmul.mubr.f32.vlgmr.msra.gmra.mxu0 %v10448_v39  ;;  %v10468_v7 = vand.u32 4294901760, %v10467_v49 }
 0xa06   :  { %19476 = vmatprep.subr.mxu1 %v10503_v46  ;;  %19490 = vmatprep.subr.mxu0 %v22674_v19  ;;  %v10524_v23 = vand.u32 4294901760, %v10523_v50 }
 0xa07   :  { %19459 = vmatprep.mubr.f32.mxu1 %v22506_v41  ;;  %19473 = vmatprep.mubr.f32.mxu0 %v10458_v47  ;;  %v10993_v41 = vsel %vm153_vm0, %v22308_v20, 0  ;;  %v10999_v20 = vsel %vm153_vm0, %v22321_v59, 0 }
 0xa08   :  { %19477 = vmatpush3.msra.mxu1 %v10503_v46  ;;  %19491 = vmatpush3.msra.mxu0 %v22674_v19  ;;  %v22771_v19 = vand.u32 4294901760, %v10993_v41  ;;  %v22792_v59 = vand.u32 4294901760, %v10999_v20 }
 0xa09   :  { %19478 = vmatprep.subr.mxu1 %v10510_v26  ;;  %19492 = vmatprep.subr.mxu0 %v10507_v60 }
 0xa0a   :  { %19479 = vmatpush3.msra.mxu1 %v10510_v26  ;;  %19493 = vmatpush3.msra.mxu0 %v10507_v60  ;;  %v22783_v60 = vand.u32 4294901760, %v10996_v13 }
 0xa0b   :  { %19460 = vmatmul.mubr.f32.gmra.mxu1 %v22530_v35  ;;  %19474 = vmatmul.mubr.f32.gmra.mxu0 %v10468_v7  ;;  %v10991_v35 = vld [vmem:[#allocation12 + $0x38] sm:$0xff] }
 0xa0c   :  { %19480 = vmatprep.subr.mxu1 %v10517_v24  ;;  %19494 = vmatprep.subr.mxu0 %v10514_v51  ;;  %v22781_v22 = vand.u32 4294901760, %v10991_v35  ;;  %v22807_v25 = vsub.f32 %v10996_v13, %v22783_v60 }
 0xa0d   :  { %19481 = vmatpush3.msra.mxu1 %v10517_v24  ;;  %19484 = vmatprep.mubr.f32.mxu1 %v22642_v1 }
 0xa0e   :  { %19495 = vmatpush3.msra.mxu0 %v10514_v51  ;;  %19498 = vmatprep.mubr.f32.mxu0 %v22659_v32  ;;  %v11002_v51 = vsel %vm153_vm0, %v22313_v29, 0  ;;  %v22813_v32 = vand.u32 4294901760, %v10989_v0  ;;  %v11085_v40 = vand.u32 4294901760, %v22807_v25 }
 0xa0f   :  { %19482 = vmatprep.subr.mxu1 %v10524_v23  ;;  %19496 = vmatprep.subr.mxu0 %v10521_v31  ;;  %v22816_v57 = vand.u32 4294901760, %v11002_v51 }
 0xa10   :  { %19483 = vmatpush3.msra.mxu1 %v10524_v23  ;;  %19497 = vmatpush3.msra.mxu0 %v10521_v31  ;;  %v22819_v31 = vsub.f32 %v10999_v20, %v22792_v59  ;;  %v11153_v6 = vsub.f32 %v10989_v0, %v22813_v32  ;;  %v11086_v39 = vsub.f32 %v22807_v25, %v11085_v40  ;;  %v10985_v20 = vld [vmem:[#allocation12 + $0x10] sm:$0xff]  ;;  %v11622_v0 = vsel %vm153_vm0, %v22905_v11, 0 }
 0xa11   :  { %19485 = vmatmul.mubr.f32.vlgmr.msra.gmra.mxu1 %v22654_v45  ;;  %19499 = vmatmul.mubr.f32.vlgmr.msra.gmra.mxu0 %v22677_v63  ;;  %v22843_v46 = vsub.f32 %v11002_v51, %v22816_v57 }
 0xa12   :  { %19504 = vmatprep.subr.mxu1 %v22652_v52  ;;  %19518 = vmatprep.subr.mxu0 %v22698_v62  ;;  %v22863_v44 = vand.u32 4294901760, %v11153_v6  ;;  %v11087_v49 = vand.u32 4294901760, %v11086_v39 }
 0xa13   :  { %19487 = vmatprep.mubr.f32.mxu1 %v22663_v30  ;;  %19501 = vmatprep.mubr.f32.mxu0 %v22689_v48  ;;  %v11095_v48 = vand.u32 4294901760, %v22819_v31  ;;  %v11105_v47 = vand.u32 4294901760, %v22843_v46 }
 0xa14   :  { %19505 = vmatpush3.msra.mxu1 %v22652_v52  ;;  %19519 = vmatpush3.msra.mxu0 %v22698_v62  ;;  %v22788_v62 = vsub.f32 %v10993_v41, %v22771_v19 }
 0xa15   :  { %19506 = vmatprep.subr.mxu1 %v22668_v53  ;;  %19520 = vmatprep.subr.mxu0 %v22718_v38  ;;  %v11106_v7 = vsub.f32 %v22843_v46, %v11105_v47 }
 0xa16   :  { %19507 = vmatpush3.msra.mxu1 %v22668_v53  ;;  %19521 = vmatpush3.msra.mxu0 %v22718_v38  ;;  %v22804_v38 = vsub.f32 %v10991_v35, %v22781_v22  ;;  %v11075_v29 = vand.u32 4294901760, %v22788_v62 }
 0xa17   :  { %19488 = vmatmul.mubr.f32.gmra.mxu1 %v22686_v14  ;;  %19502 = vmatmul.mubr.f32.gmra.mxu0 %v22713_v28  ;;  %v11096_v28 = vsub.f32 %v22819_v31, %v11095_v48 }
 0xa18   :  { %19508 = vmatprep.subr.mxu1 %v22683_v33  ;;  %19522 = vmatprep.subr.mxu0 %v22733_v5 }
 0xa19   :  { %19509 = vmatpush3.msra.mxu1 %v22683_v33  ;;  %19512 = vmatprep.mubr.f32.mxu1 %v10436_v10  ;;  %v10988_v10 = vld [vmem:[#allocation12 + $0x20] sm:$0xff]  ;;  %v11097_v50 = vand.u32 4294901760, %v11096_v28 }
 0xa1a   :  { %19523 = vmatpush3.msra.mxu0 %v22733_v5  ;;  %19526 = vmatprep.mubr.f32.mxu0 %v22642_v1  ;;  %v22828_v5 = vand.u32 4294901760, %v22804_v38  ;;  %v22834_v63 = vand.u32 4294901760, %v10988_v10 }
 0xa1b   :  { %19510 = vmatprep.subr.mxu1 %v22704_v58  ;;  %19524 = vmatprep.subr.mxu0 %v22745_v15 }
 0xa1c   :  { %19511 = vmatpush3.msra.mxu1 %v22704_v58  ;;  %19525 = vmatpush3.msra.mxu0 %v22745_v15  ;;  %v11160_v15 = vsub.f32 %v10988_v10, %v22834_v63  ;;  %v10984_v10 = vld [vmem:[#allocation12 + $0x8] sm:$0xff] }
 0xa1d   :  { %19513 = vmatmul.mubr.f32.vlgmr.msra.gmra.mxu1 %v10446_v16  ;;  %19527 = vmatmul.mubr.f32.vlgmr.msra.gmra.mxu0 %v22654_v45  ;;  %v11076_v16 = vsub.f32 %v22788_v62, %v11075_v29 }
 0xa1e   :  { %19532 = vmatprep.subr.mxu1 %v22652_v52  ;;  %19546 = vmatprep.subr.mxu0 %v22781_v22 }
 0xa1f   :  { %19515 = vmatprep.mubr.f32.mxu1 %v10456_v8  ;;  %19529 = vmatprep.mubr.f32.mxu0 %v22663_v30  ;;  %v22848_v8 = vand.u32 4294901760, %v11146_v56 }
 0xa20   :  { %19533 = vmatpush3.msra.mxu1 %v22652_v52  ;;  %19547 = vmatpush3.msra.mxu0 %v22781_v22  ;;  %v11141_v52 = vsub.f32 %v22804_v38, %v22828_v5 }
 0xa21   :  { %19534 = vmatprep.subr.mxu1 %v22668_v53  ;;  %19548 = vmatprep.subr.mxu0 %v22797_v55 }
 0xa22   :  { %19535 = vmatpush3.msra.mxu1 %v22668_v53  ;;  %19549 = vmatpush3.msra.mxu0 %v22797_v55  ;;  %v11077_v53 = vand.u32 4294901760, %v11076_v16  ;;  %v11142_v26 = vand.u32 4294901760, %v11141_v52  ;;  %v22926_v16 = vld [vmem:[#allocation3 + $0x30] sm:$0xff]  ;;  %v22935_v52 = vand.u32 4294901760, %v10984_v10 }
 0xa23   :  { %19516 = vmatmul.mubr.f32.gmra.mxu1 %v10466_v34  ;;  %19530 = vmatmul.mubr.f32.gmra.mxu0 %v22686_v14  ;;  %v11148_v34 = vsub.f32 %v11146_v56, %v22848_v8 }
 0xa24   :  { %19536 = vmatprep.subr.mxu1 %v22683_v33  ;;  %19550 = vmatprep.subr.mxu0 %v22813_v32 }
 0xa25   :  { %19537 = vmatpush3.msra.mxu1 %v22683_v33  ;;  %19540 = vmatprep.mubr.f32.mxu1 %v22642_v1  ;;  %v22875_v33 = vand.u32 4294901760, %v11160_v15  ;;  %v11155_v1 = vsub.f32 %v11153_v6, %v22863_v44  ;;  %v11149_v24 = vand.u32 4294901760, %v11148_v34 }
 0xa26   :  { %19551 = vmatpush3.msra.mxu0 %v22813_v32  ;;  %19554 = vmatprep.mubr.f32.mxu0 %v11077_v53 }
 0xa27   :  { %19538 = vmatprep.subr.mxu1 %v22704_v58  ;;  %19552 = vmatprep.subr.mxu0 %v22834_v63  ;;  %v11156_v23 = vand.u32 4294901760, %v11155_v1 }
 0xa28   :  { %19539 = vmatpush3.msra.mxu1 %v22704_v58  ;;  %19553 = vmatpush3.msra.mxu0 %v22834_v63  ;;  %v11162_v58 = vsub.f32 %v11160_v15, %v22875_v33 }
 0xa29   :  { %19541 = vmatmul.mubr.f32.vlgmr.msra.gmra.mxu1 %v22654_v45  ;;  %19555 = vmatmul.mubr.f32.vlgmr.msra.gmra.mxu0 %v11087_v49  ;;  %v11107_v45 = vand.u32 4294901760, %v11106_v7 }
 0xa2a   :  { %19560 = vmatprep.subr.mxu1 %v11142_v26  ;;  %19574 = vmatprep.subr.mxu0 %v22804_v38  ;;  %v11163_v41 = vand.u32 4294901760, %v11162_v58 }
 0xa2b   :  { %19543 = vmatprep.mubr.f32.mxu1 %v22663_v30  ;;  %19557 = vmatprep.mubr.f32.mxu0 %v11097_v50  ;;  %v10986_v30 = vld [vmem:[#allocation12 + $0x18] sm:$0xff] }
 0xa2c   :  { %19561 = vmatpush3.msra.mxu1 %v11142_v26  ;;  %19575 = vmatpush3.msra.mxu0 %v22804_v38  ;;  %v22903_v13 = vand.u32 4294901760, %v10986_v30  ;;  %v22917_v38 = vand.u32 4294901760, %v10985_v20 }
 0xa2d   :  { %19562 = vmatprep.subr.mxu1 %v11149_v24  ;;  %19576 = vmatprep.subr.mxu0 %v11146_v56 }
 0xa2e   :  { %19563 = vmatpush3.msra.mxu1 %v11149_v24  ;;  %19577 = vmatpush3.msra.mxu0 %v11146_v56  ;;  %v22919_v56 = vand.u32 4294901760, %v11622_v0 }
 0xa2f   :  { %19544 = vmatmul.mubr.f32.gmra.mxu1 %v22686_v14  ;;  %19558 = vmatmul.mubr.f32.gmra.mxu0 %v11107_v45  ;;  %v22897_v14 = vld [vmem:[#allocation3 + $0x20] sm:$0xff] }
 0xa30   :  { %19564 = vmatprep.subr.mxu1 %v11156_v23  ;;  %19578 = vmatprep.subr.mxu0 %v11153_v6  ;;  %v11619_v35 = vsel %vm153_vm0, %v22897_v14, 0 }
 0xa31   :  { %19565 = vmatpush3.msra.mxu1 %v11156_v23  ;;  %19568 = vmatprep.mubr.f32.mxu1 %v22771_v19  ;;  %v22913_v51 = vand.u32 4294901760, %v11619_v35 }
 0xa32   :  { %19579 = vmatpush3.msra.mxu0 %v11153_v6  ;;  %19582 = vmatprep.mubr.f32.mxu0 %v22788_v62  ;;  %v11625_v6 = vsel %vm153_vm0, %v22926_v16, 0  ;;  %v22947_v62 = vsub.f32 %v11622_v0, %v22919_v56 }
 0xa33   :  { %19566 = vmatprep.subr.mxu1 %v11163_v41  ;;  %19580 = vmatprep.subr.mxu0 %v11160_v15  ;;  %v22938_v39 = vsub.f32 %v11619_v35, %v22913_v51 }
 0xa34   :  { %19567 = vmatpush3.msra.mxu1 %v11163_v41  ;;  %19581 = vmatpush3.msra.mxu0 %v11160_v15  ;;  %v22940_v15 = vld [vmem:[#allocation3 + $0x38] sm:$0xff] }
 0xa35   :  { %19569 = vmatmul.mubr.f32.vlgmr.msra.gmra.mxu1 %v22783_v60  ;;  %19583 = vmatmul.mubr.f32.vlgmr.msra.gmra.mxu0 %v22807_v25  ;;  %v11628_v53 = vsel %vm153_vm0, %v22940_v15, 0  ;;  %v11701_v49 = vand.u32 4294901760, %v22938_v39  ;;  %v11711_v25 = vand.u32 4294901760, %v22947_v62 }
 0xa36   :  { %19588 = vmatprep.subr.mxu1 %v22781_v22  ;;  %19602 = vmatprep.subr.mxu0 %v22828_v5  ;;  %v22964_v26 = vand.u32 4294901760, %v11628_v53 }
 0xa37   :  { %19571 = vmatprep.mubr.f32.mxu1 %v22792_v59  ;;  %19585 = vmatprep.mubr.f32.mxu0 %v22819_v31  ;;  %v11702_v50 = vsub.f32 %v22938_v39, %v11701_v49 }
 0xa38   :  { %19589 = vmatpush3.msra.mxu1 %v22781_v22  ;;  %19603 = vmatpush3.msra.mxu0 %v22828_v5  ;;  %v22924_v5 = vsub.f32 %v10986_v30, %v22903_v13 }
 0xa39   :  { %19590 = vmatprep.subr.mxu1 %v22797_v55  ;;  %19604 = vmatprep.subr.mxu0 %v22848_v8  ;;  %v11703_v45 = vand.u32 4294901760, %v11702_v50 }
 0xa3a   :  { %19591 = vmatpush3.msra.mxu1 %v22797_v55  ;;  %19605 = vmatpush3.msra.mxu0 %v22848_v8  ;;  %v10983_v8 = vld [vmem:[#allocation12] sm:$0xff]  ;;  %v22959_v34 = vand.u32 4294901760, %v22924_v5 }
 0xa3b   :  { %19572 = vmatmul.mubr.f32.gmra.mxu1 %v22816_v57  ;;  %19586 = vmatmul.mubr.f32.gmra.mxu0 %v22843_v46  ;;  %v22956_v28 = vand.u32 4294901760, %v10983_v8 }
 0xa3c   :  { %19592 = vmatprep.subr.mxu1 %v22813_v32  ;;  %19606 = vmatprep.subr.mxu0 %v22863_v44  ;;  %v11767_v31 = vsub.f32 %v22924_v5, %v22959_v34 }
 0xa3d   :  { %19593 = vmatpush3.msra.mxu1 %v22813_v32  ;;  %19596 = vmatprep.mubr.f32.mxu1 %v11075_v29  ;;  %v22950_v29 = vsub.f32 %v10985_v20, %v22917_v38 }
 0xa3e   :  { %19607 = vmatpush3.msra.mxu0 %v22863_v44  ;;  %19610 = vmatprep.mubr.f32.mxu0 %v22771_v19  ;;  %v22952_v44 = vand.u32 4294901760, %v11625_v6  ;;  %v11768_v7 = vand.u32 4294901760, %v11767_v31 }
 0xa3f   :  { %19594 = vmatprep.subr.mxu1 %v22834_v63  ;;  %19608 = vmatprep.subr.mxu0 %v22875_v33 }
 0xa40   :  { %19595 = vmatpush3.msra.mxu1 %v22834_v63  ;;  %19609 = vmatpush3.msra.mxu0 %v22875_v33  ;;  %v22971_v33 = vsub.f32 %v10984_v10, %v22935_v52  ;;  %v22980_v1 = vsub.f32 %v11625_v6, %v22952_v44  ;;  %v12248_v10 = vld [vmem:[#allocation12 + $0x58] sm:$0xff]  ;;  %v12246_v6 = vld [vmem:[#allocation12 + $0x48] sm:$0xff] }
 0xa41   :  { %19597 = vmatmul.mubr.f32.vlgmr.msra.gmra.mxu1 %v11085_v40  ;;  %19611 = vmatmul.mubr.f32.vlgmr.msra.gmra.mxu0 %v22783_v60  ;;  %v22977_v40 = vand.u32 4294901760, %v22950_v29 }
 0xa42   :  { %19616 = vmatprep.subr.mxu1 %v22781_v22  ;;  %19599 = vmatprep.mubr.f32.mxu1 %v11095_v48  ;;  %v11786_v48 = vsub.f32 %v10983_v8, %v22956_v28  ;;  %v22999_v24 = vand.u32 4294901760, %v22971_v33 }
 0xa43   :  { %19613 = vmatprep.mubr.f32.mxu0 %v22792_v59  ;;  %19617 = vmatpush3.msra.mxu1 %v22781_v22  ;;  %v22990_v22 = vsub.f32 %v11628_v53, %v22964_v26  ;;  %v11774_v46 = vsub.f32 %v22950_v29, %v22977_v40 }
 0xa44   :  { %19618 = vmatprep.subr.mxu1 %v22797_v55  ;;  %19630 = vmatprep.subr.mxu0 %v22903_v13  ;;  %v23011_v58 = vand.u32 4294901760, %v11786_v48  ;;  %v11781_v41 = vsub.f32 %v22971_v33, %v22999_v24 }
 0xa45   :  { %19619 = vmatpush3.msra.mxu1 %v22797_v55  ;;  %19631 = vmatpush3.msra.mxu0 %v22903_v13  ;;  %v11712_v55 = vsub.f32 %v22947_v62, %v11711_v25  ;;  %v11731_v23 = vand.u32 4294901760, %v22990_v22 }
 0xa46   :  { %19600 = vmatmul.mubr.f32.gmra.mxu1 %v11105_v47  ;;  %19614 = vmatmul.mubr.f32.gmra.mxu0 %v22816_v57  ;;  %v11721_v47 = vand.u32 4294901760, %v22980_v1  ;;  %v11788_v35 = vsub.f32 %v11786_v48, %v23011_v58 }
 0xa47   :  { %19620 = vmatprep.subr.mxu1 %v22813_v32  ;;  %19632 = vmatprep.subr.mxu0 %v22917_v38 }
 0xa48   :  { %19621 = vmatpush3.msra.mxu1 %v22813_v32  ;;  %19624 = vmatprep.mubr.f32.mxu1 %v22771_v19  ;;  %v11713_v19 = vand.u32 4294901760, %v11712_v55  ;;  %v11775_v32 = vand.u32 4294901760, %v11774_v46  ;;  %v11722_v30 = vsub.f32 %v22980_v1, %v11721_v47  ;;  %v11789_v0 = vand.u32 4294901760, %v11788_v35 }
 0xa49   :  { %19633 = vmatpush3.msra.mxu0 %v22917_v38  ;;  %19622 = vmatprep.subr.mxu1 %v22834_v63 }
 0xa4a   :  { %19634 = vmatprep.subr.mxu0 %v22935_v52  ;;  %19623 = vmatpush3.msra.mxu1 %v22834_v63  ;;  %v11732_v63 = vsub.f32 %v22990_v22, %v11731_v23  ;;  %v11723_v20 = vand.u32 4294901760, %v11722_v30 }
 0xa4b   :  { %19635 = vmatpush3.msra.mxu0 %v22935_v52  ;;  %19625 = vmatmul.mubr.f32.vlgmr.msra.gmra.mxu1 %v22783_v60  ;;  %v11782_v60 = vand.u32 4294901760, %v11781_v41 }
 0xa4c   :  { %19636 = vmatprep.subr.mxu0 %v22956_v28  ;;  %19644 = vmatprep.subr.mxu1 %v11768_v7 }
 0xa4d   :  { %19627 = vmatprep.mubr.f32.mxu1 %v22792_v59  ;;  %19637 = vmatpush3.msra.mxu0 %v22956_v28  ;;  %v11733_v59 = vand.u32 4294901760, %v11732_v63 }
 0xa4e   :  { %19638 = vmatprep.mubr.f32.mxu0 %v11703_v45  ;;  %19645 = vmatpush3.msra.mxu1 %v11768_v7 }
 0xa4f   :  { %19639 = vmatmul.mubr.f32.vlgmr.msra.gmra.mxu0 %v11713_v19  ;;  %19646 = vmatprep.subr.mxu1 %v11775_v32 }
 0xa50   :  { %19658 = vmatprep.subr.mxu0 %v22924_v5  ;;  %19647 = vmatpush3.msra.mxu1 %v11775_v32 }
 0xa51   :  { %19659 = vmatpush3.msra.mxu0 %v22924_v5  ;;  %19628 = vmatmul.mubr.f32.gmra.mxu1 %v22816_v57  ;;  %v12247_v57 = vld [vmem:[#allocation12 + $0x50] sm:$0xff]  ;;  %v23043_v5 = vand.u32 4294901760, %v12248_v10 }
 0xa52   :  { %19648 = vmatprep.subr.mxu1 %v11782_v60  ;;  %19660 = vmatprep.subr.mxu0 %v22950_v29  ;;  %v23051_v53 = vand.u32 4294901760, %v12247_v57 }
 0xa53   :  { %19641 = vmatprep.mubr.f32.mxu0 %v11723_v20  ;;  %19649 = vmatpush3.msra.mxu1 %v11782_v60  ;;  %v23060_v31 = vsub.f32 %v12248_v10, %v23043_v5 }
 0xa54   :  { %19661 = vmatpush3.msra.mxu0 %v22950_v29  ;;  %19650 = vmatprep.subr.mxu1 %v11789_v0  ;;  %v12245_v29 = vld [vmem:[#allocation12 + $0x40] sm:$0xff]  ;;  %v23069_v50 = vsub.f32 %v12247_v57, %v23051_v53 }
 0xa55   :  { %19642 = vmatmul.mubr.f32.gmra.mxu0 %v11733_v59  ;;  %19662 = vmatprep.subr.mxu0 %v22971_v33  ;;  %v23080_v46 = vand.u32 4294901760, %v23060_v31 }
 0xa56   :  { %19651 = vmatpush3.msra.mxu1 %v11789_v0  ;;  %19652 = vmatprep.mubr.f32.mxu1 %v22913_v51  ;;  %v23094_v45 = vand.u32 4294901760, %v23069_v50 }
 0xa57   :  { %19663 = vmatpush3.msra.mxu0 %v22971_v33  ;;  %19653 = vmatmul.mubr.f32.vlgmr.msra.gmra.mxu1 %v22919_v56 }
 0xa58   :  { %19664 = vmatprep.subr.mxu0 %v11786_v48  ;;  %19672 = vmatprep.subr.mxu1 %v22903_v13  ;;  %v12405_v19 = vsub.f32 %v23069_v50, %v23094_v45 }
 0xa59   :  { %19665 = vmatpush3.msra.mxu0 %v11786_v48  ;;  %19666 = vmatprep.mubr.f32.mxu0 %v22938_v39  ;;  %v23062_v48 = vand.u32 4294901760, %v12246_v6 }
 0xa5a   :  { %19673 = vmatpush3.msra.mxu1 %v22903_v13  ;;  %19667 = vmatmul.mubr.f32.vlgmr.msra.gmra.mxu0 %v22947_v62  ;;  %v12398_v62 = vsub.f32 %v23060_v31, %v23080_v46  ;;  %v12406_v30 = vand.u32 4294901760, %v12405_v19 }
 0xa5b   :  { %19674 = vmatprep.subr.mxu1 %v22917_v38  ;;  %19686 = vmatprep.subr.mxu0 %v22959_v34  ;;  %v23049_v8 = vpop.f32.mrf.mxu0  ;;  %v23083_v7 = vsub.f32 %v12246_v6, %v23062_v48 }
 0xa5c   :  { %19655 = vmatprep.mubr.f32.mxu1 %v22952_v44  ;;  %19675 = vmatpush3.msra.mxu1 %v22917_v38 }
 0xa5d   :  { %19687 = vmatpush3.msra.mxu0 %v22959_v34  ;;  %19656 = vmatmul.mubr.f32.gmra.mxu1 %v22964_v26  ;;  %v23057_v33 = vpop.f32.mrf.mxu0  ;;  %v23071_v34 = vand.u32 4294901760, %v12245_v29 }
 0xa5e   :  { %19676 = vmatprep.subr.mxu1 %v22935_v52  ;;  %19688 = vmatprep.subr.mxu0 %v22977_v40 }
 0xa5f   :  { %19669 = vmatprep.mubr.f32.mxu0 %v22980_v1  ;;  %19677 = vmatpush3.msra.mxu1 %v22935_v52  ;;  %v23097_v41 = vsub.f32 %v12245_v29, %v23071_v34 }
 0xa60   :  { %19689 = vmatpush3.msra.mxu0 %v22977_v40  ;;  %19678 = vmatprep.subr.mxu1 %v22956_v28  ;;  %v23075_v55 = vpop.f32.mrf.mxu0 }
 0xa61   :  { %19670 = vmatmul.mubr.f32.gmra.mxu0 %v22990_v22  ;;  %19690 = vmatprep.subr.mxu0 %v22999_v24  ;;  %v23116_v32 = vand.u32 4294901760, %v23097_v41 }
 0xa62   :  { %19679 = vmatpush3.msra.mxu1 %v22956_v28  ;;  %19680 = vmatprep.mubr.f32.mxu1 %v11701_v49  ;;  %v23088_v40 = vpop.f32.mrf.mxu0 }
 0xa63   :  { %19691 = vmatpush3.msra.mxu0 %v22999_v24  ;;  %19681 = vmatmul.mubr.f32.vlgmr.msra.gmra.mxu1 %v11711_v25  ;;  %v23106_v25 = vand.u32 4294901760, %v23083_v7  ;;  %v12419_v22 = vsub.f32 %v23097_v41, %v23116_v32 }
 0xa64   :  { %19692 = vmatprep.subr.mxu0 %v23011_v58  ;;  %19700 = vmatprep.subr.mxu1 %v22903_v13 }
 0xa65   :  { %19693 = vmatpush3.msra.mxu0 %v23011_v58  ;;  %19694 = vmatprep.mubr.f32.mxu0 %v22913_v51  ;;  %v19234_v39 = vpop.f32.mrf.mxu1  ;;  %v19248_v49 = vpop.f32.mrf.mxu0  ;;  %v12412_v1 = vsub.f32 %v23083_v7, %v23106_v25 }
 0xa66   :  { %19701 = vmatpush3.msra.mxu1 %v22903_v13  ;;  %19695 = vmatmul.mubr.f32.vlgmr.msra.gmra.mxu0 %v22919_v56  ;;  %v12399_v13 = vand.u32 4294901760, %v12398_v62 }
 0xa67   :  { %19702 = vmatprep.subr.mxu1 %v22917_v38  ;;  %19683 = vmatprep.mubr.f32.mxu1 %v11721_v47  ;;  %v8665_v24 = vpop.f32.mrf.mxu1  ;;  %v8763_v58 = vpop.f32.mrf.mxu0  ;;  %v12413_v35 = vand.u32 4294901760, %v12412_v1 }
 0xa68   :  { %19703 = vmatpush3.msra.mxu1 %v22917_v38  ;;  %19697 = vmatprep.mubr.f32.mxu0 %v22952_v44  ;;  %v8666_v20 = vadd.f32 %v8665_v24, %v23057_v33 }
 0xa69   :  { %19684 = vmatmul.mubr.f32.gmra.mxu1 %v11731_v23  ;;  %19704 = vmatprep.subr.mxu1 %v22935_v52 }
 0xa6a   :  { %19705 = vmatpush3.msra.mxu1 %v22935_v52  ;;  %19698 = vmatmul.mubr.f32.gmra.mxu0 %v22964_v26  ;;  %v8764_v10 = vadd.f32 %v8763_v58, %v8666_v20 }
 0xa6b   :  { %19706 = vmatprep.subr.mxu1 %v22956_v28  ;;  %19708 = vmatprep.mubr.f32.mxu1 %v22913_v51  ;;  %v19237_v38 = vpop.f32.mrf.mxu1  ;;  %v19251_v47 = vpop.f32.mrf.mxu0  ;;  %v12420_v51 = vand.u32 4294901760, %v12419_v22 }
 0xa6c   :  { %19707 = vmatpush3.msra.mxu1 %v22956_v28  ;;  %19714 = vmatprep.subr.mxu0 %v23043_v5  ;;  %v8684_v57 = vadd.f32 %v19237_v38, %v23075_v55 }
 0xa6d   :  { %19709 = vmatmul.mubr.f32.vlgmr.msra.gmra.mxu1 %v22919_v56  ;;  %v8677_v23 = vpop.f32.mrf.mxu1  ;;  %v8777_v52 = vpop.f32.mrf.mxu0  ;;  %19728 = vmatprep.subr.mxu1 %v12399_v13  ;;  %v8672_v56 = vadd.f32 %v19234_v39, %v23049_v8 }
 0xa6e   :  { %19711 = vmatprep.mubr.f32.mxu1 %v22952_v44  ;;  %19729 = vmatpush3.msra.mxu1 %v12399_v13  ;;  %v8678_v33 = vadd.f32 %v8677_v23, %v23088_v40  ;;  %v8785_v62 = vadd.f32 %v19251_v47, %v8684_v57 }
 0xa6f   :  { %19730 = vmatprep.subr.mxu1 %v12406_v30  ;;  %19715 = vmatpush3.msra.mxu0 %v23043_v5 }
 0xa70   :  { %19731 = vmatpush3.msra.mxu1 %v12406_v30  ;;  %19716 = vmatprep.subr.mxu0 %v23051_v53 }
 0xa71   :  { %19712 = vmatmul.mubr.f32.gmra.mxu1 %v22964_v26  ;;  %v19262_v28 = vpop.f32.mrf.mxu1  ;;  %v19276_v63 = vpop.f32.mrf.mxu0  ;;  %19732 = vmatprep.subr.mxu1 %v12413_v35  ;;  %v8771_v26 = vadd.f32 %v19248_v49, %v8672_v56  ;;  %v8778_v49 = vadd.f32 %v8777_v52, %v8678_v33 }
 0xa72   :  { %19733 = vmatpush3.msra.mxu1 %v12413_v35  ;;  %19717 = vmatpush3.msra.mxu0 %v23051_v53 }
 0xa73   :  { %v8861_v60 = vpop.f32.mrf.mxu1  ;;  %v8968_v44 = vpop.f32.mrf.mxu0  ;;  %19734 = vmatprep.subr.mxu1 %v12420_v51  ;;  %19718 = vmatprep.subr.mxu0 %v23062_v48  ;;  %v8870_v6 = vadd.f32 %v19262_v28, %v8771_v26 }
 0xa74   :  { %19735 = vmatpush3.msra.mxu1 %v12420_v51  ;;  %19719 = vmatpush3.msra.mxu0 %v23062_v48  ;;  %v8862_v39 = vadd.f32 %v8861_v60, %v8764_v10 }
 0xa75   :  { %19756 = vmatprep.subr.mxu1 %v23043_v5  ;;  %19720 = vmatprep.subr.mxu0 %v23071_v34  ;;  %v8975_v24 = vadd.f32 %v19276_v63, %v8870_v6 }
 0xa76   :  { %19721 = vmatpush3.msra.mxu0 %v23071_v34  ;;  %v8969_v1 = vadd.f32 %v8968_v44, %v8862_v39 }
 0xa77   :  { %v19265_v0 = vpop.f32.mrf.mxu1  ;;  %v19279_v59 = vpop.f32.mrf.mxu0  ;;  %19742 = vmatprep.subr.mxu0 %v23060_v31 }
 0xa78   :  { %v8886_v30 = vadd.f32 %v19265_v0, %v8785_v62 }
 0xa79   :  { %v8877_v8 = vpop.f32.mrf.mxu1  ;;  %v8980_v29 = vpop.f32.mrf.mxu0 }
 0xa7a   :  { %v8878_v58 = vadd.f32 %v8877_v8, %v8778_v49  ;;  %v8987_v38 = vadd.f32 %v19279_v59, %v8886_v30 }
 0xa7c   :  { %v8981_v47 = vadd.f32 %v8980_v29, %v8878_v58 }
 0xa7d   :  { %v19290_v19 = vpop.f32.mrf.mxu1  ;;  %v19304_v13 = vpop.f32.mrf.mxu0 }
 0xa7e   :  { %v9068_v22 = vadd.f32 %v19290_v19, %v8975_v24 }
 0xa7f   :  { %v9061_v35 = vpop.f32.mrf.mxu1  ;;  %v23149_v51 = vpop.f32.mrf.mxu0 }
 0xa80   :  { %v9084_v56 = vmul.f32 2.0, %v9068_v22  ;;  %v9062_v55 = vadd.f32 %v9061_v35, %v8969_v1 }
 0xa82   :  { %v9088_v28 = vsub.f32 %v9084_v56, %v22905_v11  ;;  %v9083_v20 = vmul.f32 2.0, %v9062_v55 }
 0xa83   :  { %v19293_v40 = vpop.f32.mrf.mxu1  ;;  %v19307_v23 = vpop.f32.mrf.mxu0 }
 0xa84   :  { %v12253_v63 = vsel %vm153_vm0, %v9088_v28, 0  ;;  %v9087_v52 = vsub.f32 %v9083_v20, %v22897_v14  ;;  %v9080_v60 = vadd.f32 %v19293_v40, %v8987_v38 }
 0xa85   :  { %v23154_v44 = vand.u32 4294901760, %v12253_v63  ;;  %v9073_v26 = vpop.f32.mrf.mxu1  ;;  %v23156_v0 = vpop.f32.mrf.mxu0 }
 0xa86   :  { %v12250_v10 = vsel %vm153_vm0, %v9087_v52, 0  ;;  %v9086_v57 = vmul.f32 2.0, %v9080_v60  ;;  %v9074_v59 = vadd.f32 %v9073_v26, %v8981_v47 }
 0xa87   :  { %v23160_v11 = vsub.f32 %v12253_v63, %v23154_v44  ;;  %v23162_v6 = vand.u32 4294901760, %v12250_v10 }
 0xa88   :  { %v9090_v8 = vsub.f32 %v9086_v57, %v22940_v15  ;;  %v9085_v29 = vmul.f32 2.0, %v9074_v59 }
 0xa89   :  { %v12342_v14 = vand.u32 4294901760, %v23160_v11  ;;  %v23167_v33 = vsub.f32 %v12250_v10, %v23162_v6  ;;  %v19318_v39 = vpop.f32.mrf.mxu1  ;;  %v19332_v62 = vpop.f32.mrf.mxu0  ;;  %19736 = vmatprep.mubr.f32.mxu1 %v23162_v6 }
 0xa8a   :  { %v12259_v24 = vsel %vm153_vm0, %v9090_v8, 0  ;;  %v9089_v19 = vsub.f32 %v9085_v29, %v22926_v16  ;;  %v9315_v49 = vadd.f32 %v19318_v39, %v19304_v13  ;;  %19737 = vmatmul.mubr.f32.vlgmr.msra.gmra.mxu1 %v23154_v44 }
 0xa8b   :  { %v23173_v1 = vand.u32 4294901760, %v12259_v24  ;;  %v23175_v15 = vpop.f32.mrf.mxu1  ;;  %v23177_v30 = vpop.f32.mrf.mxu0  ;;  %19757 = vmatpush3.msra.mxu1 %v23043_v5  ;;  %v12332_v22 = vand.u32 4294901760, %v23167_v33  ;;  %v12343_v35 = vsub.f32 %v23160_v11, %v12342_v14 }
 0xa8c   :  { %v12256_v58 = vsel %vm153_vm0, %v9089_v19, 0  ;;  %v9414_v56 = vadd.f32 %v19332_v62, %v9315_v49  ;;  %19758 = vmatprep.subr.mxu1 %v23051_v53 }
 0xa8d   :  { %v23185_v16 = vsub.f32 %v12259_v24, %v23173_v1  ;;  %v23187_v13 = vand.u32 4294901760, %v12256_v58  ;;  %19759 = vmatpush3.msra.mxu1 %v23051_v53  ;;  %v12333_v55 = vsub.f32 %v23167_v33, %v12332_v22  ;;  %v12344_v63 = vand.u32 4294901760, %v12343_v35 }
 0xa8e   :  { %19760 = vmatprep.subr.mxu1 %v23062_v48 }
 0xa8f   :  { %v12351_v38 = vsub.f32 %v12256_v58, %v23187_v13  ;;  %v19321_v28 = vpop.f32.mrf.mxu1  ;;  %v19335_v20 = vpop.f32.mrf.mxu0  ;;  %19739 = vmatprep.mubr.f32.mxu1 %v23187_v13  ;;  %19761 = vmatpush3.msra.mxu1 %v23062_v48  ;;  %v12334_v40 = vand.u32 4294901760, %v12333_v55  ;;  %v12362_v47 = vand.u32 4294901760, %v23185_v16 }
 0xa90   :  { %v9327_v52 = vadd.f32 %v19321_v28, %v19307_v23  ;;  %19740 = vmatmul.mubr.f32.gmra.mxu1 %v23173_v1  ;;  %19762 = vmatprep.subr.mxu1 %v23071_v34 }
 0xa91   :  { %v23198_v60 = vpop.f32.mrf.mxu1  ;;  %v23200_v26 = vpop.f32.mrf.mxu0  ;;  %19764 = vmatprep.mubr.f32.mxu1 %v12332_v22  ;;  %19722 = vmatprep.mubr.f32.mxu0 %v12334_v40  ;;  %v12352_v10 = vand.u32 4294901760, %v12351_v38  ;;  %v12363_v59 = vsub.f32 %v23185_v16, %v12362_v47 }
 0xa92   :  { %v9428_v57 = vadd.f32 %v19335_v20, %v9327_v52  ;;  %19763 = vmatpush3.msra.mxu1 %v23071_v34  ;;  %19723 = vmatmul.mubr.f32.vlgmr.msra.gmra.mxu0 %v12344_v63 }
 0xa93   :  { %19784 = vmatprep.subr.mxu1 %v23043_v5  ;;  %19743 = vmatpush3.msra.mxu0 %v23060_v31  ;;  %v12353_v23 = vsub.f32 %v12351_v38, %v12352_v10  ;;  %v12364_v24 = vand.u32 4294901760, %v12363_v59 }
 0xa94   :  { %19765 = vmatmul.mubr.f32.vlgmr.msra.gmra.mxu1 %v12342_v14  ;;  %19744 = vmatprep.subr.mxu0 %v23069_v50 }
 0xa95   :  { %v19346_v8 = vpop.f32.mrf.mxu1  ;;  %v19360_v29 = vpop.f32.mrf.mxu0  ;;  %19767 = vmatprep.mubr.f32.mxu1 %v12352_v10  ;;  %19785 = vmatpush3.msra.mxu1 %v23043_v5  ;;  %v12354_v39 = vand.u32 4294901760, %v12353_v23 }
 0xa96   :  { %v9513_v62 = vadd.f32 %v19346_v8, %v9414_v56  ;;  %19786 = vmatprep.subr.mxu1 %v23051_v53  ;;  %19745 = vmatpush3.msra.mxu0 %v23069_v50 }
 0xa97   :  { %v23210_v19 = vpop.f32.mrf.mxu1  ;;  %v23212_v49 = vpop.f32.mrf.mxu0  ;;  %19725 = vmatprep.mubr.f32.mxu0 %v12354_v39  ;;  %19787 = vmatpush3.msra.mxu1 %v23051_v53 }
 0xa98   :  { %v9618_v31 = vadd.f32 %v19360_v29, %v9513_v62  ;;  %19726 = vmatmul.mubr.f32.gmra.mxu0 %v12364_v24  ;;  %19746 = vmatprep.subr.mxu0 %v23083_v7 }
 0xa99   :  { %19768 = vmatmul.mubr.f32.gmra.mxu1 %v12362_v47  ;;  %19788 = vmatprep.subr.mxu1 %v23062_v48 }
 0xa9a   :  { %19747 = vmatpush3.msra.mxu0 %v23083_v7  ;;  %19750 = vmatprep.mubr.f32.mxu0 %v23167_v33 }
 0xa9b   :  { %v19349_v5 = vpop.f32.mrf.mxu1  ;;  %v19363_v50 = vpop.f32.mrf.mxu0  ;;  %19789 = vmatpush3.msra.mxu1 %v23062_v48  ;;  %19792 = vmatprep.mubr.f32.mxu1 %v23162_v6 }
 0xa9c   :  { %v9529_v14 = vadd.f32 %v19349_v5, %v9428_v57  ;;  %19748 = vmatprep.subr.mxu0 %v23097_v41  ;;  %19790 = vmatprep.subr.mxu1 %v23071_v34 }
 0xa9d   :  { %v23223_v53 = vpop.f32.mrf.mxu1  ;;  %v23225_v22 = vpop.f32.mrf.mxu0  ;;  %19749 = vmatpush3.msra.mxu0 %v23097_v41  ;;  %19791 = vmatpush3.msra.mxu1 %v23071_v34 }
 0xa9e   :  { %v9630_v7 = vadd.f32 %v19363_v50, %v9529_v14  ;;  %19751 = vmatmul.mubr.f32.vlgmr.msra.gmra.mxu0 %v23160_v11  ;;  %19770 = vmatprep.subr.mxu0 %v23080_v46 }
 0xa9f   :  { %19793 = vmatmul.mubr.f32.vlgmr.msra.gmra.mxu1 %v23154_v44  ;;  %19753 = vmatprep.mubr.f32.mxu0 %v12351_v38 }
 0xaa0   :  { %19771 = vmatpush3.msra.mxu0 %v23080_v46  ;;  %19795 = vmatprep.mubr.f32.mxu1 %v23187_v13 }
 0xaa1   :  { %v19374_v48 = vpop.f32.mrf.mxu1  ;;  %v19388_v33 = vpop.f32.mrf.mxu0  ;;  %19772 = vmatprep.subr.mxu0 %v23094_v45 }
 0xaa2   :  { %v9711_v35 = vadd.f32 %v19374_v48, %v9618_v31  ;;  %19773 = vmatpush3.msra.mxu0 %v23094_v45 }
 0xaa3   :  { %v23236_v34 = vpop.f32.mrf.mxu1  ;;  %v23238_v41 = vpop.f32.mrf.mxu0  ;;  %19754 = vmatmul.mubr.f32.gmra.mxu0 %v23185_v16  ;;  %19774 = vmatprep.subr.mxu0 %v23106_v25 }
 0xaa4   :  { %v9820_v11 = vadd.f32 %v19388_v33, %v9711_v35  ;;  %19796 = vmatmul.mubr.f32.gmra.mxu1 %v23173_v1  ;;  %19775 = vmatpush3.msra.mxu0 %v23106_v25 }
 0xaa5   :  { %19778 = vmatprep.mubr.f32.mxu0 %v23162_v6  ;;  %19776 = vmatprep.subr.mxu0 %v23116_v32  ;;  %v24355_v6 = vld [vmem:[#allocation33_spill] sm:$0xff] }
 0xaa6   :  { %19777 = vmatpush3.msra.mxu0 %v23116_v32  ;;  %19820 = vmatprep.mubr.f32.mxu1 %v24336_v43 }
 0xaa7   :  { %v19377_v46 = vpop.f32.mrf.mxu1  ;;  %v19391_v45 = vpop.f32.mrf.mxu0  ;;  %19779 = vmatmul.mubr.f32.vlgmr.msra.gmra.mxu0 %v23154_v44 }
 0xaa8   :  { %v9723_v58 = vadd.f32 %v19377_v46, %v9630_v7  ;;  %19781 = vmatprep.mubr.f32.mxu0 %v23187_v13 }
 0xaa9   :  { %v23250_v56 = vpop.f32.mrf.mxu1  ;;  %v23252_v16 = vpop.f32.mrf.mxu0 }
 0xaaa   :  { %v9840_v25 = vadd.f32 %v19391_v45, %v9723_v58 }
 0xaab   :  { %19782 = vmatmul.mubr.f32.gmra.mxu0 %v23173_v1 }
 0xaac   :  { %19806 = vmatprep.mubr.f32.mxu0 %v24355_v6 }
 0xaad   :  { %v19402_v55 = vpop.f32.mrf.mxu1  ;;  %v19416_v32 = vpop.f32.mrf.mxu0 }
 0xaae   :  { %v9937_v38 = vadd.f32 %v19402_v55, %v9820_v11 }
 0xaaf   :  { %v23256_v28 = vpop.f32.mrf.mxu1  ;;  %v23258_v20 = vpop.f32.mrf.mxu0 }
 0xab0   :  { %v10036_v44 = vadd.f32 %v19416_v32, %v9937_v38 }
 0xab3   :  { %v19405_v40 = vpop.f32.mrf.mxu1  ;;  %v19419_v47 = vpop.f32.mrf.mxu0 }
 0xab4   :  { %v9949_v13 = vadd.f32 %v19405_v40, %v9840_v25 }
 0xab5   :  { %v23260_v63 = vpop.f32.mrf.mxu1  ;;  %v23262_v52 = vpop.f32.mrf.mxu0 }
 0xab6   :  { %24356 = vst [vmem:[#allocation41_spill] sm:$0xff] %v23260_v63  ;;  %24357 = vst [vmem:[#allocation38_spill] sm:$0xff] %v23262_v52  ;;  %v10050_v10 = vadd.f32 %v19419_v47, %v9949_v13 }
 0xab9   :  { %v19430_v57 = vpop.f32.mrf.mxu1  ;;  %v19444_v1 = vpop.f32.mrf.mxu0 }
 0xaba   :  { %v10135_v59 = vadd.f32 %v19430_v57, %v10036_v44 }
 0xabb   :  { %v23264_v23 = vpop.f32.mrf.mxu1  ;;  %v23266_v8 = vpop.f32.mrf.mxu0 }
 0xabc   :  { %24358 = vst [vmem:[#allocation37_spill] sm:$0xff] %v23264_v23  ;;  %24359 = vst [vmem:[#allocation43_spill] sm:$0xff] %v23266_v8  ;;  %v10240_v29 = vadd.f32 %v19444_v1, %v10135_v59 }
 0xabf   :  { %v19433_v39 = vpop.f32.mrf.mxu1  ;;  %v19447_v62 = vpop.f32.mrf.mxu0 }
 0xac0   :  { %v10151_v24 = vadd.f32 %v19433_v39, %v10050_v10 }
 0xac1   :  { %v23268_v31 = vpop.f32.mrf.mxu1  ;;  %v23270_v5 = vpop.f32.mrf.mxu0 }
 0xac2   :  { %24360 = vst [vmem:[#allocation39_spill] sm:$0xff] %v23268_v31  ;;  %24361 = vst [vmem:[#allocation44_spill] sm:$0xff] %v23270_v5  ;;  %v10252_v50 = vadd.f32 %v19447_v62, %v10151_v24 }
 0xac5   :  { %v19458_v14 = vpop.f32.mrf.mxu1  ;;  %v19472_v7 = vpop.f32.mrf.mxu0 }
 0xac6   :  { %v10333_v48 = vadd.f32 %v19458_v14, %v10240_v29 }
 0xac7   :  { %v23272_v33 = vpop.f32.mrf.mxu1  ;;  %v10440_v35 = vpop.f32.mrf.mxu0 }
 0xac8   :  { %24362 = vst [vmem:[#allocation42_spill] sm:$0xff] %v23272_v33 }
 0xacb   :  { %v19461_v11 = vpop.f32.mrf.mxu1  ;;  %v19475_v46 = vpop.f32.mrf.mxu0 }
 0xacc   :  { %v10345_v45 = vadd.f32 %v19461_v11, %v10252_v50 }
 0xacd   :  { %v23274_v58 = vpop.f32.mrf.mxu1  ;;  %v10460_v25 = vpop.f32.mrf.mxu0 }
 0xace   :  { %24363 = vst [vmem:[#allocation48_spill] sm:$0xff] %v23274_v58 }
 0xad1   :  { %v19486_v55 = vpop.f32.mrf.mxu1  ;;  %v19500_v32 = vpop.f32.mrf.mxu0 }
 0xad2   :  { %v10568_v38 = vadd.f32 %v19486_v55, %v19472_v7 }
 0xad3   :  { %v10561_v44 = vpop.f32.mrf.mxu1  ;;  %v10659_v40 = vpop.f32.mrf.mxu0 }
 0xad4   :  { %v10667_v47 = vadd.f32 %v19500_v32, %v10568_v38  ;;  %v10562_v50 = vadd.f32 %v10561_v44, %v10440_v35 }
 0xad6   :  { %v10660_v42 = vadd.f32 %v10659_v40, %v10562_v50 }
 0xad7   :  { %v19489_v13 = vpop.f32.mrf.mxu1  ;;  %v19503_v10 = vpop.f32.mrf.mxu0 }
 0xad8   :  { %v10580_v57 = vadd.f32 %v19489_v13, %v19475_v46 }
 0xad9   :  { %v10573_v1 = vpop.f32.mrf.mxu1  ;;  %v10673_v59 = vpop.f32.mrf.mxu0 }
 0xada   :  { %v10681_v29 = vadd.f32 %v19503_v10, %v10580_v57  ;;  %v10574_v2 = vadd.f32 %v10573_v1, %v10460_v25 }
 0xadc   :  { %v10674_v46 = vadd.f32 %v10673_v59, %v10574_v2 }
 0xadd   :  { %v19514_v39 = vpop.f32.mrf.mxu1  ;;  %v19528_v62 = vpop.f32.mrf.mxu0 }
 0xade   :  { %v10766_v24 = vadd.f32 %v19514_v39, %v10667_v47 }
 0xadf   :  { %v10757_v14 = vpop.f32.mrf.mxu1  ;;  %v10864_v6 = vpop.f32.mrf.mxu0 }
 0xae0   :  { %v10871_v11 = vadd.f32 %v19528_v62, %v10766_v24  ;;  %v10758_v32 = vadd.f32 %v10757_v14, %v10660_v42 }
 0xae2   :  { %v10865_v13 = vadd.f32 %v10864_v6, %v10758_v32 }
 0xae3   :  { %v19517_v12 = vpop.f32.mrf.mxu1  ;;  %v19531_v7 = vpop.f32.mrf.mxu0 }
 0xae4   :  { %v10782_v43 = vadd.f32 %v19517_v12, %v10681_v29 }
 0xae5   :  { %v10773_v55 = vpop.f32.mrf.mxu1  ;;  %v10876_v35 = vpop.f32.mrf.mxu0 }
 0xae6   :  { %v10883_v38 = vadd.f32 %v19531_v7, %v10782_v43  ;;  %v10774_v57 = vadd.f32 %v10773_v55, %v10674_v46 }
 0xae8   :  { %v10877_v39 = vadd.f32 %v10876_v35, %v10774_v57 }
 0xae9   :  { %v19542_v3 = vpop.f32.mrf.mxu1  ;;  %v19556_v42 = vpop.f32.mrf.mxu0 }
 0xaea   :  { %v10964_v36 = vadd.f32 %v19542_v3, %v10871_v11 }
 0xaeb   :  { %v10957_v10 = vpop.f32.mrf.mxu1  ;;  %v11079_v6 = vpop.f32.mrf.mxu0 }
 0xaec   :  { %v23276_v18 = vadd.f32 %v10964_v36, %v10333_v48  ;;  %v23278_v47 = vadd.f32 %v10957_v10, %v10865_v13 }
 0xaee   :  { %24364 = vst [vmem:[#allocation45_spill] sm:$0xff] %v23276_v18  ;;  %24365 = vst [vmem:[#allocation40_spill] sm:$0xff] %v23278_v47 }
 0xaef   :  { %v19545_v44 = vpop.f32.mrf.mxu1  ;;  %v19559_v59 = vpop.f32.mrf.mxu0 }
 0xaf0   :  { %v10976_v40 = vadd.f32 %v19545_v44, %v10883_v38 }
 0xaf1   :  { %v10969_v12 = vpop.f32.mrf.mxu1  ;;  %v11099_v48 = vpop.f32.mrf.mxu0 }
 0xaf2   :  { %v23280_v29 = vadd.f32 %v10976_v40, %v10345_v45  ;;  %v23282_v25 = vadd.f32 %v10969_v12, %v10877_v39 }
 0xaf4   :  { %24366 = vst [vmem:[#allocation46_spill] sm:$0xff] %v23280_v29  ;;  %24367 = vst [vmem:[#allocation47_spill] sm:$0xff] %v23282_v25 }
 0xaf5   :  { %v19570_v43 = vpop.f32.mrf.mxu1  ;;  %v19584_v24 = vpop.f32.mrf.mxu0 }
 0xaf7   :  { %v11200_v2 = vpop.f32.mrf.mxu1  ;;  %v11298_v11 = vpop.f32.mrf.mxu0 }
 0xafb   :  { %v19573_v3 = vpop.f32.mrf.mxu1  ;;  %v19587_v45 = vpop.f32.mrf.mxu0 }
 0xafd   :  { %v11212_v1 = vpop.f32.mrf.mxu1  ;;  %v11312_v32 = vpop.f32.mrf.mxu0 }
 0xb01   :  { %v19598_v36 = vpop.f32.mrf.mxu1  ;;  %v19612_v46 = vpop.f32.mrf.mxu0 }
 0xb03   :  { %v11396_v62 = vpop.f32.mrf.mxu1  ;;  %v11503_v10 = vpop.f32.mrf.mxu0 }
 0xb06   :  { %v19601_v14 = vpop.f32.mrf.mxu1  ;;  %v19615_v35 = vpop.f32.mrf.mxu0 }
 0xb08   :  { %v23284_v50 = vpop.f32.mrf.mxu1  ;;  %v11515_v39 = vpop.f32.mrf.mxu0 }
 0xb0b   :  { %v23286_v7 = vpop.f32.mrf.mxu1 }
 0xb0d   :  { %v23288_v55 = vpop.f32.mrf.mxu1 }
 0xb0f   :  { %v19640_v40 = vpop.f32.mrf.mxu0 }
 0xb11   :  { %v23290_v38 = vpop.f32.mrf.mxu1  ;;  %v11705_v54 = vpop.f32.mrf.mxu0 }
 0xb13   :  { %v23292_v13 = vpop.f32.mrf.mxu1 }
 0xb15   :  { %v23302_v21 = vpop.f32.mrf.mxu0 }
 0xb17   :  { %v23294_v57 = vpop.f32.mrf.mxu1  ;;  %v23306_v4 = vpop.f32.mrf.mxu0 }
 0xb19   :  { %v23296_v44 = vpop.f32.mrf.mxu1 }
 0xb1a   :  { %v23310_v37 = vpop.f32.mrf.mxu0 }
 0xb1c   :  { %v23314_v29 = vpop.f32.mrf.mxu0 }
 0xb1d   :  { %v23298_v12 = vpop.f32.mrf.mxu1  ;;  %24372 = vst [vmem:[#allocation53_spill] sm:$0xff] %v23314_v29 }
 0xb1f   :  { %v23300_v17 = vpop.f32.mrf.mxu1 }
 0xb20   :  { %24368 = vst [vmem:[#allocation49_spill] sm:$0xff] %v23300_v17  ;;  %v11213_v17 = vadd.f32 %v11212_v1, %v11099_v48 }
 0xb21   :  { %v23318_v58 = vpop.f32.mrf.mxu0 }
 0xb22   :  { %24374 = vst [vmem:[#allocation55_spill] sm:$0xff] %v23318_v58  ;;  %v11201_v58 = vadd.f32 %v11200_v2, %v11079_v6  ;;  %v11313_v6 = vadd.f32 %v11312_v32, %v11213_v17 }
 0xb23   :  { %v23304_v27 = vpop.f32.mrf.mxu1  ;;  %v23322_v47 = vpop.f32.mrf.mxu0 }
 0xb24   :  { %24369 = vst [vmem:[#allocation50_spill] sm:$0xff] %v23304_v27  ;;  %24376 = vst [vmem:[#allocation57_spill] sm:$0xff] %v23322_v47  ;;  %v11219_v47 = vadd.f32 %v19573_v3, %v19559_v59 }
 0xb25   :  { %v23308_v9 = vpop.f32.mrf.mxu1 }
 0xb26   :  { %24370 = vst [vmem:[#allocation51_spill] sm:$0xff] %v23308_v9  ;;  %v23326_v33 = vpop.f32.mrf.mxu0  ;;  %v11207_v9 = vadd.f32 %v19570_v43, %v19556_v42  ;;  %v11320_v63 = vadd.f32 %v19587_v45, %v11219_v47 }
 0xb27   :  { %24378 = vst [vmem:[#allocation59_spill] sm:$0xff] %v23326_v33 }
 0xb28   :  { %v23330_v8 = vpop.f32.mrf.mxu0  ;;  %v11306_v27 = vadd.f32 %v19584_v24, %v11207_v9  ;;  %v11421_v3 = vadd.f32 %v19601_v14, %v11320_v63 }
 0xb29   :  { %v23312_v61 = vpop.f32.mrf.mxu1  ;;  %24380 = vst [vmem:[#allocation61_spill] sm:$0xff] %v23330_v8  ;;  %v9321_v8 = vadd.f32 %v23198_v60, %v23156_v0 }
 0xb2a   :  { %24371 = vst [vmem:[#allocation52_spill] sm:$0xff] %v23312_v61  ;;  %v23334_v23 = vpop.f32.mrf.mxu0  ;;  %v11405_v43 = vadd.f32 %v19598_v36, %v11306_v27  ;;  %v11413_v27 = vadd.f32 %v23284_v50, %v11313_v6  ;;  %v24390_v6 = vld [vmem:[#allocation38_spill] sm:$0xff] }
 0xb2b   :  { %v23316_v25 = vpop.f32.mrf.mxu1  ;;  %24382 = vst [vmem:[#allocation63_spill] sm:$0xff] %v23334_v23  ;;  %v9421_v9 = vadd.f32 %v23200_v26, %v9321_v8 }
 0xb2c   :  { %24373 = vst [vmem:[#allocation54_spill] sm:$0xff] %v23316_v25  ;;  %v11510_v59 = vadd.f32 %v19612_v46, %v11405_v43  ;;  %v11516_v63 = vadd.f32 %v11515_v39, %v11413_v27  ;;  %v24387_v39 = vld [vmem:[#allocation37_spill] sm:$0xff] }
 0xb2d   :  { %v23320_v18 = vpop.f32.mrf.mxu1  ;;  %v9521_v0 = vadd.f32 %v23223_v53, %v9421_v9 }
 0xb2e   :  { %24375 = vst [vmem:[#allocation56_spill] sm:$0xff] %v23320_v18  ;;  %v9309_v18 = vadd.f32 %v23175_v15, %v23149_v51  ;;  %v11609_v48 = vadd.f32 %v23292_v13, %v11516_v63 }
 0xb2f   :  { %v23324_v5 = vpop.f32.mrf.mxu1  ;;  %v9624_v17 = vadd.f32 %v23225_v22, %v9521_v0 }
 0xb30   :  { %24377 = vst [vmem:[#allocation58_spill] sm:$0xff] %v23324_v5  ;;  %v23338_v5 = vpop.f32.mrf.mxu0 }
 0xb31   :  { %v23328_v31 = vpop.f32.mrf.mxu1  ;;  %v9717_v1 = vadd.f32 %v23250_v56, %v9624_v17  ;;  %v24392_v0 = vld [vmem:[#allocation52_spill] sm:$0xff]  ;;  %v24394_v17 = vld [vmem:[#allocation43_spill] sm:$0xff] }
 0xb32   :  { %24379 = vst [vmem:[#allocation60_spill] sm:$0xff] %v23328_v31  ;;  %v9407_v31 = vadd.f32 %v23177_v30, %v9309_v18 }
 0xb33   :  { %v23332_v52 = vpop.f32.mrf.mxu1  ;;  %v9830_v45 = vadd.f32 %v23252_v16, %v9717_v1 }
 0xb34   :  { %24381 = vst [vmem:[#allocation62_spill] sm:$0xff] %v23332_v52  ;;  %v11299_v52 = vadd.f32 %v11298_v11, %v11201_v58  ;;  %v9505_v29 = vadd.f32 %v23210_v19, %v9407_v31  ;;  %v11603_v58 = vadd.f32 %v23286_v7, %v11510_v59  ;;  %v11522_v31 = vadd.f32 %v19615_v35, %v11421_v3  ;;  %v24386_v35 = vld [vmem:[#allocation50_spill] sm:$0xff]  ;;  %v24391_v59 = vld [vmem:[#allocation57_spill] sm:$0xff] }
 0xb36   :  { %v11397_v51 = vadd.f32 %v11396_v62, %v11299_v52  ;;  %v9612_v18 = vadd.f32 %v23212_v49, %v9505_v29  ;;  %v11615_v49 = vadd.f32 %v23290_v38, %v11522_v31  ;;  %v11716_v53 = vadd.f32 %v19640_v40, %v11603_v58 }
 0xb38   :  { %v11504_v30 = vadd.f32 %v11503_v10, %v11397_v51  ;;  %v9705_v52 = vadd.f32 %v23236_v34, %v9612_v18  ;;  %v11833_v34 = vadd.f32 %v23294_v57, %v11716_v53  ;;  %v11736_v14 = vadd.f32 %v23302_v21, %v11615_v49  ;;  %v24384_v21 = vld [vmem:[#allocation53_spill] sm:$0xff]  ;;  %v24395_v49 = vld [vmem:[#allocation39_spill] sm:$0xff] }
 0xb39   :  { %v24385_v10 = vld [vmem:[#allocation49_spill] sm:$0xff] }
 0xb3a   :  { %v11597_v47 = vadd.f32 %v23288_v55, %v11504_v30  ;;  %v9810_v29 = vadd.f32 %v23238_v41, %v9705_v52  ;;  %v11726_v41 = vadd.f32 %v23306_v4, %v11609_v48  ;;  %v11932_v56 = vadd.f32 %v23310_v37, %v11833_v34 }
 0xb3c   :  { %v11706_v36 = vadd.f32 %v11705_v54, %v11597_v47  ;;  %v9931_v24 = vadd.f32 %v23256_v28, %v9810_v29  ;;  %v11845_v54 = vadd.f32 %v23298_v12, %v11736_v14  ;;  %v24383_v28 = vld [vmem:[#allocation41_spill] sm:$0xff]  ;;  %v11839_v57 = vadd.f32 %v24385_v10, %v11726_v41  ;;  %v24388_v12 = vld [vmem:[#allocation55_spill] sm:$0xff]  ;;  %v24399_v14 = vld [vmem:[#allocation42_spill] sm:$0xff] }
 0xb3d   :  { %v9943_v46 = vadd.f32 %v24383_v28, %v9830_v45  ;;  %v12031_v16 = vadd.f32 %v24386_v35, %v11932_v56  ;;  %v24401_v45 = vld [vmem:[#allocation58_spill] sm:$0xff]  ;;  %v24402_v28 = vld [vmem:[#allocation44_spill] sm:$0xff]  ;;  %v24405_v35 = vld [vmem:[#allocation45_spill] sm:$0xff] }
 0xb3e   :  { %v11827_v22 = vadd.f32 %v23296_v44, %v11706_v36  ;;  %v10029_v38 = vadd.f32 %v23258_v20, %v9931_v24  ;;  %v11946_v37 = vadd.f32 %v24388_v12, %v11845_v54  ;;  %v11939_v18 = vadd.f32 %v24391_v59, %v11839_v57  ;;  %v24398_v36 = vld [vmem:[#allocation56_spill] sm:$0xff]  ;;  %v24407_v12 = vld [vmem:[#allocation62_spill] sm:$0xff] }
 0xb3f   :  { %v10043_v3 = vadd.f32 %v24390_v6, %v9943_v46  ;;  %v24404_v57 = vld [vmem:[#allocation60_spill] sm:$0xff]  ;;  %v24411_v59 = vld [vmem:[#allocation46_spill] sm:$0xff] }
 0xb40   :  { %v11925_v13 = vadd.f32 %v24384_v21, %v11827_v22  ;;  %v10127_v40 = vadd.f32 %v24387_v39, %v10029_v38  ;;  %v12047_v30 = vadd.f32 %v24392_v0, %v11946_v37  ;;  %v24403_v21 = vld [vmem:[#allocation40_spill] sm:$0xff] }
 0xb41   :  { %v10143_v53 = vadd.f32 %v24395_v49, %v10043_v3 }
 0xb42   :  { %v10234_v63 = vadd.f32 %v24394_v17, %v10127_v40  ;;  %v24406_v40 = vld [vmem:[#allocation48_spill] sm:$0xff] }
 0xb43   :  { %v10246_v46 = vadd.f32 %v24402_v28, %v10143_v53 }
 0xb44   :  { %v10327_v22 = vadd.f32 %v24399_v14, %v10234_v63  ;;  %v20377_v14 = vld [vmem:[#allocation3 + $0x38] sm:$0xff] }
 0xb4a   :  { %v19738_v61 = vpop.f32.mrf.mxu1 }
 0xb4c   :  { %v12457_v25 = vpop.f32.mrf.mxu1 }
 0xb50   :  { %v19741_v33 = vpop.f32.mrf.mxu1 }
 0xb52   :  { %v12469_v42 = vpop.f32.mrf.mxu1  ;;  %v19724_v23 = vpop.f32.mrf.mxu0 }
 0xb53   :  { %v12464_v11 = vadd.f32 %v19738_v61, %v19724_v23 }
 0xb54   :  { %v19766_v15 = vpop.f32.mrf.mxu1  ;;  %v12336_v2 = vpop.f32.mrf.mxu0 }
 0xb55   :  { %v12458_v55 = vadd.f32 %v12457_v25, %v12336_v2  ;;  %v24389_v25 = vld [vmem:[#allocation51_spill] sm:$0xff] }
 0xb56   :  { %v12653_v60 = vpop.f32.mrf.mxu1  ;;  %v12023_v43 = vadd.f32 %v24389_v25, %v11925_v13  ;;  %v10979_v13 = vadd.f32 %v24403_v21, %v10327_v22 }
 0xb58   :  { %v19727_v19 = vpop.f32.mrf.mxu0 }
 0xb59   :  { %v19769_v8 = vpop.f32.mrf.mxu1  ;;  %v12476_v44 = vadd.f32 %v19741_v33, %v19727_v19  ;;  %v24393_v33 = vld [vmem:[#allocation59_spill] sm:$0xff] }
 0xb5a   :  { %v12356_v26 = vpop.f32.mrf.mxu0  ;;  %v12136_v19 = vadd.f32 %v24393_v33, %v12031_v16 }
 0xb5b   :  { %v12669_v50 = vpop.f32.mrf.mxu1  ;;  %v12470_v20 = vadd.f32 %v12469_v42, %v12356_v26  ;;  %v24396_v42 = vld [vmem:[#allocation61_spill] sm:$0xff] }
 0xb5c   :  { %v12130_v26 = vadd.f32 %v24396_v42, %v12023_v43  ;;  %v12229_v48 = vadd.f32 %v24398_v36, %v12136_v19 }
 0xb5e   :  { %v19752_v62 = vpop.f32.mrf.mxu0 }
 0xb5f   :  { %v12563_v32 = vadd.f32 %v19752_v62, %v12464_v11  ;;  %v19794_v61 = vpop.f32.mrf.mxu1  ;;  %v24400_v11 = vld [vmem:[#allocation63_spill] sm:$0xff] }
 0xb60   :  { %v12555_v7 = vpop.f32.mrf.mxu0 }
 0xb61   :  { %v12556_v4 = vadd.f32 %v12555_v7, %v12458_v55  ;;  %v12662_v9 = vadd.f32 %v19766_v15, %v12563_v32  ;;  %v12853_v27 = vpop.f32.mrf.mxu1  ;;  %v24397_v15 = vld [vmem:[#allocation54_spill] sm:$0xff]  ;;  %v12148_v7 = vadd.f32 %v24400_v11, %v12047_v30 }
 0xb62   :  { %v12039_v29 = vadd.f32 %v24397_v15, %v11939_v18 }
 0xb63   :  { %v19755_v23 = vpop.f32.mrf.mxu0  ;;  %v12654_v47 = vadd.f32 %v12653_v60, %v12556_v4  ;;  %v12223_v60 = vadd.f32 %v24401_v45, %v12130_v26 }
 0xb64   :  { %v12577_v2 = vadd.f32 %v19755_v23, %v12476_v44  ;;  %v19797_v41 = vpop.f32.mrf.mxu1  ;;  %v12142_v10 = vadd.f32 %v23338_v5, %v12039_v29  ;;  %v20375_v29 = vld [vmem:[#allocation3 + $0x28] sm:$0xff] }
 0xb65   :  { %v12569_v51 = vpop.f32.mrf.mxu0 }
 0xb66   :  { %v12570_v52 = vadd.f32 %v12569_v51, %v12470_v20  ;;  %v12678_v24 = vadd.f32 %v19769_v8, %v12577_v2  ;;  %v12241_v8 = vadd.f32 %v24404_v57, %v12148_v7  ;;  %v12235_v37 = vadd.f32 %v24407_v12, %v12142_v10  ;;  %v12865_v25 = vpop.f32.mrf.mxu1  ;;  %v24409_v2 = vld [vmem:[#allocation47_spill] sm:$0xff] }
 0xb67   :  { %v19780_v58 = vpop.f32.mrf.mxu0  ;;  %v24422_v12 = vld [vmem:[#allocation23_spill] sm:$0xff] }
 0xb68   :  { %v12767_v31 = vadd.f32 %v19780_v58, %v12662_v9  ;;  %v12670_v38 = vadd.f32 %v12669_v50, %v12570_v52  ;;  %v10339_v50 = vadd.f32 %v24406_v40, %v10246_v46  ;;  %v24420_v40 = vld [vmem:[#allocation36_spill] sm:$0xff] }
 0xb69   :  { %v12760_v1 = vpop.f32.mrf.mxu0 }
 0xb6a   :  { %v12860_v34 = vadd.f32 %v19794_v61, %v12767_v31  ;;  %v12761_v62 = vadd.f32 %v12760_v1, %v12654_v47  ;;  %v16810_v61 = vld [vmem:[%s24156_s9] ss:$0 sm:$0xff]  ;;  %v10981_v9 = vadd.f32 %v24409_v2, %v10339_v50  ;;  %v24421_v50 = vld [vmem:[#allocation22_spill] sm:$0xff]  ;;  %v24428_v2 = vld [vmem:[#allocation27_spill] sm:$0xff] }
 0xb6b   :  { %v19783_v54 = vpop.f32.mrf.mxu0 }
 0xb6c   :  { %v12876_v56 = vadd.f32 %v12860_v34, %v12229_v48  ;;  %v12854_v55 = vadd.f32 %v12853_v27, %v12761_v62  ;;  %v12779_v32 = vadd.f32 %v19783_v54, %v12678_v24  ;;  %v20376_v48 = vld [vmem:[#allocation3 + $0x20] sm:$0xff] }
 0xb6d   :  { %v12772_v23 = vpop.f32.mrf.mxu0 }
 0xb6e   :  { %v12880_v16 = vadd.f32 %v12876_v56, %v24405_v35  ;;  %v12875_v44 = vadd.f32 %v12854_v55, %v12223_v60  ;;  %v12872_v4 = vadd.f32 %v19797_v41, %v12779_v32  ;;  %v12773_v39 = vadd.f32 %v12772_v23, %v12670_v38  ;;  %v20378_v60 = vld [vmem:[#allocation3 + $0x30] sm:$0xff]  ;;  %v24418_v35 = vld [vmem:[#allocation34_spill] sm:$0xff] }
 0xb70   :  { %v23394_v43 = vadd.f32 %v16810_v61, %v12880_v16  ;;  %v12879_v5 = vadd.f32 %v12875_v44, %v10979_v13  ;;  %v12878_v51 = vadd.f32 %v12872_v4, %v12241_v8  ;;  %v12866_v20 = vadd.f32 %v12865_v25, %v12773_v39  ;;  %v24419_v4 = vld [vmem:[#allocation35_spill] sm:$0xff]  ;;  %v24424_v25 = vld [vmem:[#allocation25_spill] sm:$0xff] }
 0xb72   :  { %24408 = vst [vmem:[#allocation41_spill] sm:$0xff] %v23394_v43  ;;  %v16812_v6 = vmul.f32 -1.442695, %v23394_v43  ;;  %v23398_v3 = vadd.f32 %v16810_v61, %v12879_v5  ;;  %v12882_v18 = vadd.f32 %v12878_v51, %v24411_v59  ;;  %v12877_v0 = vadd.f32 %v12866_v20, %v12235_v37  ;;  %v24423_v37 = vld [vmem:[#allocation24_spill] sm:$0xff]  ;;  %v24425_v5 = vld [vmem:[#allocation26_spill] sm:$0xff]  ;;  %v24426_v51 = vld [vmem:[#allocation29_spill] sm:$0xff] }
 0xb73   :  { %v24427_v20 = vld [vmem:[#allocation30_spill] sm:$0xff]  ;;  %v24431_v59 = vld [vmem:[#allocation31_spill] sm:$0xff] }
 0xb74   :  { %24410 = vst [vmem:[#allocation53_spill] sm:$0xff] %v23398_v3  ;;  %20339 = vpow2.f32 %v16812_v6  ;;  %v16811_v30 = vmul.f32 -1.442695, %v23398_v3  ;;  %v23402_v27 = vadd.f32 %v16810_v61, %v12882_v18  ;;  %v12881_v58 = vadd.f32 %v12877_v0, %v10981_v9  ;;  %v24429_v9 = vld [vmem:[#allocation28_spill] sm:$0xff]  ;;  %v24430_v6 = vld [vmem:[#allocation21_spill] sm:$0xff] }
 0xb75   :  { %v24432_v18 = vld [vmem:[#allocation32_spill] sm:$0xff]  ;;  %v24433_v0 = vld [vmem:[#allocation33_spill] sm:$0xff] }
 0xb76   :  { %24412 = vst [vmem:[#allocation49_spill] sm:$0xff] %v23402_v27  ;;  %20341 = vpow2.f32 %v16811_v30  ;;  %v16814_v33 = vmul.f32 -1.442695, %v23402_v27  ;;  %v23405_v19 = vadd.f32 %v16810_v61, %v12881_v58 }
 0xb78   :  { %24413 = vst [vmem:[#allocation50_spill] sm:$0xff] %v23405_v19  ;;  %20343 = vpow2.f32 %v16814_v33  ;;  %v16813_v52 = vmul.f32 -1.442695, %v23405_v19 }
 0xb7a   :  { %20345 = vpow2.f32 %v16813_v52 }
 0xb81   :  { %v20340_v31 = vpop.eup %20339 }
 0xb82   :  { %v12907_v47 = vadd.f32 1.0, %v20340_v31 }
 0xb83   :  { %v20342_v17 = vpop.eup %20341 }
 0xb84   :  { %20347 = vrcp.f32 %v12907_v47  ;;  %v12906_v63 = vadd.f32 1.0, %v20342_v17 }
 0xb85   :  { %v20344_v49 = vpop.eup %20343 }
 0xb86   :  { %20349 = vrcp.f32 %v12906_v63  ;;  %v12909_v53 = vadd.f32 1.0, %v20344_v49 }
 0xb87   :  { %v20346_v42 = vpop.eup %20345 }
 0xb88   :  { %20351 = vrcp.f32 %v12909_v53  ;;  %v12908_v26 = vadd.f32 1.0, %v20346_v42 }
 0xb8a   :  { %20353 = vrcp.f32 %v12908_v26 }
 0xb91   :  { %v23408_v15 = vpop.eup %20347 }
 0xb92   :  { %24414 = vst [vmem:[#allocation37_spill] sm:$0xff] %v23408_v15  ;;  %v23411_v1 = vmul.f32 %v20375_v29, %v23408_v15 }
 0xb93   :  { %v23413_v36 = vpop.eup %20349 }
 0xb94   :  { %24415 = vst [vmem:[#allocation55_spill] sm:$0xff] %v23413_v36  ;;  %v23416_v34 = vmul.f32 %v20376_v48, %v23413_v36  ;;  %v23421_v24 = vand.u32 4294901760, %v23411_v1 }
 0xb95   :  { %v23418_v62 = vpop.eup %20351 }
 0xb96   :  { %24416 = vst [vmem:[#allocation51_spill] sm:$0xff] %v23418_v62  ;;  %v23424_v22 = vmul.f32 %v20377_v14, %v23418_v62  ;;  %v23429_v7 = vand.u32 4294901760, %v23416_v34  ;;  %v13071_v54 = vsub.f32 %v23411_v1, %v23421_v24 }
 0xb97   :  { %v23426_v11 = vpop.eup %20353 }
 0xb98   :  { %24417 = vst [vmem:[#allocation38_spill] sm:$0xff] %v23426_v11  ;;  %v23432_v45 = vand.u32 4294901760, %v23424_v22  ;;  %v23435_v41 = vmul.f32 %v20378_v60, %v23426_v11  ;;  %v13078_v32 = vsub.f32 %v23416_v34, %v23429_v7  ;;  %v13072_v46 = vand.u32 4294901760, %v13071_v54 }
 0xb9a   :  { %19798 = vmatprep.subr.mxu0 %v23432_v45  ;;  %v23441_v56 = vand.u32 4294901760, %v23435_v41  ;;  %v13057_v55 = vsub.f32 %v23424_v22, %v23432_v45  ;;  %v13079_v10 = vand.u32 4294901760, %v13078_v32  ;;  %v13073_v61 = vsub.f32 %v13071_v54, %v13072_v46 }
 0xb9b   :  { %19799 = vmatpush3.msra.mxu0 %v23432_v45 }
 0xb9c   :  { %19800 = vmatprep.subr.mxu0 %v23441_v56  ;;  %v13058_v38 = vand.u32 4294901760, %v13057_v55  ;;  %v13064_v28 = vsub.f32 %v23435_v41, %v23441_v56  ;;  %v13080_v16 = vsub.f32 %v13078_v32, %v13079_v10  ;;  %v13074_v44 = vand.u32 4294901760, %v13073_v61 }
 0xb9d   :  { %19801 = vmatpush3.msra.mxu0 %v23441_v56 }
 0xb9e   :  { %19802 = vmatprep.subr.mxu0 %v23421_v24  ;;  %v13059_v21 = vsub.f32 %v13057_v55, %v13058_v38  ;;  %v13065_v13 = vand.u32 4294901760, %v13064_v28  ;;  %v13081_v39 = vand.u32 4294901760, %v13080_v16 }
 0xb9f   :  { %19803 = vmatpush3.msra.mxu0 %v23421_v24 }
 0xba0   :  { %19804 = vmatprep.subr.mxu0 %v23429_v7  ;;  %v13060_v57 = vand.u32 4294901760, %v13059_v21  ;;  %v13066_v8 = vsub.f32 %v13064_v28, %v13065_v13 }
 0xba1   :  { %19805 = vmatpush3.msra.mxu0 %v23429_v7 }
 0xba2   :  { %19812 = vmatprep.subr.mxu1 %v13060_v57  ;;  %19826 = vmatprep.subr.mxu0 %v13057_v55  ;;  %v13067_v23 = vand.u32 4294901760, %v13066_v8 }
 0xba3   :  { %19807 = vmatmul.mubr.f32.vlgmr.msra.gmra.mxu0 %v24418_v35  ;;  %19813 = vmatpush3.msra.mxu1 %v13060_v57 }
 0xba4   :  { %19827 = vmatpush3.msra.mxu0 %v13057_v55  ;;  %19814 = vmatprep.subr.mxu1 %v13067_v23 }
 0xba5   :  { %19828 = vmatprep.subr.mxu0 %v13064_v28  ;;  %19815 = vmatpush3.msra.mxu1 %v13067_v23 }
 0xba6   :  { %19829 = vmatpush3.msra.mxu0 %v13064_v28  ;;  %19809 = vmatprep.mubr.f32.mxu0 %v24419_v4 }
 0xba7   :  { %19816 = vmatprep.subr.mxu1 %v13074_v44  ;;  %19830 = vmatprep.subr.mxu0 %v13071_v54 }
 0xba8   :  { %19810 = vmatmul.mubr.f32.gmra.mxu0 %v24420_v40  ;;  %19817 = vmatpush3.msra.mxu1 %v13074_v44 }
 0xba9   :  { %19831 = vmatpush3.msra.mxu0 %v13071_v54  ;;  %19818 = vmatprep.subr.mxu1 %v13081_v39 }
 0xbaa   :  { %19832 = vmatprep.subr.mxu0 %v13078_v32  ;;  %19819 = vmatpush3.msra.mxu1 %v13081_v39 }
 0xbab   :  { %19833 = vmatpush3.msra.mxu0 %v13078_v32  ;;  %19821 = vmatmul.mubr.f32.vlgmr.msra.gmra.mxu1 %v24421_v50 }
 0xbac   :  { %19834 = vmatprep.mubr.f32.mxu0 %v24422_v12  ;;  %19840 = vmatprep.subr.mxu1 %v23432_v45 }
 0xbad   :  { %19854 = vmatprep.subr.mxu0 %v13058_v38  ;;  %19835 = vmatmul.mubr.f32.vlgmr.msra.gmra.mxu0 %v24423_v37 }
 0xbae   :  { %19841 = vmatpush3.msra.mxu1 %v23432_v45  ;;  %19855 = vmatpush3.msra.mxu0 %v13058_v38 }
 0xbaf   :  { %19842 = vmatprep.subr.mxu1 %v23441_v56  ;;  %19856 = vmatprep.subr.mxu0 %v13065_v13 }
 0xbb0   :  { %19823 = vmatprep.mubr.f32.mxu1 %v24424_v25  ;;  %19843 = vmatpush3.msra.mxu1 %v23441_v56 }
 0xbb1   :  { %19857 = vmatpush3.msra.mxu0 %v13065_v13  ;;  %19824 = vmatmul.mubr.f32.gmra.mxu1 %v24425_v5 }
 0xbb2   :  { %19844 = vmatprep.subr.mxu1 %v23421_v24  ;;  %19858 = vmatprep.subr.mxu0 %v13072_v46 }
 0xbb3   :  { %19837 = vmatprep.mubr.f32.mxu0 %v24426_v51  ;;  %19845 = vmatpush3.msra.mxu1 %v23421_v24 }
 0xbb4   :  { %19859 = vmatpush3.msra.mxu0 %v13072_v46  ;;  %19846 = vmatprep.subr.mxu1 %v23429_v7 }
 0xbb5   :  { %19838 = vmatmul.mubr.f32.gmra.mxu0 %v24427_v20  ;;  %19860 = vmatprep.subr.mxu0 %v13079_v10 }
 0xbb6   :  { %19847 = vmatpush3.msra.mxu1 %v23429_v7  ;;  %19848 = vmatprep.mubr.f32.mxu1 %v24428_v2 }
 0xbb7   :  { %19861 = vmatpush3.msra.mxu0 %v13079_v10  ;;  %19849 = vmatmul.mubr.f32.vlgmr.msra.gmra.mxu1 %v24429_v9 }
 0xbb8   :  { %19868 = vmatprep.subr.mxu1 %v23432_v45  ;;  %19862 = vmatprep.mubr.f32.mxu0 %v24430_v6 }
 0xbb9   :  { %19869 = vmatpush3.msra.mxu1 %v23432_v45  ;;  %19863 = vmatmul.mubr.f32.vlgmr.msra.gmra.mxu0 %v24421_v50 }
 0xbba   :  { %19870 = vmatprep.subr.mxu1 %v23441_v56  ;;  %19851 = vmatprep.mubr.f32.mxu1 %v24431_v59 }
 0xbbb   :  { %19871 = vmatpush3.msra.mxu1 %v23441_v56  ;;  %19865 = vmatprep.mubr.f32.mxu0 %v24424_v25 }
 0xbbc   :  { %19852 = vmatmul.mubr.f32.gmra.mxu1 %v24432_v18  ;;  %19872 = vmatprep.subr.mxu1 %v23421_v24 }
 0xbbd   :  { %19873 = vmatpush3.msra.mxu1 %v23421_v24  ;;  %19866 = vmatmul.mubr.f32.gmra.mxu0 %v24425_v5 }
 0xbbe   :  { %19874 = vmatprep.subr.mxu1 %v23429_v7  ;;  %19876 = vmatprep.mubr.f32.mxu1 %v24430_v6 }
 0xbbf   :  { %19875 = vmatpush3.msra.mxu1 %v23429_v7  ;;  %19890 = vmatprep.mubr.f32.mxu0 %v24433_v0 }
 0xbc0   :  { %19877 = vmatmul.mubr.f32.vlgmr.msra.gmra.mxu1 %v24421_v50 }
 0xbc1   :  { %19879 = vmatprep.mubr.f32.mxu1 %v24424_v25 }
 0xbc4   :  { %19880 = vmatmul.mubr.f32.gmra.mxu1 %v24425_v5 }
 0xbc5   :  { %19904 = vmatprep.mubr.f32.mxu1 %v24430_v6 }
 0xc63   :  { %v19808_v30 = vpop.f32.mrf.mxu0 }
 0xc65   :  { %v12997_v58 = vpop.f32.mrf.mxu0 }
 0xc68   :  { %v19811_v33 = vpop.f32.mrf.mxu0 }
 0xc6a   :  { %v13017_v52 = vpop.f32.mrf.mxu0 }
 0xc6b   :  { %v19822_v31 = vpop.f32.mrf.mxu1 }
 0xc6c   :  { %v13125_v42 = vadd.f32 %v19822_v31, %v19808_v30 }
 0xc6d   :  { %v13118_v47 = vpop.f32.mrf.mxu1  ;;  %v19836_v17 = vpop.f32.mrf.mxu0 }
 0xc6e   :  { %v13119_v29 = vadd.f32 %v13118_v47, %v12997_v58  ;;  %v13224_v14 = vadd.f32 %v19836_v17, %v13125_v42 }
 0xc6f   :  { %v13216_v49 = vpop.f32.mrf.mxu0 }
 0xc70   :  { %v13217_v54 = vadd.f32 %v13216_v49, %v13119_v29 }
 0xc71   :  { %v19825_v63 = vpop.f32.mrf.mxu1 }
 0xc72   :  { %v13137_v7 = vadd.f32 %v19825_v63, %v19811_v33 }
 0xc73   :  { %v13130_v53 = vpop.f32.mrf.mxu1 }
 0xc74   :  { %v13131_v56 = vadd.f32 %v13130_v53, %v13017_v52 }
 0xc75   :  { %v19839_v26 = vpop.f32.mrf.mxu0 }
 0xc76   :  { %v13238_v28 = vadd.f32 %v19839_v26, %v13137_v7 }
 0xc77   :  { %v13230_v48 = vpop.f32.mrf.mxu0  ;;  %v19850_v24 = vpop.f32.mrf.mxu1 }
 0xc78   :  { %v13323_v55 = vadd.f32 %v19850_v24, %v13224_v14  ;;  %v13231_v10 = vadd.f32 %v13230_v48, %v13131_v56 }
 0xc79   :  { %v13314_v45 = vpop.f32.mrf.mxu1  ;;  %v19864_v60 = vpop.f32.mrf.mxu0 }
 0xc7a   :  { %v13315_v46 = vadd.f32 %v13314_v45, %v13217_v54  ;;  %v13428_v57 = vadd.f32 %v19864_v60, %v13323_v55 }
 0xc7b   :  { %v13421_v32 = vpop.f32.mrf.mxu0 }
 0xc7c   :  { %v19853_v38 = vpop.f32.mrf.mxu1  ;;  %v13422_v23 = vadd.f32 %v13421_v32, %v13315_v46 }
 0xc7d   :  { %v19867_v13 = vpop.f32.mrf.mxu0  ;;  %v13339_v8 = vadd.f32 %v19853_v38, %v13238_v28 }
 0xc7e   :  { %v13330_v21 = vpop.f32.mrf.mxu1 }
 0xc7f   :  { %v13331_v16 = vadd.f32 %v13330_v21, %v13231_v10  ;;  %v13433_v39 = vpop.f32.mrf.mxu0  ;;  %v13440_v30 = vadd.f32 %v19867_v13, %v13339_v8 }
 0xc80   :  { %v19878_v61 = vpop.f32.mrf.mxu1 }
 0xc81   :  { %v23496_v44 = vadd.f32 %v19878_v61, %v13428_v57  ;;  %v13434_v31 = vadd.f32 %v13433_v39, %v13331_v16 }
 0xc82   :  { %v13514_v0 = vpop.f32.mrf.mxu1 }
 0xc83   :  { %v13515_v58 = vadd.f32 %v13514_v0, %v13422_v23  ;;  %v23499_v33 = vand.u32 4294901760, %v23496_v44  ;;  %v14164_v23 = vld [vmem:[#allocation14 + $0x28] sm:$0xff] }
 0xc84   :  { %v19881_v52 = vpop.f32.mrf.mxu1  ;;  %v23574_v39 = vand.u32 4294901760, %v14164_v23 }
 0xc85   :  { %v23501_v47 = vadd.f32 %v19881_v52, %v13440_v30  ;;  %v23503_v17 = vand.u32 4294901760, %v13515_v58  ;;  %v13685_v42 = vsub.f32 %v23496_v44, %v23499_v33  ;;  %v14163_v30 = vld [vmem:[#allocation14 + $0x20] sm:$0xff] }
 0xc86   :  { %v13526_v63 = vpop.f32.mrf.mxu1 }
 0xc87   :  { %v23506_v49 = vand.u32 4294901760, %v23501_v47  ;;  %v13527_v53 = vadd.f32 %v13526_v63, %v13434_v31  ;;  %v13692_v48 = vsub.f32 %v13515_v58, %v23503_v17  ;;  %v13686_v7 = vand.u32 4294901760, %v13685_v42 }
 0xc88   :  { %v14177_v16 = vsel %vm153_vm0, %v23501_v47, 0  ;;  %v23595_v63 = vand.u32 4294901760, %v14163_v30 }
 0xc89   :  { %v13671_v26 = vsub.f32 %v23501_v47, %v23506_v49  ;;  %v23512_v29 = vand.u32 4294901760, %v13527_v53  ;;  %19882 = vmatprep.subr.mxu0 %v23506_v49  ;;  %v23522_v54 = vand.u32 4294901760, %v13692_v48  ;;  %v13687_v32 = vsub.f32 %v13685_v42, %v13686_v7 }
 0xc8a   :  { %19883 = vmatpush3.msra.mxu0 %v23506_v49  ;;  %v23580_v52 = vand.u32 4294901760, %v14177_v16 }
 0xc8b   :  { %v13678_v24 = vsub.f32 %v13527_v53, %v23512_v29  ;;  %19884 = vmatprep.subr.mxu0 %v23512_v29  ;;  %v13672_v14 = vand.u32 4294901760, %v13671_v26  ;;  %v13694_v28 = vsub.f32 %v13692_v48, %v23522_v54  ;;  %v13688_v46 = vand.u32 4294901760, %v13687_v32 }
 0xc8c   :  { %19885 = vmatpush3.msra.mxu0 %v23512_v29 }
 0xc8d   :  { %19886 = vmatprep.subr.mxu0 %v23499_v33  ;;  %v13673_v45 = vsub.f32 %v13671_v26, %v13672_v14  ;;  %v13679_v60 = vand.u32 4294901760, %v13678_v24  ;;  %v13695_v21 = vand.u32 4294901760, %v13694_v28 }
 0xc8e   :  { %19887 = vmatpush3.msra.mxu0 %v23499_v33 }
 0xc8f   :  { %19888 = vmatprep.subr.mxu0 %v23503_v17  ;;  %v13674_v56 = vand.u32 4294901760, %v13673_v45  ;;  %v13680_v55 = vsub.f32 %v13678_v24, %v13679_v60 }
 0xc90   :  { %19889 = vmatpush3.msra.mxu0 %v23503_v17 }
 0xc91   :  { %19891 = vmatmul.mubr.f32.vlgmr.msra.gmra.mxu0 %v24418_v35  ;;  %19896 = vmatprep.subr.mxu1 %v13674_v56  ;;  %v13681_v38 = vand.u32 4294901760, %v13680_v55  ;;  %v14168_v35 = vsel %vm153_vm0, %v13515_v58, 0 }
 0xc92   :  { %19910 = vmatprep.subr.mxu0 %v13671_v26  ;;  %19897 = vmatpush3.msra.mxu1 %v13674_v56  ;;  %v23538_v13 = vand.u32 4294901760, %v14168_v35 }
 0xc93   :  { %19911 = vmatpush3.msra.mxu0 %v13671_v26  ;;  %19898 = vmatprep.subr.mxu1 %v13681_v38  ;;  %v23607_v26 = vsub.f32 %v14177_v16, %v23580_v52  ;;  %v14159_v16 = vld [vmem:[#allocation14 + $0x8] sm:$0xff] }
 0xc94   :  { %19912 = vmatprep.subr.mxu0 %v13678_v24  ;;  %19893 = vmatprep.mubr.f32.mxu0 %v24419_v4  ;;  %v14166_v4 = vld [vmem:[#allocation14 + $0x38] sm:$0xff]  ;;  %v23552_v8 = vsub.f32 %v14168_v35, %v23538_v13 }
 0xc95   :  { %19899 = vmatpush3.msra.mxu1 %v13681_v38  ;;  %19913 = vmatpush3.msra.mxu0 %v13678_v24  ;;  %v23545_v10 = vand.u32 4294901760, %v14166_v4  ;;  %v14280_v45 = vand.u32 4294901760, %v23607_v26 }
 0xc96   :  { %19894 = vmatmul.mubr.f32.gmra.mxu0 %v24420_v40  ;;  %19900 = vmatprep.subr.mxu1 %v13688_v46  ;;  %v14171_v40 = vsel %vm153_vm0, %v23496_v44, 0  ;;  %v14250_v0 = vand.u32 4294901760, %v23552_v8 }
 0xc97   :  { %19914 = vmatprep.subr.mxu0 %v13685_v42  ;;  %19901 = vmatpush3.msra.mxu1 %v13688_v46  ;;  %v23547_v57 = vand.u32 4294901760, %v14171_v40  ;;  %v14281_v38 = vsub.f32 %v23607_v26, %v14280_v45 }
 0xc98   :  { %19915 = vmatpush3.msra.mxu0 %v13685_v42  ;;  %19902 = vmatprep.subr.mxu1 %v13695_v21  ;;  %v14328_v42 = vsub.f32 %v14164_v23, %v23574_v39 }
 0xc99   :  { %19916 = vmatprep.subr.mxu0 %v13692_v48  ;;  %19903 = vmatpush3.msra.mxu1 %v13695_v21  ;;  %v23568_v44 = vsub.f32 %v14171_v40, %v23547_v57  ;;  %v14797_v21 = vsel %vm153_vm0, %v23411_v1, 0  ;;  %v14800_v40 = vsel %vm153_vm0, %v23435_v41, 0 }
 0xc9a   :  { %19917 = vmatpush3.msra.mxu0 %v13692_v48  ;;  %19918 = vmatprep.mubr.f32.mxu0 %v24422_v12  ;;  %v14165_v12 = vld [vmem:[#allocation14 + $0x30] sm:$0xff] }
 0xc9b   :  { %19905 = vmatmul.mubr.f32.vlgmr.msra.gmra.mxu1 %v24421_v50  ;;  %19919 = vmatmul.mubr.f32.vlgmr.msra.gmra.mxu0 %v24423_v37  ;;  %v14174_v37 = vsel %vm153_vm0, %v13527_v53, 0  ;;  %v14260_v47 = vand.u32 4294901760, %v23568_v44 }
 0xc9c   :  { %19924 = vmatprep.subr.mxu1 %v23506_v49  ;;  %19938 = vmatprep.subr.mxu0 %v13672_v14  ;;  %v23557_v61 = vand.u32 4294901760, %v14174_v37 }
 0xc9d   :  { %19925 = vmatpush3.msra.mxu1 %v23506_v49  ;;  %19939 = vmatpush3.msra.mxu0 %v13672_v14  ;;  %v14261_v24 = vsub.f32 %v23568_v44, %v14260_v47 }
 0xc9e   :  { %19926 = vmatprep.subr.mxu1 %v23512_v29  ;;  %19940 = vmatprep.subr.mxu0 %v13679_v60  ;;  %v23583_v31 = vsub.f32 %v14174_v37, %v23557_v61 }
 0xc9f   :  { %19907 = vmatprep.mubr.f32.mxu1 %v24424_v25  ;;  %19921 = vmatprep.mubr.f32.mxu0 %v24426_v51  ;;  %v23555_v51 = vand.u32 4294901760, %v14165_v12 }
 0xca0   :  { %19927 = vmatpush3.msra.mxu1 %v23512_v29  ;;  %19941 = vmatpush3.msra.mxu0 %v13679_v60 }
 0xca1   :  { %19908 = vmatmul.mubr.f32.gmra.mxu1 %v24425_v5  ;;  %19922 = vmatmul.mubr.f32.gmra.mxu0 %v24427_v20  ;;  %v23565_v20 = vsub.f32 %v14166_v4, %v23545_v10  ;;  %v23578_v58 = vsub.f32 %v14165_v12, %v23555_v51  ;;  %v14160_v4 = vld [vmem:[#allocation14 + $0x10] sm:$0xff]  ;;  %v23679_v12 = vand.u32 4294901760, %v14797_v21 }
 0xca2   :  { %19928 = vmatprep.subr.mxu1 %v23499_v33  ;;  %19942 = vmatprep.subr.mxu0 %v13686_v7  ;;  %v23689_v23 = vand.u32 4294901760, %v14160_v4 }
 0xca3   :  { %19929 = vmatpush3.msra.mxu1 %v23499_v33  ;;  %19943 = vmatpush3.msra.mxu0 %v13686_v7  ;;  %v23603_v53 = vand.u32 4294901760, %v23578_v58  ;;  %v23626_v7 = vand.u32 4294901760, %v14328_v42 }
 0xca4   :  { %19930 = vmatprep.subr.mxu1 %v23503_v17  ;;  %19944 = vmatprep.subr.mxu0 %v23522_v54 }
 0xca5   :  { %19931 = vmatpush3.msra.mxu1 %v23503_v17  ;;  %19932 = vmatprep.mubr.f32.mxu1 %v24428_v2  ;;  %v23590_v2 = vand.u32 4294901760, %v23565_v20  ;;  %v14323_v14 = vsub.f32 %v23578_v58, %v23603_v53  ;;  %v14330_v55 = vsub.f32 %v14328_v42, %v23626_v7 }
 0xca6   :  { %19945 = vmatpush3.msra.mxu0 %v23522_v54  ;;  %19946 = vmatprep.mubr.f32.mxu0 %v24430_v6  ;;  %v14262_v54 = vand.u32 4294901760, %v14261_v24 }
 0xca7   :  { %19933 = vmatmul.mubr.f32.vlgmr.msra.gmra.mxu1 %v24429_v9  ;;  %19947 = vmatmul.mubr.f32.vlgmr.msra.gmra.mxu0 %v24421_v50  ;;  %v14251_v9 = vsub.f32 %v23552_v8, %v14250_v0  ;;  %v14316_v48 = vsub.f32 %v23565_v20, %v23590_v2 }
 0xca8   :  { %19952 = vmatprep.subr.mxu1 %v23506_v49  ;;  %19966 = vmatprep.subr.mxu0 %v23545_v10 }
 0xca9   :  { %19953 = vmatpush3.msra.mxu1 %v23506_v49  ;;  %19967 = vmatpush3.msra.mxu0 %v23545_v10  ;;  %v14270_v49 = vand.u32 4294901760, %v23583_v31  ;;  %v14317_v60 = vand.u32 4294901760, %v14316_v48 }
 0xcaa   :  { %19954 = vmatprep.subr.mxu1 %v23512_v29  ;;  %19968 = vmatprep.subr.mxu0 %v23555_v51 }
 0xcab   :  { %19935 = vmatprep.mubr.f32.mxu1 %v24431_v59  ;;  %19949 = vmatprep.mubr.f32.mxu0 %v24424_v25  ;;  %v14335_v59 = vsub.f32 %v14163_v30, %v23595_v63 }
 0xcac   :  { %19955 = vmatpush3.msra.mxu1 %v23512_v29  ;;  %19969 = vmatpush3.msra.mxu0 %v23555_v51  ;;  %v14252_v29 = vand.u32 4294901760, %v14251_v9  ;;  %v14158_v9 = vld [vmem:[#allocation14] sm:$0xff] }
 0xcad   :  { %19936 = vmatmul.mubr.f32.gmra.mxu1 %v24432_v18  ;;  %19950 = vmatmul.mubr.f32.gmra.mxu0 %v24425_v5  ;;  %v14271_v18 = vsub.f32 %v23583_v31, %v14270_v49  ;;  %v23637_v56 = vand.u32 4294901760, %v14335_v59 }
 0xcae   :  { %19956 = vmatprep.subr.mxu1 %v23499_v33  ;;  %19970 = vmatprep.subr.mxu0 %v23574_v39 }
 0xcaf   :  { %19957 = vmatpush3.msra.mxu1 %v23499_v33  ;;  %19971 = vmatpush3.msra.mxu0 %v23574_v39  ;;  %v14324_v33 = vand.u32 4294901760, %v14323_v14  ;;  %v14272_v32 = vand.u32 4294901760, %v14271_v18 }
 0xcb0   :  { %19974 = vmatprep.mubr.f32.mxu0 %v14252_v29  ;;  %19958 = vmatprep.subr.mxu1 %v23503_v17 }
 0xcb1   :  { %19972 = vmatprep.subr.mxu0 %v23595_v63  ;;  %19959 = vmatpush3.msra.mxu1 %v23503_v17  ;;  %v14331_v17 = vand.u32 4294901760, %v14330_v55 }
 0xcb2   :  { %19960 = vmatprep.mubr.f32.mxu1 %v24430_v6  ;;  %19973 = vmatpush3.msra.mxu0 %v23595_v63  ;;  %v14337_v6 = vsub.f32 %v14335_v59, %v23637_v56 }
 0xcb3   :  { %19961 = vmatmul.mubr.f32.vlgmr.msra.gmra.mxu1 %v24421_v50  ;;  %19975 = vmatmul.mubr.f32.vlgmr.msra.gmra.mxu0 %v14262_v54  ;;  %v14282_v50 = vand.u32 4294901760, %v14281_v38 }
 0xcb4   :  { %19980 = vmatprep.subr.mxu1 %v14317_v60  ;;  %19994 = vmatprep.subr.mxu0 %v23565_v20  ;;  %v14338_v28 = vand.u32 4294901760, %v14337_v6 }
 0xcb5   :  { %19977 = vmatprep.mubr.f32.mxu0 %v14272_v32  ;;  %19981 = vmatpush3.msra.mxu1 %v14317_v60 }
 0xcb6   :  { %19995 = vmatpush3.msra.mxu0 %v23565_v20  ;;  %19982 = vmatprep.subr.mxu1 %v14324_v33  ;;  %v23691_v20 = vand.u32 4294901760, %v14800_v40 }
 0xcb7   :  { %19996 = vmatprep.subr.mxu0 %v23578_v58  ;;  %19963 = vmatprep.mubr.f32.mxu1 %v24424_v25  ;;  %v14794_v25 = vsel %vm153_vm0, %v23416_v34, 0 }
 0xcb8   :  { %19983 = vmatpush3.msra.mxu1 %v14324_v33  ;;  %19997 = vmatpush3.msra.mxu0 %v23578_v58  ;;  %v23665_v46 = vand.u32 4294901760, %v14794_v25  ;;  %v14803_v58 = vsel %vm153_vm0, %v23424_v22, 0 }
 0xcb9   :  { %19964 = vmatmul.mubr.f32.gmra.mxu1 %v24425_v5  ;;  %19978 = vmatmul.mubr.f32.gmra.mxu0 %v14282_v50  ;;  %v14161_v5 = vld [vmem:[#allocation14 + $0x18] sm:$0xff]  ;;  %v23717_v48 = vand.u32 4294901760, %v14803_v58  ;;  %v15422_v50 = vld [vmem:[#allocation14 + $0x50] sm:$0xff] }
 0xcba   :  { %19984 = vmatprep.subr.mxu1 %v14331_v17  ;;  %19998 = vmatprep.subr.mxu0 %v14328_v42  ;;  %v23673_v35 = vand.u32 4294901760, %v14161_v5  ;;  %v23684_v37 = vsub.f32 %v14794_v25, %v23665_v46  ;;  %v15420_v25 = vld [vmem:[#allocation14 + $0x40] sm:$0xff] }
 0xcbb   :  { %19985 = vmatpush3.msra.mxu1 %v14331_v17  ;;  %19988 = vmatprep.mubr.f32.mxu1 %v23538_v13  ;;  %v23742_v14 = vsub.f32 %v14803_v58, %v23717_v48 }
 0xcbc   :  { %19999 = vmatpush3.msra.mxu0 %v14328_v42  ;;  %20002 = vmatprep.mubr.f32.mxu0 %v23552_v8  ;;  %v23696_v30 = vsub.f32 %v14161_v5, %v23673_v35  ;;  %v23703_v8 = vsub.f32 %v14797_v21, %v23679_v12  ;;  %v14947_v42 = vsub.f32 %v14160_v4, %v23689_v23 }
 0xcbd   :  { %19986 = vmatprep.subr.mxu1 %v14338_v28  ;;  %20000 = vmatprep.subr.mxu0 %v14335_v59  ;;  %v14906_v54 = vand.u32 4294901760, %v23742_v14 }
 0xcbe   :  { %19987 = vmatpush3.msra.mxu1 %v14338_v28  ;;  %20001 = vmatpush3.msra.mxu0 %v14335_v59  ;;  %v23722_v24 = vand.u32 4294901760, %v23696_v30  ;;  %v15421_v28 = vld [vmem:[#allocation14 + $0x48] sm:$0xff] }
 0xcbf   :  { %19989 = vmatmul.mubr.f32.vlgmr.msra.gmra.mxu1 %v23547_v57  ;;  %20003 = vmatmul.mubr.f32.vlgmr.msra.gmra.mxu0 %v23568_v44  ;;  %v23727_v44 = vand.u32 4294901760, %v14158_v9  ;;  %v14907_v38 = vsub.f32 %v23742_v14, %v14906_v54  ;;  %v23833_v21 = vand.u32 4294901760, %v15421_v28 }
 0xcc0   :  { %20008 = vmatprep.subr.mxu1 %v23545_v10  ;;  %20022 = vmatprep.subr.mxu0 %v23590_v2 }
 0xcc1   :  { %19991 = vmatprep.mubr.f32.mxu1 %v23557_v61  ;;  %20005 = vmatprep.mubr.f32.mxu0 %v23583_v31  ;;  %v14961_v18 = vsub.f32 %v14158_v9, %v23727_v44 }
 0xcc2   :  { %20009 = vmatpush3.msra.mxu1 %v23545_v10  ;;  %20023 = vmatpush3.msra.mxu0 %v23590_v2  ;;  %v14876_v2 = vand.u32 4294901760, %v23684_v37 }
 0xcc3   :  { %20010 = vmatprep.subr.mxu1 %v23555_v51  ;;  %20024 = vmatprep.subr.mxu0 %v23603_v53 }
 0xcc4   :  { %20011 = vmatpush3.msra.mxu1 %v23555_v51  ;;  %20025 = vmatpush3.msra.mxu0 %v23603_v53  ;;  %v23714_v53 = vsub.f32 %v14800_v40, %v23691_v20  ;;  %v14877_v59 = vsub.f32 %v23684_v37, %v14876_v2 }
 0xcc5   :  { %19992 = vmatmul.mubr.f32.gmra.mxu1 %v23580_v52  ;;  %20006 = vmatmul.mubr.f32.gmra.mxu0 %v23607_v26 }
 0xcc6   :  { %20012 = vmatprep.subr.mxu1 %v23574_v39  ;;  %20026 = vmatprep.subr.mxu0 %v23626_v7  ;;  %v14896_v31 = vand.u32 4294901760, %v23714_v53 }
 0xcc7   :  { %20013 = vmatpush3.msra.mxu1 %v23574_v39  ;;  %20016 = vmatprep.mubr.f32.mxu1 %v14250_v0  ;;  %v23707_v0 = vand.u32 4294901760, %v14159_v16 }
 0xcc8   :  { %20027 = vmatpush3.msra.mxu0 %v23626_v7  ;;  %20030 = vmatprep.mubr.f32.mxu0 %v23538_v13  ;;  %v14897_v26 = vsub.f32 %v23714_v53, %v14896_v31 }
 0xcc9   :  { %20014 = vmatprep.subr.mxu1 %v23595_v63  ;;  %20028 = vmatprep.subr.mxu0 %v23637_v56  ;;  %v14954_v29 = vsub.f32 %v14159_v16, %v23707_v0 }
 0xcca   :  { %20015 = vmatpush3.msra.mxu1 %v23595_v63  ;;  %20029 = vmatpush3.msra.mxu0 %v23637_v56  ;;  %v14898_v55 = vand.u32 4294901760, %v14897_v26 }
 0xccb   :  { %20017 = vmatmul.mubr.f32.vlgmr.msra.gmra.mxu1 %v14260_v47  ;;  %20031 = vmatmul.mubr.f32.vlgmr.msra.gmra.mxu0 %v23547_v57  ;;  %v14886_v47 = vand.u32 4294901760, %v23703_v8  ;;  %v23757_v60 = vand.u32 4294901760, %v14954_v29 }
 0xccc   :  { %20036 = vmatprep.subr.mxu1 %v23545_v10  ;;  %20050 = vmatprep.subr.mxu0 %v23673_v35 }
 0xccd   :  { %20019 = vmatprep.mubr.f32.mxu1 %v14270_v49  ;;  %20033 = vmatprep.mubr.f32.mxu0 %v23557_v61  ;;  %v23739_v49 = vand.u32 4294901760, %v14947_v42  ;;  %v14887_v7 = vsub.f32 %v23703_v8, %v14886_v47 }
 0xcce   :  { %20037 = vmatpush3.msra.mxu1 %v23545_v10  ;;  %20051 = vmatpush3.msra.mxu0 %v23673_v35  ;;  %v14942_v10 = vsub.f32 %v23696_v30, %v23722_v24 }
 0xccf   :  { %20038 = vmatprep.subr.mxu1 %v23555_v51  ;;  %20052 = vmatprep.subr.mxu0 %v23689_v23  ;;  %v14888_v33 = vand.u32 4294901760, %v14887_v7 }
 0xcd0   :  { %20039 = vmatpush3.msra.mxu1 %v23555_v51  ;;  %20053 = vmatpush3.msra.mxu0 %v23689_v23  ;;  %v14878_v51 = vand.u32 4294901760, %v14877_v59  ;;  %v14943_v56 = vand.u32 4294901760, %v14942_v10 }
 0xcd1   :  { %20020 = vmatmul.mubr.f32.gmra.mxu1 %v14280_v45  ;;  %20034 = vmatmul.mubr.f32.gmra.mxu0 %v23580_v52  ;;  %v14949_v45 = vsub.f32 %v14947_v42, %v23739_v49 }
 0xcd2   :  { %20040 = vmatprep.subr.mxu1 %v23574_v39  ;;  %20054 = vmatprep.subr.mxu0 %v23707_v0 }
 0xcd3   :  { %20041 = vmatpush3.msra.mxu1 %v23574_v39  ;;  %20044 = vmatprep.mubr.f32.mxu1 %v23538_v13  ;;  %v14962_v39 = vand.u32 4294901760, %v14961_v18  ;;  %v14956_v13 = vsub.f32 %v14954_v29, %v23757_v60  ;;  %v14950_v32 = vand.u32 4294901760, %v14949_v45 }
 0xcd4   :  { %20055 = vmatpush3.msra.mxu0 %v23707_v0  ;;  %20058 = vmatprep.mubr.f32.mxu0 %v14878_v51 }
 0xcd5   :  { %20042 = vmatprep.subr.mxu1 %v23595_v63  ;;  %20056 = vmatprep.subr.mxu0 %v23727_v44  ;;  %v14957_v6 = vand.u32 4294901760, %v14956_v13 }
 0xcd6   :  { %20043 = vmatpush3.msra.mxu1 %v23595_v63  ;;  %20057 = vmatpush3.msra.mxu0 %v23727_v44  ;;  %v14963_v63 = vsub.f32 %v14961_v18, %v14962_v39 }
 0xcd7   :  { %20045 = vmatmul.mubr.f32.vlgmr.msra.gmra.mxu1 %v23547_v57  ;;  %20059 = vmatmul.mubr.f32.vlgmr.msra.gmra.mxu0 %v14888_v33  ;;  %v14908_v57 = vand.u32 4294901760, %v14907_v38 }
 0xcd8   :  { %20064 = vmatprep.subr.mxu1 %v14943_v56  ;;  %20078 = vmatprep.subr.mxu0 %v23696_v30  ;;  %v14964_v17 = vand.u32 4294901760, %v14963_v63 }
 0xcd9   :  { %20047 = vmatprep.mubr.f32.mxu1 %v23557_v61  ;;  %20061 = vmatprep.mubr.f32.mxu0 %v14898_v55  ;;  %v15423_v61 = vld [vmem:[#allocation14 + $0x58] sm:$0xff] }
 0xcda   :  { %20065 = vmatpush3.msra.mxu1 %v14943_v56  ;;  %20079 = vmatpush3.msra.mxu0 %v23696_v30 }
 0xcdb   :  { %20066 = vmatprep.subr.mxu1 %v14950_v32  ;;  %20080 = vmatprep.subr.mxu0 %v14947_v42 }
 0xcdc   :  { %20067 = vmatpush3.msra.mxu1 %v14950_v32  ;;  %20081 = vmatpush3.msra.mxu0 %v14947_v42 }
 0xcdd   :  { %20048 = vmatmul.mubr.f32.gmra.mxu1 %v23580_v52  ;;  %20062 = vmatmul.mubr.f32.gmra.mxu0 %v14908_v57  ;;  %v23826_v52 = vand.u32 4294901760, %v15423_v61 }
 0xcde   :  { %20068 = vmatprep.subr.mxu1 %v14957_v6  ;;  %20082 = vmatprep.subr.mxu0 %v14954_v29 }
 0xcdf   :  { %20069 = vmatpush3.msra.mxu1 %v14957_v6  ;;  %20072 = vmatprep.mubr.f32.mxu1 %v23665_v46  ;;  %v23829_v5 = vsub.f32 %v15423_v61, %v23826_v52 }
 0xce0   :  { %20083 = vmatpush3.msra.mxu0 %v14954_v29  ;;  %20086 = vmatprep.mubr.f32.mxu0 %v23684_v37 }
 0xce1   :  { %20070 = vmatprep.subr.mxu1 %v14964_v17  ;;  %20084 = vmatprep.subr.mxu0 %v14961_v18  ;;  %v23840_v4 = vand.u32 4294901760, %v23829_v5 }
 0xce2   :  { %20071 = vmatpush3.msra.mxu1 %v14964_v17  ;;  %20085 = vmatpush3.msra.mxu0 %v14961_v18 }
 0xce3   :  { %20073 = vmatmul.mubr.f32.vlgmr.msra.gmra.mxu1 %v23679_v12  ;;  %20087 = vmatmul.mubr.f32.vlgmr.msra.gmra.mxu0 %v23703_v8 }
 0xce4   :  { %20092 = vmatprep.subr.mxu1 %v23673_v35  ;;  %20106 = vmatprep.subr.mxu0 %v23722_v24 }
 0xce5   :  { %20075 = vmatprep.mubr.f32.mxu1 %v23691_v20  ;;  %20089 = vmatprep.mubr.f32.mxu0 %v23714_v53 }
 0xce6   :  { %20093 = vmatpush3.msra.mxu1 %v23673_v35  ;;  %20107 = vmatpush3.msra.mxu0 %v23722_v24 }
 0xce7   :  { %20094 = vmatprep.subr.mxu1 %v23689_v23  ;;  %20108 = vmatprep.subr.mxu0 %v23739_v49 }
 0xce8   :  { %20095 = vmatpush3.msra.mxu1 %v23689_v23  ;;  %20109 = vmatpush3.msra.mxu0 %v23739_v49 }
 0xce9   :  { %20076 = vmatmul.mubr.f32.gmra.mxu1 %v23717_v48  ;;  %20090 = vmatmul.mubr.f32.gmra.mxu0 %v23742_v14 }
 0xcea   :  { %20096 = vmatprep.subr.mxu1 %v23707_v0  ;;  %20110 = vmatprep.subr.mxu0 %v23757_v60 }
 0xceb   :  { %20097 = vmatpush3.msra.mxu1 %v23707_v0  ;;  %20100 = vmatprep.mubr.f32.mxu1 %v14876_v2 }
 0xcec   :  { %20111 = vmatpush3.msra.mxu0 %v23757_v60  ;;  %20114 = vmatprep.mubr.f32.mxu0 %v23665_v46 }
 0xced   :  { %20098 = vmatprep.subr.mxu1 %v23727_v44  ;;  %20112 = vmatprep.subr.mxu0 %v14962_v39 }
 0xcee   :  { %20099 = vmatpush3.msra.mxu1 %v23727_v44  ;;  %20113 = vmatpush3.msra.mxu0 %v14962_v39 }
 0xcef   :  { %20101 = vmatmul.mubr.f32.vlgmr.msra.gmra.mxu1 %v14886_v47  ;;  %20115 = vmatmul.mubr.f32.vlgmr.msra.gmra.mxu0 %v23679_v12 }
 0xcf0   :  { %20120 = vmatprep.subr.mxu1 %v23673_v35  ;;  %20103 = vmatprep.mubr.f32.mxu1 %v14896_v31 }
 0xcf1   :  { %20117 = vmatprep.mubr.f32.mxu0 %v23691_v20  ;;  %20121 = vmatpush3.msra.mxu1 %v23673_v35  ;;  %v23835_v35 = vand.u32 4294901760, %v15420_v25 }
 0xcf2   :  { %20122 = vmatprep.subr.mxu1 %v23689_v23  ;;  %20134 = vmatprep.subr.mxu0 %v23826_v52 }
 0xcf3   :  { %20123 = vmatpush3.msra.mxu1 %v23689_v23  ;;  %20118 = vmatmul.mubr.f32.gmra.mxu0 %v23717_v48  ;;  %v23849_v37 = vsub.f32 %v15420_v25, %v23835_v35  ;;  %v15573_v23 = vsub.f32 %v23829_v5, %v23840_v4 }
 0xcf4   :  { %20104 = vmatmul.mubr.f32.gmra.mxu1 %v14906_v54  ;;  %20124 = vmatprep.subr.mxu1 %v23707_v0 }
 0xcf5   :  { %20125 = vmatpush3.msra.mxu1 %v23707_v0  ;;  %20128 = vmatprep.mubr.f32.mxu1 %v23665_v46  ;;  %v23831_v46 = vand.u32 4294901760, %v15422_v50  ;;  %v23862_v30 = vand.u32 4294901760, %v23849_v37  ;;  %v15574_v58 = vand.u32 4294901760, %v15573_v23 }
 0xcf6   :  { %20126 = vmatprep.subr.mxu1 %v23727_v44  ;;  %20135 = vmatpush3.msra.mxu0 %v23826_v52 }
 0xcf7   :  { %20127 = vmatpush3.msra.mxu1 %v23727_v44  ;;  %v23843_v40 = vsub.f32 %v15422_v50, %v23831_v46  ;;  %20136 = vmatprep.subr.mxu0 %v23831_v46  ;;  %v15594_v2 = vsub.f32 %v23849_v37, %v23862_v30 }
 0xcf8   :  { %20129 = vmatmul.mubr.f32.vlgmr.msra.gmra.mxu1 %v23679_v12  ;;  %v23846_v12 = vsub.f32 %v15421_v28, %v23833_v21  ;;  %20137 = vmatpush3.msra.mxu0 %v23831_v46 }
 0xcf9   :  { %20131 = vmatprep.mubr.f32.mxu1 %v23691_v20  ;;  %v23856_v16 = vand.u32 4294901760, %v23843_v40  ;;  %20138 = vmatprep.subr.mxu0 %v23833_v21  ;;  %v15595_v42 = vand.u32 4294901760, %v15594_v2 }
 0xcfa   :  { %v23859_v20 = vand.u32 4294901760, %v23846_v12  ;;  %20139 = vmatpush3.msra.mxu0 %v23833_v21  ;;  %20148 = vmatprep.subr.mxu1 %v15574_v58 }
 0xcfb   :  { %v15580_v8 = vsub.f32 %v23843_v40, %v23856_v16  ;;  %20140 = vmatprep.subr.mxu0 %v23835_v35  ;;  %20149 = vmatpush3.msra.mxu1 %v15574_v58 }
 0xcfc   :  { %20132 = vmatmul.mubr.f32.gmra.mxu1 %v23717_v48  ;;  %v15587_v0 = vsub.f32 %v23846_v12, %v23859_v20  ;;  %20141 = vmatpush3.msra.mxu0 %v23835_v35 }
 0xcfd   :  { %v15581_v9 = vand.u32 4294901760, %v15580_v8  ;;  %20162 = vmatprep.subr.mxu0 %v23829_v5 }
 0xcfe   :  { %v15588_v53 = vand.u32 4294901760, %v15587_v0 }
 0xcff   :  { %20150 = vmatprep.subr.mxu1 %v15581_v9 }
 0xd00   :  { %20151 = vmatpush3.msra.mxu1 %v15581_v9 }
 0xd01   :  { %20152 = vmatprep.subr.mxu1 %v15588_v53 }
 0xd02   :  { %20153 = vmatpush3.msra.mxu1 %v15588_v53 }
 0xd03   :  { %20154 = vmatprep.subr.mxu1 %v15595_v42 }
 0xd04   :  { %20155 = vmatpush3.msra.mxu1 %v15595_v42 }
 0xd05   :  { %20176 = vmatprep.subr.mxu1 %v23826_v52 }
 0xd51   :  { %v19892_v48 = vpop.f32.mrf.mxu0 }
 0xd53   :  { %v13611_v24 = vpop.f32.mrf.mxu0 }
 0xd56   :  { %v19895_v44 = vpop.f32.mrf.mxu0 }
 0xd58   :  { %v13631_v47 = vpop.f32.mrf.mxu0 }
 0xd5b   :  { %v19906_v59 = vpop.f32.mrf.mxu1  ;;  %v19920_v29 = vpop.f32.mrf.mxu0 }
 0xd5c   :  { %v13739_v51 = vadd.f32 %v19906_v59, %v19892_v48 }
 0xd5d   :  { %v13732_v31 = vpop.f32.mrf.mxu1  ;;  %v13830_v49 = vpop.f32.mrf.mxu0 }
 0xd5e   :  { %v13733_v45 = vadd.f32 %v13732_v31, %v13611_v24  ;;  %v13838_v54 = vadd.f32 %v19920_v29, %v13739_v51 }
 0xd60   :  { %v13831_v39 = vadd.f32 %v13830_v49, %v13733_v45 }
 0xd61   :  { %v19909_v14 = vpop.f32.mrf.mxu1  ;;  %v19923_v7 = vpop.f32.mrf.mxu0 }
 0xd62   :  { %v13751_v13 = vadd.f32 %v19909_v14, %v19895_v44 }
 0xd63   :  { %v13744_v10 = vpop.f32.mrf.mxu1  ;;  %v13844_v60 = vpop.f32.mrf.mxu0 }
 0xd64   :  { %v13745_v38 = vadd.f32 %v13744_v10, %v13631_v47  ;;  %v13852_v57 = vadd.f32 %v19923_v7, %v13751_v13 }
 0xd66   :  { %v13845_v50 = vadd.f32 %v13844_v60, %v13745_v38 }
 0xd67   :  { %v19934_v18 = vpop.f32.mrf.mxu1  ;;  %v19948_v56 = vpop.f32.mrf.mxu0 }
 0xd68   :  { %v13937_v55 = vadd.f32 %v19934_v18, %v13838_v54 }
 0xd69   :  { %v13928_v26 = vpop.f32.mrf.mxu1  ;;  %v14035_v6 = vpop.f32.mrf.mxu0 }
 0xd6a   :  { %v13929_v63 = vadd.f32 %v13928_v26, %v13831_v39  ;;  %v14042_v17 = vadd.f32 %v19948_v56, %v13937_v55 }
 0xd6c   :  { %v14036_v28 = vadd.f32 %v14035_v6, %v13929_v63 }
 0xd6d   :  { %v19937_v33 = vpop.f32.mrf.mxu1  ;;  %v19951_v58 = vpop.f32.mrf.mxu0 }
 0xd6e   :  { %v13953_v25 = vadd.f32 %v19937_v33, %v13852_v57 }
 0xd6f   :  { %v13944_v32 = vpop.f32.mrf.mxu1  ;;  %v14047_v24 = vpop.f32.mrf.mxu0 }
 0xd70   :  { %v13945_v0 = vadd.f32 %v13944_v32, %v13845_v50  ;;  %v14054_v53 = vadd.f32 %v19951_v58, %v13953_v25 }
 0xd72   :  { %v14048_v47 = vadd.f32 %v14047_v24, %v13945_v0 }
 0xd73   :  { %v19962_v61 = vpop.f32.mrf.mxu1 }
 0xd74   :  { %v14135_v23 = vadd.f32 %v19962_v61, %v14042_v17 }
 0xd75   :  { %v14128_v8 = vpop.f32.mrf.mxu1 }
 0xd76   :  { %v14151_v2 = vmul.f32 2.0, %v14135_v23  ;;  %v14129_v9 = vadd.f32 %v14128_v8, %v14036_v28 }
 0xd78   :  { %v14155_v42 = vsub.f32 %v14151_v2, %v23411_v1  ;;  %v14150_v48 = vmul.f32 2.0, %v14129_v9 }
 0xd79   :  { %v19965_v44 = vpop.f32.mrf.mxu1 }
 0xd7a   :  { %v15428_v59 = vsel %vm153_vm0, %v14155_v42, 0  ;;  %v14154_v29 = vsub.f32 %v14150_v48, %v23416_v34  ;;  %v14147_v31 = vadd.f32 %v19965_v44, %v14054_v53 }
 0xd7b   :  { %v23879_v49 = vand.u32 4294901760, %v15428_v59  ;;  %v14140_v14 = vpop.f32.mrf.mxu1 }
 0xd7c   :  { %v15425_v10 = vsel %vm153_vm0, %v14154_v29, 0  ;;  %v14153_v7 = vmul.f32 2.0, %v14147_v31  ;;  %v14141_v18 = vadd.f32 %v14140_v14, %v14048_v47 }
 0xd7d   :  { %v15516_v51 = vsub.f32 %v15428_v59, %v23879_v49  ;;  %v23883_v60 = vand.u32 4294901760, %v15425_v10 }
 0xd7e   :  { %v14157_v1 = vsub.f32 %v14153_v7, %v23424_v22  ;;  %v14152_v26 = vmul.f32 2.0, %v14141_v18 }
 0xd7f   :  { %v15517_v45 = vand.u32 4294901760, %v15516_v51  ;;  %v15506_v54 = vsub.f32 %v15425_v10, %v23883_v60  ;;  %20156 = vmatprep.mubr.f32.mxu1 %v23883_v60 }
 0xd80   :  { %v15434_v34 = vsel %vm153_vm0, %v14157_v1, 0  ;;  %v14156_v56 = vsub.f32 %v14152_v26, %v23435_v41  ;;  %20157 = vmatmul.mubr.f32.vlgmr.msra.gmra.mxu1 %v23879_v49 }
 0xd81   :  { %v23891_v33 = vand.u32 4294901760, %v15434_v34  ;;  %20177 = vmatpush3.msra.mxu1 %v23826_v52  ;;  %v15507_v39 = vand.u32 4294901760, %v15506_v54  ;;  %v15518_v13 = vsub.f32 %v15516_v51, %v15517_v45 }
 0xd82   :  { %v15431_v22 = vsel %vm153_vm0, %v14156_v56, 0  ;;  %20178 = vmatprep.subr.mxu1 %v23831_v46 }
 0xd83   :  { %v15536_v55 = vsub.f32 %v15434_v34, %v23891_v33  ;;  %v15525_v32 = vand.u32 4294901760, %v15431_v22  ;;  %20179 = vmatpush3.msra.mxu1 %v23831_v46  ;;  %v15508_v38 = vsub.f32 %v15506_v54, %v15507_v39  ;;  %v15519_v57 = vand.u32 4294901760, %v15518_v13 }
 0xd84   :  { %20180 = vmatprep.subr.mxu1 %v23833_v21 }
 0xd85   :  { %v15526_v41 = vsub.f32 %v15431_v22, %v15525_v32  ;;  %20159 = vmatprep.mubr.f32.mxu1 %v15525_v32  ;;  %20181 = vmatpush3.msra.mxu1 %v23833_v21  ;;  %v15509_v63 = vand.u32 4294901760, %v15508_v38  ;;  %v15537_v6 = vand.u32 4294901760, %v15536_v55 }
 0xd86   :  { %20160 = vmatmul.mubr.f32.gmra.mxu1 %v23891_v33  ;;  %20182 = vmatprep.subr.mxu1 %v23835_v35 }
 0xd87   :  { %20184 = vmatprep.mubr.f32.mxu1 %v15507_v39  ;;  %20142 = vmatprep.mubr.f32.mxu0 %v15509_v63  ;;  %v15527_v17 = vand.u32 4294901760, %v15526_v41  ;;  %v15538_v61 = vsub.f32 %v15536_v55, %v15537_v6 }
 0xd88   :  { %20183 = vmatpush3.msra.mxu1 %v23835_v35  ;;  %20143 = vmatmul.mubr.f32.vlgmr.msra.gmra.mxu0 %v15519_v57 }
 0xd89   :  { %20204 = vmatprep.subr.mxu1 %v23826_v52  ;;  %20163 = vmatpush3.msra.mxu0 %v23829_v5  ;;  %v15528_v50 = vsub.f32 %v15526_v41, %v15527_v17  ;;  %v15539_v25 = vand.u32 4294901760, %v15538_v61 }
 0xd8a   :  { %20185 = vmatmul.mubr.f32.vlgmr.msra.gmra.mxu1 %v15517_v45  ;;  %20164 = vmatprep.subr.mxu0 %v23843_v40 }
 0xd8b   :  { %20187 = vmatprep.mubr.f32.mxu1 %v15527_v17  ;;  %20205 = vmatpush3.msra.mxu1 %v23826_v52  ;;  %v15529_v28 = vand.u32 4294901760, %v15528_v50  ;;  %v19990_v52 = vpop.f32.mrf.mxu1 }
 0xd8c   :  { %20206 = vmatprep.subr.mxu1 %v23831_v46  ;;  %20165 = vmatpush3.msra.mxu0 %v23843_v40 }
 0xd8d   :  { %20145 = vmatprep.mubr.f32.mxu0 %v15529_v28  ;;  %20207 = vmatpush3.msra.mxu1 %v23831_v46  ;;  %v14375_v5 = vpop.f32.mrf.mxu1  ;;  %v19976_v46 = vpop.f32.mrf.mxu0 }
 0xd8e   :  { %20146 = vmatmul.mubr.f32.gmra.mxu0 %v15539_v25  ;;  %20166 = vmatprep.subr.mxu0 %v23846_v12 }
 0xd8f   :  { %20188 = vmatmul.mubr.f32.gmra.mxu1 %v15537_v6  ;;  %20208 = vmatprep.subr.mxu1 %v23833_v21 }
 0xd90   :  { %20167 = vmatpush3.msra.mxu0 %v23846_v12  ;;  %20170 = vmatprep.mubr.f32.mxu0 %v15506_v54 }
 0xd91   :  { %20209 = vmatpush3.msra.mxu1 %v23833_v21  ;;  %20212 = vmatprep.mubr.f32.mxu1 %v23883_v60  ;;  %v19993_v21 = vpop.f32.mrf.mxu1 }
 0xd92   :  { %20168 = vmatprep.subr.mxu0 %v23849_v37  ;;  %20210 = vmatprep.subr.mxu1 %v23835_v35 }
 0xd93   :  { %20169 = vmatpush3.msra.mxu0 %v23849_v37  ;;  %20211 = vmatpush3.msra.mxu1 %v23835_v35  ;;  %v14254_v35 = vpop.f32.mrf.mxu0 }
 0xd94   :  { %20171 = vmatmul.mubr.f32.vlgmr.msra.gmra.mxu0 %v15516_v51  ;;  %20190 = vmatprep.subr.mxu0 %v23840_v4  ;;  %v14376_v57 = vadd.f32 %v14375_v5, %v14254_v35 }
 0xd95   :  { %20213 = vmatmul.mubr.f32.vlgmr.msra.gmra.mxu1 %v23879_v49  ;;  %20173 = vmatprep.mubr.f32.mxu0 %v15526_v41  ;;  %v19979_v40 = vpop.f32.mrf.mxu0  ;;  %v14382_v41 = vadd.f32 %v19990_v52, %v19976_v46 }
 0xd96   :  { %20191 = vmatpush3.msra.mxu0 %v23840_v4  ;;  %20215 = vmatprep.mubr.f32.mxu1 %v15525_v32  ;;  %v14387_v4 = vpop.f32.mrf.mxu1  ;;  %v14394_v17 = vadd.f32 %v19993_v21, %v19979_v40 }
 0xd97   :  { %20192 = vmatprep.subr.mxu0 %v23856_v16  ;;  %v14274_v37 = vpop.f32.mrf.mxu0 }
 0xd98   :  { %20193 = vmatpush3.msra.mxu0 %v23856_v16  ;;  %v20018_v12 = vpop.f32.mrf.mxu1  ;;  %v14388_v62 = vadd.f32 %v14387_v4, %v14274_v37 }
 0xd99   :  { %20174 = vmatmul.mubr.f32.gmra.mxu0 %v15536_v55  ;;  %20194 = vmatprep.subr.mxu0 %v23859_v20 }
 0xd9a   :  { %20216 = vmatmul.mubr.f32.gmra.mxu1 %v23891_v33  ;;  %20195 = vmatpush3.msra.mxu0 %v23859_v20  ;;  %v14571_v16 = vpop.f32.mrf.mxu1  ;;  %v20004_v20 = vpop.f32.mrf.mxu0 }
 0xd9b   :  { %20198 = vmatprep.mubr.f32.mxu0 %v23883_v60  ;;  %20196 = vmatprep.subr.mxu0 %v23862_v30  ;;  %v14481_v61 = vadd.f32 %v20004_v20, %v14382_v41 }
 0xd9c   :  { %20197 = vmatpush3.msra.mxu0 %v23862_v30  ;;  %v20021_v23 = vpop.f32.mrf.mxu1  ;;  %v14473_v58 = vpop.f32.mrf.mxu0 }
 0xd9d   :  { %20199 = vmatmul.mubr.f32.vlgmr.msra.gmra.mxu0 %v23879_v49  ;;  %v14474_v25 = vadd.f32 %v14473_v58, %v14376_v57  ;;  %v14580_v11 = vadd.f32 %v20018_v12, %v14481_v61 }
 0xd9e   :  { %20201 = vmatprep.mubr.f32.mxu0 %v15525_v32  ;;  %v14587_v8 = vpop.f32.mrf.mxu1  ;;  %v20007_v30 = vpop.f32.mrf.mxu0 }
 0xd9f   :  { %v14495_v27 = vadd.f32 %v20007_v30, %v14394_v17  ;;  %v14572_v19 = vadd.f32 %v14571_v16, %v14474_v25 }
 0xda0   :  { %v20046_v0 = vpop.f32.mrf.mxu1  ;;  %v14487_v2 = vpop.f32.mrf.mxu0 }
 0xda1   :  { %20202 = vmatmul.mubr.f32.gmra.mxu0 %v23891_v33  ;;  %v14596_v52 = vadd.f32 %v20021_v23, %v14495_v27 }
 0xda2   :  { %v14771_v9 = vpop.f32.mrf.mxu1  ;;  %v20032_v53 = vpop.f32.mrf.mxu0 }
 0xda3   :  { %v14685_v46 = vadd.f32 %v20032_v53, %v14580_v11 }
 0xda4   :  { %v20049_v42 = vpop.f32.mrf.mxu1  ;;  %v14678_v48 = vpop.f32.mrf.mxu0 }
 0xda5   :  { %v14778_v21 = vadd.f32 %v20046_v0, %v14685_v46 }
 0xda6   :  { %v14783_v24 = vpop.f32.mrf.mxu1  ;;  %v20035_v44 = vpop.f32.mrf.mxu0 }
 0xda7   :  { %v14697_v40 = vadd.f32 %v20035_v44, %v14596_v52 }
 0xda8   :  { %v20074_v47 = vpop.f32.mrf.mxu1  ;;  %v14690_v59 = vpop.f32.mrf.mxu0 }
 0xda9   :  { %v14790_v4 = vadd.f32 %v20049_v42, %v14697_v40 }
 0xdaa   :  { %v15001_v29 = vpop.f32.mrf.mxu1  ;;  %v20060_v31 = vpop.f32.mrf.mxu0 }
 0xdab   :  { %v14891_v37 = vadd.f32 %v20060_v31, %v14778_v21 }
 0xdac   :  { %v20077_v49 = vpop.f32.mrf.mxu1  ;;  %v14880_v14 = vpop.f32.mrf.mxu0 }
 0xdad   :  { %v15008_v16 = vadd.f32 %v20074_v47, %v14891_v37 }
 0xdae   :  { %v23932_v10 = vpop.f32.mrf.mxu1  ;;  %v20063_v7 = vpop.f32.mrf.mxu0 }
 0xdaf   :  { %v14911_v61 = vadd.f32 %v20063_v7, %v14790_v4 }
 0xdb0   :  { %v23934_v18 = vpop.f32.mrf.mxu1  ;;  %v14900_v51 = vpop.f32.mrf.mxu0 }
 0xdb2   :  { %v23936_v60 = vpop.f32.mrf.mxu1  ;;  %v20088_v1 = vpop.f32.mrf.mxu0 }
 0xdb3   :  { %v15107_v0 = vadd.f32 %v20088_v1, %v15008_v16  ;;  %v20381_v16 = vld [vmem:[#allocation3 + $0x30] sm:$0xff] }
 0xdb4   :  { %v23938_v26 = vpop.f32.mrf.mxu1  ;;  %v15099_v45 = vpop.f32.mrf.mxu0 }
 0xdb6   :  { %v23940_v54 = vpop.f32.mrf.mxu1  ;;  %v20091_v34 = vpop.f32.mrf.mxu0 }
 0xdb8   :  { %v23942_v56 = vpop.f32.mrf.mxu1  ;;  %v23944_v33 = vpop.f32.mrf.mxu0 }
 0xdba   :  { %v23946_v39 = vpop.f32.mrf.mxu1  ;;  %v23948_v13 = vpop.f32.mrf.mxu0 }
 0xdbb   :  { %24434 = vst [vmem:[#allocation57_spill] sm:$0xff] %v23946_v39 }
 0xdbc   :  { %v23950_v22 = vpop.f32.mrf.mxu1  ;;  %v23952_v55 = vpop.f32.mrf.mxu0 }
 0xdbd   :  { %24435 = vst [vmem:[#allocation52_spill] sm:$0xff] %v23950_v22  ;;  %v14679_v22 = vadd.f32 %v14678_v48, %v14572_v19 }
 0xdbe   :  { %v23954_v32 = vpop.f32.mrf.mxu1  ;;  %v23956_v63 = vpop.f32.mrf.mxu0 }
 0xdbf   :  { %24436 = vst [vmem:[#allocation59_spill] sm:$0xff] %v23954_v32  ;;  %v14488_v32 = vadd.f32 %v14487_v2, %v14388_v62  ;;  %v14772_v20 = vadd.f32 %v14771_v9, %v14679_v22 }
 0xdc0   :  { %v23958_v50 = vpop.f32.mrf.mxu0 }
 0xdc1   :  { %v14588_v39 = vadd.f32 %v14587_v8, %v14488_v32  ;;  %v14881_v57 = vadd.f32 %v14880_v14, %v14772_v20  ;;  %v15020_v8 = vadd.f32 %v20077_v49, %v14911_v61 }
 0xdc3   :  { %v14691_v58 = vadd.f32 %v14690_v59, %v14588_v39  ;;  %v15002_v62 = vadd.f32 %v15001_v29, %v14881_v57  ;;  %v15206_v59 = vadd.f32 %v23934_v18, %v15107_v0  ;;  %v15121_v31 = vadd.f32 %v20091_v34, %v15020_v8  ;;  %v24442_v0 = vld [vmem:[#allocation50_spill] sm:$0xff] }
 0xdc5   :  { %v14784_v30 = vadd.f32 %v14783_v24, %v14691_v58  ;;  %v15100_v9 = vadd.f32 %v15099_v45, %v15002_v62  ;;  %v24440_v62 = vld [vmem:[#allocation41_spill] sm:$0xff] }
 0xdc7   :  { %v14901_v23 = vadd.f32 %v14900_v51, %v14784_v30  ;;  %v15198_v29 = vadd.f32 %v23936_v60, %v15100_v9  ;;  %v20380_v30 = vld [vmem:[#allocation3 + $0x28] sm:$0xff]  ;;  %v24443_v9 = vld [vmem:[#allocation49_spill] sm:$0xff] }
 0xdc9   :  { %v15014_v48 = vadd.f32 %v23932_v10, %v14901_v23  ;;  %v15311_v10 = vadd.f32 %v23948_v13, %v15206_v59  ;;  %v15305_v32 = vadd.f32 %v23952_v55, %v15198_v29  ;;  %v24444_v29 = vld [vmem:[#allocation37_spill] sm:$0xff] }
 0xdcb   :  { %v15114_v49 = vadd.f32 %v23944_v33, %v15014_v48 }
 0xdcd   :  { %v15214_v34 = vadd.f32 %v23940_v54, %v15114_v49  ;;  %v24438_v54 = vld [vmem:[#allocation52_spill] sm:$0xff] }
 0xdce   :  { %v16146_v49 = vld [vmem:[%s24157_s10 + $0x18] sm:$0xff] }
 0xdcf   :  { %v15317_v55 = vadd.f32 %v23958_v50, %v15214_v34  ;;  %v20379_v50 = vld [vmem:[#allocation3 + $0x20] sm:$0xff] }
 0xe40   :  { %v20158_v38 = vpop.f32.mrf.mxu1 }
 0xe42   :  { %v15632_v6 = vpop.f32.mrf.mxu1 }
 0xe46   :  { %v20161_v28 = vpop.f32.mrf.mxu1 }
 0xe48   :  { %v15644_v36 = vpop.f32.mrf.mxu1  ;;  %v20144_v15 = vpop.f32.mrf.mxu0 }
 0xe49   :  { %v15639_v11 = vadd.f32 %v20158_v38, %v20144_v15 }
 0xe4a   :  { %v20186_v3 = vpop.f32.mrf.mxu1  ;;  %v15511_v43 = vpop.f32.mrf.mxu0 }
 0xe4b   :  { %v15633_v2 = vadd.f32 %v15632_v6, %v15511_v43  ;;  %v15222_v43 = vadd.f32 %v23938_v26, %v15121_v31  ;;  %v24437_v26 = vld [vmem:[#allocation57_spill] sm:$0xff] }
 0xe4c   :  { %v15828_v5 = vpop.f32.mrf.mxu1 }
 0xe4d   :  { %v15323_v33 = vadd.f32 %v23956_v63, %v15222_v43  ;;  %v24439_v63 = vld [vmem:[#allocation59_spill] sm:$0xff] }
 0xe4e   :  { %v20147_v35 = vpop.f32.mrf.mxu0  ;;  %v15410_v4 = vadd.f32 %v24439_v63, %v15317_v55  ;;  %v16145_v43 = vld [vmem:[%s24157_s10 + $0x10] sm:$0xff] }
 0xe4f   :  { %v20189_v12 = vpop.f32.mrf.mxu1  ;;  %v15651_v24 = vadd.f32 %v20161_v28, %v20147_v35  ;;  %v15398_v28 = vadd.f32 %v24437_v26, %v15305_v32  ;;  %v15416_v40 = vadd.f32 %v24438_v54, %v15323_v33  ;;  %v24445_v32 = vld [vmem:[#allocation55_spill] sm:$0xff] }
 0xe50   :  { %v15531_v41 = vpop.f32.mrf.mxu0  ;;  %v16094_v34 = vsub.f32 1.0, %v24445_v32 }
 0xe51   :  { %v15844_v27 = vpop.f32.mrf.mxu1  ;;  %v15645_v15 = vadd.f32 %v15644_v36, %v15531_v41  ;;  %v15404_v36 = vadd.f32 %v23942_v56, %v15311_v10  ;;  %v24003_v10 = vand.u32 4294901760, %v16145_v43 }
 0xe54   :  { %v20172_v17 = vpop.f32.mrf.mxu0 }
 0xe55   :  { %v15738_v53 = vadd.f32 %v20172_v17, %v15639_v11  ;;  %v20214_v42 = vpop.f32.mrf.mxu1  ;;  %v20382_v17 = vld [vmem:[#allocation3 + $0x38] sm:$0xff] }
 0xe56   :  { %v15730_v19 = vpop.f32.mrf.mxu0 }
 0xe57   :  { %v15731_v47 = vadd.f32 %v15730_v19, %v15633_v2  ;;  %v15837_v51 = vadd.f32 %v20186_v3, %v15738_v53  ;;  %v16028_v1 = vpop.f32.mrf.mxu1  ;;  %v24441_v19 = vld [vmem:[#allocation53_spill] sm:$0xff] }
 0xe59   :  { %v20175_v44 = vpop.f32.mrf.mxu0  ;;  %v15829_v18 = vadd.f32 %v15828_v5, %v15731_v47 }
 0xe5a   :  { %v15752_v7 = vadd.f32 %v20175_v44, %v15651_v24  ;;  %v20217_v25 = vpop.f32.mrf.mxu1 }
 0xe5b   :  { %v15744_v14 = vpop.f32.mrf.mxu0 }
 0xe5c   :  { %v15745_v39 = vadd.f32 %v15744_v14, %v15645_v15  ;;  %v15853_v6 = vadd.f32 %v20189_v12, %v15752_v7  ;;  %v16040_v58 = vpop.f32.mrf.mxu1  ;;  %v16095_v14 = vsub.f32 1.0, %v24444_v29 }
 0xe5d   :  { %v20200_v45 = vpop.f32.mrf.mxu0 }
 0xe5e   :  { %v15942_v22 = vadd.f32 %v20200_v45, %v15837_v51  ;;  %v15845_v21 = vadd.f32 %v15844_v27, %v15745_v39  ;;  %v24001_v45 = vand.u32 4294901760, %v16146_v49 }
 0xe5f   :  { %v15935_v60 = vpop.f32.mrf.mxu0 }
 0xe60   :  { %v16035_v38 = vadd.f32 %v20214_v42, %v15942_v22  ;;  %v15936_v3 = vadd.f32 %v15935_v60, %v15829_v18  ;;  %v16143_v22 = vld [vmem:[%s24157_s10] sm:$0xff]  ;;  %20218 = vmatprep.subr.mxu0 %v24001_v45 }
 0xe61   :  { %v20203_v52 = vpop.f32.mrf.mxu0  ;;  %v24011_v60 = vand.u32 4294901760, %v16143_v22  ;;  %20219 = vmatpush3.msra.mxu0 %v24001_v45 }
 0xe62   :  { %v16029_v13 = vadd.f32 %v16028_v1, %v15936_v3  ;;  %v15954_v46 = vadd.f32 %v20203_v52, %v15853_v6  ;;  %v16051_v5 = vadd.f32 %v16035_v38, %v15404_v36  ;;  %v16144_v1 = vld [vmem:[%s24157_s10 + $0x8] sm:$0xff]  ;;  %v24014_v3 = vsub.f32 %v16146_v49, %v24001_v45  ;;  %20220 = vmatprep.subr.mxu0 %v24003_v10  ;;  %s20565_s10 = smov [#allocation15]  }
 0xe63   :  { %v15947_v35 = vpop.f32.mrf.mxu0  ;;  %v24005_v39 = vand.u32 4294901760, %v16144_v1  ;;  %v24017_v6 = vsub.f32 %v16145_v43, %v24003_v10  ;;  %20221 = vmatpush3.msra.mxu0 %v24003_v10  ;;  %s16788_s4 = sshll.u32 %s20565_s10, 4  ;;  %s16789_s4 = int_to_ptr.vmem [resolvable:$true] %s16788_s4 }
 0xe64   :  { %v16047_v20 = vadd.f32 %v20217_v25, %v15954_v46  ;;  %v15948_v56 = vadd.f32 %v15947_v35, %v15845_v21  ;;  %16060 = vrot.lane.b32.xlu1 %v16051_v5, %s20562_s5  ;;  %v16050_v41 = vadd.f32 %v16029_v13, %v15398_v28  ;;  %v24026_v25 = vsub.f32 %v16143_v22, %v24011_v60  ;;  %v24446_v5 = vld [vmem:[#allocation38_spill] sm:$0xff]  ;;  %s20523_s27 = scalar_lea.vmem %s16789_s4, 1024  ;;  %p20528_p8 = scmp.lt.s32.totalorder %s16789_s4, %s16789_s4 }
 0xe65   :  { %v24020_v33 = vsub.f32 %v16144_v1, %v24005_v39  ;;  %v24030_v52 = vand.u32 4294901760, %v24014_v3  ;;  %v24033_v13 = vand.u32 4294901760, %v24017_v6  ;;  %v16096_v55 = vsub.f32 1.0, %v24446_v5  ;;  %20222 = vmatprep.subr.mxu0 %v24005_v39  ;;  %p20524_p7 = scmp.ne.s32.totalorder %s16789_s4, %s20523_s27  ;;  %p20529_p9 = scmp.lt.s32.totalorder %s20523_s27, %s20523_s27 }
 0xe66   :  { %v16041_v12 = vadd.f32 %v16040_v58, %v15948_v56  ;;  %16058 = vrot.lane.b32.xlu0 %v16050_v41, %s20562_s5  ;;  %v16053_v37 = vadd.f32 %v16047_v20, %v15416_v40  ;;  %v24041_v35 = vand.u32 4294901760, %v24026_v25  ;;  %20223 = vmatpush3.msra.mxu0 %v24005_v39 }
 0xe67   :  { %v24036_v46 = vand.u32 4294901760, %v24020_v33  ;;  %v16299_v40 = vsub.f32 %v24014_v3, %v24030_v52  ;;  %v16306_v20 = vsub.f32 %v24017_v6, %v24033_v13  ;;  %20224 = vmatprep.subr.mxu0 %v24011_v60  ;;  %p20530_p10 = por %p20529_p9, %p20528_p8 }
 0xe68   :  { %16064 = vrot.lane.b32.xlu1 %v16053_v37, %s20562_s5  ;;  %v16052_v57 = vadd.f32 %v16041_v12, %v15410_v4  ;;  %v16320_v37 = vsub.f32 %v24026_v25, %v24041_v35  ;;  %20225 = vmatpush3.msra.mxu0 %v24011_v60 }
 0xe69   :  { %v16313_v56 = vsub.f32 %v24020_v33, %v24036_v46  ;;  %v16300_v4 = vand.u32 4294901760, %v16299_v40  ;;  %v16307_v12 = vand.u32 4294901760, %v16306_v20  ;;  %20246 = vmatprep.subr.mxu0 %v24014_v3  ;;  %p20531_p11 = pnand %p20530_p10, %p20524_p7 }
 0xe6a   :  { %16062 = vrot.lane.b32.xlu0 %v16052_v57, %s20562_s5 }
 0xe6b   :  { %20232 = vmatprep.subr.mxu1 %v16300_v4 }
 0xe6c   :  { %20233 = vmatpush3.msra.mxu1 %v16300_v4 }
 0xe6d   :  { %20234 = vmatprep.subr.mxu1 %v16307_v12 }
 0xe6e   :  { %16078 = vrot.lane.b32.xlu0 %v20379_v50, %s20563_s20  ;;  %v24447_v50 = vld [vmem:[#allocation51_spill] sm:$0xff]  ;;  %20235 = vmatpush3.msra.mxu1 %v16307_v12 }
 0xe72   :  { %16080 = vrot.lane.b32.xlu0 %v20380_v30, %s20563_s20  ;;  %v16097_v30 = vsub.f32 1.0, %v24447_v50 }
 0xe76   :  { %16082 = vrot.lane.b32.xlu0 %v20381_v16, %s20563_s20 }
 0xe7a   :  { %16084 = vrot.lane.b32.xlu0 %v20382_v17, %s20563_s20  ;;  %v16314_v17 = vand.u32 4294901760, %v16313_v56 }
 0xe7c   :  { %20236 = vmatprep.subr.mxu1 %v16314_v17 }
 0xe7d   :  { %20237 = vmatpush3.msra.mxu1 %v16314_v17 }
 0xed6   :  { %v16061_v61 = vpop.permute.xlu1 %16060 }
 0xed7   :  { %v16071_v27 = vadd.f32 %v16061_v61, %v24440_v62 }
 0xed8   :  { %v16059_v11 = vpop.permute.xlu0 %16058 }
 0xed9   :  { %20355 = vtanh.f32 %v16071_v27  ;;  %v16070_v23 = vadd.f32 %v16059_v11, %v24441_v19  ;;  %v16321_v27 = vand.u32 4294901760, %v16320_v37 }
 0xeda   :  { %v16065_v53 = vpop.permute.xlu1 %16064 }
 0xedb   :  { %20357 = vtanh.f32 %v16070_v23  ;;  %v16073_v48 = vadd.f32 %v16065_v53, %v24443_v9  ;;  %20238 = vmatprep.subr.mxu1 %v16321_v27 }
 0xedc   :  { %v16063_v8 = vpop.permute.xlu0 %16062  ;;  %20239 = vmatpush3.msra.mxu1 %v16321_v27 }
 0xedd   :  { %v16072_v2 = vadd.f32 %v16063_v8, %v24442_v0  ;;  %20260 = vmatprep.subr.mxu1 %v24001_v45 }
 0xedf   :  { %20359 = vtanh.f32 %v16072_v2 }
 0xee0   :  { %20361 = vtanh.f32 %v16073_v48  ;;  %v16079_v47 = vpop.permute.xlu0 %16078 }
 0xee1   :  { %v16090_v26 = vmul.f32 %v24445_v32, %v16079_v47 }
 0xee4   :  { %v16081_v31 = vpop.permute.xlu0 %16080 }
 0xee5   :  { %v16091_v7 = vmul.f32 %v24444_v29, %v16081_v31 }
 0xee6   :  { %v20356_v42 = vpop.eup %20355 }
 0xee7   :  { %16104 = vrot.lane.b32.xlu1 %v20356_v42, %s20564_s21 }
 0xee8   :  { %v20358_v44 = vpop.eup %20357  ;;  %v16083_v36 = vpop.permute.xlu0 %16082 }
 0xee9   :  { %v16092_v41 = vmul.f32 %v24446_v5, %v16083_v36 }
 0xeeb   :  { %16102 = vrot.lane.b32.xlu1 %v20358_v44, %s20564_s21 }
 0xeec   :  { %v20360_v59 = vpop.eup %20359  ;;  %v16085_v63 = vpop.permute.xlu0 %16084 }
 0xeed   :  { %v20362_v24 = vpop.eup %20361  ;;  %v16093_v61 = vmul.f32 %v24447_v50, %v16085_v63 }
 0xeef   :  { %16106 = vrot.lane.b32.xlu1 %v20360_v59, %s20564_s21 }
 0xef3   :  { %16108 = vrot.lane.b32.xlu1 %v20362_v24, %s20564_s21 }
 0xf59   :  { %v16105_v15 = vpop.permute.xlu1 %16104 }
 0xf5a   :  { %v16115_v51 = vmul.f32 %v16105_v15, %v16095_v14 }
 0xf5c   :  { %v16119_v18 = vadd.f32 %v16115_v51, %v16091_v7 }
 0xf5d   :  { %v16103_v38 = vpop.permute.xlu1 %16102 }
 0xf5e   :  { %v16114_v28 = vmul.f32 %v16103_v38, %v16094_v34  ;;  %16128 = vrot.lane.b32.xlu1 %v16119_v18, %s20564_s21 }
 0xf60   :  { %v16118_v21 = vadd.f32 %v16114_v28, %v16090_v26 }
 0xf61   :  { %v16107_v54 = vpop.permute.xlu1 %16106 }
 0xf62   :  { %v16116_v58 = vmul.f32 %v16107_v54, %v16096_v55  ;;  %16126 = vrot.lane.b32.xlu0 %v16118_v21, %s20564_s21 }
 0xf64   :  { %v16120_v57 = vadd.f32 %v16116_v58, %v16092_v41 }
 0xf65   :  { %v16109_v16 = vpop.permute.xlu1 %16108 }
 0xf66   :  { %v16117_v62 = vmul.f32 %v16109_v16, %v16097_v30  ;;  %16130 = vrot.lane.b32.xlu0 %v16120_v57, %s20564_s21 }
 0xf68   :  { %v16121_v11 = vadd.f32 %v16117_v62, %v16093_v61 }
 0xf6a   :  { %16132 = vrot.lane.b32.xlu1 %v16121_v11, %s20564_s21 }
 0xfd0   :  { %v16129_v19 = vpop.permute.xlu1 %16128 }
 0xfd1   :  { %16140 = vst.msk [vmem:[#allocation15 + $0x28] sm:$0xff] %vm153_vm0, %v16129_v19  ;;  %v16156_v23 = vsel %vm153_vm0, %v16129_v19, 0 }
 0xfd2   :  { %v24066_v8 = vand.u32 4294901760, %v16156_v23 }
 0xfd4   :  { %v24069_v0 = vsub.f32 %v16156_v23, %v24066_v8  ;;  %v16127_v2 = vpop.permute.xlu0 %16126 }
 0xfd5   :  { %16139 = vst.msk [vmem:[#allocation15 + $0x20] sm:$0xff] %vm153_vm0, %v16127_v2  ;;  %v16154_v53 = vsel %vm153_vm0, %v16127_v2, 0 }
 0xfd6   :  { %v24073_v9 = vand.u32 4294901760, %v16154_v53  ;;  %v16243_v48 = vand.u32 4294901760, %v24069_v0 }
 0xfd8   :  { %v16232_v42 = vsub.f32 %v16154_v53, %v24073_v9  ;;  %20240 = vmatprep.mubr.f32.mxu1 %v24073_v9  ;;  %v16131_v44 = vpop.permute.xlu0 %16130  ;;  %v16244_v31 = vsub.f32 %v24069_v0, %v16243_v48 }
 0xfd9   :  { %16141 = vst.msk [vmem:[#allocation15 + $0x30] sm:$0xff] %vm153_vm0, %v16131_v44  ;;  %v16158_v59 = vsel %vm153_vm0, %v16131_v44, 0  ;;  %20241 = vmatmul.mubr.f32.vlgmr.msra.gmra.mxu1 %v24066_v8 }
 0xfda   :  { %v24081_v24 = vand.u32 4294901760, %v16158_v59  ;;  %20261 = vmatpush3.msra.mxu1 %v24001_v45  ;;  %v16233_v47 = vand.u32 4294901760, %v16232_v42  ;;  %v16245_v1 = vand.u32 4294901760, %v16244_v31 }
 0xfdb   :  { %20262 = vmatprep.subr.mxu1 %v24003_v10 }
 0xfdc   :  { %v16252_v29 = vsub.f32 %v16158_v59, %v24081_v24  ;;  %v16133_v14 = vpop.permute.xlu1 %16132  ;;  %20243 = vmatprep.mubr.f32.mxu1 %v24081_v24  ;;  %20263 = vmatpush3.msra.mxu1 %v24003_v10  ;;  %v16234_v15 = vsub.f32 %v16232_v42, %v16233_v47 }
 0xfdd   :  { %16142 = vst.msk [vmem:[#allocation15 + $0x38] sm:$0xff] %vm153_vm0, %v16133_v14  ;;  %v16160_v7 = vsel %vm153_vm0, %v16133_v14, 0  ;;  %20264 = vmatprep.subr.mxu1 %v24005_v39 }
 0xfde   :  { %v16253_v51 = vand.u32 4294901760, %v16252_v29  ;;  %v16261_v49 = vand.u32 4294901760, %v16160_v7  ;;  %v16235_v43 = vand.u32 4294901760, %v16234_v15  ;;  %20265 = vmatpush3.msra.mxu1 %v24005_v39 }
 0xfdf   :  { %20266 = vmatprep.subr.mxu1 %v24011_v60 }
 0xfe0   :  { %v16262_v22 = vsub.f32 %v16160_v7, %v16261_v49  ;;  %20226 = vmatprep.mubr.f32.mxu0 %v16235_v43  ;;  %20244 = vmatmul.mubr.f32.gmra.mxu1 %v16261_v49  ;;  %v16254_v18 = vsub.f32 %v16252_v29, %v16253_v51 }
 0xfe1   :  { %20227 = vmatmul.mubr.f32.vlgmr.msra.gmra.mxu0 %v16245_v1  ;;  %20268 = vmatprep.mubr.f32.mxu1 %v16233_v47 }
 0xfe2   :  { %v16263_v32 = vand.u32 4294901760, %v16262_v22  ;;  %20267 = vmatpush3.msra.mxu1 %v24011_v60  ;;  %v16255_v34 = vand.u32 4294901760, %v16254_v18  ;;  %20247 = vmatpush3.msra.mxu0 %v24014_v3 }
 0xfe3   :  { %20288 = vmatprep.subr.mxu1 %v24001_v45  ;;  %20248 = vmatprep.subr.mxu0 %v24017_v6 }
 0xfe4   :  { %v16264_v36 = vsub.f32 %v16262_v22, %v16263_v32  ;;  %20229 = vmatprep.mubr.f32.mxu0 %v16255_v34  ;;  %20269 = vmatmul.mubr.f32.vlgmr.msra.gmra.mxu1 %v16243_v48 }
 0xfe5   :  { %20271 = vmatprep.mubr.f32.mxu1 %v16253_v51  ;;  %20289 = vmatpush3.msra.mxu1 %v24001_v45 }
 0xfe6   :  { %v16265_v38 = vand.u32 4294901760, %v16264_v36  ;;  %20290 = vmatprep.subr.mxu1 %v24003_v10  ;;  %20249 = vmatpush3.msra.mxu0 %v24017_v6 }
 0xfe7   :  { %20291 = vmatpush3.msra.mxu1 %v24003_v10  ;;  %20250 = vmatprep.subr.mxu0 %v24020_v33 }
 0xfe8   :  { %20230 = vmatmul.mubr.f32.gmra.mxu0 %v16265_v38  ;;  %20272 = vmatmul.mubr.f32.gmra.mxu1 %v16263_v32 }
 0xfe9   :  { %20292 = vmatprep.subr.mxu1 %v24005_v39  ;;  %20251 = vmatpush3.msra.mxu0 %v24020_v33 }
 0xfea   :  { %20254 = vmatprep.mubr.f32.mxu0 %v16232_v42  ;;  %20293 = vmatpush3.msra.mxu1 %v24005_v39 }
 0xfeb   :  { %20296 = vmatprep.mubr.f32.mxu1 %v24073_v9  ;;  %20252 = vmatprep.subr.mxu0 %v24026_v25 }
 0xfec   :  { %20294 = vmatprep.subr.mxu1 %v24011_v60  ;;  %20253 = vmatpush3.msra.mxu0 %v24026_v25 }
 0xfed   :  { %20295 = vmatpush3.msra.mxu1 %v24011_v60  ;;  %20255 = vmatmul.mubr.f32.vlgmr.msra.gmra.mxu0 %v24069_v0 }
 0xfee   :  { %20274 = vmatprep.subr.mxu0 %v24030_v52  ;;  %20297 = vmatmul.mubr.f32.vlgmr.msra.gmra.mxu1 %v24066_v8 }
 0xfef   :  { %20257 = vmatprep.mubr.f32.mxu0 %v16252_v29  ;;  %20275 = vmatpush3.msra.mxu0 %v24030_v52 }
 0xff0   :  { %20299 = vmatprep.mubr.f32.mxu1 %v24081_v24  ;;  %20276 = vmatprep.subr.mxu0 %v24033_v13 }
 0xff1   :  { %20277 = vmatpush3.msra.mxu0 %v24033_v13 }
 0xff2   :  { %20258 = vmatmul.mubr.f32.gmra.mxu0 %v16262_v22  ;;  %20278 = vmatprep.subr.mxu0 %v24036_v46 }
 0xff3   :  { %20300 = vmatmul.mubr.f32.gmra.mxu1 %v16261_v49  ;;  %20279 = vmatpush3.msra.mxu0 %v24036_v46 }
 0xff4   :  { %20282 = vmatprep.mubr.f32.mxu0 %v24073_v9  ;;  %20280 = vmatprep.subr.mxu0 %v24041_v35 }
 0xff5   :  { %20281 = vmatpush3.msra.mxu0 %v24041_v35 }
 0xff6   :  { %20283 = vmatmul.mubr.f32.vlgmr.msra.gmra.mxu0 %v24066_v8 }
 0xff7   :  { %20285 = vmatprep.mubr.f32.mxu0 %v24081_v24 }
 0xffa   :  { %20286 = vmatmul.mubr.f32.gmra.mxu0 %v16261_v49 }
 0xffb   :  { %20534 = shalt.err (!%p20531_p11)
}
 0xffc   :  { %16794 = dma.vmem_to_hbm [thread:$0]  %s16789_s4, 1024, %s24160_s13, [#allocation5], %s20555_s11, %s20555_s11, %s20556_s15   ;;  %v16815_v28 = vld [vmem:[#allocation2] ss:$0 sm:$0xff]  ;;  %vm16776_vm3 = vcmask 7168  }
0x1099   :  { %v20242_v45 = vpop.f32.mrf.mxu1 }
0x109b   :  { %v16358_v10 = vpop.f32.mrf.mxu1 }
0x10a0   :  { %v20245_v39 = vpop.f32.mrf.mxu1 }
0x10a1   :  { %v20228_v60 = vpop.f32.mrf.mxu0 }
0x10a2   :  { %v16370_v3 = vpop.f32.mrf.mxu1  ;;  %v16248_v46 = vadd.f32 %v20228_v60, %v16815_v28 }
0x10a3   :  { %v16237_v33 = vpop.f32.mrf.mxu0 }
0x10a4   :  { %v20270_v6 = vpop.f32.mrf.mxu1  ;;  %v16238_v21 = vadd.f32 %v16815_v28, %v16237_v33  ;;  %v16365_v54 = vadd.f32 %v20242_v45, %v16248_v46 }
0x10a6   :  { %v16554_v26 = vpop.f32.mrf.mxu1  ;;  %v16359_v41 = vadd.f32 %v16358_v10, %v16238_v21 }
0x10a8   :  { %v20231_v25 = vpop.f32.mrf.mxu0  ;;  %v20273_v52 = vpop.f32.mrf.mxu1 }
0x10a9   :  { %v16268_v35 = vadd.f32 %v20231_v25, %v16815_v28 }
0x10aa   :  { %v16257_v13 = vpop.f32.mrf.mxu0  ;;  %v16570_v55 = vpop.f32.mrf.mxu1 }
0x10ab   :  { %v16258_v20 = vadd.f32 %v16815_v28, %v16257_v13  ;;  %v16377_v12 = vadd.f32 %v20245_v39, %v16268_v35 }
0x10ad   :  { %v20256_v5 = vpop.f32.mrf.mxu0  ;;  %v16371_v50 = vadd.f32 %v16370_v3, %v16258_v20 }
0x10ae   :  { %v16464_v56 = vadd.f32 %v20256_v5, %v16365_v54  ;;  %v20298_v58 = vpop.f32.mrf.mxu1 }
0x10af   :  { %v16456_v40 = vpop.f32.mrf.mxu0 }
0x10b0   :  { %v16457_v4 = vadd.f32 %v16456_v40, %v16359_v41  ;;  %v16563_v30 = vadd.f32 %v20270_v6, %v16464_v56  ;;  %v16754_v16 = vpop.f32.mrf.mxu1 }
0x10b2   :  { %v20259_v63 = vpop.f32.mrf.mxu0  ;;  %v16555_v27 = vadd.f32 %v16554_v26, %v16457_v4 }
0x10b3   :  { %v16478_v57 = vadd.f32 %v20259_v63, %v16377_v12  ;;  %v20301_v0 = vpop.f32.mrf.mxu1 }
0x10b4   :  { %v16470_v37 = vpop.f32.mrf.mxu0 }
0x10b5   :  { %v16471_v61 = vadd.f32 %v16470_v37, %v16371_v50  ;;  %v16579_v8 = vadd.f32 %v20273_v52, %v16478_v57  ;;  %v16766_v24 = vpop.f32.mrf.mxu1 }
0x10b6   :  { %v20284_v17 = vpop.f32.mrf.mxu0 }
0x10b7   :  { %v16668_v62 = vadd.f32 %v20284_v17, %v16563_v30  ;;  %v16571_v48 = vadd.f32 %v16570_v55, %v16471_v61 }
0x10b8   :  { %v16661_v11 = vpop.f32.mrf.mxu0 }
0x10b9   :  { %v16761_v19 = vadd.f32 %v20298_v58, %v16668_v62  ;;  %v16662_v23 = vadd.f32 %v16661_v11, %v16555_v27 }
0x10ba   :  { %v20287_v2 = vpop.f32.mrf.mxu0 }
0x10bb   :  { %16778 = vst.msk [vmem:[%s24159_s12 + $0x8] sm:$0xff] %vm16776_vm3, %v16761_v19  ;;  %v16755_v53 = vadd.f32 %v16754_v16, %v16662_v23  ;;  %v16680_v9 = vadd.f32 %v20287_v2, %v16579_v8 }
0x10bc   :  { %v16673_v42 = vpop.f32.mrf.mxu0 }
0x10bd   :  { %16777 = vst.msk [vmem:[%s24159_s12] sm:$0xff] %vm16776_vm3, %v16755_v53  ;;  %v16773_v44 = vadd.f32 %v20301_v0, %v16680_v9  ;;  %v16674_v59 = vadd.f32 %v16673_v42, %v16571_v48 }
0x10bf   :  { %16780 = vst.msk [vmem:[%s24159_s12 + $0x18] sm:$0xff] %vm16776_vm3, %v16773_v44  ;;  %v16767_v47 = vadd.f32 %v16766_v24, %v16674_v59 }
0x10c1   :  { %16779 = vst.msk [vmem:[%s24159_s12 + $0x10] sm:$0xff] %vm16776_vm3, %v16767_v47 }
0x10c2   :  { %20551 = dma.done.wait [#allocation5], 1024  }
0x10c3   :  { %20552 = vsyncadd [#allocation5], 4294966272 }
0x10c4   :  { %16800 = vsyncpa [#allocation4], 1 }
0x10c5   :  { %16801 = vsyncpa [#allocation7], 1 }
0x10c6   :  { %16802 = vsyncpa [#allocation10], 1 }
0x10c7   :  { %16803 = vsyncpa [#allocation13], 1 }
0x10c8   :  { %16804 = vsyncpa [#allocation5], 1 }

</bundles_post_ra>
